<compile_context>
chip_gen: v7x
topology: tpu7x:2x2x1
jax: 0.10.0
libtpu: 0.0.40
codegen_flags: <defaults>
</compile_context>

<pallas_src>
import functools

import jax
import jax.numpy as jnp
from jax.experimental import pallas as pl
from jax.experimental.pallas import tpu as pltpu


# ----------------------------------------------------------------------------
# Pallas kernel: fused (transposed matmul + per-channel affine + activation)
# ----------------------------------------------------------------------------
def _make_fused_kernel(act):
    def kernel(w_ref, p_ref, sb_ref, o_ref):
        # (C, K) @ (K, Mtile) -> (C, Mtile), f32 accumulation on the MXU.
        acc = jnp.dot(w_ref[...], p_ref[...], preferred_element_type=jnp.float32)
        scale = sb_ref[:, 0:1]            # (C, 1) broadcast along lanes
        shift = sb_ref[:, 1:2]
        y = acc * scale + shift           # folded conv-bias + BatchNorm
        if act == "lrelu":
            y = jnp.where(y > 0, y, 0.2 * y)      # LeakyReLU(0.2)
        elif act == "relu":
            y = jnp.maximum(y, 0.0)
        elif act == "tanh":
            y = jnp.tanh(y)
        o_ref[...] = y

    return kernel


def _round_up(x, m):
    return ((x + m - 1) // m) * m


def fused_matmul_T(w_lhs, patches, sb, act):
    """w_lhs: (C, K), patches: (K, M), sb: (C, 2) -> (C, M) f32 (lane-dense M)."""
    C, K = w_lhs.shape
    M = patches.shape[1]

    if M <= 512:
        # Single full-array block: no (8,128) constraint, no padding, 1 grid step.
        Mp, tile, grid_m = M, M, 1
    else:
        # Exactly 2 lane tiles (each a multiple of 128) -> both v7x TCs get work
        # while keeping per-step grid overhead minimal.
        Mp = _round_up(M, 256)
        tile, grid_m = Mp // 2, 2

    if Mp != M:
        patches = jnp.pad(patches, ((0, 0), (0, Mp - M)))

    w_bf = w_lhs.astype(jnp.bfloat16)
    p_bf = patches.astype(jnp.bfloat16)
    sb_f32 = sb.astype(jnp.float32)

    out = pl.pallas_call(
        _make_fused_kernel(act),
        out_shape=jax.ShapeDtypeStruct((C, Mp), jnp.float32),
        grid=(grid_m,),
        in_specs=[
            pl.BlockSpec((C, K), lambda i: (0, 0)),     # full weight, resident
            pl.BlockSpec((K, tile), lambda i: (0, i)),  # patch columns, tiled over M
            pl.BlockSpec((C, 2), lambda i: (0, 0)),     # packed per-channel scale/shift
        ],
        out_specs=pl.BlockSpec((C, tile), lambda i: (0, i)),
        compiler_params=pltpu.CompilerParams(
            dimension_semantics=("parallel",),
        ),
    )(w_bf, p_bf, sb_f32)

    return out[:, :M] if Mp != M else out


# ----------------------------------------------------------------------------
# Plain-JAX glue: channel-major im2col / dilation / BN folding
# ----------------------------------------------------------------------------
def _im2col_cm(x_cm, kh, kw, stride, pad):
    """x_cm: (C, N, H, W) -> patches (kh*kw*C, N*OH*OW), K ordered [kh, kw, C]."""
    C, N, H, W = x_cm.shape
    xp = jnp.pad(x_cm, ((0, 0), (0, 0), (pad, pad), (pad, pad)))
    Hp, Wp = H + 2 * pad, W + 2 * pad
    OH = (Hp - kh) // stride + 1
    OW = (Wp - kw) // stride + 1
    taps = []
    for i in range(kh):
        for j in range(kw):
            taps.append(xp[:, :, i:i + stride * OH:stride, j:j + stride * OW:stride])
    patches = jnp.stack(taps, axis=0)                    # (kh*kw, C, N, OH, OW)
    return patches.reshape(kh * kw * C, N * OH * OW), (N, OH, OW)


def _dilate_cm(x_cm, s):
    if s == 1:
        return x_cm
    C, N, H, W = x_cm.shape
    y = jnp.zeros((C, N, (H - 1) * s + 1, (W - 1) * s + 1), x_cm.dtype)
    return y.at[:, :, ::s, ::s].set(x_cm)


def conv2d_fused(x_cm, w_oihw, sb, stride, pad, act):
    """Conv2d (PyTorch weight layout (Cout,Cin,KH,KW)) + affine + activation."""
    Cout, Cin, KH, KW = w_oihw.shape
    patches, (N, OH, OW) = _im2col_cm(x_cm.astype(jnp.bfloat16), KH, KW, stride, pad)
    # LHS (Cout, K) with K ordered [KH, KW, Cin] to match patch tap stacking.
    w_lhs = jnp.transpose(w_oihw, (0, 2, 3, 1)).reshape(Cout, KH * KW * Cin)
    y = fused_matmul_T(w_lhs, patches, sb, act)          # (Cout, N*OH*OW)
    return y.reshape(Cout, N, OH, OW)


def convT2d_fused(x_cm, w_iohw, sb, stride, pad, act):
    """ConvTranspose2d (PyTorch weight layout (Cin,Cout,KH,KW)) as dilated conv."""
    Cin, Cout, KH, KW = w_iohw.shape
    xd = _dilate_cm(x_cm, stride)
    w_eq = jnp.transpose(w_iohw[:, :, ::-1, ::-1], (1, 0, 2, 3))  # (Cout,Cin,KH,KW)
    return conv2d_fused(xd, w_eq, sb, 1, KH - 1 - pad, act)


def _bn_fuse(gamma, beta, mean, var, conv_bias, eps=1e-5):
    scale = gamma / jnp.sqrt(var + eps)
    shift = beta + (conv_bias - mean) * scale
    return scale, shift


# ----------------------------------------------------------------------------
# Deterministic parameter init (shapes follow _netG.__init__)
# ----------------------------------------------------------------------------
def init_params(seed=0, in_channels=4, num_actions=18, lookahead=1, ngf=8):
    A = num_actions * lookahead
    layers = [
        # name, kind,   cin,          cout,       k, s, p, bn,    act
        ("en1", "conv",  in_channels,  ngf,        4, 2, 1, True,  "lrelu"),
        ("en2", "conv",  ngf,          2 * ngf,    4, 2, 0, True,  "lrelu"),
        ("en3", "conv",  2 * ngf,      4 * ngf,    4, 2, 1, True,  "lrelu"),
        ("en4", "conv",  4 * ngf,      8 * ngf,    4, 2, 1, True,  "lrelu"),
        ("en5", "conv",  8 * ngf,      8 * ngf,    3, 1, 1, True,  "lrelu"),
        ("en6", "conv",  8 * ngf,      8 * ngf,    3, 1, 1, True,  "lrelu"),
        ("de6", "convT", 8 * ngf + A,  8 * ngf,    3, 1, 1, True,  "relu"),
        ("de5", "convT", 16 * ngf + A, 8 * ngf,    3, 1, 1, True,  "relu"),
        ("de4", "convT", 16 * ngf + A, 4 * ngf,    4, 2, 1, True,  "relu"),
        ("de3", "convT", 8 * ngf + A,  2 * ngf,    4, 2, 1, True,  "relu"),
        ("de2", "convT", 4 * ngf + A,  ngf,        4, 2, 0, True,  "relu"),
        ("de1", "convT", ngf + A,      lookahead,  4, 2, 1, False, "tanh"),
    ]
    base = jax.random.PRNGKey(seed)
    params = {}
    for idx, (name, kind, cin, cout, k, s, p, bn, act) in enumerate(layers):
        kk = jax.random.fold_in(base, idx)
        kw_, kb_, kg_, kbe_, km_, kv_ = jax.random.split(kk, 6)
        wshape = (cout, cin, k, k) if kind == "conv" else (cin, cout, k, k)
        d = dict(
            kind=kind, s=s, p=p, bn=bn, act=act,
            w=0.05 * jax.random.normal(kw_, wshape, jnp.float32),
            b=0.01 * jax.random.normal(kb_, (cout,), jnp.float32),
        )
        if bn:
            d["gamma"] = 1.0 + 0.1 * jax.random.normal(kg_, (cout,), jnp.float32)
            d["beta"] = 0.05 * jax.random.normal(kbe_, (cout,), jnp.float32)
            d["mean"] = 0.05 * jax.random.normal(km_, (cout,), jnp.float32)
            d["var"] = jax.random.uniform(kv_, (cout,), jnp.float32, 0.5, 1.5)
        params[name] = d
    return params


# ----------------------------------------------------------------------------
# Forward pass (matches _netG.forward); public interface is NCHW like PyTorch.
# ----------------------------------------------------------------------------
def netG_forward(params, x_nchw, a):
    x = jnp.transpose(x_nchw, (1, 0, 2, 3)).astype(jnp.float32)   # NCHW -> (C,N,H,W)
    a_cm = a.astype(jnp.float32).T                                # (A, N)

    def run(name, inp_cm):
        p = params[name]
        if p["bn"]:
            scale, shift = _bn_fuse(p["gamma"], p["beta"], p["mean"], p["var"], p["b"])
        else:
            scale, shift = jnp.ones_like(p["b"]), p["b"]
        sb = jnp.stack([scale, shift], axis=1)                    # packed (Cout, 2)
        fn = conv2d_fused if p["kind"] == "conv" else convT2d_fused
        return fn(inp_cm, p["w"], sb, p["s"], p["p"], p["act"])

    def a_tile(ref_cm):
        # PyTorch: a.repeat(H, W, 1, 1).permute(2, 3, 0, 1) == per-pixel copy of
        # a[n, c]; in channel-major that is a broadcast of a.T over (H, W).
        _, N, H, W = ref_cm.shape
        return jnp.broadcast_to(a_cm[:, :, None, None], (a_cm.shape[0], N, H, W))

    x1 = run("en1", x)
    x2 = run("en2", x1)
    x3 = run("en3", x2)
    x4 = run("en4", x3)
    x5 = run("en5", x4)
    x6 = run("en6", x5)

    dx5 = run("de6", jnp.concatenate([x6, a_tile(x6)], axis=0))
    dx4 = run("de5", jnp.concatenate([dx5, x5, a_tile(dx5)], axis=0))
    dx3 = run("de4", jnp.concatenate([dx4, x4, a_tile(dx4)], axis=0))
    dx2 = run("de3", jnp.concatenate([dx3, x3, a_tile(dx3)], axis=0))
    dx1 = run("de2", jnp.concatenate([dx2, x2, a_tile(dx2)], axis=0))
    out = run("de1", jnp.concatenate([dx1, a_tile(dx1)], axis=0))

    return jnp.transpose(out, (1, 0, 2, 3))                       # (C,N,H,W) -> NCHW


# ----------------------------------------------------------------------------
if __name__ == "__main__":
    IN_CH, NUM_ACTIONS, LOOKAHEAD, NGF = 4, 18, 1, 8
    N, H, W = 2, 36, 36          # 36x36 propagates cleanly through the U-Net

    params = init_params(seed=0, in_channels=IN_CH, num_actions=NUM_ACTIONS,
                         lookahead=LOOKAHEAD, ngf=NGF)

    kx, ka = jax.random.split(jax.random.PRNGKey(0))
    x = jax.random.normal(kx, (N, IN_CH, H, W), jnp.float32)
    a = jax.random.normal(ka, (N, NUM_ACTIONS * LOOKAHEAD), jnp.float32)

    fwd = jax.jit(functools.partial(netG_forward, params))
    out = fwd(x, a)
    jax.block_until_ready(out)

    assert out.shape == (N, LOOKAHEAD, H, W), out.shape
    assert bool(jnp.all(jnp.isfinite(out)))
    print("KERNEL_OK")
</pallas_src>

<mosaic_0001>
module attributes {stable_mosaic.version = 11 : i64} {
  func.func @kernel(%arg0: i32, %arg1: memref<8x64xbf16, #tpu.memory_space<vmem>>, %arg2: memref<64x384xbf16, #tpu.memory_space<vmem>>, %arg3: memref<8x2xf32, #tpu.memory_space<vmem>>, %arg4: memref<8x384xf32, #tpu.memory_space<vmem>>) attributes {dimension_semantics = [#tpu.dimension_semantics<parallel>], iteration_bounds = array<i64: 2>, scalar_prefetch = 0 : i64, scratch_operands = 0 : i64, tpu.core_type = #tpu.core_type<tc>, window_params = [{pipeline_mode = #tpu.pipeline_mode<synchronous>, transform_indices = @transform_0, window_bounds = array<i64: 8, 64>}, {transform_indices = @transform_1, window_bounds = array<i64: 64, 384>}, {pipeline_mode = #tpu.pipeline_mode<synchronous>, transform_indices = @transform_2, window_bounds = array<i64: 8, 2>}, {transform_indices = @transform_3, window_bounds = array<i64: 8, 384>}]} {
    %c0 = arith.constant 0 : index
    %c0_0 = arith.constant 0 : index
    %0 = vector.load %arg1[%c0, %c0_0] : memref<8x64xbf16, #tpu.memory_space<vmem>>, vector<8x64xbf16>
    %c0_1 = arith.constant 0 : index
    %c0_2 = arith.constant 0 : index
    %1 = vector.load %arg2[%c0_1, %c0_2] : memref<64x384xbf16, #tpu.memory_space<vmem>>, vector<64x384xbf16>
    %cst = arith.constant dense<0.000000e+00> : vector<8x384xf32>
    %2 = tpu.matmul %0, %1, %cst {dimension_numbers = #tpu.dot_dimension_numbers<[1], [0], [0], [1], [0, 0, 1, 1], [], []>} : vector<8x64xbf16>, vector<64x384xbf16>, vector<8x384xf32> -> vector<8x384xf32>
    %c0_3 = arith.constant 0 : index
    %c0_4 = arith.constant 0 : index
    %3 = vector.load %arg3[%c0_3, %c0_4] : memref<8x2xf32, #tpu.memory_space<vmem>>, vector<8x1xf32>
    %c0_5 = arith.constant 0 : index
    %c1 = arith.constant 1 : index
    %4 = vector.load %arg3[%c0_5, %c1] : memref<8x2xf32, #tpu.memory_space<vmem>>, vector<8x1xf32>
    %5 = vector.broadcast %3 : vector<8x1xf32> to vector<8x384xf32>
    %6 = arith.mulf %2, %5 : vector<8x384xf32>
    %7 = vector.broadcast %4 : vector<8x1xf32> to vector<8x384xf32>
    %8 = arith.addf %6, %7 : vector<8x384xf32>
    %cst_6 = arith.constant 0.000000e+00 : f32
    %9 = vector.broadcast %cst_6 : f32 to vector<8x384xf32>
    %10 = arith.cmpf ogt, %8, %9 : vector<8x384xf32>
    %cst_7 = arith.constant 2.000000e-01 : f32
    %11 = vector.broadcast %cst_7 : f32 to vector<8x384xf32>
    %12 = arith.mulf %11, %8 : vector<8x384xf32>
    %13 = arith.select %10, %8, %12 : vector<8x384xi1>, vector<8x384xf32>
    %c0_8 = arith.constant 0 : index
    %c0_9 = arith.constant 0 : index
    %14 = vector.load %arg4[%c0_8, %c0_9] : memref<8x384xf32, #tpu.memory_space<vmem>>, vector<8x384xf32>
    tpu.vector_store %arg4[%c0_8, %c0_9], %13 {strides = array<i32>} : memref<8x384xf32, #tpu.memory_space<vmem>>, vector<8x384xf32>,
    return
  }
  func.func @transform_0(%arg0: i32) -> (i32, i32) {
    %c0_i32 = arith.constant 0 : i32
    %c0_i32_0 = arith.constant 0 : i32
    %c0_i32_1 = arith.constant 0 : i32
    return %c0_i32, %c0_i32_0 : i32, i32
  }
  func.func @transform_1(%arg0: i32) -> (i32, i32) {
    %c0_i32 = arith.constant 0 : i32
    %c0_i32_0 = arith.constant 0 : i32
    return %c0_i32, %arg0 : i32, i32
  }
  func.func @transform_2(%arg0: i32) -> (i32, i32) {
    %c0_i32 = arith.constant 0 : i32
    %c0_i32_0 = arith.constant 0 : i32
    %c0_i32_1 = arith.constant 0 : i32
    return %c0_i32, %c0_i32_0 : i32, i32
  }
  func.func @transform_3(%arg0: i32) -> (i32, i32) {
    %c0_i32 = arith.constant 0 : i32
    %c0_i32_0 = arith.constant 0 : i32
    return %c0_i32, %arg0 : i32, i32
  }
}

module attributes {stable_mosaic.version = 11 : i64} {
  func.func @kernel(%arg0: i32, %arg1: memref<16x128xbf16, #tpu.memory_space<vmem>>, %arg2: memref<128x128xbf16, #tpu.memory_space<vmem>>, %arg3: memref<16x2xf32, #tpu.memory_space<vmem>>, %arg4: memref<16x128xf32, #tpu.memory_space<vmem>>) attributes {dimension_semantics = [#tpu.dimension_semantics<parallel>], iteration_bounds = array<i64: 1>, scalar_prefetch = 0 : i64, scratch_operands = 0 : i64, tpu.core_type = #tpu.core_type<tc>, window_params = [{pipeline_mode = #tpu.pipeline_mode<synchronous>, transform_indices = @transform_0, window_bounds = array<i64: 16, 128>}, {transform_indices = @transform_1, window_bounds = array<i64: 128, 128>}, {pipeline_mode = #tpu.pipeline_mode<synchronous>, transform_indices = @transform_2, window_bounds = array<i64: 16, 2>}, {transform_indices = @transform_3, window_bounds = array<i64: 16, 128>}]} {
    %c0 = arith.constant 0 : index
    %c0_0 = arith.constant 0 : index
    %0 = vector.load %arg1[%c0, %c0_0] : memref<16x128xbf16, #tpu.memory_space<vmem>>, vector<16x128xbf16>
    %c0_1 = arith.constant 0 : index
    %c0_2 = arith.constant 0 : index
    %1 = vector.load %arg2[%c0_1, %c0_2] : memref<128x128xbf16, #tpu.memory_space<vmem>>, vector<128x128xbf16>
    %cst = arith.constant dense<0.000000e+00> : vector<16x128xf32>
    %2 = tpu.matmul %0, %1, %cst {dimension_numbers = #tpu.dot_dimension_numbers<[1], [0], [0], [1], [0, 0, 1, 1], [], []>} : vector<16x128xbf16>, vector<128x128xbf16>, vector<16x128xf32> -> vector<16x128xf32>
    %c0_3 = arith.constant 0 : index
    %c0_4 = arith.constant 0 : index
    %3 = vector.load %arg3[%c0_3, %c0_4] : memref<16x2xf32, #tpu.memory_space<vmem>>, vector<16x1xf32>
    %c0_5 = arith.constant 0 : index
    %c1 = arith.constant 1 : index
    %4 = vector.load %arg3[%c0_5, %c1] : memref<16x2xf32, #tpu.memory_space<vmem>>, vector<16x1xf32>
    %5 = vector.broadcast %3 : vector<16x1xf32> to vector<16x128xf32>
    %6 = arith.mulf %2, %5 : vector<16x128xf32>
    %7 = vector.broadcast %4 : vector<16x1xf32> to vector<16x128xf32>
    %8 = arith.addf %6, %7 : vector<16x128xf32>
    %cst_6 = arith.constant 0.000000e+00 : f32
    %9 = vector.broadcast %cst_6 : f32 to vector<16x128xf32>
    %10 = arith.cmpf ogt, %8, %9 : vector<16x128xf32>
    %cst_7 = arith.constant 2.000000e-01 : f32
    %11 = vector.broadcast %cst_7 : f32 to vector<16x128xf32>
    %12 = arith.mulf %11, %8 : vector<16x128xf32>
    %13 = arith.select %10, %8, %12 : vector<16x128xi1>, vector<16x128xf32>
    %c0_8 = arith.constant 0 : index
    %c0_9 = arith.constant 0 : index
    %14 = vector.load %arg4[%c0_8, %c0_9] : memref<16x128xf32, #tpu.memory_space<vmem>>, vector<16x128xf32>
    tpu.vector_store %arg4[%c0_8, %c0_9], %13 {strides = array<i32>} : memref<16x128xf32, #tpu.memory_space<vmem>>, vector<16x128xf32>,
    return
  }
  func.func @transform_0(%arg0: i32) -> (i32, i32) {
    %c0_i32 = arith.constant 0 : i32
    %c0_i32_0 = arith.constant 0 : i32
    %c0_i32_1 = arith.constant 0 : i32
    return %c0_i32, %c0_i32_0 : i32, i32
  }
  func.func @transform_1(%arg0: i32) -> (i32, i32) {
    %c0_i32 = arith.constant 0 : i32
    %c0_i32_0 = arith.constant 0 : i32
    return %c0_i32, %arg0 : i32, i32
  }
  func.func @transform_2(%arg0: i32) -> (i32, i32) {
    %c0_i32 = arith.constant 0 : i32
    %c0_i32_0 = arith.constant 0 : i32
    %c0_i32_1 = arith.constant 0 : i32
    return %c0_i32, %c0_i32_0 : i32, i32
  }
  func.func @transform_3(%arg0: i32) -> (i32, i32) {
    %c0_i32 = arith.constant 0 : i32
    %c0_i32_0 = arith.constant 0 : i32
    return %c0_i32, %arg0 : i32, i32
  }
}

module attributes {stable_mosaic.version = 11 : i64} {
  func.func @kernel(%arg0: i32, %arg1: memref<32x256xbf16, #tpu.memory_space<vmem>>, %arg2: memref<256x32xbf16, #tpu.memory_space<vmem>>, %arg3: memref<32x2xf32, #tpu.memory_space<vmem>>, %arg4: memref<32x32xf32, #tpu.memory_space<vmem>>) attributes {dimension_semantics = [#tpu.dimension_semantics<parallel>], iteration_bounds = array<i64: 1>, scalar_prefetch = 0 : i64, scratch_operands = 0 : i64, tpu.core_type = #tpu.core_type<tc>, window_params = [{pipeline_mode = #tpu.pipeline_mode<synchronous>, transform_indices = @transform_0, window_bounds = array<i64: 32, 256>}, {transform_indices = @transform_1, window_bounds = array<i64: 256, 32>}, {pipeline_mode = #tpu.pipeline_mode<synchronous>, transform_indices = @transform_2, window_bounds = array<i64: 32, 2>}, {transform_indices = @transform_3, window_bounds = array<i64: 32, 32>}]} {
    %c0 = arith.constant 0 : index
    %c0_0 = arith.constant 0 : index
    %0 = vector.load %arg1[%c0, %c0_0] : memref<32x256xbf16, #tpu.memory_space<vmem>>, vector<32x256xbf16>
    %c0_1 = arith.constant 0 : index
    %c0_2 = arith.constant 0 : index
    %1 = vector.load %arg2[%c0_1, %c0_2] : memref<256x32xbf16, #tpu.memory_space<vmem>>, vector<256x32xbf16>
    %cst = arith.constant dense<0.000000e+00> : vector<32x32xf32>
    %2 = tpu.matmul %0, %1, %cst {dimension_numbers = #tpu.dot_dimension_numbers<[1], [0], [0], [1], [0, 0, 1, 1], [], []>} : vector<32x256xbf16>, vector<256x32xbf16>, vector<32x32xf32> -> vector<32x32xf32>
    %c0_3 = arith.constant 0 : index
    %c0_4 = arith.constant 0 : index
    %3 = vector.load %arg3[%c0_3, %c0_4] : memref<32x2xf32, #tpu.memory_space<vmem>>, vector<32x1xf32>
    %c0_5 = arith.constant 0 : index
    %c1 = arith.constant 1 : index
    %4 = vector.load %arg3[%c0_5, %c1] : memref<32x2xf32, #tpu.memory_space<vmem>>, vector<32x1xf32>
    %5 = vector.broadcast %3 : vector<32x1xf32> to vector<32x32xf32>
    %6 = arith.mulf %2, %5 : vector<32x32xf32>
    %7 = vector.broadcast %4 : vector<32x1xf32> to vector<32x32xf32>
    %8 = arith.addf %6, %7 : vector<32x32xf32>
    %cst_6 = arith.constant 0.000000e+00 : f32
    %9 = vector.broadcast %cst_6 : f32 to vector<32x32xf32>
    %10 = arith.cmpf ogt, %8, %9 : vector<32x32xf32>
    %cst_7 = arith.constant 2.000000e-01 : f32
    %11 = vector.broadcast %cst_7 : f32 to vector<32x32xf32>
    %12 = arith.mulf %11, %8 : vector<32x32xf32>
    %13 = arith.select %10, %8, %12 : vector<32x32xi1>, vector<32x32xf32>
    %c0_8 = arith.constant 0 : index
    %c0_9 = arith.constant 0 : index
    %14 = vector.load %arg4[%c0_8, %c0_9] : memref<32x32xf32, #tpu.memory_space<vmem>>, vector<32x32xf32>
    tpu.vector_store %arg4[%c0_8, %c0_9], %13 {strides = array<i32>} : memref<32x32xf32, #tpu.memory_space<vmem>>, vector<32x32xf32>,
    return
  }
  func.func @transform_0(%arg0: i32) -> (i32, i32) {
    %c0_i32 = arith.constant 0 : i32
    %c0_i32_0 = arith.constant 0 : i32
    %c0_i32_1 = arith.constant 0 : i32
    return %c0_i32, %c0_i32_0 : i32, i32
  }
  func.func @transform_1(%arg0: i32) -> (i32, i32) {
    %c0_i32 = arith.constant 0 : i32
    %c0_i32_0 = arith.constant 0 : i32
    return %c0_i32, %arg0 : i32, i32
  }
  func.func @transform_2(%arg0: i32) -> (i32, i32) {
    %c0_i32 = arith.constant 0 : i32
    %c0_i32_0 = arith.constant 0 : i32
    %c0_i32_1 = arith.constant 0 : i32
    return %c0_i32, %c0_i32_0 : i32, i32
  }
  func.func @transform_3(%arg0: i32) -> (i32, i32) {
    %c0_i32 = arith.constant 0 : i32
    %c0_i32_0 = arith.constant 0 : i32
    return %c0_i32, %arg0 : i32, i32
  }
}

module attributes {stable_mosaic.version = 11 : i64} {
  func.func @kernel(%arg0: i32, %arg1: memref<64x512xbf16, #tpu.memory_space<vmem>>, %arg2: memref<512x8xbf16, #tpu.memory_space<vmem>>, %arg3: memref<64x2xf32, #tpu.memory_space<vmem>>, %arg4: memref<64x8xf32, #tpu.memory_space<vmem>>) attributes {dimension_semantics = [#tpu.dimension_semantics<parallel>], iteration_bounds = array<i64: 1>, scalar_prefetch = 0 : i64, scratch_operands = 0 : i64, tpu.core_type = #tpu.core_type<tc>, window_params = [{pipeline_mode = #tpu.pipeline_mode<synchronous>, transform_indices = @transform_0, window_bounds = array<i64: 64, 512>}, {transform_indices = @transform_1, window_bounds = array<i64: 512, 8>}, {pipeline_mode = #tpu.pipeline_mode<synchronous>, transform_indices = @transform_2, window_bounds = array<i64: 64, 2>}, {transform_indices = @transform_3, window_bounds = array<i64: 64, 8>}]} {
    %c0 = arith.constant 0 : index
    %c0_0 = arith.constant 0 : index
    %0 = vector.load %arg1[%c0, %c0_0] : memref<64x512xbf16, #tpu.memory_space<vmem>>, vector<64x512xbf16>
    %c0_1 = arith.constant 0 : index
    %c0_2 = arith.constant 0 : index
    %1 = vector.load %arg2[%c0_1, %c0_2] : memref<512x8xbf16, #tpu.memory_space<vmem>>, vector<512x8xbf16>
    %cst = arith.constant dense<0.000000e+00> : vector<64x8xf32>
    %2 = tpu.matmul %0, %1, %cst {dimension_numbers = #tpu.dot_dimension_numbers<[1], [0], [0], [1], [0, 0, 1, 1], [], []>} : vector<64x512xbf16>, vector<512x8xbf16>, vector<64x8xf32> -> vector<64x8xf32>
    %c0_3 = arith.constant 0 : index
    %c0_4 = arith.constant 0 : index
    %3 = vector.load %arg3[%c0_3, %c0_4] : memref<64x2xf32, #tpu.memory_space<vmem>>, vector<64x1xf32>
    %c0_5 = arith.constant 0 : index
    %c1 = arith.constant 1 : index
    %4 = vector.load %arg3[%c0_5, %c1] : memref<64x2xf32, #tpu.memory_space<vmem>>, vector<64x1xf32>
    %5 = vector.broadcast %3 : vector<64x1xf32> to vector<64x8xf32>
    %6 = arith.mulf %2, %5 : vector<64x8xf32>
    %7 = vector.broadcast %4 : vector<64x1xf32> to vector<64x8xf32>
    %8 = arith.addf %6, %7 : vector<64x8xf32>
    %cst_6 = arith.constant 0.000000e+00 : f32
    %9 = vector.broadcast %cst_6 : f32 to vector<64x8xf32>
    %10 = arith.cmpf ogt, %8, %9 : vector<64x8xf32>
    %cst_7 = arith.constant 2.000000e-01 : f32
    %11 = vector.broadcast %cst_7 : f32 to vector<64x8xf32>
    %12 = arith.mulf %11, %8 : vector<64x8xf32>
    %13 = arith.select %10, %8, %12 : vector<64x8xi1>, vector<64x8xf32>
    %c0_8 = arith.constant 0 : index
    %c0_9 = arith.constant 0 : index
    %14 = vector.load %arg4[%c0_8, %c0_9] : memref<64x8xf32, #tpu.memory_space<vmem>>, vector<64x8xf32>
    tpu.vector_store %arg4[%c0_8, %c0_9], %13 {strides = array<i32>} : memref<64x8xf32, #tpu.memory_space<vmem>>, vector<64x8xf32>,
    return
  }
  func.func @transform_0(%arg0: i32) -> (i32, i32) {
    %c0_i32 = arith.constant 0 : i32
    %c0_i32_0 = arith.constant 0 : i32
    %c0_i32_1 = arith.constant 0 : i32
    return %c0_i32, %c0_i32_0 : i32, i32
  }
  func.func @transform_1(%arg0: i32) -> (i32, i32) {
    %c0_i32 = arith.constant 0 : i32
    %c0_i32_0 = arith.constant 0 : i32
    return %c0_i32, %arg0 : i32, i32
  }
  func.func @transform_2(%arg0: i32) -> (i32, i32) {
    %c0_i32 = arith.constant 0 : i32
    %c0_i32_0 = arith.constant 0 : i32
    %c0_i32_1 = arith.constant 0 : i32
    return %c0_i32, %c0_i32_0 : i32, i32
  }
  func.func @transform_3(%arg0: i32) -> (i32, i32) {
    %c0_i32 = arith.constant 0 : i32
    %c0_i32_0 = arith.constant 0 : i32
    return %c0_i32, %arg0 : i32, i32
  }
}

module attributes {stable_mosaic.version = 11 : i64} {
  func.func @kernel(%arg0: i32, %arg1: memref<64x576xbf16, #tpu.memory_space<vmem>>, %arg2: memref<576x8xbf16, #tpu.memory_space<vmem>>, %arg3: memref<64x2xf32, #tpu.memory_space<vmem>>, %arg4: memref<64x8xf32, #tpu.memory_space<vmem>>) attributes {dimension_semantics = [#tpu.dimension_semantics<parallel>], iteration_bounds = array<i64: 1>, scalar_prefetch = 0 : i64, scratch_operands = 0 : i64, tpu.core_type = #tpu.core_type<tc>, window_params = [{pipeline_mode = #tpu.pipeline_mode<synchronous>, transform_indices = @transform_0, window_bounds = array<i64: 64, 576>}, {transform_indices = @transform_1, window_bounds = array<i64: 576, 8>}, {pipeline_mode = #tpu.pipeline_mode<synchronous>, transform_indices = @transform_2, window_bounds = array<i64: 64, 2>}, {transform_indices = @transform_3, window_bounds = array<i64: 64, 8>}]} {
    %c0 = arith.constant 0 : index
    %c0_0 = arith.constant 0 : index
    %0 = vector.load %arg1[%c0, %c0_0] : memref<64x576xbf16, #tpu.memory_space<vmem>>, vector<64x576xbf16>
    %c0_1 = arith.constant 0 : index
    %c0_2 = arith.constant 0 : index
    %1 = vector.load %arg2[%c0_1, %c0_2] : memref<576x8xbf16, #tpu.memory_space<vmem>>, vector<576x8xbf16>
    %cst = arith.constant dense<0.000000e+00> : vector<64x8xf32>
    %2 = tpu.matmul %0, %1, %cst {dimension_numbers = #tpu.dot_dimension_numbers<[1], [0], [0], [1], [0, 0, 1, 1], [], []>} : vector<64x576xbf16>, vector<576x8xbf16>, vector<64x8xf32> -> vector<64x8xf32>
    %c0_3 = arith.constant 0 : index
    %c0_4 = arith.constant 0 : index
    %3 = vector.load %arg3[%c0_3, %c0_4] : memref<64x2xf32, #tpu.memory_space<vmem>>, vector<64x1xf32>
    %c0_5 = arith.constant 0 : index
    %c1 = arith.constant 1 : index
    %4 = vector.load %arg3[%c0_5, %c1] : memref<64x2xf32, #tpu.memory_space<vmem>>, vector<64x1xf32>
    %5 = vector.broadcast %3 : vector<64x1xf32> to vector<64x8xf32>
    %6 = arith.mulf %2, %5 : vector<64x8xf32>
    %7 = vector.broadcast %4 : vector<64x1xf32> to vector<64x8xf32>
    %8 = arith.addf %6, %7 : vector<64x8xf32>
    %cst_6 = arith.constant 0.000000e+00 : f32
    %9 = vector.broadcast %cst_6 : f32 to vector<64x8xf32>
    %10 = arith.cmpf ogt, %8, %9 : vector<64x8xf32>
    %cst_7 = arith.constant 2.000000e-01 : f32
    %11 = vector.broadcast %cst_7 : f32 to vector<64x8xf32>
    %12 = arith.mulf %11, %8 : vector<64x8xf32>
    %13 = arith.select %10, %8, %12 : vector<64x8xi1>, vector<64x8xf32>
    %c0_8 = arith.constant 0 : index
    %c0_9 = arith.constant 0 : index
    %14 = vector.load %arg4[%c0_8, %c0_9] : memref<64x8xf32, #tpu.memory_space<vmem>>, vector<64x8xf32>
    tpu.vector_store %arg4[%c0_8, %c0_9], %13 {strides = array<i32>} : memref<64x8xf32, #tpu.memory_space<vmem>>, vector<64x8xf32>,
    return
  }
  func.func @transform_0(%arg0: i32) -> (i32, i32) {
    %c0_i32 = arith.constant 0 : i32
    %c0_i32_0 = arith.constant 0 : i32
    %c0_i32_1 = arith.constant 0 : i32
    return %c0_i32, %c0_i32_0 : i32, i32
  }
  func.func @transform_1(%arg0: i32) -> (i32, i32) {
    %c0_i32 = arith.constant 0 : i32
    %c0_i32_0 = arith.constant 0 : i32
    return %c0_i32, %arg0 : i32, i32
  }
  func.func @transform_2(%arg0: i32) -> (i32, i32) {
    %c0_i32 = arith.constant 0 : i32
    %c0_i32_0 = arith.constant 0 : i32
    %c0_i32_1 = arith.constant 0 : i32
    return %c0_i32, %c0_i32_0 : i32, i32
  }
  func.func @transform_3(%arg0: i32) -> (i32, i32) {
    %c0_i32 = arith.constant 0 : i32
    %c0_i32_0 = arith.constant 0 : i32
    return %c0_i32, %arg0 : i32, i32
  }
}

module attributes {stable_mosaic.version = 11 : i64} {
  func.func @kernel(%arg0: i32, %arg1: memref<64x738xbf16, #tpu.memory_space<vmem>>, %arg2: memref<738x8xbf16, #tpu.memory_space<vmem>>, %arg3: memref<64x2xf32, #tpu.memory_space<vmem>>, %arg4: memref<64x8xf32, #tpu.memory_space<vmem>>) attributes {dimension_semantics = [#tpu.dimension_semantics<parallel>], iteration_bounds = array<i64: 1>, scalar_prefetch = 0 : i64, scratch_operands = 0 : i64, tpu.core_type = #tpu.core_type<tc>, window_params = [{pipeline_mode = #tpu.pipeline_mode<synchronous>, transform_indices = @transform_0, window_bounds = array<i64: 64, 738>}, {transform_indices = @transform_1, window_bounds = array<i64: 738, 8>}, {pipeline_mode = #tpu.pipeline_mode<synchronous>, transform_indices = @transform_2, window_bounds = array<i64: 64, 2>}, {transform_indices = @transform_3, window_bounds = array<i64: 64, 8>}]} {
    %c0 = arith.constant 0 : index
    %c0_0 = arith.constant 0 : index
    %0 = vector.load %arg1[%c0, %c0_0] : memref<64x738xbf16, #tpu.memory_space<vmem>>, vector<64x738xbf16>
    %c0_1 = arith.constant 0 : index
    %c0_2 = arith.constant 0 : index
    %1 = vector.load %arg2[%c0_1, %c0_2] : memref<738x8xbf16, #tpu.memory_space<vmem>>, vector<738x8xbf16>
    %cst = arith.constant dense<0.000000e+00> : vector<64x8xf32>
    %2 = tpu.matmul %0, %1, %cst {dimension_numbers = #tpu.dot_dimension_numbers<[1], [0], [0], [1], [0, 0, 1, 1], [], []>} : vector<64x738xbf16>, vector<738x8xbf16>, vector<64x8xf32> -> vector<64x8xf32>
    %c0_3 = arith.constant 0 : index
    %c0_4 = arith.constant 0 : index
    %3 = vector.load %arg3[%c0_3, %c0_4] : memref<64x2xf32, #tpu.memory_space<vmem>>, vector<64x1xf32>
    %c0_5 = arith.constant 0 : index
    %c1 = arith.constant 1 : index
    %4 = vector.load %arg3[%c0_5, %c1] : memref<64x2xf32, #tpu.memory_space<vmem>>, vector<64x1xf32>
    %5 = vector.broadcast %3 : vector<64x1xf32> to vector<64x8xf32>
    %6 = arith.mulf %2, %5 : vector<64x8xf32>
    %7 = vector.broadcast %4 : vector<64x1xf32> to vector<64x8xf32>
    %8 = arith.addf %6, %7 : vector<64x8xf32>
    %cst_6 = arith.constant 0.000000e+00 : f32
    %9 = vector.broadcast %cst_6 : f32 to vector<64x8xf32>
    %10 = arith.maximumf %8, %9 : vector<64x8xf32>
    %c0_7 = arith.constant 0 : index
    %c0_8 = arith.constant 0 : index
    %11 = vector.load %arg4[%c0_7, %c0_8] : memref<64x8xf32, #tpu.memory_space<vmem>>, vector<64x8xf32>
    tpu.vector_store %arg4[%c0_7, %c0_8], %10 {strides = array<i32>} : memref<64x8xf32, #tpu.memory_space<vmem>>, vector<64x8xf32>,
    return
  }
  func.func @transform_0(%arg0: i32) -> (i32, i32) {
    %c0_i32 = arith.constant 0 : i32
    %c0_i32_0 = arith.constant 0 : i32
    %c0_i32_1 = arith.constant 0 : i32
    return %c0_i32, %c0_i32_0 : i32, i32
  }
  func.func @transform_1(%arg0: i32) -> (i32, i32) {
    %c0_i32 = arith.constant 0 : i32
    %c0_i32_0 = arith.constant 0 : i32
    return %c0_i32, %arg0 : i32, i32
  }
  func.func @transform_2(%arg0: i32) -> (i32, i32) {
    %c0_i32 = arith.constant 0 : i32
    %c0_i32_0 = arith.constant 0 : i32
    %c0_i32_1 = arith.constant 0 : i32
    return %c0_i32, %c0_i32_0 : i32, i32
  }
  func.func @transform_3(%arg0: i32) -> (i32, i32) {
    %c0_i32 = arith.constant 0 : i32
    %c0_i32_0 = arith.constant 0 : i32
    return %c0_i32, %arg0 : i32, i32
  }
}

module attributes {stable_mosaic.version = 11 : i64} {
  func.func @kernel(%arg0: i32, %arg1: memref<64x1314xbf16, #tpu.memory_space<vmem>>, %arg2: memref<1314x8xbf16, #tpu.memory_space<vmem>>, %arg3: memref<64x2xf32, #tpu.memory_space<vmem>>, %arg4: memref<64x8xf32, #tpu.memory_space<vmem>>) attributes {dimension_semantics = [#tpu.dimension_semantics<parallel>], iteration_bounds = array<i64: 1>, scalar_prefetch = 0 : i64, scratch_operands = 0 : i64, tpu.core_type = #tpu.core_type<tc>, window_params = [{pipeline_mode = #tpu.pipeline_mode<synchronous>, transform_indices = @transform_0, window_bounds = array<i64: 64, 1314>}, {transform_indices = @transform_1, window_bounds = array<i64: 1314, 8>}, {pipeline_mode = #tpu.pipeline_mode<synchronous>, transform_indices = @transform_2, window_bounds = array<i64: 64, 2>}, {transform_indices = @transform_3, window_bounds = array<i64: 64, 8>}]} {
    %c0 = arith.constant 0 : index
    %c0_0 = arith.constant 0 : index
    %0 = vector.load %arg1[%c0, %c0_0] : memref<64x1314xbf16, #tpu.memory_space<vmem>>, vector<64x1314xbf16>
    %c0_1 = arith.constant 0 : index
    %c0_2 = arith.constant 0 : index
    %1 = vector.load %arg2[%c0_1, %c0_2] : memref<1314x8xbf16, #tpu.memory_space<vmem>>, vector<1314x8xbf16>
    %cst = arith.constant dense<0.000000e+00> : vector<64x8xf32>
    %2 = tpu.matmul %0, %1, %cst {dimension_numbers = #tpu.dot_dimension_numbers<[1], [0], [0], [1], [0, 0, 1, 1], [], []>} : vector<64x1314xbf16>, vector<1314x8xbf16>, vector<64x8xf32> -> vector<64x8xf32>
    %c0_3 = arith.constant 0 : index
    %c0_4 = arith.constant 0 : index
    %3 = vector.load %arg3[%c0_3, %c0_4] : memref<64x2xf32, #tpu.memory_space<vmem>>, vector<64x1xf32>
    %c0_5 = arith.constant 0 : index
    %c1 = arith.constant 1 : index
    %4 = vector.load %arg3[%c0_5, %c1] : memref<64x2xf32, #tpu.memory_space<vmem>>, vector<64x1xf32>
    %5 = vector.broadcast %3 : vector<64x1xf32> to vector<64x8xf32>
    %6 = arith.mulf %2, %5 : vector<64x8xf32>
    %7 = vector.broadcast %4 : vector<64x1xf32> to vector<64x8xf32>
    %8 = arith.addf %6, %7 : vector<64x8xf32>
    %cst_6 = arith.constant 0.000000e+00 : f32
    %9 = vector.broadcast %cst_6 : f32 to vector<64x8xf32>
    %10 = arith.maximumf %8, %9 : vector<64x8xf32>
    %c0_7 = arith.constant 0 : index
    %c0_8 = arith.constant 0 : index
    %11 = vector.load %arg4[%c0_7, %c0_8] : memref<64x8xf32, #tpu.memory_space<vmem>>, vector<64x8xf32>
    tpu.vector_store %arg4[%c0_7, %c0_8], %10 {strides = array<i32>} : memref<64x8xf32, #tpu.memory_space<vmem>>, vector<64x8xf32>,
    return
  }
  func.func @transform_0(%arg0: i32) -> (i32, i32) {
    %c0_i32 = arith.constant 0 : i32
    %c0_i32_0 = arith.constant 0 : i32
    %c0_i32_1 = arith.constant 0 : i32
    return %c0_i32, %c0_i32_0 : i32, i32
  }
  func.func @transform_1(%arg0: i32) -> (i32, i32) {
    %c0_i32 = arith.constant 0 : i32
    %c0_i32_0 = arith.constant 0 : i32
    return %c0_i32, %arg0 : i32, i32
  }
  func.func @transform_2(%arg0: i32) -> (i32, i32) {
    %c0_i32 = arith.constant 0 : i32
    %c0_i32_0 = arith.constant 0 : i32
    %c0_i32_1 = arith.constant 0 : i32
    return %c0_i32, %c0_i32_0 : i32, i32
  }
  func.func @transform_3(%arg0: i32) -> (i32, i32) {
    %c0_i32 = arith.constant 0 : i32
    %c0_i32_0 = arith.constant 0 : i32
    return %c0_i32, %arg0 : i32, i32
  }
}

module attributes {stable_mosaic.version = 11 : i64} {
  func.func @kernel(%arg0: i32, %arg1: memref<32x2336xbf16, #tpu.memory_space<vmem>>, %arg2: memref<2336x32xbf16, #tpu.memory_space<vmem>>, %arg3: memref<32x2xf32, #tpu.memory_space<vmem>>, %arg4: memref<32x32xf32, #tpu.memory_space<vmem>>) attributes {dimension_semantics = [#tpu.dimension_semantics<parallel>], iteration_bounds = array<i64: 1>, scalar_prefetch = 0 : i64, scratch_operands = 0 : i64, tpu.core_type = #tpu.core_type<tc>, window_params = [{pipeline_mode = #tpu.pipeline_mode<synchronous>, transform_indices = @transform_0, window_bounds = array<i64: 32, 2336>}, {transform_indices = @transform_1, window_bounds = array<i64: 2336, 32>}, {pipeline_mode = #tpu.pipeline_mode<synchronous>, transform_indices = @transform_2, window_bounds = array<i64: 32, 2>}, {transform_indices = @transform_3, window_bounds = array<i64: 32, 32>}]} {
    %c0 = arith.constant 0 : index
    %c0_0 = arith.constant 0 : index
    %0 = vector.load %arg1[%c0, %c0_0] : memref<32x2336xbf16, #tpu.memory_space<vmem>>, vector<32x2336xbf16>
    %c0_1 = arith.constant 0 : index
    %c0_2 = arith.constant 0 : index
    %1 = vector.load %arg2[%c0_1, %c0_2] : memref<2336x32xbf16, #tpu.memory_space<vmem>>, vector<2336x32xbf16>
    %cst = arith.constant dense<0.000000e+00> : vector<32x32xf32>
    %2 = tpu.matmul %0, %1, %cst {dimension_numbers = #tpu.dot_dimension_numbers<[1], [0], [0], [1], [0, 0, 1, 1], [], []>} : vector<32x2336xbf16>, vector<2336x32xbf16>, vector<32x32xf32> -> vector<32x32xf32>
    %c0_3 = arith.constant 0 : index
    %c0_4 = arith.constant 0 : index
    %3 = vector.load %arg3[%c0_3, %c0_4] : memref<32x2xf32, #tpu.memory_space<vmem>>, vector<32x1xf32>
    %c0_5 = arith.constant 0 : index
    %c1 = arith.constant 1 : index
    %4 = vector.load %arg3[%c0_5, %c1] : memref<32x2xf32, #tpu.memory_space<vmem>>, vector<32x1xf32>
    %5 = vector.broadcast %3 : vector<32x1xf32> to vector<32x32xf32>
    %6 = arith.mulf %2, %5 : vector<32x32xf32>
    %7 = vector.broadcast %4 : vector<32x1xf32> to vector<32x32xf32>
    %8 = arith.addf %6, %7 : vector<32x32xf32>
    %cst_6 = arith.constant 0.000000e+00 : f32
    %9 = vector.broadcast %cst_6 : f32 to vector<32x32xf32>
    %10 = arith.maximumf %8, %9 : vector<32x32xf32>
    %c0_7 = arith.constant 0 : index
    %c0_8 = arith.constant 0 : index
    %11 = vector.load %arg4[%c0_7, %c0_8] : memref<32x32xf32, #tpu.memory_space<vmem>>, vector<32x32xf32>
    tpu.vector_store %arg4[%c0_7, %c0_8], %10 {strides = array<i32>} : memref<32x32xf32, #tpu.memory_space<vmem>>, vector<32x32xf32>,
    return
  }
  func.func @transform_0(%arg0: i32) -> (i32, i32) {
    %c0_i32 = arith.constant 0 : i32
    %c0_i32_0 = arith.constant 0 : i32
    %c0_i32_1 = arith.constant 0 : i32
    return %c0_i32, %c0_i32_0 : i32, i32
  }
  func.func @transform_1(%arg0: i32) -> (i32, i32) {
    %c0_i32 = arith.constant 0 : i32
    %c0_i32_0 = arith.constant 0 : i32
    return %c0_i32, %arg0 : i32, i32
  }
  func.func @transform_2(%arg0: i32) -> (i32, i32) {
    %c0_i32 = arith.constant 0 : i32
    %c0_i32_0 = arith.constant 0 : i32
    %c0_i32_1 = arith.constant 0 : i32
    return %c0_i32, %c0_i32_0 : i32, i32
  }
  func.func @transform_3(%arg0: i32) -> (i32, i32) {
    %c0_i32 = arith.constant 0 : i32
    %c0_i32_0 = arith.constant 0 : i32
    return %c0_i32, %arg0 : i32, i32
  }
}

module attributes {stable_mosaic.version = 11 : i64} {
  func.func @kernel(%arg0: i32, %arg1: memref<16x1312xbf16, #tpu.memory_space<vmem>>, %arg2: memref<1312x128xbf16, #tpu.memory_space<vmem>>, %arg3: memref<16x2xf32, #tpu.memory_space<vmem>>, %arg4: memref<16x128xf32, #tpu.memory_space<vmem>>) attributes {dimension_semantics = [#tpu.dimension_semantics<parallel>], iteration_bounds = array<i64: 1>, scalar_prefetch = 0 : i64, scratch_operands = 0 : i64, tpu.core_type = #tpu.core_type<tc>, window_params = [{pipeline_mode = #tpu.pipeline_mode<synchronous>, transform_indices = @transform_0, window_bounds = array<i64: 16, 1312>}, {transform_indices = @transform_1, window_bounds = array<i64: 1312, 128>}, {pipeline_mode = #tpu.pipeline_mode<synchronous>, transform_indices = @transform_2, window_bounds = array<i64: 16, 2>}, {transform_indices = @transform_3, window_bounds = array<i64: 16, 128>}]} {
    %c0 = arith.constant 0 : index
    %c0_0 = arith.constant 0 : index
    %0 = vector.load %arg1[%c0, %c0_0] : memref<16x1312xbf16, #tpu.memory_space<vmem>>, vector<16x1312xbf16>
    %c0_1 = arith.constant 0 : index
    %c0_2 = arith.constant 0 : index
    %1 = vector.load %arg2[%c0_1, %c0_2] : memref<1312x128xbf16, #tpu.memory_space<vmem>>, vector<1312x128xbf16>
    %cst = arith.constant dense<0.000000e+00> : vector<16x128xf32>
    %2 = tpu.matmul %0, %1, %cst {dimension_numbers = #tpu.dot_dimension_numbers<[1], [0], [0], [1], [0, 0, 1, 1], [], []>} : vector<16x1312xbf16>, vector<1312x128xbf16>, vector<16x128xf32> -> vector<16x128xf32>
    %c0_3 = arith.constant 0 : index
    %c0_4 = arith.constant 0 : index
    %3 = vector.load %arg3[%c0_3, %c0_4] : memref<16x2xf32, #tpu.memory_space<vmem>>, vector<16x1xf32>
    %c0_5 = arith.constant 0 : index
    %c1 = arith.constant 1 : index
    %4 = vector.load %arg3[%c0_5, %c1] : memref<16x2xf32, #tpu.memory_space<vmem>>, vector<16x1xf32>
    %5 = vector.broadcast %3 : vector<16x1xf32> to vector<16x128xf32>
    %6 = arith.mulf %2, %5 : vector<16x128xf32>
    %7 = vector.broadcast %4 : vector<16x1xf32> to vector<16x128xf32>
    %8 = arith.addf %6, %7 : vector<16x128xf32>
    %cst_6 = arith.constant 0.000000e+00 : f32
    %9 = vector.broadcast %cst_6 : f32 to vector<16x128xf32>
    %10 = arith.maximumf %8, %9 : vector<16x128xf32>
    %c0_7 = arith.constant 0 : index
    %c0_8 = arith.constant 0 : index
    %11 = vector.load %arg4[%c0_7, %c0_8] : memref<16x128xf32, #tpu.memory_space<vmem>>, vector<16x128xf32>
    tpu.vector_store %arg4[%c0_7, %c0_8], %10 {strides = array<i32>} : memref<16x128xf32, #tpu.memory_space<vmem>>, vector<16x128xf32>,
    return
  }
  func.func @transform_0(%arg0: i32) -> (i32, i32) {
    %c0_i32 = arith.constant 0 : i32
    %c0_i32_0 = arith.constant 0 : i32
    %c0_i32_1 = arith.constant 0 : i32
    return %c0_i32, %c0_i32_0 : i32, i32
  }
  func.func @transform_1(%arg0: i32) -> (i32, i32) {
    %c0_i32 = arith.constant 0 : i32
    %c0_i32_0 = arith.constant 0 : i32
    return %c0_i32, %arg0 : i32, i32
  }
  func.func @transform_2(%arg0: i32) -> (i32, i32) {
    %c0_i32 = arith.constant 0 : i32
    %c0_i32_0 = arith.constant 0 : i32
    %c0_i32_1 = arith.constant 0 : i32
    return %c0_i32, %c0_i32_0 : i32, i32
  }
  func.func @transform_3(%arg0: i32) -> (i32, i32) {
    %c0_i32 = arith.constant 0 : i32
    %c0_i32_0 = arith.constant 0 : i32
    return %c0_i32, %arg0 : i32, i32
  }
}

module attributes {stable_mosaic.version = 11 : i64} {
  func.func @kernel(%arg0: i32, %arg1: memref<8x800xbf16, #tpu.memory_space<vmem>>, %arg2: memref<800x384xbf16, #tpu.memory_space<vmem>>, %arg3: memref<8x2xf32, #tpu.memory_space<vmem>>, %arg4: memref<8x384xf32, #tpu.memory_space<vmem>>) attributes {dimension_semantics = [#tpu.dimension_semantics<parallel>], iteration_bounds = array<i64: 2>, scalar_prefetch = 0 : i64, scratch_operands = 0 : i64, tpu.core_type = #tpu.core_type<tc>, window_params = [{pipeline_mode = #tpu.pipeline_mode<synchronous>, transform_indices = @transform_0, window_bounds = array<i64: 8, 800>}, {transform_indices = @transform_1, window_bounds = array<i64: 800, 384>}, {pipeline_mode = #tpu.pipeline_mode<synchronous>, transform_indices = @transform_2, window_bounds = array<i64: 8, 2>}, {transform_indices = @transform_3, window_bounds = array<i64: 8, 384>}]} {
    %c0 = arith.constant 0 : index
    %c0_0 = arith.constant 0 : index
    %0 = vector.load %arg1[%c0, %c0_0] : memref<8x800xbf16, #tpu.memory_space<vmem>>, vector<8x800xbf16>
    %c0_1 = arith.constant 0 : index
    %c0_2 = arith.constant 0 : index
    %1 = vector.load %arg2[%c0_1, %c0_2] : memref<800x384xbf16, #tpu.memory_space<vmem>>, vector<800x384xbf16>
    %cst = arith.constant dense<0.000000e+00> : vector<8x384xf32>
    %2 = tpu.matmul %0, %1, %cst {dimension_numbers = #tpu.dot_dimension_numbers<[1], [0], [0], [1], [0, 0, 1, 1], [], []>} : vector<8x800xbf16>, vector<800x384xbf16>, vector<8x384xf32> -> vector<8x384xf32>
    %c0_3 = arith.constant 0 : index
    %c0_4 = arith.constant 0 : index
    %3 = vector.load %arg3[%c0_3, %c0_4] : memref<8x2xf32, #tpu.memory_space<vmem>>, vector<8x1xf32>
    %c0_5 = arith.constant 0 : index
    %c1 = arith.constant 1 : index
    %4 = vector.load %arg3[%c0_5, %c1] : memref<8x2xf32, #tpu.memory_space<vmem>>, vector<8x1xf32>
    %5 = vector.broadcast %3 : vector<8x1xf32> to vector<8x384xf32>
    %6 = arith.mulf %2, %5 : vector<8x384xf32>
    %7 = vector.broadcast %4 : vector<8x1xf32> to vector<8x384xf32>
    %8 = arith.addf %6, %7 : vector<8x384xf32>
    %cst_6 = arith.constant 0.000000e+00 : f32
    %9 = vector.broadcast %cst_6 : f32 to vector<8x384xf32>
    %10 = arith.maximumf %8, %9 : vector<8x384xf32>
    %c0_7 = arith.constant 0 : index
    %c0_8 = arith.constant 0 : index
    %11 = vector.load %arg4[%c0_7, %c0_8] : memref<8x384xf32, #tpu.memory_space<vmem>>, vector<8x384xf32>
    tpu.vector_store %arg4[%c0_7, %c0_8], %10 {strides = array<i32>} : memref<8x384xf32, #tpu.memory_space<vmem>>, vector<8x384xf32>,
    return
  }
  func.func @transform_0(%arg0: i32) -> (i32, i32) {
    %c0_i32 = arith.constant 0 : i32
    %c0_i32_0 = arith.constant 0 : i32
    %c0_i32_1 = arith.constant 0 : i32
    return %c0_i32, %c0_i32_0 : i32, i32
  }
  func.func @transform_1(%arg0: i32) -> (i32, i32) {
    %c0_i32 = arith.constant 0 : i32
    %c0_i32_0 = arith.constant 0 : i32
    return %c0_i32, %arg0 : i32, i32
  }
  func.func @transform_2(%arg0: i32) -> (i32, i32) {
    %c0_i32 = arith.constant 0 : i32
    %c0_i32_0 = arith.constant 0 : i32
    %c0_i32_1 = arith.constant 0 : i32
    return %c0_i32, %c0_i32_0 : i32, i32
  }
  func.func @transform_3(%arg0: i32) -> (i32, i32) {
    %c0_i32 = arith.constant 0 : i32
    %c0_i32_0 = arith.constant 0 : i32
    return %c0_i32, %arg0 : i32, i32
  }
}

module attributes {stable_mosaic.version = 11 : i64} {
  func.func @kernel(%arg0: i32, %arg1: memref<1x416xbf16, #tpu.memory_space<vmem>>, %arg2: memref<416x1408xbf16, #tpu.memory_space<vmem>>, %arg3: memref<1x2xf32, #tpu.memory_space<vmem>>, %arg4: memref<1x1408xf32, #tpu.memory_space<vmem>>) attributes {dimension_semantics = [#tpu.dimension_semantics<parallel>], iteration_bounds = array<i64: 2>, scalar_prefetch = 0 : i64, scratch_operands = 0 : i64, tpu.core_type = #tpu.core_type<tc>, window_params = [{pipeline_mode = #tpu.pipeline_mode<synchronous>, transform_indices = @transform_0, window_bounds = array<i64: 1, 416>}, {transform_indices = @transform_1, window_bounds = array<i64: 416, 1408>}, {pipeline_mode = #tpu.pipeline_mode<synchronous>, transform_indices = @transform_2, window_bounds = array<i64: 1, 2>}, {transform_indices = @transform_3, window_bounds = array<i64: 1, 1408>}]} {
    %c0 = arith.constant 0 : index
    %c0_0 = arith.constant 0 : index
    %0 = vector.load %arg1[%c0, %c0_0] : memref<1x416xbf16, #tpu.memory_space<vmem>>, vector<1x416xbf16>
    %c0_1 = arith.constant 0 : index
    %c0_2 = arith.constant 0 : index
    %1 = vector.load %arg2[%c0_1, %c0_2] : memref<416x1408xbf16, #tpu.memory_space<vmem>>, vector<416x1408xbf16>
    %cst = arith.constant dense<0.000000e+00> : vector<1x1408xf32>
    %2 = tpu.matmul %0, %1, %cst {dimension_numbers = #tpu.dot_dimension_numbers<[1], [0], [0], [1], [0, 0, 1, 1], [], []>} : vector<1x416xbf16>, vector<416x1408xbf16>, vector<1x1408xf32> -> vector<1x1408xf32>
    %c0_3 = arith.constant 0 : index
    %c0_4 = arith.constant 0 : index
    %3 = vector.load %arg3[%c0_3, %c0_4] : memref<1x2xf32, #tpu.memory_space<vmem>>, vector<1x1xf32>
    %c0_5 = arith.constant 0 : index
    %c1 = arith.constant 1 : index
    %4 = vector.load %arg3[%c0_5, %c1] : memref<1x2xf32, #tpu.memory_space<vmem>>, vector<1x1xf32>
    %5 = vector.broadcast %3 : vector<1x1xf32> to vector<1x1408xf32>
    %6 = arith.mulf %2, %5 : vector<1x1408xf32>
    %7 = vector.broadcast %4 : vector<1x1xf32> to vector<1x1408xf32>
    %8 = arith.addf %6, %7 : vector<1x1408xf32>
    %9 = math.tanh %8 : vector<1x1408xf32>
    %c0_6 = arith.constant 0 : index
    %c0_7 = arith.constant 0 : index
    %10 = vector.load %arg4[%c0_6, %c0_7] : memref<1x1408xf32, #tpu.memory_space<vmem>>, vector<1x1408xf32>
    tpu.vector_store %arg4[%c0_6, %c0_7], %9 {strides = array<i32>} : memref<1x1408xf32, #tpu.memory_space<vmem>>, vector<1x1408xf32>,
    return
  }
  func.func @transform_0(%arg0: i32) -> (i32, i32) {
    %c0_i32 = arith.constant 0 : i32
    %c0_i32_0 = arith.constant 0 : i32
    %c0_i32_1 = arith.constant 0 : i32
    return %c0_i32, %c0_i32_0 : i32, i32
  }
  func.func @transform_1(%arg0: i32) -> (i32, i32) {
    %c0_i32 = arith.constant 0 : i32
    %c0_i32_0 = arith.constant 0 : i32
    return %c0_i32, %arg0 : i32, i32
  }
  func.func @transform_2(%arg0: i32) -> (i32, i32) {
    %c0_i32 = arith.constant 0 : i32
    %c0_i32_0 = arith.constant 0 : i32
    %c0_i32_1 = arith.constant 0 : i32
    return %c0_i32, %c0_i32_0 : i32, i32
  }
  func.func @transform_3(%arg0: i32) -> (i32, i32) {
    %c0_i32 = arith.constant 0 : i32
    %c0_i32_0 = arith.constant 0 : i32
    return %c0_i32, %arg0 : i32, i32
  }
}

</mosaic_0001>

<bundles_post_ra>
// kernel: netG_forward.12
= control target key start
LH: loop header
LB: loop body
LE: loop exit
PB: predicated region body
PF: predicated region fallthrough
CT: control target
= control target key end

     0   :  { %s646_s12 = smov 0   ;;  %s648_s13 = smov 0   ;;  %s722_s0 = inlined_call_operand.vmem [shape: bf16[8,64], index: 0, kind: input, shape index: {}]   ;;  %s723_s1 = inlined_call_operand.vmem [shape: bf16[64,768], index: 1, kind: input, shape index: {}]   ;;  %s724_s2 = inlined_call_operand.vmem [shape: f32[8,2], index: 2, kind: input, shape index: {}]   ;;  %s725_s3 = inlined_call_operand.vmem [shape: f32[8,768], index: 3, kind: output, shape index: {}]  }
   0x1   :  { %s650_s14 = smov 0  }
   0x2 LB: > { %s493_s15 = sadd.s32 4294967295, %s620_s14   ;;  %s663_s16 = sadd.s32 1, %s620_s14   ;;  %s620_s14 = sphi %s650_s14, %s728_s14   ;;  %s616_s13 = sphi %s648_s13, %s727_s13   ;;  %s612_s12 = sphi %s646_s12, %s726_s12  }
   0x3   : > { %s38_s17 = ssub.s32 %s620_s14, %s663_s16  ;;  %s41_s18 = sadd.s32 1, %s616_s13 }
   0x4   : > { %p39_p0 = scmp.eq.s32.totalorder %s38_s17, 0  ;;  %p48_p1 = scmp.ne.s32.totalorder %s616_s13, %s612_s12 }
   0x5   : > { %p49_p2 = scmp.eq.s32.totalorder %s620_s14, 0  ;;  %p496_p4 = scmp.ge.s32.totalorder %s620_s14, 2 }
   0x6   : > { %s672_s19 = scalar_select %p39_p0, %s616_s13, %s41_s18  }
   0x7   : > { %p50_p3 = por %p49_p2, %p48_p1  ;;  %127 = sbr.rel (%p496_p4) target bundleno = 28 (0x1c), region = 24 }
   0xe   : > { %130 = sbr.rel (!%p50_p3) target bundleno = 28 (0x1c), region = 28  ;;  %s132_s20 = sand.u32 (%p50_p3), 1, %s616_s13  }
   0xf   : > { %s532_s21 = smul.u32 (%p50_p3), 12, %s620_s14 }
  0x10   : > { %s550_s22 = smul.u32 (%p50_p3), 96, %s132_s20 }
  0x11   : > { %s680_s25 = scalar_lea.vmem (%p50_p3), %s723_s1, %s532_s21 }
  0x12   : > { %v152_v0 = vld [vmem:[%s680_s25] sm:$0xff] (%p50_p3)  ;;  %v154_v1 = vld [vmem:[%s680_s25 + $0x18] sm:$0xff] (%p50_p3)  ;;  %v156_v2 = vld [vmem:[%s680_s25 + $0x30] sm:$0xff] (%p50_p3)  ;;  %s134_s26 = scalar_lea.vmem (%p50_p3), [#allocation2], %s550_s22 }
  0x13   : > { %153 = vst [vmem:[%s134_s26] sm:$0xff] (%p50_p3), %v152_v0  ;;  %155 = vst [vmem:[%s134_s26 + $0xc] sm:$0xff] (%p50_p3), %v154_v1  ;;  %v158_v3 = vld [vmem:[%s680_s25 + $0x48] sm:$0xff] (%p50_p3)  ;;  %v160_v4 = vld [vmem:[%s680_s25 + $0x60] sm:$0xff] (%p50_p3) }
  0x14   : > { %157 = vst [vmem:[%s134_s26 + $0x18] sm:$0xff] (%p50_p3), %v156_v2  ;;  %v162_v5 = vld [vmem:[%s680_s25 + $0x78] sm:$0xff] (%p50_p3)  ;;  %159 = vst [vmem:[%s134_s26 + $0x24] sm:$0xff] (%p50_p3), %v158_v3  ;;  %v164_v6 = vld [vmem:[%s680_s25 + $0x90] sm:$0xff] (%p50_p3) }
  0x15   : > { %161 = vst [vmem:[%s134_s26 + $0x30] sm:$0xff] %v160_v4  ;;  %163 = vst [vmem:[%s134_s26 + $0x3c] sm:$0xff] %v162_v5  ;;  %v166_v7 = vld [vmem:[%s680_s25 + $0xa8] sm:$0xff]  ;;  %v500_v9 = vld [vmem:[%s680_s25 + $0x20] sm:$0xf] }
  0x16   : > { %v498_v8 = vld [vmem:[%s680_s25 + $0x8] sm:$0xf]  ;;  %165 = vst [vmem:[%s134_s26 + $0x48] sm:$0xff] %v164_v6  ;;  %167 = vst [vmem:[%s134_s26 + $0x54] sm:$0xff] %v166_v7  ;;  %v502_v10 = vld [vmem:[%s680_s25 + $0x38] sm:$0xf] }
  0x17   : > { %499 = vst [vmem:[%s134_s26 + $0x8] sm:$0xf] %v498_v8  ;;  %v504_v11 = vld [vmem:[%s680_s25 + $0x50] sm:$0xf]  ;;  %501 = vst [vmem:[%s134_s26 + $0x14] sm:$0xf] %v500_v9 }
  0x18   : > { %503 = vst [vmem:[%s134_s26 + $0x20] sm:$0xf] %v502_v10  ;;  %505 = vst [vmem:[%s134_s26 + $0x2c] sm:$0xf] %v504_v11  ;;  %v506_v12 = vld [vmem:[%s680_s25 + $0x68] sm:$0xf] }
  0x19   : > { %v508_v13 = vld [vmem:[%s680_s25 + $0x80] sm:$0xf]  ;;  %v510_v14 = vld [vmem:[%s680_s25 + $0x98] sm:$0xf]  ;;  %507 = vst [vmem:[%s134_s26 + $0x38] sm:$0xf] %v506_v12 }
  0x1a   : > { %509 = vst [vmem:[%s134_s26 + $0x44] sm:$0xf] %v508_v13  ;;  %511 = vst [vmem:[%s134_s26 + $0x50] sm:$0xf] %v510_v14  ;;  %v512_v15 = vld [vmem:[%s680_s25 + $0xb0] sm:$0xf] }
  0x1b   : > { %513 = vst [vmem:[%s134_s26 + $0x5c] sm:$0xf] %v512_v15 }
  0x1c PF: > { %p514_p5 = scmp.ge.s32.totalorder %s620_s14, 1  ;;  %p195_p6 = scmp.lt.s32.totalorder %s620_s14, 3 }
  0x1e   : > { %p196_p7 = pnand %p514_p5, %p195_p6 }
  0x1f   : > { %s202_s27 = sand.u32 (!%p196_p7), 1, %s612_s12   ;;  %v622_v16 = vmov (!%p196_p7), 0.0   ;;  %vm623_vm0 = vmmov (!%p196_p7), 0   ;;  %v399_v17 = vld [vmem:[%s724_s2] sm:$0xff] (!%p196_p7)  ;;  %v624_v18 = vmov (!%p196_p7), 0   ;;  %v625_v23 = vmov (!%p196_p7), 1  }
  0x20   : > { %199 = sbr.rel (%p196_p7) target bundleno = 274 (0x112), region = 54  ;;  %538 = vmatprep.subr.bf16.mxu1 (!%p196_p7), %v622_v16  ;;  %546 = vmatprep.mubr.msk.bf16.mxu1 (!%p196_p7), %vm623_vm0, %v622_v16  ;;  %v233_v32 = vld [vmem:[%s722_s0] sm:$0xf] (!%p196_p7)  ;;  %vm314_vm1 = vcmask (!%p196_p7), 523264  }
  0x21   : > { %s551_s28 = smul.u32 (!%p196_p7), 96, %s202_s27  ;;  %350 = vmatprep.mubr.bf16.mxu0 (!%p196_p7), %v624_v18  ;;  %580 = vset.pattern.permute.xlu0 (!%p196_p7), %v624_v18 }
  0x22   : > { %402 = vperm.xlu0 (!%p196_p7), %580, %v399_v17   ;;  %s226_s7 = smul.u32 (!%p196_p7), 3, %s493_s15 }
  0x23   : > { %s204_s4 = scalar_lea.vmem (!%p196_p7), [#allocation2], %s551_s28 }
  0x24   : > { %v582_v19 = vld [vmem:[%s204_s4 + $0x4] ss:$12 sps:$4 sm:$0xff] (!%p196_p7)   ;;  %v584_v20 = vld [vmem:[%s204_s4 + $0x8] ss:$12 sps:$4 sm:$0xff] (!%p196_p7)   ;;  %v585_v21 = vld [vmem:[%s204_s4] ss:$12 sps:$4 sm:$0xff] (!%p196_p7)  }
  0x25   : > { %318 = vmatprep.subr.bf16.mxu0 (!%p196_p7), %v582_v19  ;;  %539 = vmatpush3.bf16.msra.mxu1 (!%p196_p7), %v584_v20  ;;  %v586_v22 = vld [vmem:[%s204_s4 + $0x1c] ss:$12 sps:$4 sm:$0xff] (!%p196_p7)   ;;  %v588_v24 = vld [vmem:[%s204_s4 + $0x20] ss:$12 sps:$4 sm:$0xff] (!%p196_p7)   ;;  %v589_v25 = vld [vmem:[%s204_s4 + $0x18] ss:$12 sps:$4 sm:$0xff] (!%p196_p7)  }
  0x26   : > { %581 = vset.pattern.permute.xlu0 (!%p196_p7), %v625_v23  ;;  %319 = vmatpush1.bf16.msra.mxu0 (!%p196_p7), %v585_v21  ;;  %v590_v26 = vld [vmem:[%s204_s4 + $0x34] ss:$12 sps:$4 sm:$0xff] (!%p196_p7)   ;;  %v592_v27 = vld [vmem:[%s204_s4 + $0x38] ss:$12 sps:$4 sm:$0xff] (!%p196_p7)   ;;  %v593_v28 = vld [vmem:[%s204_s4 + $0x30] ss:$12 sps:$4 sm:$0xff] (!%p196_p7)  }
  0x27   : > { %540 = vmatprep.subr.bf16.mxu1 %v622_v16  ;;  %320 = vmatprep.subr.bf16.mxu0 %v586_v22  ;;  %v594_v29 = vld [vmem:[%s204_s4 + $0x4c] ss:$12 sps:$4 sm:$0xff]   ;;  %v596_v30 = vld [vmem:[%s204_s4 + $0x50] ss:$12 sps:$4 sm:$0xff]   ;;  %v597_v31 = vld [vmem:[%s204_s4 + $0x48] ss:$12 sps:$4 sm:$0xff]  }
  0x28   : > { %409 = vperm.xlu0 %581, %v399_v17   ;;  %p227_p8 = scmp.lt.s32.totalorder %s226_s7, 5 }
  0x29   : > { %541 = vmatpush3.bf16.msra.mxu1 %v588_v24 }
  0x2a   : > { %321 = vmatpush1.bf16.msra.mxu0 %v589_v25  ;;  %542 = vmatprep.subr.bf16.mxu1 %v622_v16  ;;  %s730_s7 = smov (!%p227_p8, %s226_s7), 5 }
  0x2b   : > { %322 = vmatprep.subr.bf16.mxu0 %v590_v26  ;;  %s515_s8 = sshll.u32 %s730_s7, 3 }
  0x2c   : > { %s230_s11 = scalar_lea.vmem %s725_s3, %s515_s8 }
  0x2d   : > { %543 = vmatpush3.bf16.msra.mxu1 %v592_v27 }
  0x2e   : > { %323 = vmatpush1.bf16.msra.mxu0 %v593_v28  ;;  %544 = vmatprep.subr.bf16.mxu1 %v622_v16 }
  0x2f   : > { %324 = vmatprep.subr.bf16.mxu0 %v594_v29 }
  0x31   : > { %545 = vmatpush3.bf16.msra.mxu1 %v596_v30 }
  0x32   : > { %325 = vmatpush1.bf16.msra.mxu0 %v597_v31 }
  0x34   : > { %547 = vmatmul.mubr.msk.bf16.vlgmr.msra.gmra.mrb[0].mxu1 %vm314_vm1, %v233_v32 }
  0x35   : > { %528 = vmatmul.mubr.msk.bf16.vlgmr.msra.gmra.mrb[0].mxu0 %vm314_vm1, %v233_v32 }
  0xa1   : > { %v403_v33 = vpop.permute.xlu0 %402 }
  0xa7   : > { %v410_v35 = vpop.permute.xlu0 %409 }
 0x107   : > { %v393_v34 = vpop.f32.mrb[0].mxu1 }
 0x108   : > { %v407_v36 = vmul.f32 %v403_v33, %v393_v34  ;;  %v352_v37 = vpop.f32.mrb[0].mxu0  ;;  %v548_v38 = vpop.f32.mrb[1].mxu1 }
 0x109   : > { %v405_v39 = vmul.f32 %v403_v33, %v352_v37  ;;  %v354_v40 = vpop.f32.mrb[1].mxu0  ;;  %v396_v41 = vpop.f32.mrb[2].mxu1 }
 0x10a   : > { %v414_v42 = vadd.f32 %v410_v35, %v407_v36  ;;  %v406_v43 = vmul.f32 %v403_v33, %v354_v40  ;;  %v356_v44 = vpop.f32.mrb[2].mxu0  ;;  %v549_v45 = vpop.f32.mrb[3].mxu1 }
 0x10b   : > { %v412_v46 = vadd.f32 %v410_v35, %v405_v39  ;;  %v357_v47 = vpop.f32.mrb[3].mxu0 }
 0x10c   : > { %vm417_vm2 = vcmp.gt.f32.partialorder %v414_v42, 0.0  ;;  %v420_v48 = vmul.f32 0.2, %v414_v42  ;;  %v413_v49 = vadd.f32 %v410_v35, %v406_v43 }
 0x10d   : > { %vm415_vm3 = vcmp.gt.f32.partialorder %v412_v46, 0.0  ;;  %v418_v50 = vmul.f32 0.2, %v412_v46 }
 0x10e   : > { %v423_v51 = vsel %vm417_vm2, %v414_v42, %v420_v48  ;;  %vm416_vm4 = vcmp.gt.f32.partialorder %v413_v49, 0.0  ;;  %v419_v52 = vmul.f32 0.2, %v413_v49 }
 0x10f   : > { %v421_v53 = vsel %vm415_vm3, %v412_v46, %v418_v50  ;;  %426 = vst [vmem:[%s230_s11 + $0x10] sm:$0xff] %v423_v51 }
 0x110   : > { %424 = vst [vmem:[%s230_s11] sm:$0xff] %v421_v53  ;;  %v422_v54 = vsel %vm416_vm4, %v413_v49, %v419_v52 }
 0x111   : > { %425 = vst [vmem:[%s230_s11 + $0x8] sm:$0xff] %v422_v54 }
 0x112 PF: > { %p10_p9 = scmp.ge.s32.totalorder %s663_s16, 4   ;;  %s726_s12 = smov %s616_s13 }
 0x113   : > { %s727_s13 = smov %s672_s19  ;;  %s728_s14 = smov %s663_s16 }
 0x114   :  { %12 = sbr.rel (!%p10_p9) target bundleno = 2 (0x2), region = 99 }

// kernel: netG_forward.13
= control target key start
LH: loop header
LB: loop body
LE: loop exit
PB: predicated region body
PF: predicated region fallthrough
CT: control target
= control target key end

     0   :  { %v218_v0 = vmov 0.0   ;;  %vm219_vm0 = vmmov 0   ;;  %v220_v2 = vmov 0   ;;  %v221_v3 = vmov 1   ;;  %s281_s1 = inlined_call_operand.vmem [shape: bf16[128,128], index: 1, kind: input, shape index: {}]   ;;  %s282_s2 = inlined_call_operand.vmem [shape: f32[16,2], index: 2, kind: input, shape index: {}]   ;;  %s283_s0 = inlined_call_operand.vmem [shape: bf16[16,128], index: 0, kind: input, shape index: {}]   ;;  %s284_s3 = inlined_call_operand.vmem [shape: f32[16,128], index: 3, kind: output, shape index: {}]  }
   0x1   :  { %182 = vmatprep.subr.bf16.mxu0 %v218_v0  ;;  %v209_v1 = vld [vmem:[%s281_s1] sm:$0xff]   ;;  %198 = vmatprep.mubr.msk.bf16.mxu0 %vm219_vm0, %v218_v0  ;;  %v210_v4 = vld [vmem:[%s281_s1 + $0x8] sm:$0xff]   ;;  %v211_v5 = vld [vmem:[%s281_s1 + $0x10] sm:$0xff]  }
   0x2   :  { %206 = vset.pattern.permute.xlu0 %v220_v2  ;;  %207 = vset.pattern.permute.xlu1 %v221_v3  ;;  %v128_v6 = vld [vmem:[%s282_s2] sm:$0xff]  ;;  %v212_v7 = vld [vmem:[%s281_s1 + $0x18] sm:$0xff]   ;;  %v129_v8 = vld [vmem:[%s282_s2 + $0x8] sm:$0xff] }
   0x3   :  { %183 = vmatpush3.bf16.msra.mxu0 %v209_v1  ;;  %132 = vperm.xlu0 %206, %v128_v6   ;;  %v213_v9 = vld [vmem:[%s281_s1 + $0x20] sm:$0xff]   ;;  %v214_v10 = vld [vmem:[%s281_s1 + $0x28] sm:$0xff]   ;;  %v215_v11 = vld [vmem:[%s281_s1 + $0x30] sm:$0xff]  }
   0x4   :  { %184 = vmatprep.subr.bf16.mxu0 %v218_v0  ;;  %143 = vperm.xlu1 %207, %v128_v6   ;;  %v216_v12 = vld [vmem:[%s281_s1 + $0x38] sm:$0xff]   ;;  %v217_v13 = vld [vmem:[%s283_s0] sm:$0xff]  }
   0x7   :  { %185 = vmatpush3.bf16.msra.mxu0 %v210_v4  ;;  %137 = vperm.xlu0 %206, %v129_v8  }
   0x8   :  { %186 = vmatprep.subr.bf16.mxu0 %v218_v0  ;;  %147 = vperm.xlu1 %207, %v129_v8  }
   0xb   :  { %187 = vmatpush3.bf16.msra.mxu0 %v211_v5  ;;  %208 = vset.pattern.permute.xlu0 %v221_v3 }
   0xc   :  { %188 = vmatprep.subr.bf16.mxu0 %v218_v0 }
   0xf   :  { %189 = vmatpush3.bf16.msra.mxu0 %v212_v7 }
  0x10   :  { %190 = vmatprep.subr.bf16.mxu0 %v218_v0 }
  0x13   :  { %191 = vmatpush3.bf16.msra.mxu0 %v213_v9 }
  0x14   :  { %192 = vmatprep.subr.bf16.mxu0 %v218_v0 }
  0x17   :  { %193 = vmatpush3.bf16.msra.mxu0 %v214_v10 }
  0x18   :  { %194 = vmatprep.subr.bf16.mxu0 %v218_v0 }
  0x1b   :  { %195 = vmatpush3.bf16.msra.mxu0 %v215_v11 }
  0x1c   :  { %196 = vmatprep.subr.bf16.mxu0 %v218_v0 }
  0x1f   :  { %197 = vmatpush3.bf16.msra.mxu0 %v216_v12 }
  0x22   :  { %199 = vmatmul.mubr.bf16.vlgmr.msra.gmra.mrb[0].mxu0 %v217_v13 }
  0x82   :  { %v133_v14 = vpop.permute.xlu0 %132 }
  0x83   :  { %v144_v15 = vpop.permute.xlu1 %143 }
  0x86   :  { %v138_v19 = vpop.permute.xlu0 %137 }
  0x87   :  { %v148_v24 = vpop.permute.xlu1 %147 }
  0xf5   :  { %v121_v16 = vpop.f32.mrb[0].mxu0 }
  0xf6   :  { %v140_v17 = vmul.f32 %v133_v14, %v121_v16  ;;  %v200_v18 = vpop.f32.mrb[1].mxu0 }
  0xf7   :  { %v124_v20 = vpop.f32.mrb[2].mxu0 }
  0xf8   :  { %v150_v21 = vadd.f32 %v144_v15, %v140_v17  ;;  %v141_v22 = vmul.f32 %v138_v19, %v124_v20  ;;  %v201_v23 = vpop.f32.mrb[3].mxu0 }
  0xfa   :  { %vm152_vm1 = vcmp.gt.f32.partialorder %v150_v21, 0.0  ;;  %v154_v25 = vmul.f32 0.2, %v150_v21  ;;  %v151_v26 = vadd.f32 %v148_v24, %v141_v22 }
  0xfc   :  { %v156_v27 = vsel %vm152_vm1, %v150_v21, %v154_v25  ;;  %vm153_vm2 = vcmp.gt.f32.partialorder %v151_v26, 0.0  ;;  %v155_v28 = vmul.f32 0.2, %v151_v26 }
  0xfd   :  { %158 = vst [vmem:[%s284_s3] sm:$0xff] %v156_v27 }
  0xfe   :  { %v157_v29 = vsel %vm153_vm2, %v151_v26, %v155_v28 }
  0xff   :  { %159 = vst [vmem:[%s284_s3 + $0x8] sm:$0xff] %v157_v29 }

// kernel: netG_forward.14
= control target key start
LH: loop header
LB: loop body
LE: loop exit
PB: predicated region body
PF: predicated region fallthrough
CT: control target
= control target key end

     0   :  { %v377_v1 = vmov 0   ;;  %v378_v25 = vmov 1   ;;  %vm276_vm0 = vcmask 261120   ;;  %s487_s1 = inlined_call_operand.vmem [shape: bf16[256,32], index: 1, kind: input, shape index: {}]   ;;  %s488_s0 = inlined_call_operand.vmem [shape: bf16[32,256], index: 0, kind: input, shape index: {}]   ;;  %s489_s2 = inlined_call_operand.vmem [shape: f32[32,2], index: 2, kind: input, shape index: {}]   ;;  %s490_s3 = inlined_call_operand.vmem [shape: f32[32,32], index: 3, kind: output, shape index: {}]  }
   0x1   :  { %v355_v0 = vld [vmem:[%s487_s1 + $0x40] sm:$0xff]   ;;  %352 = vset.pattern.permute.xlu1 %v377_v1  ;;  %351 = vset.pattern.permute.xlu0 %v377_v1  ;;  %v357_v3 = vld [vmem:[%s487_s1 + $0x48] sm:$0xff]   ;;  %v359_v5 = vld [vmem:[%s487_s1 + $0x50] sm:$0xff]  }
   0x2   :  { %v356_v2 = vld [vmem:[%s487_s1] sm:$0xff]   ;;  %305 = vmatprep.subr.bf16.mxu0 %v355_v0  ;;  %333 = vmatprep.subr.bf16.mxu1 %v355_v0  ;;  %v358_v4 = vld [vmem:[%s487_s1 + $0x8] sm:$0xff]   ;;  %v360_v6 = vld [vmem:[%s487_s1 + $0x10] sm:$0xff]  }
   0x3   :  { %306 = vmatpush3.bf16.msra.mxu0 %v356_v2  ;;  %341 = vmatpush3.bf16.msra.mxu1 %v356_v2  ;;  %v361_v7 = vld [vmem:[%s487_s1 + $0x58] sm:$0xff]   ;;  %v363_v9 = vld [vmem:[%s487_s1 + $0x60] sm:$0xff]   ;;  %v365_v11 = vld [vmem:[%s487_s1 + $0x68] sm:$0xff]  }
   0x4   :  { %307 = vmatprep.subr.bf16.mxu0 %v357_v3  ;;  %334 = vmatprep.subr.bf16.mxu1 %v357_v3  ;;  %v362_v8 = vld [vmem:[%s487_s1 + $0x18] sm:$0xff]   ;;  %v364_v10 = vld [vmem:[%s487_s1 + $0x20] sm:$0xff]   ;;  %v366_v14 = vld [vmem:[%s487_s1 + $0x28] sm:$0xff]  }
   0x5   :  { %v373_v12 = vld [vmem:[%s488_s0 + $0x4] ss:$8 sps:$4 sm:$0xff]   ;;  %v376_v13 = vld [vmem:[%s488_s0 + $0x14] ss:$8 sps:$4 sm:$0xff]   ;;  %v371_v23 = vld [vmem:[%s488_s0] ss:$8 sps:$4 sm:$0xff]  }
   0x6   :  { %v218_v15 = vld [vmem:[%s489_s2 + $0x10] sm:$0xff]  ;;  %v216_v16 = vld [vmem:[%s489_s2] sm:$0xff]  ;;  %199 = vmatprep.mubr.bf16.mxu0 %v373_v12  ;;  %207 = vmatprep.mubr.bf16.mxu1 %v376_v13  ;;  %v219_v19 = vld [vmem:[%s489_s2 + $0x18] sm:$0xff] }
   0x7   :  { %308 = vmatpush3.bf16.msra.mxu0 %v358_v4  ;;  %342 = vmatpush3.bf16.msra.mxu1 %v358_v4  ;;  %v367_v17 = vld [vmem:[%s487_s1 + $0x70] sm:$0xff]   ;;  %v217_v20 = vld [vmem:[%s489_s2 + $0x8] sm:$0xff]  ;;  %v369_v21 = vld [vmem:[%s487_s1 + $0x78] sm:$0xff]  }
   0x8   :  { %309 = vmatprep.subr.bf16.mxu0 %v359_v5  ;;  %335 = vmatprep.subr.bf16.mxu1 %v359_v5  ;;  %v368_v18 = vld [vmem:[%s487_s1 + $0x30] sm:$0xff]   ;;  %v370_v22 = vld [vmem:[%s487_s1 + $0x38] sm:$0xff]  }
   0x9   :  { %232 = vperm.xlu1 %352, %v218_v15   ;;  %222 = vperm.xlu0 %351, %v216_v16   ;;  %v374_v24 = vld [vmem:[%s488_s0 + $0x10] ss:$8 sps:$4 sm:$0xff]  }
   0xb   :  { %310 = vmatpush3.bf16.msra.mxu0 %v360_v6  ;;  %343 = vmatpush3.bf16.msra.mxu1 %v360_v6 }
   0xc   :  { %311 = vmatprep.subr.bf16.mxu0 %v361_v7  ;;  %336 = vmatprep.subr.bf16.mxu1 %v361_v7 }
   0xd   :  { %237 = vperm.xlu1 %352, %v219_v19   ;;  %227 = vperm.xlu0 %351, %v217_v20  }
   0xf   :  { %312 = vmatpush3.bf16.msra.mxu0 %v362_v8  ;;  %344 = vmatpush3.bf16.msra.mxu1 %v362_v8 }
  0x10   :  { %313 = vmatprep.subr.bf16.mxu0 %v363_v9  ;;  %337 = vmatprep.subr.bf16.mxu1 %v363_v9 }
  0x11   :  { %354 = vset.pattern.permute.xlu1 %v378_v25  ;;  %353 = vset.pattern.permute.xlu0 %v378_v25 }
  0x12   :  { %249 = vperm.xlu1 %354, %v217_v20   ;;  %245 = vperm.xlu0 %353, %v216_v16  }
  0x13   :  { %314 = vmatpush3.bf16.msra.mxu0 %v364_v10  ;;  %345 = vmatpush3.bf16.msra.mxu1 %v364_v10 }
  0x14   :  { %315 = vmatprep.subr.bf16.mxu0 %v365_v11  ;;  %338 = vmatprep.subr.bf16.mxu1 %v365_v11 }
  0x16   :  { %253 = vperm.xlu1 %354, %v218_v15   ;;  %257 = vperm.xlu0 %353, %v219_v19  }
  0x17   :  { %316 = vmatpush3.bf16.msra.mxu0 %v366_v14  ;;  %346 = vmatpush3.bf16.msra.mxu1 %v366_v14 }
  0x18   :  { %317 = vmatprep.subr.bf16.mxu0 %v367_v17  ;;  %339 = vmatprep.subr.bf16.mxu1 %v367_v17 }
  0x1b   :  { %318 = vmatpush3.bf16.msra.mxu0 %v368_v18  ;;  %347 = vmatpush3.bf16.msra.mxu1 %v368_v18 }
  0x1c   :  { %319 = vmatprep.subr.bf16.mxu0 %v369_v21  ;;  %340 = vmatprep.subr.bf16.mxu1 %v369_v21 }
  0x1f   :  { %320 = vmatpush3.bf16.msra.mxu0 %v370_v22  ;;  %348 = vmatpush3.bf16.msra.mxu1 %v370_v22 }
  0x22   :  { %200 = vmatmul.mubr.bf16.vlgmr.msra.gmra.mrb[0].mxu0 %v371_v23  ;;  %208 = vmatmul.mubr.bf16.vlgmr.msra.gmra.mrb[0].mxu1 %v374_v24 }
  0x88   :  { %v233_v26 = vpop.permute.xlu1 %232  ;;  %v223_v27 = vpop.permute.xlu0 %222 }
  0x8c   :  { %v238_v28 = vpop.permute.xlu1 %237  ;;  %v228_v29 = vpop.permute.xlu0 %227 }
  0x91   :  { %v250_v30 = vpop.permute.xlu1 %249  ;;  %v246_v31 = vpop.permute.xlu0 %245 }
  0x95   :  { %v254_v46 = vpop.permute.xlu1 %253  ;;  %v258_v53 = vpop.permute.xlu0 %257 }
  0xf5   :  { %v321_v32 = vpop.f32.mrb[0].mxu0  ;;  %v327_v33 = vpop.f32.mrb[0].mxu1 }
  0xf6   :  { %v322_v34 = vpop.f32.mrb[1].mxu0  ;;  %v328_v35 = vpop.f32.mrb[1].mxu1 }
  0xf7   :  { %v323_v36 = vadd.f32 %v322_v34, %v321_v32  ;;  %v329_v37 = vadd.f32 %v328_v35, %v327_v33  ;;  %v324_v38 = vpop.f32.mrb[2].mxu0  ;;  %v330_v39 = vpop.f32.mrb[2].mxu1 }
  0xf8   :  { %v325_v40 = vpop.f32.mrb[3].mxu0  ;;  %v331_v41 = vpop.f32.mrb[3].mxu1 }
  0xf9   :  { %v240_v42 = vmul.f32 %v323_v36, %v223_v27  ;;  %v242_v43 = vmul.f32 %v329_v37, %v233_v26  ;;  %v326_v44 = vadd.f32 %v325_v40, %v324_v38  ;;  %v332_v45 = vadd.f32 %v331_v41, %v330_v39 }
  0xfb   :  { %v260_v47 = vadd.f32 %v246_v31, %v240_v42  ;;  %v262_v48 = vadd.f32 %v254_v46, %v242_v43  ;;  %v241_v49 = vmul.f32 %v326_v44, %v228_v29  ;;  %v243_v50 = vmul.f32 %v332_v45, %v238_v28 }
  0xfd   :  { %vm264_vm1 = vcmp.gt.f32.partialorder %v260_v47, 0.0  ;;  %v268_v51 = vmul.f32 0.2, %v260_v47  ;;  %vm266_vm2 = vcmp.gt.f32.partialorder %v262_v48, 0.0  ;;  %v270_v52 = vmul.f32 0.2, %v262_v48 }
  0xfe   :  { %v261_v54 = vadd.f32 %v250_v30, %v241_v49  ;;  %v263_v55 = vadd.f32 %v258_v53, %v243_v50 }
  0xff   :  { %v272_v56 = vsel %vm264_vm1, %v260_v47, %v268_v51  ;;  %v274_v57 = vsel %vm266_vm2, %v262_v48, %v270_v52 }
 0x100   :  { %277 = vst.msk [vmem:[%s490_s3] sm:$0xff] %vm276_vm0, %v272_v56  ;;  %279 = vst.msk [vmem:[%s490_s3 + $0x10] sm:$0xff] %vm276_vm0, %v274_v57  ;;  %vm265_vm3 = vcmp.gt.f32.partialorder %v261_v54, 0.0  ;;  %v269_v58 = vmul.f32 0.2, %v261_v54  ;;  %vm267_vm4 = vcmp.gt.f32.partialorder %v263_v55, 0.0 }
 0x101   :  { %v271_v59 = vmul.f32 0.2, %v263_v55 }
 0x102   :  { %v273_v60 = vsel %vm265_vm3, %v261_v54, %v269_v58 }
 0x103   :  { %v275_v61 = vsel %vm267_vm4, %v263_v55, %v271_v59  ;;  %278 = vst.msk [vmem:[%s490_s3 + $0x8] sm:$0xff] %vm276_vm0, %v273_v60 }
 0x104   :  { %280 = vst.msk [vmem:[%s490_s3 + $0x18] sm:$0xff] %vm276_vm0, %v275_v61 }

// kernel: netG_forward.15
= control target key start
LH: loop header
LB: loop body
LE: loop exit
PB: predicated region body
PF: predicated region fallthrough
CT: control target
= control target key end

     0   :  { %v820_v1 = vmov 0   ;;  %v821_v57 = vmov 1   ;;  %vm617_vm0 = vcmask 64512   ;;  %s1054_s1 = inlined_call_operand.vmem [shape: bf16[512,8], index: 1, kind: input, shape index: {}]   ;;  %s1055_s0 = inlined_call_operand.vmem [shape: bf16[64,512], index: 0, kind: input, shape index: {}]   ;;  %s1056_s2 = inlined_call_operand.vmem [shape: f32[64,2], index: 2, kind: input, shape index: {}]   ;;  %s1057_s3 = inlined_call_operand.vmem [shape: f32[64,8], index: 3, kind: output, shape index: {}]  }
   0x1   :  { %v764_v0 = vld [vmem:[%s1054_s1 + $0x40] sm:$0xff]   ;;  %760 = vset.pattern.permute.xlu0 %v820_v1  ;;  %761 = vset.pattern.permute.xlu1 %v820_v1  ;;  %v768_v5 = vld [vmem:[%s1054_s1 + $0x48] sm:$0xff]   ;;  %v772_v9 = vld [vmem:[%s1054_s1 + $0x50] sm:$0xff]  }
   0x2   :  { %v765_v2 = vld [vmem:[%s1054_s1 + $0xc0] sm:$0xff]   ;;  %678 = vmatprep.subr.bf16.mxu0 %v764_v0  ;;  %v769_v6 = vld [vmem:[%s1054_s1 + $0xc8] sm:$0xff]   ;;  %v773_v10 = vld [vmem:[%s1054_s1 + $0xd0] sm:$0xff]  }
   0x3   :  { %v766_v3 = vld [vmem:[%s1054_s1] sm:$0xff]   ;;  %718 = vmatprep.subr.bf16.mxu1 %v765_v2  ;;  %v770_v7 = vld [vmem:[%s1054_s1 + $0x8] sm:$0xff]   ;;  %v774_v11 = vld [vmem:[%s1054_s1 + $0x10] sm:$0xff]  }
   0x4   :  { %v767_v4 = vld [vmem:[%s1054_s1 + $0x80] sm:$0xff]   ;;  %679 = vmatpush3.bf16.msra.mxu0 %v766_v3  ;;  %v771_v8 = vld [vmem:[%s1054_s1 + $0x88] sm:$0xff]   ;;  %v775_v12 = vld [vmem:[%s1054_s1 + $0x90] sm:$0xff]  }
   0x5   :  { %719 = vmatpush3.bf16.msra.mxu1 %v767_v4  ;;  %680 = vmatprep.subr.bf16.mxu0 %v768_v5  ;;  %v776_v13 = vld [vmem:[%s1054_s1 + $0x58] sm:$0xff]   ;;  %v780_v17 = vld [vmem:[%s1054_s1 + $0x60] sm:$0xff]   ;;  %v784_v21 = vld [vmem:[%s1054_s1 + $0x68] sm:$0xff]  }
   0x6   :  { %720 = vmatprep.subr.bf16.mxu1 %v769_v6  ;;  %v777_v14 = vld [vmem:[%s1054_s1 + $0xd8] sm:$0xff]   ;;  %v781_v18 = vld [vmem:[%s1054_s1 + $0xe0] sm:$0xff]   ;;  %v785_v22 = vld [vmem:[%s1054_s1 + $0xe8] sm:$0xff]  }
   0x7   :  { %v778_v15 = vld [vmem:[%s1054_s1 + $0x18] sm:$0xff]   ;;  %v782_v19 = vld [vmem:[%s1054_s1 + $0x20] sm:$0xff]   ;;  %v786_v23 = vld [vmem:[%s1054_s1 + $0x28] sm:$0xff]  }
   0x8   :  { %681 = vmatpush3.bf16.msra.mxu0 %v770_v7  ;;  %v779_v16 = vld [vmem:[%s1054_s1 + $0x98] sm:$0xff]   ;;  %v783_v20 = vld [vmem:[%s1054_s1 + $0xa0] sm:$0xff]   ;;  %v787_v24 = vld [vmem:[%s1054_s1 + $0xa8] sm:$0xff]  }
   0x9   :  { %721 = vmatpush3.bf16.msra.mxu1 %v771_v8  ;;  %682 = vmatprep.subr.bf16.mxu0 %v772_v9  ;;  %v788_v25 = vld [vmem:[%s1054_s1 + $0x70] sm:$0xff]   ;;  %v792_v29 = vld [vmem:[%s1054_s1 + $0x78] sm:$0xff]   ;;  %v497_v43 = vld [vmem:[%s1056_s2] sm:$0xff] }
   0xa   :  { %722 = vmatprep.subr.bf16.mxu1 %v773_v10  ;;  %v789_v26 = vld [vmem:[%s1054_s1 + $0xf0] sm:$0xff]   ;;  %v793_v30 = vld [vmem:[%s1054_s1 + $0xf8] sm:$0xff]   ;;  %507 = vperm.xlu0 %760, %v497_v43   ;;  %v498_v45 = vld [vmem:[%s1056_s2 + $0x8] sm:$0xff] }
   0xb   :  { %v790_v27 = vld [vmem:[%s1054_s1 + $0x30] sm:$0xff]   ;;  %v794_v31 = vld [vmem:[%s1054_s1 + $0x38] sm:$0xff]   ;;  %v501_v48 = vld [vmem:[%s1056_s2 + $0x20] sm:$0xff] }
   0xc   :  { %683 = vmatpush3.bf16.msra.mxu0 %v774_v11  ;;  %v791_v28 = vld [vmem:[%s1054_s1 + $0xb0] sm:$0xff]   ;;  %v795_v32 = vld [vmem:[%s1054_s1 + $0xb8] sm:$0xff]   ;;  %v502_v51 = vld [vmem:[%s1056_s2 + $0x28] sm:$0xff] }
   0xd   :  { %723 = vmatpush3.bf16.msra.mxu1 %v775_v12  ;;  %684 = vmatprep.subr.bf16.mxu0 %v776_v13  ;;  %v796_v33 = vld [vmem:[%s1055_s0] ss:$16 sps:$4 sm:$0xff]   ;;  %v798_v34 = vld [vmem:[%s1055_s0 + $0x4] ss:$16 sps:$4 sm:$0xff]   ;;  %v799_v35 = vld [vmem:[%s1055_s0 + $0x8] ss:$16 sps:$4 sm:$0xff]  }
   0xe   :  { %724 = vmatprep.subr.bf16.mxu1 %v777_v14  ;;  %v801_v36 = vld [vmem:[%s1055_s0 + $0xc] ss:$16 sps:$4 sm:$0xff]   ;;  %399 = vmatprep.mubr.bf16.mxu0 %v798_v34  ;;  %v802_v37 = vld [vmem:[%s1055_s0 + $0x24] ss:$16 sps:$4 sm:$0xff]   ;;  %v806_v39 = vld [vmem:[%s1055_s0 + $0x20] ss:$16 sps:$4 sm:$0xff]  }
   0xf   :  { %464 = vmatprep.mubr.bf16.mxu1 %v801_v36  ;;  %v804_v38 = vld [vmem:[%s1055_s0 + $0x2c] ss:$16 sps:$4 sm:$0xff]   ;;  %v807_v40 = vld [vmem:[%s1055_s0 + $0x28] ss:$16 sps:$4 sm:$0xff]   ;;  %v808_v41 = vld [vmem:[%s1055_s0 + $0x44] ss:$16 sps:$4 sm:$0xff]   ;;  %512 = vperm.xlu0 %760, %v498_v45  }
  0x10   :  { %685 = vmatpush3.bf16.msra.mxu0 %v778_v15  ;;  %v810_v42 = vld [vmem:[%s1055_s0 + $0x4c] ss:$16 sps:$4 sm:$0xff]   ;;  %v499_v44 = vld [vmem:[%s1056_s2 + $0x10] sm:$0xff]  ;;  %v813_v49 = vld [vmem:[%s1055_s0 + $0x48] ss:$16 sps:$4 sm:$0xff]  }
  0x11   :  { %725 = vmatpush3.bf16.msra.mxu1 %v779_v16  ;;  %686 = vmatprep.subr.bf16.mxu0 %v780_v17  ;;  %v500_v46 = vld [vmem:[%s1056_s2 + $0x18] sm:$0xff]  ;;  %v812_v47 = vld [vmem:[%s1055_s0 + $0x40] ss:$16 sps:$4 sm:$0xff]   ;;  %v814_v50 = vld [vmem:[%s1055_s0 + $0x64] ss:$16 sps:$4 sm:$0xff]  }
  0x12   :  { %726 = vmatprep.subr.bf16.mxu1 %v781_v18  ;;  %517 = vperm.xlu1 %761, %v499_v44   ;;  %v816_v52 = vld [vmem:[%s1055_s0 + $0x6c] ss:$16 sps:$4 sm:$0xff]   ;;  %v503_v53 = vld [vmem:[%s1056_s2 + $0x30] sm:$0xff]  ;;  %v819_v56 = vld [vmem:[%s1055_s0 + $0x68] ss:$16 sps:$4 sm:$0xff]  }
  0x13   :  { %527 = vperm.xlu0 %760, %v501_v48   ;;  %v504_v54 = vld [vmem:[%s1056_s2 + $0x38] sm:$0xff]  ;;  %v818_v55 = vld [vmem:[%s1055_s0 + $0x60] ss:$16 sps:$4 sm:$0xff]  }
  0x14   :  { %687 = vmatpush3.bf16.msra.mxu0 %v782_v19 }
  0x15   :  { %727 = vmatpush3.bf16.msra.mxu1 %v783_v20  ;;  %688 = vmatprep.subr.bf16.mxu0 %v784_v21 }
  0x16   :  { %728 = vmatprep.subr.bf16.mxu1 %v785_v22  ;;  %522 = vperm.xlu1 %761, %v500_v46  }
  0x17   :  { %537 = vperm.xlu0 %760, %v503_v53  }
  0x18   :  { %689 = vmatpush3.bf16.msra.mxu0 %v786_v23 }
  0x19   :  { %729 = vmatpush3.bf16.msra.mxu1 %v787_v24  ;;  %690 = vmatprep.subr.bf16.mxu0 %v788_v25 }
  0x1a   :  { %730 = vmatprep.subr.bf16.mxu1 %v789_v26  ;;  %532 = vperm.xlu1 %761, %v502_v51  }
  0x1b   :  { %762 = vset.pattern.permute.xlu0 %v821_v57 }
  0x1c   :  { %691 = vmatpush3.bf16.msra.mxu0 %v790_v27  ;;  %554 = vperm.xlu0 %762, %v497_v43  }
  0x1d   :  { %731 = vmatpush3.bf16.msra.mxu1 %v791_v28  ;;  %692 = vmatprep.subr.bf16.mxu0 %v792_v29 }
  0x1e   :  { %732 = vmatprep.subr.bf16.mxu1 %v793_v30  ;;  %542 = vperm.xlu1 %761, %v504_v54  }
  0x20   :  { %693 = vmatpush3.bf16.msra.mxu0 %v794_v31  ;;  %566 = vperm.xlu0 %762, %v500_v46  }
  0x21   :  { %733 = vmatpush3.bf16.msra.mxu1 %v795_v32 }
  0x22   :  { %763 = vset.pattern.permute.xlu1 %v821_v57 }
  0x23   :  { %400 = vmatmul.mubr.bf16.vlgmr.msra.gmra.mrb[0].mxu0 %v796_v33  ;;  %558 = vperm.xlu1 %763, %v498_v45  }
  0x24   :  { %465 = vmatmul.mubr.bf16.vlgmr.msra.gmra.mrb[0].mxu1 %v799_v35  ;;  %407 = vmatprep.mubr.bf16.mxu0 %v802_v37 }
  0x25   :  { %472 = vmatprep.mubr.bf16.mxu1 %v804_v38  ;;  %574 = vperm.xlu0 %762, %v502_v51  }
  0x27   :  { %562 = vperm.xlu1 %763, %v499_v44  }
  0x29   :  { %582 = vperm.xlu0 %762, %v504_v54  }
  0x2b   :  { %408 = vmatmul.mubr.bf16.gmra.mrb[4].mxu0 %v806_v39  ;;  %570 = vperm.xlu1 %763, %v501_v48  }
  0x2c   :  { %473 = vmatmul.mubr.bf16.gmra.mrb[4].mxu1 %v807_v40  ;;  %415 = vmatprep.mubr.bf16.mxu0 %v808_v41 }
  0x2d   :  { %480 = vmatprep.mubr.bf16.mxu1 %v810_v42 }
  0x2f   :  { %578 = vperm.xlu1 %763, %v503_v53  }
  0x33   :  { %416 = vmatmul.mubr.bf16.gmra.mrb[8].mxu0 %v812_v47 }
  0x34   :  { %481 = vmatmul.mubr.bf16.gmra.mrb[8].mxu1 %v813_v49  ;;  %423 = vmatprep.mubr.bf16.mxu0 %v814_v50 }
  0x35   :  { %488 = vmatprep.mubr.bf16.mxu1 %v816_v52 }
  0x3b   :  { %424 = vmatmul.mubr.bf16.gmra.mrb[12].mxu0 %v818_v55 }
  0x3c   :  { %489 = vmatmul.mubr.bf16.gmra.mrb[12].mxu1 %v819_v56 }
  0x89   :  { %v508_v58 = vpop.permute.xlu0 %507 }
  0x8e   :  { %v513_v60 = vpop.permute.xlu0 %512 }
  0x91   :  { %v518_v59 = vpop.permute.xlu1 %517 }
  0x92   :  { %v1010_v62 = vpop.permute.xlu0 %527 }
  0x95   :  { %v523_v61 = vpop.permute.xlu1 %522 }
  0x96   :  { %v1014_v0 = vpop.permute.xlu0 %537 }
  0x99   :  { %v1012_v63 = vpop.permute.xlu1 %532 }
  0x9b   :  { %v555_v15 = vpop.permute.xlu0 %554 }
  0x9d   :  { %v1016_v2 = vpop.permute.xlu1 %542 }
  0x9f   :  { %v567_v40 = vpop.permute.xlu0 %566 }
  0xa2   :  { %v559_v19 = vpop.permute.xlu1 %558 }
  0xa6   :  { %v563_v42 = vpop.permute.xlu1 %562 }
  0xf6   :  { %v694_v1 = vpop.f32.mrb[0].mxu0 }
  0xf7   :  { %v734_v3 = vpop.f32.mrb[0].mxu1  ;;  %v695_v4 = vpop.f32.mrb[1].mxu0 }
  0xf8   :  { %v696_v5 = vadd.f32 %v695_v4, %v694_v1  ;;  %v735_v6 = vpop.f32.mrb[1].mxu1  ;;  %v697_v7 = vpop.f32.mrb[2].mxu0 }
  0xf9   :  { %v736_v8 = vadd.f32 %v735_v6, %v734_v3  ;;  %v737_v9 = vpop.f32.mrb[2].mxu1  ;;  %v698_v10 = vpop.f32.mrb[3].mxu0 }
  0xfa   :  { %v699_v11 = vadd.f32 %v698_v10, %v697_v7  ;;  %v738_v12 = vpop.f32.mrb[3].mxu1  ;;  %v575_v1 = vpop.permute.xlu0 %574 }
  0xfb   :  { %v467_v13 = vadd.f32 %v736_v8, %v696_v5  ;;  %v739_v14 = vadd.f32 %v738_v12, %v737_v9  ;;  %v571_v6 = vpop.permute.xlu1 %570 }
  0xfd   :  { %v470_v16 = vadd.f32 %v739_v14, %v699_v11  ;;  %v545_v17 = vmul.f32 %v508_v58, %v467_v13 }
  0xfe   :  { %v700_v18 = vpop.f32.mrb[4].mxu0 }
  0xff   :  { %v585_v20 = vadd.f32 %v555_v15, %v545_v17  ;;  %v740_v21 = vpop.f32.mrb[4].mxu1  ;;  %v546_v22 = vmul.f32 %v513_v60, %v470_v16  ;;  %v701_v23 = vpop.f32.mrb[5].mxu0 }
 0x100   :  { %v702_v24 = vadd.f32 %v701_v23, %v700_v18  ;;  %v741_v25 = vpop.f32.mrb[5].mxu1  ;;  %v703_v26 = vpop.f32.mrb[6].mxu0 }
 0x101   :  { %vm593_vm1 = vcmp.gt.f32.partialorder %v585_v20, 0.0  ;;  %v601_v27 = vmul.f32 0.2, %v585_v20  ;;  %v586_v28 = vadd.f32 %v559_v19, %v546_v22  ;;  %v742_v29 = vadd.f32 %v741_v25, %v740_v21  ;;  %v743_v30 = vpop.f32.mrb[6].mxu1  ;;  %v704_v31 = vpop.f32.mrb[7].mxu0 }
 0x102   :  { %v705_v32 = vadd.f32 %v704_v31, %v703_v26  ;;  %v744_v33 = vpop.f32.mrb[7].mxu1  ;;  %v579_v26 = vpop.permute.xlu1 %578 }
 0x103   :  { %v609_v34 = vsel %vm593_vm1, %v585_v20, %v601_v27  ;;  %vm594_vm2 = vcmp.gt.f32.partialorder %v586_v28, 0.0  ;;  %v602_v35 = vmul.f32 0.2, %v586_v28  ;;  %v475_v36 = vadd.f32 %v742_v29, %v702_v24 }
 0x104   :  { %618 = vst.msk [vmem:[%s1057_s3] sm:$0xff] %vm617_vm0, %v609_v34  ;;  %v745_v37 = vadd.f32 %v744_v33, %v743_v30  ;;  %v583_v30 = vpop.permute.xlu0 %582 }
 0x105   :  { %v610_v38 = vsel %vm594_vm2, %v586_v28, %v602_v35  ;;  %v547_v39 = vmul.f32 %v518_v59, %v475_v36 }
 0x106   :  { %619 = vst.msk [vmem:[%s1057_s3 + $0x8] sm:$0xff] %vm617_vm0, %v610_v38  ;;  %v478_v41 = vadd.f32 %v745_v37, %v705_v32  ;;  %v706_v43 = vpop.f32.mrb[8].mxu0 }
 0x107   :  { %v587_v44 = vadd.f32 %v563_v42, %v547_v39  ;;  %v746_v45 = vpop.f32.mrb[8].mxu1  ;;  %v707_v46 = vpop.f32.mrb[9].mxu0 }
 0x108   :  { %v548_v47 = vmul.f32 %v523_v61, %v478_v41  ;;  %v708_v48 = vadd.f32 %v707_v46, %v706_v43  ;;  %v747_v49 = vpop.f32.mrb[9].mxu1  ;;  %v709_v50 = vpop.f32.mrb[10].mxu0 }
 0x109   :  { %vm595_vm3 = vcmp.gt.f32.partialorder %v587_v44, 0.0  ;;  %v603_v51 = vmul.f32 0.2, %v587_v44  ;;  %v748_v52 = vadd.f32 %v747_v49, %v746_v45  ;;  %v749_v53 = vpop.f32.mrb[10].mxu1  ;;  %v710_v54 = vpop.f32.mrb[11].mxu0 }
 0x10a   :  { %v588_v55 = vadd.f32 %v567_v40, %v548_v47  ;;  %v711_v56 = vadd.f32 %v710_v54, %v709_v50  ;;  %v750_v57 = vpop.f32.mrb[11].mxu1 }
 0x10b   :  { %v611_v58 = vsel %vm595_vm3, %v587_v44, %v603_v51  ;;  %v483_v59 = vadd.f32 %v748_v52, %v708_v48  ;;  %v751_v60 = vadd.f32 %v750_v57, %v749_v53 }
 0x10c   :  { %620 = vst.msk [vmem:[%s1057_s3 + $0x10] sm:$0xff] %vm617_vm0, %v611_v58  ;;  %vm596_vm4 = vcmp.gt.f32.partialorder %v588_v55, 0.0  ;;  %v604_v61 = vmul.f32 0.2, %v588_v55 }
 0x10d   :  { %v549_v3 = vmul.f32 %v1010_v62, %v483_v59  ;;  %v486_v4 = vadd.f32 %v751_v60, %v711_v56 }
 0x10e   :  { %v612_v5 = vsel %vm596_vm4, %v588_v55, %v604_v61  ;;  %v712_v7 = vpop.f32.mrb[12].mxu0 }
 0x10f   :  { %621 = vst.msk [vmem:[%s1057_s3 + $0x18] sm:$0xff] %vm617_vm0, %v612_v5  ;;  %v589_v8 = vadd.f32 %v571_v6, %v549_v3  ;;  %v550_v9 = vmul.f32 %v1012_v63, %v486_v4  ;;  %v752_v10 = vpop.f32.mrb[12].mxu1  ;;  %v713_v11 = vpop.f32.mrb[13].mxu0 }
 0x110   :  { %v714_v12 = vadd.f32 %v713_v11, %v712_v7  ;;  %v753_v13 = vpop.f32.mrb[13].mxu1  ;;  %v715_v14 = vpop.f32.mrb[14].mxu0 }
 0x111   :  { %vm597_vm5 = vcmp.gt.f32.partialorder %v589_v8, 0.0  ;;  %v605_v15 = vmul.f32 0.2, %v589_v8  ;;  %v590_v62 = vadd.f32 %v575_v1, %v550_v9  ;;  %v754_v16 = vadd.f32 %v753_v13, %v752_v10  ;;  %v755_v17 = vpop.f32.mrb[14].mxu1  ;;  %v716_v18 = vpop.f32.mrb[15].mxu0 }
 0x112   :  { %v717_v19 = vadd.f32 %v716_v18, %v715_v14  ;;  %v756_v20 = vpop.f32.mrb[15].mxu1 }
 0x113   :  { %v613_v21 = vsel %vm597_vm5, %v589_v8, %v605_v15  ;;  %vm598_vm6 = vcmp.gt.f32.partialorder %v590_v62, 0.0  ;;  %v606_v22 = vmul.f32 0.2, %v590_v62  ;;  %v491_v23 = vadd.f32 %v754_v16, %v714_v12 }
 0x114   :  { %622 = vst.msk [vmem:[%s1057_s3 + $0x20] sm:$0xff] %vm617_vm0, %v613_v21  ;;  %v757_v63 = vadd.f32 %v756_v20, %v755_v17 }
 0x115   :  { %v614_v24 = vsel %vm598_vm6, %v590_v62, %v606_v22  ;;  %v551_v25 = vmul.f32 %v1014_v0, %v491_v23 }
 0x116   :  { %623 = vst.msk [vmem:[%s1057_s3 + $0x28] sm:$0xff] %vm617_vm0, %v614_v24  ;;  %v494_v27 = vadd.f32 %v757_v63, %v717_v19 }
 0x117   :  { %v591_v28 = vadd.f32 %v579_v26, %v551_v25 }
 0x118   :  { %v552_v29 = vmul.f32 %v1016_v2, %v494_v27 }
 0x119   :  { %vm599_vm7 = vcmp.gt.f32.partialorder %v591_v28, 0.0  ;;  %v607_v31 = vmul.f32 0.2, %v591_v28 }
 0x11a   :  { %v592_v32 = vadd.f32 %v583_v30, %v552_v29 }
 0x11b   :  { %v615_v33 = vsel %vm599_vm7, %v591_v28, %v607_v31 }
 0x11c   :  { %624 = vst.msk [vmem:[%s1057_s3 + $0x30] sm:$0xff] %vm617_vm0, %v615_v33  ;;  %vm600_vm8 = vcmp.gt.f32.partialorder %v592_v32, 0.0  ;;  %v608_v0 = vmul.f32 0.2, %v592_v32 }
 0x11e   :  { %v616_v34 = vsel %vm600_vm8, %v592_v32, %v608_v0 }
 0x11f   :  { %625 = vst.msk [vmem:[%s1057_s3 + $0x38] sm:$0xff] %vm617_vm0, %v616_v34 }

// kernel: netG_forward.16
= control target key start
LH: loop header
LB: loop body
LE: loop exit
PB: predicated region body
PF: predicated region fallthrough
CT: control target
= control target key end

     0   :  { %v1010_v1 = vmov 0   ;;  %vm427_vm0 = vcmask 523264   ;;  %vm755_vm1 = vcmask 64512   ;;  %s1287_s1 = inlined_call_operand.vmem [shape: bf16[576,8], index: 1, kind: input, shape index: {}]   ;;  %s1288_s0 = inlined_call_operand.vmem [shape: bf16[64,576], index: 0, kind: input, shape index: {}]   ;;  %s1289_s2 = inlined_call_operand.vmem [shape: f32[64,2], index: 2, kind: input, shape index: {}]   ;;  %s1290_s3 = inlined_call_operand.vmem [shape: f32[64,8], index: 3, kind: output, shape index: {}]  }
   0x1   :  { %v946_v0 = vld [vmem:[%s1287_s1 + $0x40] sm:$0xff]   ;;  %943 = vset.pattern.permute.xlu1 %v1010_v1  ;;  %942 = vset.pattern.permute.xlu0 %v1010_v1  ;;  %v950_v5 = vld [vmem:[%s1287_s1 + $0x48] sm:$0xff]   ;;  %v954_v9 = vld [vmem:[%s1287_s1 + $0x50] sm:$0xff]   ;;  %v1011_v1 = vmov 1  }
   0x2   :  { %v947_v2 = vld [vmem:[%s1287_s1 + $0xc0] sm:$0xff]   ;;  %828 = vmatprep.subr.bf16.mxu0 %v946_v0  ;;  %v951_v6 = vld [vmem:[%s1287_s1 + $0xc8] sm:$0xff]   ;;  %v955_v10 = vld [vmem:[%s1287_s1 + $0xd0] sm:$0xff]  }
   0x3   :  { %v948_v3 = vld [vmem:[%s1287_s1] sm:$0xff]   ;;  %868 = vmatprep.subr.bf16.mxu1 %v947_v2  ;;  %v952_v7 = vld [vmem:[%s1287_s1 + $0x8] sm:$0xff]   ;;  %v956_v11 = vld [vmem:[%s1287_s1 + $0x10] sm:$0xff]  }
   0x4   :  { %v949_v4 = vld [vmem:[%s1287_s1 + $0x80] sm:$0xff]   ;;  %829 = vmatpush3.bf16.msra.mxu0 %v948_v3  ;;  %v953_v8 = vld [vmem:[%s1287_s1 + $0x88] sm:$0xff]   ;;  %v957_v12 = vld [vmem:[%s1287_s1 + $0x90] sm:$0xff]  }
   0x5   :  { %869 = vmatpush3.bf16.msra.mxu1 %v949_v4  ;;  %830 = vmatprep.subr.bf16.mxu0 %v950_v5  ;;  %v958_v13 = vld [vmem:[%s1287_s1 + $0x58] sm:$0xff]   ;;  %v962_v17 = vld [vmem:[%s1287_s1 + $0x60] sm:$0xff]   ;;  %v966_v21 = vld [vmem:[%s1287_s1 + $0x68] sm:$0xff]  }
   0x6   :  { %870 = vmatprep.subr.bf16.mxu1 %v951_v6  ;;  %v959_v14 = vld [vmem:[%s1287_s1 + $0xd8] sm:$0xff]   ;;  %v963_v18 = vld [vmem:[%s1287_s1 + $0xe0] sm:$0xff]   ;;  %v967_v22 = vld [vmem:[%s1287_s1 + $0xe8] sm:$0xff]  }
   0x7   :  { %v960_v15 = vld [vmem:[%s1287_s1 + $0x18] sm:$0xff]   ;;  %v964_v19 = vld [vmem:[%s1287_s1 + $0x20] sm:$0xff]   ;;  %v968_v23 = vld [vmem:[%s1287_s1 + $0x28] sm:$0xff]  }
   0x8   :  { %831 = vmatpush3.bf16.msra.mxu0 %v952_v7  ;;  %v961_v16 = vld [vmem:[%s1287_s1 + $0x98] sm:$0xff]   ;;  %v965_v20 = vld [vmem:[%s1287_s1 + $0xa0] sm:$0xff]   ;;  %v969_v24 = vld [vmem:[%s1287_s1 + $0xa8] sm:$0xff]  }
   0x9   :  { %871 = vmatpush3.bf16.msra.mxu1 %v953_v8  ;;  %832 = vmatprep.subr.bf16.mxu0 %v954_v9  ;;  %v970_v25 = vld [vmem:[%s1287_s1 + $0x70] sm:$0xff]   ;;  %v974_v29 = vld [vmem:[%s1287_s1 + $0x78] sm:$0xff]   ;;  %v983_v36 = vld [vmem:[%s1288_s0 + $0xc] ss:$20 sps:$4 sm:$0xff]  }
   0xa   :  { %872 = vmatprep.subr.bf16.mxu1 %v955_v10  ;;  %v971_v26 = vld [vmem:[%s1287_s1 + $0xf0] sm:$0xff]   ;;  %v975_v30 = vld [vmem:[%s1287_s1 + $0xf8] sm:$0xff]   ;;  %v984_v37 = vld [vmem:[%s1287_s1 + $0x100] sm:$0xff]   ;;  %537 = vmatprep.mubr.bf16.mxu1 %v983_v36 }
   0xb   :  { %v972_v27 = vld [vmem:[%s1287_s1 + $0x30] sm:$0xff]   ;;  %v976_v31 = vld [vmem:[%s1287_s1 + $0x38] sm:$0xff]   ;;  %v985_v38 = vld [vmem:[%s1288_s0 + $0x2c] ss:$20 sps:$4 sm:$0xff]  }
   0xc   :  { %833 = vmatpush3.bf16.msra.mxu0 %v956_v11  ;;  %v973_v28 = vld [vmem:[%s1287_s1 + $0xb0] sm:$0xff]   ;;  %v977_v32 = vld [vmem:[%s1287_s1 + $0xb8] sm:$0xff]   ;;  %v991_v40 = vld [vmem:[%s1287_s1 + $0x108] sm:$0xff]  }
   0xd   :  { %873 = vmatpush3.bf16.msra.mxu1 %v957_v12  ;;  %834 = vmatprep.subr.bf16.mxu0 %v958_v13  ;;  %v978_v33 = vld [vmem:[%s1288_s0] ss:$20 sps:$4 sm:$0xff]   ;;  %v980_v34 = vld [vmem:[%s1288_s0 + $0x4] ss:$20 sps:$4 sm:$0xff]   ;;  %v981_v35 = vld [vmem:[%s1288_s0 + $0x8] ss:$20 sps:$4 sm:$0xff]  }
   0xe   :  { %874 = vmatprep.subr.bf16.mxu1 %v959_v14  ;;  %472 = vmatprep.mubr.bf16.mxu0 %v980_v34  ;;  %v987_v39 = vld [vmem:[%s1288_s0 + $0x34] ss:$20 sps:$4 sm:$0xff]   ;;  %v990_v42 = vld [vmem:[%s1288_s0 + $0x30] ss:$20 sps:$4 sm:$0xff]   ;;  %v1005_v46 = vld [vmem:[%s1287_s1 + $0x118] sm:$0xff]  }
   0xf   :  { %v989_v41 = vld [vmem:[%s1288_s0 + $0x28] ss:$20 sps:$4 sm:$0xff]   ;;  %v998_v45 = vld [vmem:[%s1287_s1 + $0x110] sm:$0xff]   ;;  %v997_v48 = vld [vmem:[%s1288_s0 + $0x58] ss:$20 sps:$4 sm:$0xff]  }
  0x10   :  { %835 = vmatpush3.bf16.msra.mxu0 %v960_v15  ;;  %v992_v43 = vld [vmem:[%s1288_s0 + $0x54] ss:$20 sps:$4 sm:$0xff]   ;;  %v994_v44 = vld [vmem:[%s1288_s0 + $0x5c] ss:$20 sps:$4 sm:$0xff]   ;;  %v1001_v50 = vld [vmem:[%s1288_s0 + $0x84] ss:$20 sps:$4 sm:$0xff]  }
  0x11   :  { %875 = vmatpush3.bf16.msra.mxu1 %v961_v16  ;;  %836 = vmatprep.subr.bf16.mxu0 %v962_v17  ;;  %v996_v47 = vld [vmem:[%s1288_s0 + $0x50] ss:$20 sps:$4 sm:$0xff]   ;;  %v638_v53 = vld [vmem:[%s1289_s2 + $0x18] sm:$0xff]  ;;  %v636_v54 = vld [vmem:[%s1289_s2 + $0x8] sm:$0xff] }
  0x12   :  { %876 = vmatprep.subr.bf16.mxu1 %v963_v18  ;;  %v999_v49 = vld [vmem:[%s1288_s0 + $0x7c] ss:$20 sps:$4 sm:$0xff]   ;;  %v635_v52 = vld [vmem:[%s1289_s2] sm:$0xff]  ;;  %v1003_v55 = vld [vmem:[%s1288_s0 + $0x78] ss:$20 sps:$4 sm:$0xff]  }
  0x13   :  { %v637_v51 = vld [vmem:[%s1289_s2 + $0x10] sm:$0xff]  ;;  %645 = vperm.xlu0 %942, %v635_v52   ;;  %v640_v58 = vld [vmem:[%s1289_s2 + $0x28] sm:$0xff]  ;;  %v639_v60 = vld [vmem:[%s1289_s2 + $0x20] sm:$0xff] }
  0x14   :  { %837 = vmatpush3.bf16.msra.mxu0 %v964_v19  ;;  %655 = vperm.xlu1 %943, %v637_v51   ;;  %v1004_v56 = vld [vmem:[%s1288_s0 + $0x80] ss:$20 sps:$4 sm:$0xff]   ;;  %v1006_v57 = vld [vmem:[%s1288_s0 + $0x10] ss:$20 sps:$4 sm:$0xff]   ;;  %v642_v61 = vld [vmem:[%s1289_s2 + $0x38] sm:$0xff] }
  0x15   :  { %877 = vmatpush3.bf16.msra.mxu1 %v965_v20  ;;  %838 = vmatprep.subr.bf16.mxu0 %v966_v21  ;;  %v1007_v59 = vld [vmem:[%s1288_s0 + $0x60] ss:$20 sps:$4 sm:$0xff]   ;;  %v1008_v63 = vld [vmem:[%s1288_s0 + $0x38] ss:$20 sps:$4 sm:$0xff]   ;;  %v1009_v0 = vld [vmem:[%s1288_s0 + $0x88] ss:$20 sps:$4 sm:$0xff]  }
  0x16   :  { %878 = vmatprep.subr.bf16.mxu1 %v967_v22  ;;  %v641_v62 = vld [vmem:[%s1289_s2 + $0x30] sm:$0xff] }
  0x17   :  { %650 = vperm.xlu0 %942, %v636_v54  }
  0x18   :  { %839 = vmatpush3.bf16.msra.mxu0 %v968_v23  ;;  %660 = vperm.xlu1 %943, %v638_v53  }
  0x19   :  { %879 = vmatpush3.bf16.msra.mxu1 %v969_v24  ;;  %840 = vmatprep.subr.bf16.mxu0 %v970_v25 }
  0x1a   :  { %880 = vmatprep.subr.bf16.mxu1 %v971_v26 }
  0x1b   :  { %665 = vperm.xlu0 %942, %v639_v60  }
  0x1c   :  { %841 = vmatpush3.bf16.msra.mxu0 %v972_v27  ;;  %670 = vperm.xlu1 %943, %v640_v58  }
  0x1d   :  { %881 = vmatpush3.bf16.msra.mxu1 %v973_v28  ;;  %842 = vmatprep.subr.bf16.mxu0 %v974_v29 }
  0x1e   :  { %882 = vmatprep.subr.bf16.mxu1 %v975_v30 }
  0x1f   :  { %675 = vperm.xlu0 %942, %v641_v62  }
  0x20   :  { %843 = vmatpush3.bf16.msra.mxu0 %v976_v31  ;;  %680 = vperm.xlu1 %943, %v642_v61  }
  0x21   :  { %883 = vmatpush3.bf16.msra.mxu1 %v977_v32  ;;  %916 = vmatprep.subr.bf16.mxu0 %v984_v37 }
  0x22   :  { %932 = vmatprep.subr.bf16.mxu1 %v984_v37 }
  0x23   :  { %473 = vmatmul.mubr.bf16.vlgmr.msra.gmra.mrb[0].mxu0 %v978_v33  ;;  %944 = vset.pattern.permute.xlu0 %v1011_v1 }
  0x24   :  { %538 = vmatmul.mubr.bf16.vlgmr.msra.gmra.mrb[0].mxu1 %v981_v35  ;;  %917 = vmatpush3.bf16.msra.mxu0 %v984_v37 }
  0x25   :  { %936 = vmatpush3.bf16.msra.mxu1 %v984_v37  ;;  %480 = vmatprep.mubr.bf16.mxu0 %v985_v38 }
  0x26   :  { %545 = vmatprep.mubr.bf16.mxu1 %v987_v39  ;;  %918 = vmatprep.subr.bf16.mxu0 %v991_v40 }
  0x27   :  { %933 = vmatprep.subr.bf16.mxu1 %v991_v40  ;;  %945 = vset.pattern.permute.xlu1 %v1011_v1 }
  0x28   :  { %919 = vmatpush3.bf16.msra.mxu0 %v991_v40  ;;  %696 = vperm.xlu1 %945, %v636_v54  }
  0x29   :  { %937 = vmatpush3.bf16.msra.mxu1 %v991_v40  ;;  %920 = vmatprep.subr.bf16.mxu0 %v998_v45 }
  0x2a   :  { %934 = vmatprep.subr.bf16.mxu1 %v998_v45  ;;  %692 = vperm.xlu0 %944, %v635_v52  }
  0x2b   :  { %481 = vmatmul.mubr.bf16.gmra.mrb[4].mxu0 %v989_v41 }
  0x2c   :  { %546 = vmatmul.mubr.bf16.gmra.mrb[4].mxu1 %v990_v42  ;;  %488 = vmatprep.mubr.bf16.mxu0 %v992_v43 }
  0x2d   :  { %553 = vmatprep.mubr.bf16.mxu1 %v994_v44  ;;  %921 = vmatpush3.bf16.msra.mxu0 %v998_v45 }
  0x2e   :  { %938 = vmatpush3.bf16.msra.mxu1 %v998_v45  ;;  %922 = vmatprep.subr.bf16.mxu0 %v1005_v46 }
  0x2f   :  { %935 = vmatprep.subr.bf16.mxu1 %v1005_v46  ;;  %700 = vperm.xlu1 %945, %v637_v51  }
  0x30   :  { %704 = vperm.xlu0 %944, %v638_v53  }
  0x31   :  { %923 = vmatpush3.bf16.msra.mxu0 %v1005_v46 }
  0x32   :  { %939 = vmatpush3.bf16.msra.mxu1 %v1005_v46 }
  0x33   :  { %489 = vmatmul.mubr.bf16.gmra.mrb[8].mxu0 %v996_v47  ;;  %708 = vperm.xlu1 %945, %v639_v60  }
  0x34   :  { %554 = vmatmul.mubr.bf16.gmra.mrb[8].mxu1 %v997_v48  ;;  %496 = vmatprep.mubr.bf16.mxu0 %v999_v49 }
  0x35   :  { %561 = vmatprep.mubr.bf16.mxu1 %v1001_v50  ;;  %712 = vperm.xlu0 %944, %v640_v58  }
  0x37   :  { %716 = vperm.xlu1 %945, %v641_v62  }
  0x39   :  { %720 = vperm.xlu0 %944, %v642_v61  }
  0x3b   :  { %497 = vmatmul.mubr.bf16.gmra.mrb[12].mxu0 %v1003_v55 }
  0x3c   :  { %562 = vmatmul.mubr.bf16.gmra.mrb[12].mxu1 %v1004_v56  ;;  %924 = vmatprep.mubr.msk.bf16.mxu0 %vm427_vm0, %v1006_v57 }
  0x3d   :  { %928 = vmatprep.mubr.msk.bf16.mxu1 %vm427_vm0, %v1007_v59 }
  0x43   :  { %925 = vmatmul.mubr.msk.bf16.vlgmr.msra.gmra.mrb[16].mxu0 %vm427_vm0, %v1008_v63 }
  0x44   :  { %929 = vmatmul.mubr.msk.bf16.vlgmr.msra.gmra.mrb[16].mxu1 %vm427_vm0, %v1009_v0 }
  0x92   :  { %v1230_v3 = vpop.permute.xlu0 %645 }
  0x93   :  { %v1228_v2 = vpop.permute.xlu1 %655 }
  0x96   :  { %v1234_v5 = vpop.permute.xlu0 %650 }
  0x97   :  { %v1232_v4 = vpop.permute.xlu1 %660 }
  0x9a   :  { %v1238_v8 = vpop.permute.xlu0 %665 }
  0x9b   :  { %v1236_v6 = vpop.permute.xlu1 %670 }
  0x9e   :  { %v676_v24 = vpop.permute.xlu0 %675 }
  0x9f   :  { %v1240_v21 = vpop.permute.xlu1 %680 }
  0xa7   :  { %v1244_v37 = vpop.permute.xlu1 %696 }
  0xa9   :  { %v693_v39 = vpop.permute.xlu0 %692 }
  0xae   :  { %v701_v53 = vpop.permute.xlu1 %700 }
  0xaf   :  { %v705_v55 = vpop.permute.xlu0 %704 }
  0xf6   :  { %v844_v7 = vpop.f32.mrb[0].mxu0 }
  0xf7   :  { %v884_v9 = vpop.f32.mrb[0].mxu1  ;;  %v845_v10 = vpop.f32.mrb[1].mxu0 }
  0xf8   :  { %v846_v11 = vadd.f32 %v845_v10, %v844_v7  ;;  %v885_v12 = vpop.f32.mrb[1].mxu1  ;;  %v847_v13 = vpop.f32.mrb[2].mxu0 }
  0xf9   :  { %v886_v14 = vadd.f32 %v885_v12, %v884_v9  ;;  %v887_v15 = vpop.f32.mrb[2].mxu1  ;;  %v848_v16 = vpop.f32.mrb[3].mxu0 }
  0xfa   :  { %v849_v17 = vadd.f32 %v848_v16, %v847_v13  ;;  %v888_v18 = vpop.f32.mrb[3].mxu1  ;;  %v713_v13 = vpop.permute.xlu0 %712 }
  0xfb   :  { %v889_v19 = vadd.f32 %v888_v18, %v887_v15  ;;  %v540_v20 = vadd.f32 %v886_v14, %v846_v11  ;;  %v709_v11 = vpop.permute.xlu1 %708 }
  0xfd   :  { %v1242_v22 = vadd.f32 %v889_v19, %v849_v17 }
  0xfe   :  { %v850_v23 = vpop.f32.mrb[4].mxu0 }
  0xff   :  { %v890_v25 = vpop.f32.mrb[4].mxu1  ;;  %v851_v26 = vpop.f32.mrb[5].mxu0 }
 0x100   :  { %v852_v27 = vadd.f32 %v851_v26, %v850_v23  ;;  %v891_v28 = vpop.f32.mrb[5].mxu1  ;;  %v853_v29 = vpop.f32.mrb[6].mxu0 }
 0x101   :  { %v892_v30 = vadd.f32 %v891_v28, %v890_v25  ;;  %v893_v31 = vpop.f32.mrb[6].mxu1  ;;  %v854_v32 = vpop.f32.mrb[7].mxu0 }
 0x102   :  { %v855_v33 = vadd.f32 %v854_v32, %v853_v29  ;;  %v894_v34 = vpop.f32.mrb[7].mxu1 }
 0x103   :  { %v895_v35 = vadd.f32 %v894_v34, %v893_v31  ;;  %v548_v36 = vadd.f32 %v892_v30, %v852_v27 }
 0x105   :  { %v551_v38 = vadd.f32 %v895_v35, %v855_v33 }
 0x106   :  { %v856_v40 = vpop.f32.mrb[8].mxu0 }
 0x107   :  { %v896_v41 = vpop.f32.mrb[8].mxu1  ;;  %v857_v42 = vpop.f32.mrb[9].mxu0 }
 0x108   :  { %v858_v43 = vadd.f32 %v857_v42, %v856_v40  ;;  %v897_v44 = vpop.f32.mrb[9].mxu1  ;;  %v859_v45 = vpop.f32.mrb[10].mxu0 }
 0x109   :  { %v898_v46 = vadd.f32 %v897_v44, %v896_v41  ;;  %v899_v47 = vpop.f32.mrb[10].mxu1  ;;  %v860_v48 = vpop.f32.mrb[11].mxu0 }
 0x10a   :  { %v861_v49 = vadd.f32 %v860_v48, %v859_v45  ;;  %v900_v50 = vpop.f32.mrb[11].mxu1 }
 0x10b   :  { %v901_v51 = vadd.f32 %v900_v50, %v899_v47  ;;  %v556_v52 = vadd.f32 %v898_v46, %v858_v43  ;;  %v721_v47 = vpop.permute.xlu0 %720 }
 0x10d   :  { %v559_v54 = vadd.f32 %v901_v51, %v861_v49 }
 0x10e   :  { %v862_v56 = vpop.f32.mrb[12].mxu0 }
 0x10f   :  { %v902_v57 = vpop.f32.mrb[12].mxu1  ;;  %v863_v58 = vpop.f32.mrb[13].mxu0 }
 0x110   :  { %v864_v59 = vadd.f32 %v863_v58, %v862_v56  ;;  %v903_v60 = vpop.f32.mrb[13].mxu1  ;;  %v865_v61 = vpop.f32.mrb[14].mxu0 }
 0x111   :  { %v904_v62 = vadd.f32 %v903_v60, %v902_v57  ;;  %v905_v63 = vpop.f32.mrb[14].mxu1  ;;  %v866_v0 = vpop.f32.mrb[15].mxu0 }
 0x112   :  { %v867_v1 = vadd.f32 %v866_v0, %v865_v61  ;;  %v906_v7 = vpop.f32.mrb[15].mxu1 }
 0x113   :  { %v907_v9 = vadd.f32 %v906_v7, %v905_v63  ;;  %v564_v10 = vadd.f32 %v904_v62, %v864_v59 }
 0x115   :  { %v567_v12 = vadd.f32 %v907_v9, %v867_v1 }
 0x116   :  { %v926_v14 = vpop.f32.mrb[16].mxu0 }
 0x117   :  { %v613_v15 = vadd.f32 %v926_v14, %v548_v36  ;;  %v930_v16 = vpop.f32.mrb[16].mxu1  ;;  %v604_v17 = vpop.f32.mrb[17].mxu0 }
 0x118   :  { %v629_v18 = vadd.f32 %v930_v16, %v564_v10  ;;  %v605_v19 = vadd.f32 %v604_v17, %v540_v20  ;;  %v620_v23 = vpop.f32.mrb[17].mxu1  ;;  %v927_v25 = vpop.f32.mrb[18].mxu0 }
 0x119   :  { %v685_v26 = vmul.f32 %v1228_v2, %v613_v15  ;;  %v621_v27 = vadd.f32 %v620_v23, %v556_v52  ;;  %v616_v28 = vadd.f32 %v927_v25, %v551_v38  ;;  %v931_v29 = vpop.f32.mrb[18].mxu1  ;;  %v607_v30 = vpop.f32.mrb[19].mxu0 }
 0x11a   :  { %v689_v31 = vmul.f32 %v676_v24, %v629_v18  ;;  %v683_v32 = vmul.f32 %v1230_v3, %v605_v19  ;;  %v632_v33 = vadd.f32 %v931_v29, %v567_v12  ;;  %v608_v34 = vadd.f32 %v607_v30, %v1242_v22  ;;  %v623_v35 = vpop.f32.mrb[19].mxu1  ;;  %v717_v36 = vpop.permute.xlu1 %716 }
 0x11b   :  { %v725_v40 = vadd.f32 %v701_v53, %v685_v26  ;;  %v687_v20 = vmul.f32 %v1238_v8, %v621_v27  ;;  %v686_v41 = vmul.f32 %v1232_v4, %v616_v28  ;;  %v624_v42 = vadd.f32 %v623_v35, %v559_v54 }
 0x11c   :  { %v729_v2 = vadd.f32 %v717_v36, %v689_v31  ;;  %v723_v43 = vadd.f32 %v693_v39, %v683_v32  ;;  %v690_v38 = vmul.f32 %v1240_v21, %v632_v33  ;;  %v684_v44 = vmul.f32 %v1234_v5, %v608_v34 }
 0x11d   :  { %vm733_vm2 = vcmp.gt.f32.partialorder %v725_v40, 0.0  ;;  %v741_v24 = vmul.f32 0.2, %v725_v40  ;;  %v727_v3 = vadd.f32 %v709_v11, %v687_v20  ;;  %v726_v45 = vadd.f32 %v705_v55, %v686_v41 }
 0x11e   :  { %vm737_vm3 = vcmp.gt.f32.partialorder %v729_v2, 0.0  ;;  %v745_v22 = vmul.f32 0.2, %v729_v2  ;;  %vm731_vm4 = vcmp.gt.f32.partialorder %v723_v43, 0.0  ;;  %v739_v46 = vmul.f32 0.2, %v723_v43 }
 0x11f   :  { %v749_v48 = vsel %vm733_vm2, %v725_v40, %v741_v24  ;;  %vm735_vm5 = vcmp.gt.f32.partialorder %v727_v3, 0.0  ;;  %v743_v8 = vmul.f32 0.2, %v727_v3  ;;  %vm734_vm6 = vcmp.gt.f32.partialorder %v726_v45, 0.0 }
 0x120   :  { %758 = vst.msk [vmem:[%s1290_s3 + $0x10] sm:$0xff] %vm755_vm1, %v749_v48  ;;  %v753_v4 = vsel %vm737_vm3, %v729_v2, %v745_v22  ;;  %v747_v5 = vsel %vm731_vm4, %v723_v43, %v739_v46  ;;  %v742_v21 = vmul.f32 0.2, %v726_v45  ;;  %v730_v39 = vadd.f32 %v721_v47, %v690_v38 }
 0x121   :  { %762 = vst.msk [vmem:[%s1290_s3 + $0x30] sm:$0xff] %vm755_vm1, %v753_v4  ;;  %756 = vst.msk [vmem:[%s1290_s3] sm:$0xff] %vm755_vm1, %v747_v5  ;;  %v751_v49 = vsel %vm735_vm5, %v727_v3, %v743_v8  ;;  %v724_v50 = vadd.f32 %v1244_v37, %v684_v44  ;;  %v688_v51 = vmul.f32 %v1236_v6, %v624_v42 }
 0x122   :  { %760 = vst.msk [vmem:[%s1290_s3 + $0x20] sm:$0xff] %vm755_vm1, %v751_v49  ;;  %v750_v52 = vsel %vm734_vm6, %v726_v45, %v742_v21  ;;  %vm738_vm7 = vcmp.gt.f32.partialorder %v730_v39, 0.0  ;;  %v746_v53 = vmul.f32 0.2, %v730_v39 }
 0x123   :  { %759 = vst.msk [vmem:[%s1290_s3 + $0x18] sm:$0xff] %vm755_vm1, %v750_v52  ;;  %vm732_vm8 = vcmp.gt.f32.partialorder %v724_v50, 0.0  ;;  %v740_v54 = vmul.f32 0.2, %v724_v50  ;;  %v728_v55 = vadd.f32 %v713_v13, %v688_v51 }
 0x124   :  { %v754_v56 = vsel %vm738_vm7, %v730_v39, %v746_v53 }
 0x125   :  { %763 = vst.msk [vmem:[%s1290_s3 + $0x38] sm:$0xff] %vm755_vm1, %v754_v56  ;;  %v748_v6 = vsel %vm732_vm8, %v724_v50, %v740_v54  ;;  %vm736_vm9 = vcmp.gt.f32.partialorder %v728_v55, 0.0  ;;  %v744_v37 = vmul.f32 0.2, %v728_v55 }
 0x126   :  { %757 = vst.msk [vmem:[%s1290_s3 + $0x8] sm:$0xff] %vm755_vm1, %v748_v6 }
 0x127   :  { %v752_v57 = vsel %vm736_vm9, %v728_v55, %v744_v37 }
 0x128   :  { %761 = vst.msk [vmem:[%s1290_s3 + $0x28] sm:$0xff] %vm755_vm1, %v752_v57 }

// kernel: netG_forward.18
= control target key start
LH: loop header
LB: loop body
LE: loop exit
PB: predicated region body
PF: predicated region fallthrough
CT: control target
= control target key end

     0   :  { %v1100_v1 = vmov 0   ;;  %vm527_vm0 = vcmask 801792   ;;  %vm540_vm1 = vcmask 1040384   ;;  %vm843_vm2 = vcmask 64512   ;;  %s1436_s1 = inlined_call_operand.vmem [shape: bf16[738,8], index: 1, kind: input, shape index: {}]   ;;  %s1437_s0 = inlined_call_operand.vmem [shape: bf16[64,738], index: 0, kind: input, shape index: {}]   ;;  %s1438_s2 = inlined_call_operand.vmem [shape: f32[64,2], index: 2, kind: input, shape index: {}]   ;;  %s1439_s3 = inlined_call_operand.vmem [shape: f32[64,8], index: 3, kind: output, shape index: {}]  }
   0x1   :  { %v1017_v0 = vld [vmem:[%s1436_s1 + $0x40] sm:$0xff]   ;;  %674 = vmatprep.subr.bf16.mxu0 %v1100_v1  ;;  %1013 = vset.pattern.permute.xlu0 %v1100_v1  ;;  %v1019_v3 = vld [vmem:[%s1436_s1 + $0x48] sm:$0xff]   ;;  %v1021_v5 = vld [vmem:[%s1436_s1 + $0x50] sm:$0xff]  }
   0x2   :  { %v1018_v2 = vld [vmem:[%s1436_s1] sm:$0xff]   ;;  %1014 = vset.pattern.permute.xlu1 %v1100_v1  ;;  %931 = vmatprep.subr.bf16.mxu1 %v1017_v0  ;;  %v1020_v4 = vld [vmem:[%s1436_s1 + $0x8] sm:$0xff]   ;;  %v1023_v7 = vld [vmem:[%s1436_s1 + $0x10] sm:$0xff]  }
   0x3   :  { %932 = vmatpush3.bf16.msra.mxu1 %v1018_v2  ;;  %v1022_v6 = vld [vmem:[%s1436_s1 + $0x100] sm:$0xff]   ;;  %v1024_v8 = vld [vmem:[%s1436_s1 + $0x58] sm:$0xff]   ;;  %v1025_v9 = vld [vmem:[%s1436_s1 + $0x108] sm:$0xff]  }
   0x4   :  { %933 = vmatprep.subr.bf16.mxu1 %v1019_v3  ;;  %675 = vmatpush1.bf16.msra.mxu0 %v1022_v6  ;;  %v1026_v10 = vld [vmem:[%s1436_s1 + $0x18] sm:$0xff]   ;;  %v1028_v11 = vld [vmem:[%s1436_s1 + $0x110] sm:$0xff]   ;;  %v1027_v12 = vld [vmem:[%s1436_s1 + $0x60] sm:$0xff]  }
   0x5   :  { %676 = vmatprep.subr.bf16.mxu0 %v1100_v1  ;;  %v1029_v13 = vld [vmem:[%s1436_s1 + $0x20] sm:$0xff]   ;;  %v1031_v14 = vld [vmem:[%s1436_s1 + $0x118] sm:$0xff]   ;;  %v1030_v15 = vld [vmem:[%s1436_s1 + $0x68] sm:$0xff]  }
   0x6   :  { %v1032_v16 = vld [vmem:[%s1436_s1 + $0x28] sm:$0xff]   ;;  %v1034_v17 = vld [vmem:[%s1436_s1 + $0x120] sm:$0xff]   ;;  %v1033_v18 = vld [vmem:[%s1436_s1 + $0x70] sm:$0xff]  }
   0x7   :  { %934 = vmatpush3.bf16.msra.mxu1 %v1020_v4  ;;  %v1035_v19 = vld [vmem:[%s1436_s1 + $0x30] sm:$0xff]   ;;  %v1037_v20 = vld [vmem:[%s1436_s1 + $0x128] sm:$0xff]   ;;  %v1041_v21 = vld [vmem:[%s1437_s0 + $0x4] ss:$24 sps:$4 sm:$0xff]  }
   0x8   :  { %935 = vmatprep.subr.bf16.mxu1 %v1021_v5  ;;  %677 = vmatpush1.bf16.msra.mxu0 %v1025_v9  ;;  %v1036_v22 = vld [vmem:[%s1436_s1 + $0x78] sm:$0xff]   ;;  %v1043_v24 = vld [vmem:[%s1436_s1 + $0x130] sm:$0xff]   ;;  %v1042_v25 = vld [vmem:[%s1436_s1 + $0xc0] sm:$0xff]  }
   0x9   :  { %678 = vmatprep.subr.bf16.mxu0 %v1100_v1  ;;  %576 = vmatprep.mubr.bf16.mxu1 %v1041_v21  ;;  %v1038_v23 = vld [vmem:[%s1436_s1 + $0x38] sm:$0xff]   ;;  %v1044_v27 = vld [vmem:[%s1436_s1 + $0x80] sm:$0xff]   ;;  %v1045_v28 = vld [vmem:[%s1436_s1 + $0xc8] sm:$0xff]  }
   0xa   :  { %v1039_v26 = vld [vmem:[%s1437_s0] ss:$24 sps:$4 sm:$0xff]   ;;  %v1048_v30 = vld [vmem:[%s1437_s0 + $0x34] ss:$24 sps:$4 sm:$0xff]   ;;  %v1050_v34 = vld [vmem:[%s1437_s0 + $0x30] ss:$24 sps:$4 sm:$0xff]  }
   0xb   :  { %936 = vmatpush3.bf16.msra.mxu1 %v1023_v7  ;;  %v1046_v29 = vld [vmem:[%s1436_s1 + $0x138] sm:$0xff]   ;;  %v1047_v31 = vld [vmem:[%s1436_s1 + $0x88] sm:$0xff]   ;;  %v1052_v32 = vld [vmem:[%s1436_s1 + $0x140] sm:$0xff]  }
   0xc   :  { %937 = vmatprep.subr.bf16.mxu1 %v1024_v8  ;;  %679 = vmatpush1.bf16.msra.mxu0 %v1028_v11  ;;  %v1051_v33 = vld [vmem:[%s1436_s1 + $0xd0] sm:$0xff]   ;;  %v1054_v36 = vld [vmem:[%s1436_s1 + $0xd8] sm:$0xff]   ;;  %v1055_v37 = vld [vmem:[%s1436_s1 + $0x148] sm:$0xff]  }
   0xd   :  { %680 = vmatprep.subr.bf16.mxu0 %v1100_v1  ;;  %v1053_v35 = vld [vmem:[%s1436_s1 + $0x90] sm:$0xff]   ;;  %v1057_v38 = vld [vmem:[%s1437_s0 + $0x64] ss:$24 sps:$4 sm:$0xff]   ;;  %v1059_v41 = vld [vmem:[%s1437_s0 + $0x60] ss:$24 sps:$4 sm:$0xff]  }
   0xe   :  { %v1056_v39 = vld [vmem:[%s1436_s1 + $0x98] sm:$0xff]   ;;  %v1061_v40 = vld [vmem:[%s1436_s1 + $0x150] sm:$0xff]   ;;  %v1060_v42 = vld [vmem:[%s1436_s1 + $0xe0] sm:$0xff]  }
   0xf   :  { %938 = vmatpush3.bf16.msra.mxu1 %v1026_v10  ;;  %v1062_v43 = vld [vmem:[%s1436_s1 + $0xa0] sm:$0xff]   ;;  %v1063_v44 = vld [vmem:[%s1436_s1 + $0xe8] sm:$0xff]   ;;  %v1064_v45 = vld [vmem:[%s1436_s1 + $0x158] sm:$0xff]  }
  0x10   :  { %939 = vmatprep.subr.bf16.mxu1 %v1027_v12  ;;  %681 = vmatpush1.bf16.msra.mxu0 %v1031_v14  ;;  %v1066_v46 = vld [vmem:[%s1437_s0 + $0x94] ss:$24 sps:$4 sm:$0xff]   ;;  %v1070_v48 = vld [vmem:[%s1436_s1 + $0x160] sm:$0xff]   ;;  %v1068_v49 = vld [vmem:[%s1437_s0 + $0x90] ss:$24 sps:$4 sm:$0xff]  }
  0x11   :  { %682 = vmatprep.subr.bf16.mxu0 %v1100_v1  ;;  %v1065_v47 = vld [vmem:[%s1436_s1 + $0xa8] sm:$0xff]   ;;  %v1069_v50 = vld [vmem:[%s1436_s1 + $0xf0] sm:$0xff]   ;;  %v1072_v52 = vld [vmem:[%s1436_s1 + $0xf8] sm:$0xff]  }
  0x12   :  { %v1071_v51 = vld [vmem:[%s1436_s1 + $0xb0] sm:$0xff]   ;;  %v1073_v54 = vld [vmem:[%s1436_s1 + $0x168] sm:$0xff]   ;;  %v1074_v57 = vld [vmem:[%s1436_s1 + $0xb8] sm:$0xff]  }
  0x13   :  { %940 = vmatpush3.bf16.msra.mxu1 %v1029_v13  ;;  %v1081_v53 = vld [vmem:[%s1437_s0 + $0x14] ss:$24 sps:$4 sm:$0xff]   ;;  %v1078_v56 = vld [vmem:[%s1436_s1 + $0x170] ss:$0 sps:$4 sm:$0x11]   ;;  %v739_v61 = vld [vmem:[%s1438_s2] sm:$0xff] }
  0x14   :  { %941 = vmatprep.subr.bf16.mxu1 %v1030_v15  ;;  %683 = vmatpush1.bf16.msra.mxu0 %v1034_v17  ;;  %v1077_v55 = vld [vmem:[%s1437_s0 + $0xc] ss:$24 sps:$4 sm:$0xff]   ;;  %v542_v58 = vsel %vm540_vm1, %v1078_v56, 0  ;;  %v1075_v59 = vld [vmem:[%s1437_s0 + $0x8] ss:$24 sps:$4 sm:$0xff]   ;;  %v741_v0 = vld [vmem:[%s1438_s2 + $0x10] sm:$0xff] }
  0x15   :  { %684 = vmatprep.subr.bf16.mxu0 %v1100_v1  ;;  %927 = vmatprep.mubr.msk.bf16.mxu0 %vm527_vm0, %v1081_v53  ;;  %v1079_v60 = vld [vmem:[%s1437_s0 + $0x10] ss:$24 sps:$4 sm:$0xff]   ;;  %v1082_v62 = vld [vmem:[%s1437_s0 + $0x3c] ss:$24 sps:$4 sm:$0xff]   ;;  %v743_v3 = vld [vmem:[%s1438_s2 + $0x20] sm:$0xff]  ;;  %v1101_v15 = vmov 1  }
  0x16   :  { %v1085_v63 = vld [vmem:[%s1437_s0 + $0x44] ss:$24 sps:$4 sm:$0xff]   ;;  %749 = vperm.xlu0 %1013, %v739_v61   ;;  %759 = vperm.xlu1 %1014, %v741_v0   ;;  %v744_v4 = vld [vmem:[%s1438_s2 + $0x28] sm:$0xff]  ;;  %v1084_v5 = vld [vmem:[%s1437_s0 + $0x38] ss:$24 sps:$4 sm:$0xff]  }
  0x17   :  { %942 = vmatpush3.bf16.msra.mxu1 %v1032_v16  ;;  %v742_v2 = vld [vmem:[%s1438_s2 + $0x18] sm:$0xff]  ;;  %v1088_v7 = vld [vmem:[%s1437_s0 + $0x6c] ss:$24 sps:$4 sm:$0xff]   ;;  %v745_v9 = vld [vmem:[%s1438_s2 + $0x30] sm:$0xff] }
  0x18   :  { %943 = vmatprep.subr.bf16.mxu1 %v1033_v18  ;;  %685 = vmatpush1.bf16.msra.mxu0 %v1037_v20  ;;  %v1087_v6 = vld [vmem:[%s1437_s0 + $0x40] ss:$24 sps:$4 sm:$0xff]   ;;  %v1091_v8 = vld [vmem:[%s1437_s0 + $0x74] ss:$24 sps:$4 sm:$0xff]   ;;  %v1093_v12 = vld [vmem:[%s1437_s0 + $0x70] ss:$24 sps:$4 sm:$0xff]  }
  0x19   :  { %686 = vmatprep.subr.bf16.mxu0 %v1100_v1  ;;  %v746_v10 = vld [vmem:[%s1438_s2 + $0x38] sm:$0xff]  ;;  %v1090_v11 = vld [vmem:[%s1437_s0 + $0x68] ss:$24 sps:$4 sm:$0xff]  }
  0x1a   :  { %764 = vperm.xlu1 %1014, %v742_v2   ;;  %v1094_v13 = vld [vmem:[%s1437_s0 + $0x9c] ss:$24 sps:$4 sm:$0xff]   ;;  %v1096_v16 = vld [vmem:[%s1437_s0 + $0x98] ss:$24 sps:$4 sm:$0xff]  }
  0x1b   :  { %944 = vmatpush3.bf16.msra.mxu1 %v1035_v19  ;;  %v1097_v14 = vld [vmem:[%s1437_s0 + $0xa4] ss:$24 sps:$4 sm:$0xff]   ;;  %v1099_v17 = vld [vmem:[%s1437_s0 + $0xa0] ss:$24 sps:$4 sm:$0xff]  }
  0x1c   :  { %945 = vmatprep.subr.bf16.mxu1 %v1036_v22  ;;  %687 = vmatpush1.bf16.msra.mxu0 %v1043_v24 }
  0x1d   :  { %688 = vmatprep.subr.bf16.mxu0 %v1100_v1 }
  0x1e   :  { %774 = vperm.xlu1 %1014, %v744_v4  }
  0x1f   :  { %946 = vmatpush3.bf16.msra.mxu1 %v1038_v23 }
  0x20   :  { %971 = vmatprep.subr.bf16.mxu1 %v1042_v25  ;;  %689 = vmatpush1.bf16.msra.mxu0 %v1046_v29 }
  0x21   :  { %690 = vmatprep.subr.bf16.mxu0 %v1100_v1 }
  0x22   :  { %577 = vmatmul.mubr.bf16.vlgmr.msra.gmra.mrb[0].mxu1 %v1039_v26  ;;  %784 = vperm.xlu1 %1014, %v746_v10  }
  0x23   :  { %972 = vmatpush3.bf16.msra.mxu1 %v1044_v27  ;;  %584 = vmatprep.mubr.bf16.mxu1 %v1048_v30 }
  0x24   :  { %973 = vmatprep.subr.bf16.mxu1 %v1045_v28  ;;  %691 = vmatpush1.bf16.msra.mxu0 %v1052_v32 }
  0x25   :  { %692 = vmatprep.subr.bf16.mxu0 %v1100_v1 }
  0x26   :  { %1016 = vset.pattern.permute.xlu1 %v1101_v15 }
  0x27   :  { %974 = vmatpush3.bf16.msra.mxu1 %v1047_v31 }
  0x28   :  { %975 = vmatprep.subr.bf16.mxu1 %v1051_v33  ;;  %693 = vmatpush1.bf16.msra.mxu0 %v1055_v37 }
  0x29   :  { %694 = vmatprep.subr.bf16.mxu0 %v1100_v1 }
  0x2a   :  { %585 = vmatmul.mubr.bf16.gmra.mrb[4].mxu1 %v1050_v34 }
  0x2b   :  { %976 = vmatpush3.bf16.msra.mxu1 %v1053_v35  ;;  %592 = vmatprep.mubr.bf16.mxu1 %v1057_v38 }
  0x2c   :  { %977 = vmatprep.subr.bf16.mxu1 %v1054_v36  ;;  %695 = vmatpush1.bf16.msra.mxu0 %v1061_v40 }
  0x2d   :  { %696 = vmatprep.subr.bf16.mxu0 %v1100_v1 }
  0x2f   :  { %978 = vmatpush3.bf16.msra.mxu1 %v1056_v39 }
  0x30   :  { %979 = vmatprep.subr.bf16.mxu1 %v1060_v42  ;;  %697 = vmatpush1.bf16.msra.mxu0 %v1064_v45 }
  0x31   :  { %698 = vmatprep.subr.bf16.mxu0 %v1100_v1 }
  0x32   :  { %593 = vmatmul.mubr.bf16.gmra.mrb[8].mxu1 %v1059_v41 }
  0x33   :  { %980 = vmatpush3.bf16.msra.mxu1 %v1062_v43  ;;  %600 = vmatprep.mubr.bf16.mxu1 %v1066_v46 }
  0x34   :  { %981 = vmatprep.subr.bf16.mxu1 %v1063_v44  ;;  %699 = vmatpush1.bf16.msra.mxu0 %v1070_v48 }
  0x35   :  { %700 = vmatprep.subr.bf16.mxu0 %v1100_v1 }
  0x37   :  { %982 = vmatpush3.bf16.msra.mxu1 %v1065_v47 }
  0x38   :  { %983 = vmatprep.subr.bf16.mxu1 %v1069_v50  ;;  %701 = vmatpush1.bf16.msra.mxu0 %v1073_v54 }
  0x39   :  { %702 = vmatprep.subr.bf16.mxu0 %v1100_v1  ;;  %v740_v1 = vld [vmem:[%s1438_s2 + $0x8] sm:$0xff] }
  0x3a   :  { %601 = vmatmul.mubr.bf16.gmra.mrb[12].mxu1 %v1068_v49  ;;  %754 = vperm.xlu0 %1013, %v740_v1  }
  0x3b   :  { %984 = vmatpush3.bf16.msra.mxu1 %v1071_v51  ;;  %641 = vmatprep.mubr.bf16.mxu1 %v1077_v55 }
  0x3c   :  { %985 = vmatprep.subr.bf16.mxu1 %v1072_v52  ;;  %703 = vmatpush1.bf16.msra.mxu0 %v542_v58 }
  0x3d   :  { %800 = vperm.xlu1 %1016, %v740_v1  }
  0x3e   :  { %769 = vperm.xlu0 %1013, %v743_v3  }
  0x3f   :  { %986 = vmatpush3.bf16.msra.mxu1 %v1074_v57  ;;  %707 = vmatmul.mubr.bf16.vlgmr.msra.gmra.mrb[0].mxu0 %v1079_v60 }
  0x40   :  { %928 = vmatprep.mubr.msk.bf16.mxu0 %vm527_vm0, %v1085_v63 }
  0x41   :  { %804 = vperm.xlu1 %1016, %v741_v0  }
  0x42   :  { %642 = vmatmul.mubr.bf16.vlgmr.msra.gmra.mrb[16].mxu1 %v1075_v59  ;;  %779 = vperm.xlu0 %1013, %v745_v9  }
  0x43   :  { %649 = vmatprep.mubr.bf16.mxu1 %v1082_v62 }
  0x45   :  { %812 = vperm.xlu1 %1016, %v743_v3  }
  0x46   :  { %1015 = vset.pattern.permute.xlu0 %v1101_v15 }
  0x47   :  { %715 = vmatmul.mubr.bf16.gmra.mrb[4].mxu0 %v1087_v6  ;;  %796 = vperm.xlu0 %1015, %v739_v61  }
  0x48   :  { %929 = vmatprep.mubr.msk.bf16.mxu0 %vm527_vm0, %v1091_v8 }
  0x49   :  { %820 = vperm.xlu1 %1016, %v745_v9  }
  0x4a   :  { %650 = vmatmul.mubr.bf16.gmra.mrb[20].mxu1 %v1084_v5 }
  0x4b   :  { %657 = vmatprep.mubr.bf16.mxu1 %v1088_v7  ;;  %808 = vperm.xlu0 %1015, %v742_v2  }
  0x4f   :  { %723 = vmatmul.mubr.bf16.gmra.mrb[8].mxu0 %v1093_v12  ;;  %816 = vperm.xlu0 %1015, %v744_v4  }
  0x50   :  { %930 = vmatprep.mubr.msk.bf16.mxu0 %vm527_vm0, %v1097_v14 }
  0x52   :  { %658 = vmatmul.mubr.bf16.gmra.mrb[24].mxu1 %v1090_v11 }
  0x53   :  { %665 = vmatprep.mubr.bf16.mxu1 %v1094_v13  ;;  %824 = vperm.xlu0 %1015, %v746_v10  }
  0x57   :  { %731 = vmatmul.mubr.bf16.gmra.mrb[12].mxu0 %v1099_v17 }
  0x5a   :  { %666 = vmatmul.mubr.bf16.gmra.mrb[28].mxu1 %v1096_v16 }
  0x95   :  { %v750_v30 = vpop.permute.xlu0 %749  ;;  %v760_v31 = vpop.permute.xlu1 %759 }
  0x99   :  { %v765_v38 = vpop.permute.xlu1 %764 }
  0x9d   :  { %v1386_v43 = vpop.permute.xlu1 %774 }
  0xa1   :  { %v1394_v49 = vpop.permute.xlu1 %784 }
  0xb9   :  { %v755_v36 = vpop.permute.xlu0 %754 }
  0xbc   :  { %v801_v0 = vpop.permute.xlu1 %800 }
  0xbd   :  { %v1384_v41 = vpop.permute.xlu0 %769 }
  0xc1   :  { %v1392_v48 = vpop.permute.xlu0 %779 }
  0xc6   :  { %v797_v63 = vpop.permute.xlu0 %796 }
  0xf5   :  { %v947_v18 = vpop.f32.mrb[0].mxu1 }
  0xf6   :  { %v948_v19 = vpop.f32.mrb[1].mxu1 }
  0xf7   :  { %v949_v20 = vadd.f32 %v948_v19, %v947_v18  ;;  %v950_v21 = vpop.f32.mrb[2].mxu1 }
  0xf8   :  { %v951_v22 = vpop.f32.mrb[3].mxu1 }
  0xf9   :  { %v952_v23 = vadd.f32 %v951_v22, %v950_v21  ;;  %v805_v21 = vpop.permute.xlu1 %804  ;;  %v809_v22 = vpop.permute.xlu0 %808 }
  0xfd   :  { %v953_v24 = vpop.f32.mrb[4].mxu1 }
  0xfe   :  { %v954_v25 = vpop.f32.mrb[5].mxu1 }
  0xff   :  { %v955_v26 = vadd.f32 %v954_v25, %v953_v24  ;;  %v956_v27 = vpop.f32.mrb[6].mxu1 }
 0x100   :  { %v957_v28 = vpop.f32.mrb[7].mxu1 }
 0x101   :  { %v958_v29 = vadd.f32 %v957_v28, %v956_v27 }
 0x105   :  { %v959_v32 = vpop.f32.mrb[8].mxu1 }
 0x106   :  { %v960_v33 = vpop.f32.mrb[9].mxu1 }
 0x107   :  { %v1380_v34 = vadd.f32 %v960_v33, %v959_v32  ;;  %v962_v35 = vpop.f32.mrb[10].mxu1 }
 0x108   :  { %v963_v37 = vpop.f32.mrb[11].mxu1 }
 0x109   :  { %v1382_v39 = vadd.f32 %v963_v37, %v962_v35 }
 0x10d   :  { %v965_v40 = vpop.f32.mrb[12].mxu1 }
 0x10e   :  { %v966_v42 = vpop.f32.mrb[13].mxu1 }
 0x10f   :  { %v1388_v44 = vadd.f32 %v966_v42, %v965_v40  ;;  %v968_v45 = vpop.f32.mrb[14].mxu1 }
 0x110   :  { %v969_v46 = vpop.f32.mrb[15].mxu1 }
 0x111   :  { %v1390_v47 = vadd.f32 %v969_v46, %v968_v45 }
 0x112   :  { %v708_v51 = vpop.f32.mrb[0].mxu0 }
 0x113   :  { %v710_v53 = vpop.f32.mrb[1].mxu0 }
 0x114   :  { %v711_v56 = vpop.f32.mrb[2].mxu0 }
 0x115   :  { %v987_v50 = vpop.f32.mrb[16].mxu1  ;;  %v713_v58 = vpop.f32.mrb[3].mxu0 }
 0x116   :  { %v988_v52 = vpop.f32.mrb[17].mxu1 }
 0x117   :  { %v989_v54 = vadd.f32 %v988_v52, %v987_v50  ;;  %v990_v55 = vpop.f32.mrb[18].mxu1  ;;  %v817_v52 = vpop.permute.xlu0 %816 }
 0x118   :  { %v991_v57 = vpop.f32.mrb[19].mxu1 }
 0x119   :  { %v992_v59 = vadd.f32 %v991_v57, %v990_v55  ;;  %v644_v60 = vadd.f32 %v989_v54, %v949_v20 }
 0x11a   :  { %v716_v4 = vpop.f32.mrb[4].mxu0 }
 0x11b   :  { %v709_v61 = vadd.f32 %v708_v51, %v644_v60  ;;  %v647_v62 = vadd.f32 %v992_v59, %v952_v23  ;;  %v718_v6 = vpop.f32.mrb[5].mxu0 }
 0x11c   :  { %v719_v11 = vpop.f32.mrb[6].mxu0 }
 0x11d   :  { %v712_v1 = vadd.f32 %v711_v56, %v647_v62  ;;  %v993_v2 = vpop.f32.mrb[20].mxu1  ;;  %v787_v3 = vmul.f32 %v750_v30, %v709_v61  ;;  %v721_v13 = vpop.f32.mrb[7].mxu0 }
 0x11e   :  { %v994_v5 = vpop.f32.mrb[21].mxu1 }
 0x11f   :  { %v827_v7 = vadd.f32 %v797_v63, %v787_v3  ;;  %v995_v8 = vadd.f32 %v994_v5, %v993_v2  ;;  %v996_v9 = vpop.f32.mrb[22].mxu1  ;;  %v788_v10 = vmul.f32 %v755_v36, %v712_v1 }
 0x120   :  { %v997_v12 = vpop.f32.mrb[23].mxu1 }
 0x121   :  { %v835_v14 = vmax.f32 %v827_v7, 0.0  ;;  %v828_v15 = vadd.f32 %v801_v0, %v788_v10  ;;  %v998_v16 = vadd.f32 %v997_v12, %v996_v9  ;;  %v652_v17 = vadd.f32 %v995_v8, %v955_v26  ;;  %v825_v9 = vpop.permute.xlu0 %824 }
 0x122   :  { %v724_v27 = vpop.f32.mrb[8].mxu0 }
 0x123   :  { %844 = vst.msk [vmem:[%s1439_s3] sm:$0xff] %vm843_vm2, %v835_v14  ;;  %v836_v18 = vmax.f32 %v828_v15, 0.0  ;;  %v717_v19 = vadd.f32 %v716_v4, %v652_v17  ;;  %v655_v20 = vadd.f32 %v998_v16, %v958_v29  ;;  %v726_v28 = vpop.f32.mrb[9].mxu0 }
 0x124   :  { %v727_v36 = vpop.f32.mrb[10].mxu0 }
 0x125   :  { %845 = vst.msk [vmem:[%s1439_s3 + $0x8] sm:$0xff] %vm843_vm2, %v836_v18  ;;  %v720_v23 = vadd.f32 %v719_v11, %v655_v20  ;;  %v789_v24 = vmul.f32 %v760_v31, %v717_v19  ;;  %v999_v25 = vpop.f32.mrb[24].mxu1  ;;  %v729_v29 = vpop.f32.mrb[11].mxu0 }
 0x126   :  { %v1000_v26 = vpop.f32.mrb[25].mxu1 }
 0x127   :  { %v829_v30 = vadd.f32 %v805_v21, %v789_v24  ;;  %v790_v32 = vmul.f32 %v765_v38, %v720_v23  ;;  %v1001_v33 = vadd.f32 %v1000_v26, %v999_v25  ;;  %v1002_v35 = vpop.f32.mrb[26].mxu1  ;;  %v813_v38 = vpop.permute.xlu1 %812 }
 0x128   :  { %v1003_v37 = vpop.f32.mrb[27].mxu1 }
 0x129   :  { %v837_v40 = vmax.f32 %v829_v30, 0.0  ;;  %v830_v42 = vadd.f32 %v809_v22, %v790_v32  ;;  %v1004_v45 = vadd.f32 %v1003_v37, %v1002_v35  ;;  %v660_v46 = vadd.f32 %v1001_v33, %v1380_v34 }
 0x12a   :  { %v732_v55 = vpop.f32.mrb[12].mxu0 }
 0x12b   :  { %846 = vst.msk [vmem:[%s1439_s3 + $0x10] sm:$0xff] %vm843_vm2, %v837_v40  ;;  %v838_v31 = vmax.f32 %v830_v42, 0.0  ;;  %v725_v50 = vadd.f32 %v724_v27, %v660_v46  ;;  %v663_v51 = vadd.f32 %v1004_v45, %v1382_v39  ;;  %v734_v57 = vpop.f32.mrb[13].mxu0  ;;  %v821_v7 = vpop.permute.xlu1 %820 }
 0x12c   :  { %v735_v39 = vpop.f32.mrb[14].mxu0 }
 0x12d   :  { %847 = vst.msk [vmem:[%s1439_s3 + $0x18] sm:$0xff] %vm843_vm2, %v838_v31  ;;  %v791_v53 = vmul.f32 %v1384_v41, %v725_v50  ;;  %v728_v54 = vadd.f32 %v727_v36, %v663_v51  ;;  %v1005_v34 = vpop.f32.mrb[28].mxu1  ;;  %v737_v63 = vpop.f32.mrb[15].mxu0 }
 0x12e   :  { %v1006_v56 = vpop.f32.mrb[29].mxu1 }
 0x12f   :  { %v831_v58 = vadd.f32 %v813_v38, %v791_v53  ;;  %v792_v59 = vmul.f32 %v1386_v43, %v728_v54  ;;  %v1007_v60 = vadd.f32 %v1006_v56, %v1005_v34  ;;  %v1008_v61 = vpop.f32.mrb[30].mxu1 }
 0x130   :  { %v1009_v62 = vpop.f32.mrb[31].mxu1 }
 0x131   :  { %v839_v0 = vmax.f32 %v831_v58, 0.0  ;;  %v832_v1 = vadd.f32 %v817_v52, %v792_v59  ;;  %v1010_v2 = vadd.f32 %v1009_v62, %v1008_v61  ;;  %v668_v3 = vadd.f32 %v1007_v60, %v1388_v44 }
 0x133   :  { %848 = vst.msk [vmem:[%s1439_s3 + $0x20] sm:$0xff] %vm843_vm2, %v839_v0  ;;  %v840_v41 = vmax.f32 %v832_v1, 0.0  ;;  %v733_v4 = vadd.f32 %v732_v55, %v668_v3  ;;  %v671_v5 = vadd.f32 %v1010_v2, %v1390_v47 }
 0x135   :  { %849 = vst.msk [vmem:[%s1439_s3 + $0x28] sm:$0xff] %vm843_vm2, %v840_v41  ;;  %v793_v43 = vmul.f32 %v1392_v48, %v733_v4  ;;  %v736_v6 = vadd.f32 %v735_v39, %v671_v5 }
 0x137   :  { %v833_v8 = vadd.f32 %v821_v7, %v793_v43  ;;  %v794_v44 = vmul.f32 %v1394_v49, %v736_v6 }
 0x139   :  { %v841_v10 = vmax.f32 %v833_v8, 0.0  ;;  %v834_v11 = vadd.f32 %v825_v9, %v794_v44 }
 0x13b   :  { %850 = vst.msk [vmem:[%s1439_s3 + $0x30] sm:$0xff] %vm843_vm2, %v841_v10  ;;  %v842_v47 = vmax.f32 %v834_v11, 0.0 }
 0x13d   :  { %851 = vst.msk [vmem:[%s1439_s3 + $0x38] sm:$0xff] %vm843_vm2, %v842_v47 }

// kernel: netG_forward.19
= control target key start
LH: loop header
LB: loop body
LE: loop exit
PB: predicated region body
PF: predicated region fallthrough
CT: control target
= control target key end

     0   :  { %v1973_v10 = vmov 0   ;;  %vm956_vm0 = vcmask 1040384   ;;  %vm943_vm1 = vcmask 277504   ;;  %vm1454_vm2 = vcmask 64512   ;;  %s2484_s1 = inlined_call_operand.vmem [shape: bf16[1314,8], index: 1, kind: input, shape index: {}]   ;;  %s2485_s0 = inlined_call_operand.vmem [shape: bf16[64,1314], index: 0, kind: input, shape index: {}]   ;;  %s2486_s2 = inlined_call_operand.vmem [shape: f32[64,2], index: 2, kind: input, shape index: {}]   ;;  %s2487_s3 = inlined_call_operand.vmem [shape: f32[64,8], index: 3, kind: output, shape index: {}]  }
   0x1   :  { %v1826_v0 = vld [vmem:[%s2484_s1 + $0x40] sm:$0xff]   ;;  %v1830_v4 = vld [vmem:[%s2484_s1 + $0x48] sm:$0xff]   ;;  %v1834_v8 = vld [vmem:[%s2484_s1 + $0x50] sm:$0xff]   ;;  %1822 = vset.pattern.permute.xlu0 %v1973_v10  ;;  %1823 = vset.pattern.permute.xlu1 %v1973_v10 }
   0x2   :  { %v1827_v1 = vld [vmem:[%s2484_s1 + $0xc0] sm:$0xff]   ;;  %1598 = vmatprep.subr.bf16.mxu0 %v1826_v0  ;;  %v1831_v5 = vld [vmem:[%s2484_s1 + $0xc8] sm:$0xff]   ;;  %v1835_v9 = vld [vmem:[%s2484_s1 + $0xd0] sm:$0xff]  }
   0x3   :  { %v1828_v2 = vld [vmem:[%s2484_s1] sm:$0xff]   ;;  %1638 = vmatprep.subr.bf16.mxu1 %v1827_v1  ;;  %v1832_v6 = vld [vmem:[%s2484_s1 + $0x8] sm:$0xff]   ;;  %v1836_v11 = vld [vmem:[%s2484_s1 + $0x10] sm:$0xff]  }
   0x4   :  { %v1829_v3 = vld [vmem:[%s2484_s1 + $0x80] sm:$0xff]   ;;  %1599 = vmatpush3.bf16.msra.mxu0 %v1828_v2  ;;  %v1833_v7 = vld [vmem:[%s2484_s1 + $0x88] sm:$0xff]   ;;  %v1837_v12 = vld [vmem:[%s2484_s1 + $0x90] sm:$0xff]  }
   0x5   :  { %1639 = vmatpush3.bf16.msra.mxu1 %v1829_v3  ;;  %1600 = vmatprep.subr.bf16.mxu0 %v1830_v4  ;;  %v1838_v13 = vld [vmem:[%s2484_s1 + $0x58] sm:$0xff]   ;;  %v1842_v17 = vld [vmem:[%s2484_s1 + $0x60] sm:$0xff]   ;;  %v1846_v21 = vld [vmem:[%s2484_s1 + $0x68] sm:$0xff]  }
   0x6   :  { %1640 = vmatprep.subr.bf16.mxu1 %v1831_v5  ;;  %v1839_v14 = vld [vmem:[%s2484_s1 + $0xd8] sm:$0xff]   ;;  %v1843_v18 = vld [vmem:[%s2484_s1 + $0xe0] sm:$0xff]   ;;  %v1847_v22 = vld [vmem:[%s2484_s1 + $0xe8] sm:$0xff]  }
   0x7   :  { %v1840_v15 = vld [vmem:[%s2484_s1 + $0x18] sm:$0xff]   ;;  %v1844_v19 = vld [vmem:[%s2484_s1 + $0x20] sm:$0xff]   ;;  %v1848_v23 = vld [vmem:[%s2484_s1 + $0x28] sm:$0xff]  }
   0x8   :  { %1601 = vmatpush3.bf16.msra.mxu0 %v1832_v6  ;;  %v1841_v16 = vld [vmem:[%s2484_s1 + $0x98] sm:$0xff]   ;;  %v1845_v20 = vld [vmem:[%s2484_s1 + $0xa0] sm:$0xff]   ;;  %v1849_v24 = vld [vmem:[%s2484_s1 + $0xa8] sm:$0xff]  }
   0x9   :  { %1641 = vmatpush3.bf16.msra.mxu1 %v1833_v7  ;;  %1602 = vmatprep.subr.bf16.mxu0 %v1834_v8  ;;  %v1850_v25 = vld [vmem:[%s2484_s1 + $0x70] sm:$0xff]   ;;  %v1854_v29 = vld [vmem:[%s2484_s1 + $0x78] sm:$0xff]   ;;  %v1858_v33 = vld [vmem:[%s2485_s0] ss:$44 sps:$4 sm:$0xff]  }
   0xa   :  { %1642 = vmatprep.subr.bf16.mxu1 %v1835_v9  ;;  %v1851_v26 = vld [vmem:[%s2484_s1 + $0xf0] sm:$0xff]   ;;  %v1855_v30 = vld [vmem:[%s2484_s1 + $0xf8] sm:$0xff]   ;;  %v1864_v37 = vld [vmem:[%s2484_s1 + $0x140] sm:$0xff]  }
   0xb   :  { %v1852_v27 = vld [vmem:[%s2484_s1 + $0x30] sm:$0xff]   ;;  %v1856_v31 = vld [vmem:[%s2484_s1 + $0x38] sm:$0xff]   ;;  %v1865_v38 = vld [vmem:[%s2484_s1 + $0x100] sm:$0xff]  }
   0xc   :  { %1603 = vmatpush3.bf16.msra.mxu0 %v1836_v11  ;;  %v1853_v28 = vld [vmem:[%s2484_s1 + $0xb0] sm:$0xff]   ;;  %v1857_v32 = vld [vmem:[%s2484_s1 + $0xb8] sm:$0xff]   ;;  %v1866_v39 = vld [vmem:[%s2484_s1 + $0x1c0] sm:$0xff]  }
   0xd   :  { %1643 = vmatpush3.bf16.msra.mxu1 %v1837_v12  ;;  %1604 = vmatprep.subr.bf16.mxu0 %v1838_v13  ;;  %v1860_v34 = vld [vmem:[%s2485_s0 + $0x4] ss:$44 sps:$4 sm:$0xff]   ;;  %v1861_v35 = vld [vmem:[%s2485_s0 + $0x8] ss:$44 sps:$4 sm:$0xff]   ;;  %v1863_v36 = vld [vmem:[%s2485_s0 + $0xc] ss:$44 sps:$4 sm:$0xff]  }
   0xe   :  { %1644 = vmatprep.subr.bf16.mxu1 %v1839_v14  ;;  %992 = vmatprep.mubr.bf16.mxu0 %v1860_v34  ;;  %v1867_v40 = vld [vmem:[%s2484_s1 + $0x180] sm:$0xff]   ;;  %v1868_v41 = vld [vmem:[%s2484_s1 + $0x148] sm:$0xff]   ;;  %v1878_v49 = vld [vmem:[%s2484_s1 + $0x150] sm:$0xff]  }
   0xf   :  { %1057 = vmatprep.mubr.bf16.mxu1 %v1863_v36  ;;  %v1869_v42 = vld [vmem:[%s2484_s1 + $0x108] sm:$0xff]   ;;  %v1873_v45 = vld [vmem:[%s2485_s0 + $0x64] ss:$44 sps:$4 sm:$0xff]   ;;  %v1882_v53 = vld [vmem:[%s2484_s1 + $0x158] sm:$0xff]  }
  0x10   :  { %1605 = vmatpush3.bf16.msra.mxu0 %v1840_v15  ;;  %v1870_v43 = vld [vmem:[%s2484_s1 + $0x1c8] sm:$0xff]   ;;  %v1876_v47 = vld [vmem:[%s2485_s0 + $0x58] ss:$44 sps:$4 sm:$0xff]   ;;  %v1879_v50 = vld [vmem:[%s2484_s1 + $0x110] sm:$0xff]  }
  0x11   :  { %1645 = vmatpush3.bf16.msra.mxu1 %v1841_v16  ;;  %1606 = vmatprep.subr.bf16.mxu0 %v1842_v17  ;;  %v1871_v44 = vld [vmem:[%s2485_s0 + $0x5c] ss:$44 sps:$4 sm:$0xff]   ;;  %v1877_v48 = vld [vmem:[%s2485_s0 + $0x60] ss:$44 sps:$4 sm:$0xff]   ;;  %v1880_v51 = vld [vmem:[%s2484_s1 + $0x1d0] sm:$0xff]  }
  0x12   :  { %1646 = vmatprep.subr.bf16.mxu1 %v1843_v18  ;;  %v1875_v46 = vld [vmem:[%s2484_s1 + $0x188] sm:$0xff]   ;;  %v1881_v52 = vld [vmem:[%s2484_s1 + $0x190] sm:$0xff]   ;;  %v1883_v54 = vld [vmem:[%s2484_s1 + $0x118] sm:$0xff]  }
  0x13   :  { %v1884_v55 = vld [vmem:[%s2484_s1 + $0x1d8] sm:$0xff]   ;;  %v1885_v56 = vld [vmem:[%s2485_s0 + $0xb4] ss:$44 sps:$4 sm:$0xff]   ;;  %v1896_v1 = vld [vmem:[%s2484_s1 + $0x168] sm:$0xff]  }
  0x14   :  { %1607 = vmatpush3.bf16.msra.mxu0 %v1844_v19  ;;  %v1887_v57 = vld [vmem:[%s2485_s0 + $0xbc] ss:$44 sps:$4 sm:$0xff]   ;;  %v1891_v60 = vld [vmem:[%s2485_s0 + $0xb8] ss:$44 sps:$4 sm:$0xff]   ;;  %v1901_v5 = vld [vmem:[%s2485_s0 + $0x114] ss:$44 sps:$4 sm:$0xff]  }
  0x15   :  { %1647 = vmatpush3.bf16.msra.mxu1 %v1845_v20  ;;  %1608 = vmatprep.subr.bf16.mxu0 %v1846_v21  ;;  %v1889_v58 = vld [vmem:[%s2484_s1 + $0x198] sm:$0xff]   ;;  %v1892_v61 = vld [vmem:[%s2484_s1 + $0x160] sm:$0xff]   ;;  %v1897_v2 = vld [vmem:[%s2484_s1 + $0x128] sm:$0xff]  }
  0x16   :  { %1648 = vmatprep.subr.bf16.mxu1 %v1847_v22  ;;  %v1890_v59 = vld [vmem:[%s2485_s0 + $0xb0] ss:$44 sps:$4 sm:$0xff]   ;;  %v1893_v62 = vld [vmem:[%s2484_s1 + $0x120] sm:$0xff]   ;;  %v1898_v3 = vld [vmem:[%s2484_s1 + $0x1e8] sm:$0xff]  }
  0x17   :  { %v1894_v63 = vld [vmem:[%s2484_s1 + $0x1e0] sm:$0xff]   ;;  %v1899_v4 = vld [vmem:[%s2485_s0 + $0x10c] ss:$44 sps:$4 sm:$0xff]   ;;  %v1904_v7 = vld [vmem:[%s2485_s0 + $0x108] ss:$44 sps:$4 sm:$0xff]  }
  0x18   :  { %1609 = vmatpush3.bf16.msra.mxu0 %v1848_v23  ;;  %v1895_v0 = vld [vmem:[%s2484_s1 + $0x1a0] sm:$0xff]   ;;  %v1903_v6 = vld [vmem:[%s2484_s1 + $0x1a8] sm:$0xff]   ;;  %v1905_v8 = vld [vmem:[%s2485_s0 + $0x110] ss:$44 sps:$4 sm:$0xff]  }
  0x19   :  { %1649 = vmatpush3.bf16.msra.mxu1 %v1849_v24  ;;  %1610 = vmatprep.subr.bf16.mxu0 %v1850_v25  ;;  %v1906_v9 = vld [vmem:[%s2484_s1 + $0x170] sm:$0xff]   ;;  %v1910_v13 = vld [vmem:[%s2484_s1 + $0x178] sm:$0xff]   ;;  %v1917_v19 = vld [vmem:[%s2484_s1 + $0x240] sm:$0xff]  }
  0x1a   :  { %1650 = vmatprep.subr.bf16.mxu1 %v1851_v26  ;;  %v1907_v10 = vld [vmem:[%s2484_s1 + $0x130] sm:$0xff]   ;;  %v1911_v14 = vld [vmem:[%s2484_s1 + $0x138] sm:$0xff]   ;;  %v1921_v22 = vld [vmem:[%s2484_s1 + $0x200] sm:$0xff]  }
  0x1b   :  { %v1908_v11 = vld [vmem:[%s2484_s1 + $0x1f0] sm:$0xff]   ;;  %v1912_v15 = vld [vmem:[%s2484_s1 + $0x1f8] sm:$0xff]   ;;  %v1922_v23 = vld [vmem:[%s2484_s1 + $0x248] sm:$0xff]  }
  0x1c   :  { %1611 = vmatpush3.bf16.msra.mxu0 %v1852_v27  ;;  %v1909_v12 = vld [vmem:[%s2484_s1 + $0x1b0] sm:$0xff]   ;;  %v1916_v18 = vld [vmem:[%s2484_s1 + $0x1b8] sm:$0xff]   ;;  %v1923_v24 = vld [vmem:[%s2484_s1 + $0x208] sm:$0xff]  }
  0x1d   :  { %1651 = vmatpush3.bf16.msra.mxu1 %v1853_v28  ;;  %1612 = vmatprep.subr.bf16.mxu0 %v1854_v29  ;;  %v1913_v16 = vld [vmem:[%s2485_s0 + $0x10] ss:$44 sps:$4 sm:$0xff]   ;;  %v1915_v17 = vld [vmem:[%s2485_s0 + $0x14] ss:$44 sps:$4 sm:$0xff]   ;;  %v1918_v20 = vld [vmem:[%s2485_s0 + $0x18] ss:$44 sps:$4 sm:$0xff]  }
  0x1e   :  { %1652 = vmatprep.subr.bf16.mxu1 %v1855_v30  ;;  %v1920_v21 = vld [vmem:[%s2485_s0 + $0x1c] ss:$44 sps:$4 sm:$0xff]   ;;  %v1924_v25 = vld [vmem:[%s2485_s0 + $0x6c] ss:$44 sps:$4 sm:$0xff]   ;;  %v1927_v27 = vld [vmem:[%s2484_s1 + $0x250] sm:$0xff]  }
  0x1f   :  { %v1926_v26 = vld [vmem:[%s2485_s0 + $0x68] ss:$44 sps:$4 sm:$0xff]   ;;  %v1931_v30 = vld [vmem:[%s2485_s0 + $0x70] ss:$44 sps:$4 sm:$0xff]   ;;  %v1936_v34 = vld [vmem:[%s2485_s0 + $0xc0] ss:$44 sps:$4 sm:$0xff]  }
  0x20   :  { %1613 = vmatpush3.bf16.msra.mxu0 %v1856_v31  ;;  %v1928_v28 = vld [vmem:[%s2485_s0 + $0x74] ss:$44 sps:$4 sm:$0xff]   ;;  %v1932_v31 = vld [vmem:[%s2484_s1 + $0x258] sm:$0xff]  }
  0x21   :  { %1653 = vmatpush3.bf16.msra.mxu1 %v1857_v32  ;;  %1678 = vmatprep.subr.bf16.mxu0 %v1864_v37  ;;  %v1930_v29 = vld [vmem:[%s2484_s1 + $0x210] sm:$0xff]   ;;  %v1933_v32 = vld [vmem:[%s2484_s1 + $0x218] sm:$0xff]   ;;  %v1940_v37 = vld [vmem:[%s2484_s1 + $0x220] sm:$0xff]  }
  0x22   :  { %1718 = vmatprep.subr.bf16.mxu1 %v1866_v39  ;;  %v1938_v36 = vld [vmem:[%s2485_s0 + $0xcc] ss:$44 sps:$4 sm:$0xff]  }
  0x23   :  { %993 = vmatmul.mubr.bf16.vlgmr.msra.gmra.mrb[0].mxu0 %v1858_v33  ;;  %v1934_v33 = vld [vmem:[%s2485_s0 + $0xc4] ss:$44 sps:$4 sm:$0xff]   ;;  %v1942_v39 = vld [vmem:[%s2484_s1 + $0x268] sm:$0xff]  }
  0x24   :  { %1058 = vmatmul.mubr.bf16.vlgmr.msra.gmra.mrb[0].mxu1 %v1861_v35  ;;  %1679 = vmatpush3.bf16.msra.mxu0 %v1865_v38  ;;  %v1937_v35 = vld [vmem:[%s2484_s1 + $0x260] sm:$0xff]   ;;  %v1941_v38 = vld [vmem:[%s2485_s0 + $0xc8] ss:$44 sps:$4 sm:$0xff]  }
  0x25   :  { %1719 = vmatpush3.bf16.msra.mxu1 %v1867_v40  ;;  %1680 = vmatprep.subr.bf16.mxu0 %v1868_v41  ;;  %v1943_v40 = vld [vmem:[%s2484_s1 + $0x280] sm:$0xff]   ;;  %v1944_v41 = vld [vmem:[%s2484_s1 + $0x228] sm:$0xff]  }
  0x26   :  { %1720 = vmatprep.subr.bf16.mxu1 %v1870_v43  ;;  %1000 = vmatprep.mubr.bf16.mxu0 %v1871_v44  ;;  %v1947_v43 = vld [vmem:[%s2485_s0 + $0x118] ss:$44 sps:$4 sm:$0xff]   ;;  %v1948_v44 = vld [vmem:[%s2484_s1 + $0x270] sm:$0xff]  }
  0x27   :  { %1065 = vmatprep.mubr.bf16.mxu1 %v1873_v45  ;;  %v1949_v45 = vld [vmem:[%s2485_s0 + $0x124] ss:$44 sps:$4 sm:$0xff]  }
  0x28   :  { %1681 = vmatpush3.bf16.msra.mxu0 %v1869_v42  ;;  %v1945_v42 = vld [vmem:[%s2485_s0 + $0x11c] ss:$44 sps:$4 sm:$0xff]  }
  0x29   :  { %1721 = vmatpush3.bf16.msra.mxu1 %v1875_v46  ;;  %1682 = vmatprep.subr.bf16.mxu0 %v1878_v49  ;;  %v1951_v46 = vld [vmem:[%s2484_s1 + $0x230] sm:$0xff]   ;;  %v1954_v49 = vld [vmem:[%s2484_s1 + $0x288] sm:$0xff]  }
  0x2a   :  { %1722 = vmatprep.subr.bf16.mxu1 %v1880_v51  ;;  %v1958_v51 = vld [vmem:[%s2485_s0 + $0x24] ss:$44 sps:$4 sm:$0xff]  }
  0x2b   :  { %1001 = vmatmul.mubr.bf16.gmra.mrb[4].mxu0 %v1876_v47  ;;  %v1952_v47 = vld [vmem:[%s2485_s0 + $0x120] ss:$44 sps:$4 sm:$0xff]  }
  0x2c   :  { %1066 = vmatmul.mubr.bf16.gmra.mrb[4].mxu1 %v1877_v48  ;;  %1683 = vmatpush3.bf16.msra.mxu0 %v1879_v50  ;;  %v1953_v48 = vld [vmem:[%s2484_s1 + $0x278] sm:$0xff]  }
  0x2d   :  { %1723 = vmatpush3.bf16.msra.mxu1 %v1881_v52  ;;  %1684 = vmatprep.subr.bf16.mxu0 %v1882_v53  ;;  %v1955_v50 = vld [vmem:[%s2484_s1 + $0x238] sm:$0xff]   ;;  %v1959_v52 = vld [vmem:[%s2484_s1 + $0x290] ss:$0 sps:$4 sm:$0x11]   ;;  %v1960_v53 = vld [vmem:[%s2485_s0 + $0x28] ss:$44 sps:$4 sm:$0xff]  }
  0x2e   :  { %1724 = vmatprep.subr.bf16.mxu1 %v1884_v55  ;;  %1008 = vmatprep.mubr.bf16.mxu0 %v1885_v56  ;;  %v1956_v55 = vld [vmem:[%s2485_s0 + $0x20] ss:$44 sps:$4 sm:$0xff]  }
  0x2f   :  { %1073 = vmatprep.mubr.bf16.mxu1 %v1887_v57  ;;  %v1961_v56 = vld [vmem:[%s2485_s0 + $0x80] ss:$44 sps:$4 sm:$0xff]   ;;  %v1962_v57 = vld [vmem:[%s2485_s0 + $0x7c] ss:$44 sps:$4 sm:$0xff]  }
  0x30   :  { %1685 = vmatpush3.bf16.msra.mxu0 %v1883_v54  ;;  %v958_v54 = vsel %vm956_vm0, %v1959_v52, 0 }
  0x31   :  { %1725 = vmatpush3.bf16.msra.mxu1 %v1889_v58  ;;  %1686 = vmatprep.subr.bf16.mxu0 %v1892_v61  ;;  %v1968_v58 = vld [vmem:[%s2485_s0 + $0xd8] ss:$44 sps:$4 sm:$0xff]   ;;  %v1351_v61 = vld [vmem:[%s2486_s2 + $0x8] sm:$0xff] }
  0x32   :  { %1726 = vmatprep.subr.bf16.mxu1 %v1894_v63  ;;  %v1353_v63 = vld [vmem:[%s2486_s2 + $0x18] sm:$0xff] }
  0x33   :  { %1009 = vmatmul.mubr.bf16.gmra.mrb[8].mxu0 %v1890_v59  ;;  %v1350_v59 = vld [vmem:[%s2486_s2] sm:$0xff] }
  0x34   :  { %1074 = vmatmul.mubr.bf16.gmra.mrb[8].mxu1 %v1891_v60  ;;  %1687 = vmatpush3.bf16.msra.mxu0 %v1893_v62  ;;  %v1352_v60 = vld [vmem:[%s2486_s2 + $0x10] sm:$0xff]  ;;  %v1964_v62 = vld [vmem:[%s2485_s0 + $0x78] ss:$44 sps:$4 sm:$0xff]  }
  0x35   :  { %1727 = vmatpush3.bf16.msra.mxu1 %v1895_v0  ;;  %1688 = vmatprep.subr.bf16.mxu0 %v1896_v1  ;;  %v1965_v0 = vld [vmem:[%s2485_s0 + $0xd4] ss:$44 sps:$4 sm:$0xff]   ;;  %v1969_v1 = vld [vmem:[%s2485_s0 + $0x130] ss:$44 sps:$4 sm:$0xff]  }
  0x36   :  { %1728 = vmatprep.subr.bf16.mxu1 %v1898_v3  ;;  %1016 = vmatprep.mubr.bf16.mxu0 %v1899_v4  ;;  %v1355_v3 = vld [vmem:[%s2486_s2 + $0x28] sm:$0xff]  ;;  %v1356_v4 = vld [vmem:[%s2486_s2 + $0x30] sm:$0xff] }
  0x37   :  { %1081 = vmatprep.mubr.bf16.mxu1 %v1901_v5  ;;  %1360 = vperm.xlu0 %1822, %v1350_v59   ;;  %v1967_v5 = vld [vmem:[%s2485_s0 + $0xd0] ss:$44 sps:$4 sm:$0xff]  }
  0x38   :  { %1689 = vmatpush3.bf16.msra.mxu0 %v1897_v2  ;;  %1370 = vperm.xlu1 %1823, %v1352_v60   ;;  %v1354_v2 = vld [vmem:[%s2486_s2 + $0x20] sm:$0xff] }
  0x39   :  { %1729 = vmatpush3.bf16.msra.mxu1 %v1903_v6  ;;  %1690 = vmatprep.subr.bf16.mxu0 %v1906_v9  ;;  %v1357_v6 = vld [vmem:[%s2486_s2 + $0x38] sm:$0xff]  ;;  %v1972_v9 = vld [vmem:[%s2485_s0 + $0x128] ss:$44 sps:$4 sm:$0xff]  }
  0x3a   :  { %1730 = vmatprep.subr.bf16.mxu1 %v1908_v11 }
  0x3b   :  { %1017 = vmatmul.mubr.bf16.gmra.mrb[12].mxu0 %v1904_v7  ;;  %1365 = vperm.xlu0 %1822, %v1351_v61   ;;  %v1970_v7 = vld [vmem:[%s2485_s0 + $0x12c] ss:$44 sps:$4 sm:$0xff]  }
  0x3c   :  { %1082 = vmatmul.mubr.bf16.gmra.mrb[12].mxu1 %v1905_v8  ;;  %1691 = vmatpush3.bf16.msra.mxu0 %v1907_v10  ;;  %v1974_v8 = vmov 1  }
  0x3d   :  { %1731 = vmatpush3.bf16.msra.mxu1 %v1909_v12  ;;  %1692 = vmatprep.subr.bf16.mxu0 %v1910_v13 }
  0x3e   :  { %1732 = vmatprep.subr.bf16.mxu1 %v1912_v15  ;;  %1122 = vmatprep.mubr.bf16.mxu0 %v1915_v17 }
  0x3f   :  { %1187 = vmatprep.mubr.bf16.mxu1 %v1920_v21  ;;  %1375 = vperm.xlu1 %1823, %v1353_v63  }
  0x40   :  { %1693 = vmatpush3.bf16.msra.mxu0 %v1911_v14  ;;  %1380 = vperm.xlu0 %1822, %v1354_v2  }
  0x41   :  { %1733 = vmatpush3.bf16.msra.mxu1 %v1916_v18  ;;  %1758 = vmatprep.subr.bf16.mxu0 %v1917_v19 }
  0x42   :  { %1805 = vmatprep.subr.bf16.mxu1 %v1943_v40 }
  0x43   :  { %1123 = vmatmul.mubr.bf16.vlgmr.msra.gmra.mrb[16].mxu0 %v1913_v16  ;;  %1385 = vperm.xlu1 %1823, %v1355_v3  }
  0x44   :  { %1759 = vmatpush3.bf16.msra.mxu0 %v1921_v22  ;;  %1188 = vmatmul.mubr.bf16.vlgmr.msra.gmra.mrb[16].mxu1 %v1918_v20 }
  0x45   :  { %1760 = vmatprep.subr.bf16.mxu0 %v1922_v23  ;;  %1130 = vmatprep.mubr.bf16.mxu0 %v1924_v25 }
  0x46   :  { %1195 = vmatprep.mubr.bf16.mxu1 %v1928_v28  ;;  %1806 = vmatpush3.bf16.msra.mxu1 %v1943_v40 }
  0x47   :  { %1807 = vmatprep.subr.bf16.mxu1 %v1954_v49  ;;  %1390 = vperm.xlu0 %1822, %v1356_v4  }
  0x48   :  { %1761 = vmatpush3.bf16.msra.mxu0 %v1923_v24  ;;  %1395 = vperm.xlu1 %1823, %v1357_v6  }
  0x49   :  { %1762 = vmatprep.subr.bf16.mxu0 %v1927_v27 }
  0x4a   :  { %1808 = vmatpush3.bf16.msra.mxu1 %v1954_v49 }
  0x4b   :  { %1131 = vmatmul.mubr.bf16.gmra.mrb[20].mxu0 %v1926_v26  ;;  %1819 = vmatprep.subr.msk.bf16.mxu1 %vm956_vm0, %v1959_v52 }
  0x4c   :  { %1763 = vmatpush3.bf16.msra.mxu0 %v1930_v29  ;;  %1196 = vmatmul.mubr.bf16.gmra.mrb[20].mxu1 %v1931_v30 }
  0x4d   :  { %1764 = vmatprep.subr.bf16.mxu0 %v1932_v31  ;;  %1138 = vmatprep.mubr.bf16.mxu0 %v1934_v33 }
  0x4e   :  { %1203 = vmatprep.mubr.bf16.mxu1 %v1938_v36  ;;  %1810 = vmatpush3.bf16.msra.mxu1 %v958_v54 }
  0x4f   :  { %1824 = vset.pattern.permute.xlu0 %v1974_v8  ;;  %1825 = vset.pattern.permute.xlu1 %v1974_v8 }
  0x50   :  { %1765 = vmatpush3.bf16.msra.mxu0 %v1933_v32  ;;  %1407 = vperm.xlu0 %1824, %v1350_v59  }
  0x51   :  { %1766 = vmatprep.subr.bf16.mxu0 %v1937_v35  ;;  %1411 = vperm.xlu1 %1825, %v1351_v61  }
  0x53   :  { %1139 = vmatmul.mubr.bf16.gmra.mrb[24].mxu0 %v1936_v34 }
  0x54   :  { %1767 = vmatpush3.bf16.msra.mxu0 %v1940_v37  ;;  %1204 = vmatmul.mubr.bf16.gmra.mrb[24].mxu1 %v1941_v38 }
  0x55   :  { %1768 = vmatprep.subr.bf16.mxu0 %v1942_v39  ;;  %1146 = vmatprep.mubr.bf16.mxu0 %v1945_v42 }
  0x56   :  { %1211 = vmatprep.mubr.bf16.mxu1 %v1949_v45  ;;  %1419 = vperm.xlu0 %1824, %v1353_v63  }
  0x57   :  { %1415 = vperm.xlu1 %1825, %v1352_v60  }
  0x58   :  { %1769 = vmatpush3.bf16.msra.mxu0 %v1944_v41 }
  0x59   :  { %1770 = vmatprep.subr.bf16.mxu0 %v1948_v44 }
  0x5a   :  { %1427 = vperm.xlu0 %1824, %v1355_v3  }
  0x5b   :  { %1147 = vmatmul.mubr.bf16.gmra.mrb[28].mxu0 %v1947_v43  ;;  %1423 = vperm.xlu1 %1825, %v1354_v2  }
  0x5c   :  { %1771 = vmatpush3.bf16.msra.mxu0 %v1951_v46  ;;  %1212 = vmatmul.mubr.bf16.gmra.mrb[28].mxu1 %v1952_v47 }
  0x5d   :  { %1772 = vmatprep.subr.bf16.mxu0 %v1953_v48  ;;  %1252 = vmatprep.mubr.bf16.mxu0 %v1958_v51 }
  0x5e   :  { %1811 = vmatprep.mubr.msk.bf16.mxu1 %vm943_vm1, %v1960_v53  ;;  %1435 = vperm.xlu0 %1824, %v1357_v6  }
  0x5f   :  { %1431 = vperm.xlu1 %1825, %v1356_v4  }
  0x60   :  { %1773 = vmatpush3.bf16.msra.mxu0 %v1955_v50 }
  0x63   :  { %1253 = vmatmul.mubr.bf16.vlgmr.msra.gmra.mrb[32].mxu0 %v1956_v55 }
  0x64   :  { %1812 = vmatmul.mubr.msk.bf16.vlgmr.msra.gmra.mrb[32].mxu1 %vm943_vm1, %v1961_v56  ;;  %1260 = vmatprep.mubr.bf16.mxu0 %v1962_v57 }
  0x65   :  { %1815 = vmatprep.mubr.msk.bf16.mxu1 %vm943_vm1, %v1968_v58 }
  0x6b   :  { %1261 = vmatmul.mubr.bf16.gmra.mrb[36].mxu0 %v1964_v62 }
  0x6c   :  { %1268 = vmatprep.mubr.bf16.mxu0 %v1965_v0  ;;  %1816 = vmatmul.mubr.msk.bf16.gmra.mrb[36].mxu1 %vm943_vm1, %v1969_v1 }
  0x73   :  { %1269 = vmatmul.mubr.bf16.gmra.mrb[40].mxu0 %v1967_v5 }
  0x74   :  { %1276 = vmatprep.mubr.bf16.mxu0 %v1970_v7 }
  0x7b   :  { %1277 = vmatmul.mubr.bf16.gmra.mrb[44].mxu0 %v1972_v9 }
  0xf6   :  { %v1614_v10 = vpop.f32.mrb[0].mxu0 }
  0xf7   :  { %v1654_v11 = vpop.f32.mrb[0].mxu1  ;;  %v1615_v12 = vpop.f32.mrb[1].mxu0 }
  0xf8   :  { %v1616_v13 = vadd.f32 %v1615_v12, %v1614_v10  ;;  %v1655_v14 = vpop.f32.mrb[1].mxu1  ;;  %v1617_v15 = vpop.f32.mrb[2].mxu0 }
  0xf9   :  { %v1656_v16 = vadd.f32 %v1655_v14, %v1654_v11  ;;  %v1657_v17 = vpop.f32.mrb[2].mxu1  ;;  %v1618_v18 = vpop.f32.mrb[3].mxu0 }
  0xfa   :  { %v1619_v19 = vadd.f32 %v1618_v18, %v1617_v15  ;;  %v1658_v20 = vpop.f32.mrb[3].mxu1 }
  0xfb   :  { %v1060_v21 = vadd.f32 %v1656_v16, %v1616_v13  ;;  %v1659_v22 = vadd.f32 %v1658_v20, %v1657_v17 }
  0xfd   :  { %v1063_v23 = vadd.f32 %v1659_v22, %v1619_v19 }
  0xfe   :  { %v1620_v24 = vpop.f32.mrb[4].mxu0 }
  0xff   :  { %v1660_v25 = vpop.f32.mrb[4].mxu1  ;;  %v1621_v26 = vpop.f32.mrb[5].mxu0 }
 0x100   :  { %v1622_v27 = vadd.f32 %v1621_v26, %v1620_v24  ;;  %v1661_v28 = vpop.f32.mrb[5].mxu1  ;;  %v1623_v29 = vpop.f32.mrb[6].mxu0 }
 0x101   :  { %v1662_v30 = vadd.f32 %v1661_v28, %v1660_v25  ;;  %v1663_v31 = vpop.f32.mrb[6].mxu1  ;;  %v1624_v32 = vpop.f32.mrb[7].mxu0 }
 0x102   :  { %v1625_v33 = vadd.f32 %v1624_v32, %v1623_v29  ;;  %v1664_v34 = vpop.f32.mrb[7].mxu1 }
 0x103   :  { %v1068_v35 = vadd.f32 %v1662_v30, %v1622_v27  ;;  %v1665_v36 = vadd.f32 %v1664_v34, %v1663_v31  ;;  %v1361_v31 = vpop.permute.xlu0 %1360 }
 0x105   :  { %v1071_v37 = vadd.f32 %v1665_v36, %v1625_v33  ;;  %v2414_v36 = vpop.permute.xlu1 %1370 }
 0x106   :  { %v1626_v38 = vpop.f32.mrb[8].mxu0 }
 0x107   :  { %v1666_v39 = vpop.f32.mrb[8].mxu1  ;;  %v1627_v40 = vpop.f32.mrb[9].mxu0 }
 0x108   :  { %v1628_v41 = vadd.f32 %v1627_v40, %v1626_v38  ;;  %v1667_v42 = vpop.f32.mrb[9].mxu1  ;;  %v1629_v43 = vpop.f32.mrb[10].mxu0 }
 0x109   :  { %v1668_v44 = vadd.f32 %v1667_v42, %v1666_v39  ;;  %v1669_v45 = vpop.f32.mrb[10].mxu1  ;;  %v1630_v46 = vpop.f32.mrb[11].mxu0 }
 0x10a   :  { %v1631_v47 = vadd.f32 %v1630_v46, %v1629_v43  ;;  %v1670_v48 = vpop.f32.mrb[11].mxu1  ;;  %v1366_v46 = vpop.permute.xlu0 %1365 }
 0x10b   :  { %v1076_v49 = vadd.f32 %v1668_v44, %v1628_v41  ;;  %v1671_v50 = vadd.f32 %v1670_v48, %v1669_v45 }
 0x10d   :  { %v1079_v51 = vadd.f32 %v1671_v50, %v1631_v47 }
 0x10e   :  { %v1632_v52 = vpop.f32.mrb[12].mxu0 }
 0x10f   :  { %v1672_v53 = vpop.f32.mrb[12].mxu1  ;;  %v1633_v54 = vpop.f32.mrb[13].mxu0 }
 0x110   :  { %v1673_v55 = vpop.f32.mrb[13].mxu1  ;;  %v1634_v56 = vadd.f32 %v1633_v54, %v1632_v52  ;;  %v1635_v58 = vpop.f32.mrb[14].mxu0 }
 0x111   :  { %v1674_v57 = vadd.f32 %v1673_v55, %v1672_v53  ;;  %v1675_v59 = vpop.f32.mrb[14].mxu1  ;;  %v1636_v60 = vpop.f32.mrb[15].mxu0 }
 0x112   :  { %v1676_v61 = vpop.f32.mrb[15].mxu1  ;;  %v1637_v63 = vadd.f32 %v1636_v60, %v1635_v58  ;;  %v2418_v52 = vpop.permute.xlu1 %1375 }
 0x113   :  { %v2404_v62 = vadd.f32 %v1674_v57, %v1634_v56  ;;  %v1677_v0 = vadd.f32 %v1676_v61, %v1675_v59  ;;  %v2424_v60 = vpop.permute.xlu0 %1380 }
 0x115   :  { %v2406_v1 = vadd.f32 %v1677_v0, %v1637_v63 }
 0x116   :  { %v1694_v2 = vpop.f32.mrb[16].mxu0 }
 0x117   :  { %v1695_v3 = vpop.f32.mrb[17].mxu0  ;;  %v1734_v8 = vpop.f32.mrb[16].mxu1 }
 0x118   :  { %v1696_v4 = vadd.f32 %v1695_v3, %v1694_v2  ;;  %v1697_v5 = vpop.f32.mrb[18].mxu0  ;;  %v1735_v10 = vpop.f32.mrb[17].mxu1 }
 0x119   :  { %v1698_v6 = vpop.f32.mrb[19].mxu0  ;;  %v1736_v12 = vadd.f32 %v1735_v10, %v1734_v8  ;;  %v1737_v13 = vpop.f32.mrb[18].mxu1 }
 0x11a   :  { %v1125_v7 = vadd.f32 %v1696_v4, %v1060_v21  ;;  %v1699_v9 = vadd.f32 %v1698_v6, %v1697_v5  ;;  %v1738_v14 = vpop.f32.mrb[19].mxu1  ;;  %v2427_v2 = vpop.permute.xlu1 %1385 }
 0x11b   :  { %v1739_v16 = vadd.f32 %v1738_v14, %v1737_v13  ;;  %v2434_v10 = vpop.permute.xlu0 %1390 }
 0x11c   :  { %v1128_v11 = vadd.f32 %v1699_v9, %v1063_v23  ;;  %v2408_v15 = vadd.f32 %v1736_v12, %v1125_v7 }
 0x11e   :  { %v1700_v17 = vpop.f32.mrb[20].mxu0  ;;  %v2410_v18 = vadd.f32 %v1739_v16, %v1128_v11  ;;  %v2436_v12 = vpop.permute.xlu1 %1395 }
 0x11f   :  { %v1701_v19 = vpop.f32.mrb[21].mxu0  ;;  %v1740_v24 = vpop.f32.mrb[20].mxu1 }
 0x120   :  { %v1702_v20 = vadd.f32 %v1701_v19, %v1700_v17  ;;  %v1703_v22 = vpop.f32.mrb[22].mxu0  ;;  %v1741_v27 = vpop.f32.mrb[21].mxu1 }
 0x121   :  { %v1704_v25 = vpop.f32.mrb[23].mxu0  ;;  %v1742_v28 = vadd.f32 %v1741_v27, %v1740_v24  ;;  %v1743_v29 = vpop.f32.mrb[22].mxu1 }
 0x122   :  { %v1133_v26 = vadd.f32 %v1702_v20, %v1068_v35  ;;  %v1705_v21 = vadd.f32 %v1704_v25, %v1703_v22  ;;  %v1744_v30 = vpop.f32.mrb[23].mxu1 }
 0x123   :  { %v1745_v33 = vadd.f32 %v1744_v30, %v1743_v29 }
 0x124   :  { %v1136_v23 = vadd.f32 %v1705_v21, %v1071_v37  ;;  %v2412_v32 = vadd.f32 %v1742_v28, %v1133_v26  ;;  %v1408_v21 = vpop.permute.xlu0 %1407 }
 0x126   :  { %v1706_v34 = vpop.f32.mrb[24].mxu0  ;;  %v2416_v38 = vadd.f32 %v1745_v33, %v1136_v23  ;;  %v1412_v23 = vpop.permute.xlu1 %1411 }
 0x127   :  { %v1707_v39 = vpop.f32.mrb[25].mxu0  ;;  %v1746_v42 = vpop.f32.mrb[24].mxu1 }
 0x128   :  { %v1708_v40 = vadd.f32 %v1707_v39, %v1706_v34  ;;  %v1709_v41 = vpop.f32.mrb[26].mxu0  ;;  %v1747_v45 = vpop.f32.mrb[25].mxu1 }
 0x129   :  { %v1710_v35 = vpop.f32.mrb[27].mxu0  ;;  %v1748_v37 = vadd.f32 %v1747_v45, %v1746_v42  ;;  %v1749_v47 = vpop.f32.mrb[26].mxu1 }
 0x12a   :  { %v1141_v43 = vadd.f32 %v1708_v40, %v1076_v49  ;;  %v1711_v44 = vadd.f32 %v1710_v35, %v1709_v41  ;;  %v1750_v50 = vpop.f32.mrb[27].mxu1 }
 0x12b   :  { %v1751_v54 = vadd.f32 %v1750_v50, %v1749_v47 }
 0x12c   :  { %v1144_v48 = vadd.f32 %v1711_v44, %v1079_v51  ;;  %v2420_v53 = vadd.f32 %v1748_v37, %v1141_v43 }
 0x12e   :  { %v1712_v55 = vpop.f32.mrb[28].mxu0  ;;  %v2422_v56 = vadd.f32 %v1751_v54, %v1144_v48  ;;  %v1416_v54 = vpop.permute.xlu1 %1415 }
 0x12f   :  { %v1713_v57 = vpop.f32.mrb[29].mxu0  ;;  %v1752_v49 = vpop.f32.mrb[28].mxu1 }
 0x130   :  { %v1714_v58 = vadd.f32 %v1713_v57, %v1712_v55  ;;  %v1715_v59 = vpop.f32.mrb[30].mxu0  ;;  %v1753_v51 = vpop.f32.mrb[29].mxu1 }
 0x131   :  { %v1716_v61 = vpop.f32.mrb[31].mxu0  ;;  %v1754_v3 = vadd.f32 %v1753_v51, %v1752_v49  ;;  %v1755_v4 = vpop.f32.mrb[30].mxu1 }
 0x132   :  { %v1149_v63 = vadd.f32 %v1714_v58, %v2404_v62  ;;  %v1717_v0 = vadd.f32 %v1716_v61, %v1715_v59  ;;  %v1756_v6 = vpop.f32.mrb[31].mxu1  ;;  %v1420_v61 = vpop.permute.xlu0 %1419 }
 0x133   :  { %v1757_v8 = vadd.f32 %v1756_v6, %v1755_v4 }
 0x134   :  { %v1152_v5 = vadd.f32 %v1717_v0, %v2406_v1  ;;  %v2430_v7 = vadd.f32 %v1754_v3, %v1149_v63 }
 0x136   :  { %v2432_v9 = vadd.f32 %v1757_v8, %v1152_v5  ;;  %v1774_v11 = vpop.f32.mrb[32].mxu0 }
 0x137   :  { %v1775_v62 = vpop.f32.mrb[33].mxu0  ;;  %v1813_v13 = vpop.f32.mrb[32].mxu1 }
 0x138   :  { %v1776_v14 = vadd.f32 %v1775_v62, %v1774_v11  ;;  %v1777_v16 = vpop.f32.mrb[34].mxu0  ;;  %v1319_v17 = vpop.f32.mrb[33].mxu1 }
 0x139   :  { %v1778_v19 = vpop.f32.mrb[35].mxu0  ;;  %v1814_v20 = vpop.f32.mrb[34].mxu1 }
 0x13a   :  { %v1779_v22 = vadd.f32 %v1778_v19, %v1777_v16  ;;  %v1255_v1 = vadd.f32 %v1776_v14, %v2408_v15  ;;  %v1322_v24 = vpop.f32.mrb[35].mxu1  ;;  %v1424_v11 = vpop.permute.xlu1 %1423 }
 0x13c   :  { %v1320_v25 = vadd.f32 %v1319_v17, %v1255_v1  ;;  %v1258_v26 = vadd.f32 %v1779_v22, %v2410_v18  ;;  %v1428_v17 = vpop.permute.xlu0 %1427 }
 0x13e   :  { %v1323_v27 = vadd.f32 %v1322_v24, %v1258_v26  ;;  %v1780_v28 = vpop.f32.mrb[36].mxu0  ;;  %v1398_v29 = vmul.f32 %v1361_v31, %v1320_v25 }
 0x13f   :  { %v1781_v30 = vpop.f32.mrb[37].mxu0  ;;  %v1817_v33 = vpop.f32.mrb[36].mxu1 }
 0x140   :  { %v1438_v34 = vadd.f32 %v1408_v21, %v1398_v29  ;;  %v1782_v39 = vadd.f32 %v1781_v30, %v1780_v28  ;;  %v1783_v40 = vpop.f32.mrb[38].mxu0  ;;  %v1399_v41 = vmul.f32 %v1366_v46, %v1323_v27  ;;  %v1335_v42 = vpop.f32.mrb[37].mxu1 }
 0x141   :  { %v1784_v35 = vpop.f32.mrb[39].mxu0  ;;  %v1818_v43 = vpop.f32.mrb[38].mxu1 }
 0x142   :  { %v1446_v15 = vmax.f32 %v1438_v34, 0.0  ;;  %v1263_v44 = vadd.f32 %v1782_v39, %v2412_v32  ;;  %v1439_v45 = vadd.f32 %v1412_v23, %v1399_v41  ;;  %v1785_v18 = vadd.f32 %v1784_v35, %v1783_v40  ;;  %v1338_v37 = vpop.f32.mrb[39].mxu1  ;;  %v1432_v21 = vpop.permute.xlu1 %1431 }
 0x143   :  { %v1436_v28 = vpop.permute.xlu0 %1435 }
 0x144   :  { %1455 = vst.msk [vmem:[%s2487_s3] sm:$0xff] %vm1454_vm2, %v1446_v15  ;;  %v1447_v31 = vmax.f32 %v1439_v45, 0.0  ;;  %v1266_v47 = vadd.f32 %v1785_v18, %v2416_v38  ;;  %v1328_v48 = vadd.f32 %v1813_v13, %v1263_v44 }
 0x146   :  { %1456 = vst.msk [vmem:[%s2487_s3 + $0x8] sm:$0xff] %vm1454_vm2, %v1447_v31  ;;  %v1400_v46 = vmul.f32 %v2414_v36, %v1328_v48  ;;  %v1331_v32 = vadd.f32 %v1814_v20, %v1266_v47  ;;  %v1786_v50 = vpop.f32.mrb[40].mxu0 }
 0x147   :  { %v1787_v55 = vpop.f32.mrb[41].mxu0 }
 0x148   :  { %v1440_v57 = vadd.f32 %v1416_v54, %v1400_v46  ;;  %v1401_v58 = vmul.f32 %v2418_v52, %v1331_v32  ;;  %v1788_v59 = vadd.f32 %v1787_v55, %v1786_v50  ;;  %v1789_v49 = vpop.f32.mrb[42].mxu0 }
 0x149   :  { %v1790_v63 = vpop.f32.mrb[43].mxu0 }
 0x14a   :  { %v1448_v38 = vmax.f32 %v1440_v57, 0.0  ;;  %v1441_v0 = vadd.f32 %v1420_v61, %v1401_v58  ;;  %v1791_v51 = vadd.f32 %v1790_v63, %v1789_v49  ;;  %v1271_v3 = vadd.f32 %v1788_v59, %v2420_v53 }
 0x14c   :  { %1457 = vst.msk [vmem:[%s2487_s3 + $0x10] sm:$0xff] %vm1454_vm2, %v1448_v38  ;;  %v1449_v36 = vmax.f32 %v1441_v0, 0.0  ;;  %v1336_v4 = vadd.f32 %v1335_v42, %v1271_v3  ;;  %v1274_v5 = vadd.f32 %v1791_v51, %v2422_v56 }
 0x14e   :  { %1458 = vst.msk [vmem:[%s2487_s3 + $0x18] sm:$0xff] %vm1454_vm2, %v1449_v36  ;;  %v1402_v52 = vmul.f32 %v2424_v60, %v1336_v4  ;;  %v1339_v6 = vadd.f32 %v1338_v37, %v1274_v5  ;;  %v1792_v8 = vpop.f32.mrb[44].mxu0 }
 0x14f   :  { %v1793_v53 = vpop.f32.mrb[45].mxu0 }
 0x150   :  { %v1442_v62 = vadd.f32 %v1424_v11, %v1402_v52  ;;  %v1403_v13 = vmul.f32 %v2427_v2, %v1339_v6  ;;  %v1794_v14 = vadd.f32 %v1793_v53, %v1792_v8  ;;  %v1795_v16 = vpop.f32.mrb[46].mxu0 }
 0x151   :  { %v1796_v19 = vpop.f32.mrb[47].mxu0 }
 0x152   :  { %v1450_v20 = vmax.f32 %v1442_v62, 0.0  ;;  %v1443_v56 = vadd.f32 %v1428_v17, %v1403_v13  ;;  %v1279_v22 = vadd.f32 %v1794_v14, %v2430_v7  ;;  %v1797_v1 = vadd.f32 %v1796_v19, %v1795_v16 }
 0x154   :  { %1459 = vst.msk [vmem:[%s2487_s3 + $0x20] sm:$0xff] %vm1454_vm2, %v1450_v20  ;;  %v1451_v60 = vmax.f32 %v1443_v56, 0.0  ;;  %v1344_v24 = vadd.f32 %v1817_v33, %v1279_v22  ;;  %v1282_v25 = vadd.f32 %v1797_v1, %v2432_v9 }
 0x156   :  { %1460 = vst.msk [vmem:[%s2487_s3 + $0x28] sm:$0xff] %vm1454_vm2, %v1451_v60  ;;  %v1404_v2 = vmul.f32 %v2434_v10, %v1344_v24  ;;  %v1347_v26 = vadd.f32 %v1818_v43, %v1282_v25 }
 0x158   :  { %v1444_v7 = vadd.f32 %v1432_v21, %v1404_v2  ;;  %v1405_v27 = vmul.f32 %v2436_v12, %v1347_v26 }
 0x15a   :  { %v1452_v29 = vmax.f32 %v1444_v7, 0.0  ;;  %v1445_v23 = vadd.f32 %v1436_v28, %v1405_v27 }
 0x15c   :  { %1461 = vst.msk [vmem:[%s2487_s3 + $0x30] sm:$0xff] %vm1454_vm2, %v1452_v29  ;;  %v1453_v9 = vmax.f32 %v1445_v23, 0.0 }
 0x15e   :  { %1462 = vst.msk [vmem:[%s2487_s3 + $0x38] sm:$0xff] %vm1454_vm2, %v1453_v9 }

// kernel: netG_forward.20
= control target key start
LH: loop header
LB: loop body
LE: loop exit
PB: predicated region body
PF: predicated region fallthrough
CT: control target
= control target key end

     0   :  { %vm1413_vm0 = vcmask 261120   ;;  %s3232_s1 = inlined_call_operand.vmem [shape: bf16[2336,32], index: 1, kind: input, shape index: {}]   ;;  %s3233_s0 = inlined_call_operand.vmem [shape: bf16[32,2336], index: 0, kind: input, shape index: {}]   ;;  %s3234_s2 = inlined_call_operand.vmem [shape: f32[32,2], index: 2, kind: input, shape index: {}]   ;;  %s3235_s3 = inlined_call_operand.vmem [shape: f32[32,32], index: 3, kind: output, shape index: {}]  }
   0x1   :  { %v2426_v0 = vld [vmem:[%s3232_s1 + $0x40] sm:$0xff]   ;;  %v2430_v4 = vld [vmem:[%s3232_s1 + $0x48] sm:$0xff]   ;;  %v2434_v8 = vld [vmem:[%s3232_s1 + $0x50] sm:$0xff]  }
   0x2   :  { %v2427_v1 = vld [vmem:[%s3232_s1 + $0xc0] sm:$0xff]   ;;  %2156 = vmatprep.subr.bf16.mxu0 %v2426_v0  ;;  %v2431_v5 = vld [vmem:[%s3232_s1 + $0xc8] sm:$0xff]   ;;  %v2435_v9 = vld [vmem:[%s3232_s1 + $0xd0] sm:$0xff]  }
   0x3   :  { %v2428_v2 = vld [vmem:[%s3232_s1] sm:$0xff]   ;;  %2184 = vmatprep.subr.bf16.mxu1 %v2427_v1  ;;  %v2432_v6 = vld [vmem:[%s3232_s1 + $0x8] sm:$0xff]   ;;  %v2436_v10 = vld [vmem:[%s3232_s1 + $0x10] sm:$0xff]   ;;  %v2628_v1 = vmov 0  }
   0x4   :  { %v2429_v3 = vld [vmem:[%s3232_s1 + $0x80] sm:$0xff]   ;;  %2157 = vmatpush3.bf16.msra.mxu0 %v2428_v2  ;;  %v2433_v7 = vld [vmem:[%s3232_s1 + $0x88] sm:$0xff]   ;;  %v2437_v11 = vld [vmem:[%s3232_s1 + $0x90] sm:$0xff]   ;;  %2422 = vset.pattern.permute.xlu0 %v2628_v1 }
   0x5   :  { %2185 = vmatpush3.bf16.msra.mxu1 %v2429_v3  ;;  %2158 = vmatprep.subr.bf16.mxu0 %v2430_v4  ;;  %v2438_v12 = vld [vmem:[%s3232_s1 + $0x58] sm:$0xff]   ;;  %v2442_v16 = vld [vmem:[%s3232_s1 + $0x60] sm:$0xff]   ;;  %v2446_v20 = vld [vmem:[%s3232_s1 + $0x68] sm:$0xff]  }
   0x6   :  { %2186 = vmatprep.subr.bf16.mxu1 %v2431_v5  ;;  %v2439_v13 = vld [vmem:[%s3232_s1 + $0xd8] sm:$0xff]   ;;  %v2443_v17 = vld [vmem:[%s3232_s1 + $0xe0] sm:$0xff]   ;;  %v2447_v21 = vld [vmem:[%s3232_s1 + $0xe8] sm:$0xff]   ;;  %2423 = vset.pattern.permute.xlu1 %v2628_v1 }
   0x7   :  { %v2440_v14 = vld [vmem:[%s3232_s1 + $0x18] sm:$0xff]   ;;  %v2444_v18 = vld [vmem:[%s3232_s1 + $0x20] sm:$0xff]   ;;  %v2448_v22 = vld [vmem:[%s3232_s1 + $0x28] sm:$0xff]  }
   0x8   :  { %2159 = vmatpush3.bf16.msra.mxu0 %v2432_v6  ;;  %v2441_v15 = vld [vmem:[%s3232_s1 + $0x98] sm:$0xff]   ;;  %v2445_v19 = vld [vmem:[%s3232_s1 + $0xa0] sm:$0xff]   ;;  %v2449_v23 = vld [vmem:[%s3232_s1 + $0xa8] sm:$0xff]  }
   0x9   :  { %2187 = vmatpush3.bf16.msra.mxu1 %v2433_v7  ;;  %2160 = vmatprep.subr.bf16.mxu0 %v2434_v8  ;;  %v2450_v24 = vld [vmem:[%s3232_s1 + $0x70] sm:$0xff]   ;;  %v2454_v28 = vld [vmem:[%s3232_s1 + $0x78] sm:$0xff]   ;;  %v2458_v32 = vld [vmem:[%s3233_s0] ss:$76 sps:$4 sm:$0xff]  }
   0xa   :  { %2188 = vmatprep.subr.bf16.mxu1 %v2435_v9  ;;  %v2451_v25 = vld [vmem:[%s3232_s1 + $0xf0] sm:$0xff]   ;;  %v2455_v29 = vld [vmem:[%s3232_s1 + $0xf8] sm:$0xff]   ;;  %v2464_v36 = vld [vmem:[%s3232_s1 + $0x140] sm:$0xff]  }
   0xb   :  { %v2452_v26 = vld [vmem:[%s3232_s1 + $0x30] sm:$0xff]   ;;  %v2456_v30 = vld [vmem:[%s3232_s1 + $0x38] sm:$0xff]   ;;  %v2465_v37 = vld [vmem:[%s3232_s1 + $0x100] sm:$0xff]  }
   0xc   :  { %2161 = vmatpush3.bf16.msra.mxu0 %v2436_v10  ;;  %v2453_v27 = vld [vmem:[%s3232_s1 + $0xb0] sm:$0xff]   ;;  %v2457_v31 = vld [vmem:[%s3232_s1 + $0xb8] sm:$0xff]   ;;  %v2466_v38 = vld [vmem:[%s3232_s1 + $0x1c0] sm:$0xff]  }
   0xd   :  { %2189 = vmatpush3.bf16.msra.mxu1 %v2437_v11  ;;  %2162 = vmatprep.subr.bf16.mxu0 %v2438_v12  ;;  %v2460_v33 = vld [vmem:[%s3233_s0 + $0x4] ss:$76 sps:$4 sm:$0xff]   ;;  %v2461_v34 = vld [vmem:[%s3233_s0 + $0x8] ss:$76 sps:$4 sm:$0xff]   ;;  %v2463_v35 = vld [vmem:[%s3233_s0 + $0xc] ss:$76 sps:$4 sm:$0xff]  }
   0xe   :  { %2190 = vmatprep.subr.bf16.mxu1 %v2439_v13  ;;  %1452 = vmatprep.mubr.bf16.mxu0 %v2460_v33  ;;  %v2467_v39 = vld [vmem:[%s3232_s1 + $0x180] sm:$0xff]   ;;  %v2468_v40 = vld [vmem:[%s3232_s1 + $0x148] sm:$0xff]   ;;  %v2472_v44 = vld [vmem:[%s3232_s1 + $0x150] sm:$0xff]  }
   0xf   :  { %1501 = vmatprep.mubr.bf16.mxu1 %v2463_v35  ;;  %v2469_v41 = vld [vmem:[%s3232_s1 + $0x108] sm:$0xff]   ;;  %v2473_v45 = vld [vmem:[%s3232_s1 + $0x110] sm:$0xff]   ;;  %v2476_v48 = vld [vmem:[%s3232_s1 + $0x158] sm:$0xff]  }
  0x10   :  { %2163 = vmatpush3.bf16.msra.mxu0 %v2440_v14  ;;  %v2470_v42 = vld [vmem:[%s3232_s1 + $0x1c8] sm:$0xff]   ;;  %v2474_v46 = vld [vmem:[%s3232_s1 + $0x1d0] sm:$0xff]   ;;  %v2477_v49 = vld [vmem:[%s3232_s1 + $0x118] sm:$0xff]  }
  0x11   :  { %2191 = vmatpush3.bf16.msra.mxu1 %v2441_v15  ;;  %2164 = vmatprep.subr.bf16.mxu0 %v2442_v16  ;;  %v2471_v43 = vld [vmem:[%s3232_s1 + $0x188] sm:$0xff]   ;;  %v2475_v47 = vld [vmem:[%s3232_s1 + $0x190] sm:$0xff]   ;;  %v2478_v50 = vld [vmem:[%s3232_s1 + $0x1d8] sm:$0xff]  }
  0x12   :  { %2192 = vmatprep.subr.bf16.mxu1 %v2443_v17  ;;  %v2479_v51 = vld [vmem:[%s3232_s1 + $0x198] sm:$0xff]   ;;  %v2480_v52 = vld [vmem:[%s3232_s1 + $0x160] sm:$0xff]   ;;  %v2484_v56 = vld [vmem:[%s3232_s1 + $0x168] sm:$0xff]  }
  0x13   :  { %v2481_v53 = vld [vmem:[%s3232_s1 + $0x120] sm:$0xff]   ;;  %v2485_v57 = vld [vmem:[%s3233_s0 + $0x9c] ss:$76 sps:$4 sm:$0xff]   ;;  %v2494_v0 = vld [vmem:[%s3232_s1 + $0x170] sm:$0xff]  }
  0x14   :  { %2165 = vmatpush3.bf16.msra.mxu0 %v2444_v18  ;;  %v2482_v54 = vld [vmem:[%s3232_s1 + $0x1e0] sm:$0xff]   ;;  %v2489_v59 = vld [vmem:[%s3232_s1 + $0x128] sm:$0xff]   ;;  %v2495_v2 = vld [vmem:[%s3232_s1 + $0x130] sm:$0xff]  }
  0x15   :  { %2193 = vmatpush3.bf16.msra.mxu1 %v2445_v19  ;;  %2166 = vmatprep.subr.bf16.mxu0 %v2446_v20  ;;  %v2483_v55 = vld [vmem:[%s3232_s1 + $0x1a0] sm:$0xff]   ;;  %v2492_v62 = vld [vmem:[%s3232_s1 + $0x1e8] sm:$0xff]   ;;  %v2496_v3 = vld [vmem:[%s3232_s1 + $0x1f0] sm:$0xff]  }
  0x16   :  { %2194 = vmatprep.subr.bf16.mxu1 %v2447_v21  ;;  %v2487_v58 = vld [vmem:[%s3233_s0 + $0xa4] ss:$76 sps:$4 sm:$0xff]   ;;  %v2491_v61 = vld [vmem:[%s3233_s0 + $0xa0] ss:$76 sps:$4 sm:$0xff]   ;;  %v2498_v5 = vld [vmem:[%s3232_s1 + $0x178] sm:$0xff]  }
  0x17   :  { %v2490_v60 = vld [vmem:[%s3233_s0 + $0x98] ss:$76 sps:$4 sm:$0xff]   ;;  %v2493_v63 = vld [vmem:[%s3232_s1 + $0x1a8] sm:$0xff]   ;;  %v2497_v4 = vld [vmem:[%s3232_s1 + $0x1b0] sm:$0xff]  }
  0x18   :  { %2167 = vmatpush3.bf16.msra.mxu0 %v2448_v22  ;;  %v2499_v6 = vld [vmem:[%s3232_s1 + $0x138] sm:$0xff]   ;;  %v2503_v9 = vld [vmem:[%s3233_s0 + $0x14] ss:$76 sps:$4 sm:$0xff]   ;;  %v2512_v17 = vld [vmem:[%s3232_s1 + $0x248] sm:$0xff]  }
  0x19   :  { %2195 = vmatpush3.bf16.msra.mxu1 %v2449_v23  ;;  %2168 = vmatprep.subr.bf16.mxu0 %v2450_v24  ;;  %v2500_v7 = vld [vmem:[%s3232_s1 + $0x1f8] sm:$0xff]   ;;  %v2505_v11 = vld [vmem:[%s3232_s1 + $0x240] sm:$0xff]   ;;  %v2513_v18 = vld [vmem:[%s3232_s1 + $0x208] sm:$0xff]  }
  0x1a   :  { %2196 = vmatprep.subr.bf16.mxu1 %v2451_v25  ;;  %v2501_v8 = vld [vmem:[%s3233_s0 + $0x10] ss:$76 sps:$4 sm:$0xff]   ;;  %v2506_v12 = vld [vmem:[%s3233_s0 + $0x18] ss:$76 sps:$4 sm:$0xff]   ;;  %v2514_v19 = vld [vmem:[%s3232_s1 + $0x2c8] sm:$0xff]  }
  0x1b   :  { %v2504_v10 = vld [vmem:[%s3232_s1 + $0x1b8] sm:$0xff]   ;;  %v2509_v14 = vld [vmem:[%s3232_s1 + $0x200] sm:$0xff]   ;;  %v2517_v21 = vld [vmem:[%s3232_s1 + $0x288] sm:$0xff]  }
  0x1c   :  { %2169 = vmatpush3.bf16.msra.mxu0 %v2452_v26  ;;  %v2508_v13 = vld [vmem:[%s3233_s0 + $0x1c] ss:$76 sps:$4 sm:$0xff]   ;;  %v2510_v15 = vld [vmem:[%s3232_s1 + $0x2c0] sm:$0xff]   ;;  %v2515_v20 = vld [vmem:[%s3233_s0 + $0xac] ss:$76 sps:$4 sm:$0xff]  }
  0x1d   :  { %2197 = vmatpush3.bf16.msra.mxu1 %v2453_v27  ;;  %2170 = vmatprep.subr.bf16.mxu0 %v2454_v28  ;;  %v2511_v16 = vld [vmem:[%s3232_s1 + $0x280] sm:$0xff]   ;;  %v2518_v22 = vld [vmem:[%s3233_s0 + $0xa8] ss:$76 sps:$4 sm:$0xff]   ;;  %v2523_v26 = vld [vmem:[%s3233_s0 + $0xb0] ss:$76 sps:$4 sm:$0xff]  }
  0x1e   :  { %2198 = vmatprep.subr.bf16.mxu1 %v2455_v29  ;;  %v2519_v23 = vld [vmem:[%s3232_s1 + $0x250] sm:$0xff]   ;;  %v2526_v29 = vld [vmem:[%s3232_s1 + $0x258] sm:$0xff]   ;;  %v2530_v33 = vld [vmem:[%s3232_s1 + $0x260] sm:$0xff]  }
  0x1f   :  { %v2520_v24 = vld [vmem:[%s3233_s0 + $0xb4] ss:$76 sps:$4 sm:$0xff]  }
  0x20   :  { %2171 = vmatpush3.bf16.msra.mxu0 %v2456_v30  ;;  %v2522_v25 = vld [vmem:[%s3232_s1 + $0x210] sm:$0xff]   ;;  %v2527_v30 = vld [vmem:[%s3232_s1 + $0x218] sm:$0xff]   ;;  %v2532_v35 = vld [vmem:[%s3232_s1 + $0x2e0] sm:$0xff]  }
  0x21   :  { %2199 = vmatpush3.bf16.msra.mxu1 %v2457_v31  ;;  %2212 = vmatprep.subr.bf16.mxu0 %v2464_v36  ;;  %v2524_v27 = vld [vmem:[%s3232_s1 + $0x2d0] sm:$0xff]   ;;  %v2528_v31 = vld [vmem:[%s3232_s1 + $0x2d8] sm:$0xff]   ;;  %v2533_v36 = vld [vmem:[%s3232_s1 + $0x2a0] sm:$0xff]  }
  0x22   :  { %2240 = vmatprep.subr.bf16.mxu1 %v2466_v38  ;;  %v2525_v28 = vld [vmem:[%s3232_s1 + $0x290] sm:$0xff]   ;;  %v2535_v38 = vld [vmem:[%s3232_s1 + $0x228] sm:$0xff]  }
  0x23   :  { %1453 = vmatmul.mubr.bf16.vlgmr.msra.gmra.mrb[0].mxu0 %v2458_v32  ;;  %v2529_v32 = vld [vmem:[%s3232_s1 + $0x298] sm:$0xff]   ;;  %v2566_v1 = vld [vmem:[%s3232_s1 + $0x310] sm:$0xff]  }
  0x24   :  { %1502 = vmatmul.mubr.bf16.vlgmr.msra.gmra.mrb[0].mxu1 %v2461_v34  ;;  %2213 = vmatpush3.bf16.msra.mxu0 %v2465_v37  ;;  %v2531_v34 = vld [vmem:[%s3232_s1 + $0x220] sm:$0xff]   ;;  %v2534_v37 = vld [vmem:[%s3232_s1 + $0x268] sm:$0xff]  }
  0x25   :  { %2241 = vmatpush3.bf16.msra.mxu1 %v2467_v39  ;;  %2214 = vmatprep.subr.bf16.mxu0 %v2468_v40  ;;  %v2536_v39 = vld [vmem:[%s3232_s1 + $0x2e8] sm:$0xff]  }
  0x26   :  { %2242 = vmatprep.subr.bf16.mxu1 %v2470_v42  ;;  %1460 = vmatprep.mubr.bf16.mxu0 %v2485_v57  ;;  %v2537_v40 = vld [vmem:[%s3232_s1 + $0x2a8] sm:$0xff]   ;;  %v2539_v42 = vld [vmem:[%s3232_s1 + $0x230] sm:$0xff]  }
  0x27   :  { %1509 = vmatprep.mubr.bf16.mxu1 %v2487_v58  ;;  %v2556_v57 = vld [vmem:[%s3232_s1 + $0x348] sm:$0xff]  }
  0x28   :  { %2215 = vmatpush3.bf16.msra.mxu0 %v2469_v41  ;;  %v2538_v41 = vld [vmem:[%s3232_s1 + $0x270] sm:$0xff]   ;;  %v2557_v58 = vld [vmem:[%s3232_s1 + $0x308] sm:$0xff]  }
  0x29   :  { %2243 = vmatpush3.bf16.msra.mxu1 %v2471_v43  ;;  %2216 = vmatprep.subr.bf16.mxu0 %v2472_v44  ;;  %v2540_v43 = vld [vmem:[%s3232_s1 + $0x2f0] sm:$0xff]  }
  0x2a   :  { %2244 = vmatprep.subr.bf16.mxu1 %v2474_v46  ;;  %v2541_v44 = vld [vmem:[%s3232_s1 + $0x2b0] sm:$0xff]   ;;  %v2543_v46 = vld [vmem:[%s3232_s1 + $0x238] sm:$0xff]  }
  0x2b   :  { %1461 = vmatmul.mubr.bf16.gmra.mrb[4].mxu0 %v2490_v60  ;;  %v2559_v60 = vld [vmem:[%s3233_s0 + $0xbc] ss:$76 sps:$4 sm:$0xff]  }
  0x2c   :  { %2217 = vmatpush3.bf16.msra.mxu0 %v2473_v45  ;;  %1510 = vmatmul.mubr.bf16.gmra.mrb[4].mxu1 %v2491_v61  ;;  %v2542_v45 = vld [vmem:[%s3232_s1 + $0x278] sm:$0xff]   ;;  %v2561_v61 = vld [vmem:[%s3232_s1 + $0x388] sm:$0xff]  }
  0x2d   :  { %2245 = vmatpush3.bf16.msra.mxu1 %v2475_v47  ;;  %2218 = vmatprep.subr.bf16.mxu0 %v2476_v48  ;;  %v2544_v47 = vld [vmem:[%s3232_s1 + $0x2f8] sm:$0xff]   ;;  %v2545_v48 = vld [vmem:[%s3233_s0 + $0x20] ss:$76 sps:$4 sm:$0xff]  }
  0x2e   :  { %2246 = vmatprep.subr.bf16.mxu1 %v2478_v50  ;;  %1550 = vmatprep.mubr.bf16.mxu0 %v2503_v9  ;;  %v2548_v50 = vld [vmem:[%s3232_s1 + $0x2b8] sm:$0xff]   ;;  %v2574_v9 = vld [vmem:[%s3232_s1 + $0x360] sm:$0xff]  }
  0x2f   :  { %1599 = vmatprep.mubr.bf16.mxu1 %v2508_v13  ;;  %v2578_v13 = vld [vmem:[%s3232_s1 + $0x368] sm:$0xff]  }
  0x30   :  { %2219 = vmatpush3.bf16.msra.mxu0 %v2477_v49  ;;  %v2547_v49 = vld [vmem:[%s3233_s0 + $0x24] ss:$76 sps:$4 sm:$0xff]  }
  0x31   :  { %2247 = vmatpush3.bf16.msra.mxu1 %v2479_v51  ;;  %2220 = vmatprep.subr.bf16.mxu0 %v2480_v52  ;;  %v2549_v51 = vld [vmem:[%s3232_s1 + $0x340] sm:$0xff]   ;;  %v2550_v52 = vld [vmem:[%s3233_s0 + $0x28] ss:$76 sps:$4 sm:$0xff]  }
  0x32   :  { %2248 = vmatprep.subr.bf16.mxu1 %v2482_v54  ;;  %v2553_v54 = vld [vmem:[%s3232_s1 + $0x300] sm:$0xff]  }
  0x34   :  { %2221 = vmatpush3.bf16.msra.mxu0 %v2481_v53  ;;  %v2552_v53 = vld [vmem:[%s3233_s0 + $0x2c] ss:$76 sps:$4 sm:$0xff]  }
  0x35   :  { %2249 = vmatpush3.bf16.msra.mxu1 %v2483_v55  ;;  %2222 = vmatprep.subr.bf16.mxu0 %v2484_v56  ;;  %v2554_v55 = vld [vmem:[%s3232_s1 + $0x3c0] sm:$0xff]  }
  0x36   :  { %2250 = vmatprep.subr.bf16.mxu1 %v2492_v62  ;;  %v2555_v56 = vld [vmem:[%s3232_s1 + $0x380] sm:$0xff]  }
  0x37   :  { %v2562_v62 = vld [vmem:[%s3233_s0 + $0xb8] ss:$76 sps:$4 sm:$0xff]  }
  0x38   :  { %2223 = vmatpush3.bf16.msra.mxu0 %v2489_v59  ;;  %v2558_v59 = vld [vmem:[%s3232_s1 + $0x3c8] sm:$0xff]  }
  0x39   :  { %2251 = vmatpush3.bf16.msra.mxu1 %v2493_v63  ;;  %2224 = vmatprep.subr.bf16.mxu0 %v2494_v0  ;;  %v2563_v63 = vld [vmem:[%s3232_s1 + $0x350] sm:$0xff]  }
  0x3a   :  { %2252 = vmatprep.subr.bf16.mxu1 %v2496_v3  ;;  %v2564_v0 = vld [vmem:[%s3233_s0 + $0xc4] ss:$76 sps:$4 sm:$0xff]  }
  0x3b   :  { %v2568_v3 = vld [vmem:[%s3232_s1 + $0x3d0] sm:$0xff]  }
  0x3c   :  { %2225 = vmatpush3.bf16.msra.mxu0 %v2495_v2  ;;  %v2567_v2 = vld [vmem:[%s3233_s0 + $0xc0] ss:$76 sps:$4 sm:$0xff]  }
  0x3d   :  { %2253 = vmatpush3.bf16.msra.mxu1 %v2497_v4  ;;  %2226 = vmatprep.subr.bf16.mxu0 %v2498_v5  ;;  %v2569_v4 = vld [vmem:[%s3232_s1 + $0x390] sm:$0xff]   ;;  %v2570_v5 = vld [vmem:[%s3232_s1 + $0x358] sm:$0xff]  }
  0x3e   :  { %2254 = vmatprep.subr.bf16.mxu1 %v2500_v7  ;;  %v2572_v7 = vld [vmem:[%s3232_s1 + $0x3d8] sm:$0xff]  }
  0x40   :  { %2227 = vmatpush3.bf16.msra.mxu0 %v2499_v6  ;;  %v2571_v6 = vld [vmem:[%s3232_s1 + $0x318] sm:$0xff]  }
  0x41   :  { %2255 = vmatpush3.bf16.msra.mxu1 %v2504_v10  ;;  %2268 = vmatprep.subr.bf16.mxu0 %v2505_v11  ;;  %v2575_v10 = vld [vmem:[%s3232_s1 + $0x320] sm:$0xff]  }
  0x42   :  { %2296 = vmatprep.subr.bf16.mxu1 %v2510_v15  ;;  %v2576_v11 = vld [vmem:[%s3232_s1 + $0x3e0] sm:$0xff]   ;;  %v2580_v15 = vld [vmem:[%s3232_s1 + $0x3e8] sm:$0xff]  }
  0x43   :  { %1551 = vmatmul.mubr.bf16.vlgmr.msra.gmra.mrb[8].mxu0 %v2501_v8  ;;  %v2573_v8 = vld [vmem:[%s3232_s1 + $0x398] sm:$0xff]  }
  0x44   :  { %2269 = vmatpush3.bf16.msra.mxu0 %v2509_v14  ;;  %1600 = vmatmul.mubr.bf16.vlgmr.msra.gmra.mrb[8].mxu1 %v2506_v12  ;;  %v2577_v12 = vld [vmem:[%s3232_s1 + $0x3a0] sm:$0xff]   ;;  %v2579_v14 = vld [vmem:[%s3232_s1 + $0x328] sm:$0xff]  }
  0x45   :  { %2297 = vmatpush3.bf16.msra.mxu1 %v2511_v16  ;;  %2270 = vmatprep.subr.bf16.mxu0 %v2512_v17  ;;  %v2581_v16 = vld [vmem:[%s3232_s1 + $0x3a8] sm:$0xff]   ;;  %v2582_v17 = vld [vmem:[%s3232_s1 + $0x370] sm:$0xff]  }
  0x46   :  { %2298 = vmatprep.subr.bf16.mxu1 %v2514_v19  ;;  %1558 = vmatprep.mubr.bf16.mxu0 %v2515_v20  ;;  %v2584_v19 = vld [vmem:[%s3232_s1 + $0x3f0] sm:$0xff]  }
  0x47   :  { %1607 = vmatprep.mubr.bf16.mxu1 %v2520_v24  ;;  %v2585_v20 = vld [vmem:[%s3232_s1 + $0x3b0] sm:$0xff]  }
  0x48   :  { %2271 = vmatpush3.bf16.msra.mxu0 %v2513_v18  ;;  %v2583_v18 = vld [vmem:[%s3232_s1 + $0x330] sm:$0xff]  }
  0x49   :  { %2299 = vmatpush3.bf16.msra.mxu1 %v2517_v21  ;;  %2272 = vmatprep.subr.bf16.mxu0 %v2519_v23  ;;  %v2586_v21 = vld [vmem:[%s3232_s1 + $0x378] sm:$0xff]  }
  0x4a   :  { %2300 = vmatprep.subr.bf16.mxu1 %v2524_v27  ;;  %v2588_v23 = vld [vmem:[%s3232_s1 + $0x3f8] sm:$0xff]   ;;  %v2593_v27 = vld [vmem:[%s3232_s1 + $0x440] sm:$0xff]  }
  0x4b   :  { %1559 = vmatmul.mubr.bf16.gmra.mrb[12].mxu0 %v2518_v22  ;;  %v2587_v22 = vld [vmem:[%s3232_s1 + $0x338] sm:$0xff]  }
  0x4c   :  { %2273 = vmatpush3.bf16.msra.mxu0 %v2522_v25  ;;  %1608 = vmatmul.mubr.bf16.gmra.mrb[12].mxu1 %v2523_v26  ;;  %v2589_v24 = vld [vmem:[%s3233_s0 + $0x30] ss:$76 sps:$4 sm:$0xff]   ;;  %v2591_v25 = vld [vmem:[%s3233_s0 + $0x34] ss:$76 sps:$4 sm:$0xff]  }
  0x4d   :  { %2301 = vmatpush3.bf16.msra.mxu1 %v2525_v28  ;;  %2274 = vmatprep.subr.bf16.mxu0 %v2526_v29  ;;  %v2592_v26 = vld [vmem:[%s3232_s1 + $0x3b8] sm:$0xff]  }
  0x4e   :  { %2302 = vmatprep.subr.bf16.mxu1 %v2528_v31  ;;  %1648 = vmatprep.mubr.bf16.mxu0 %v2547_v49  ;;  %v2594_v28 = vld [vmem:[%s3233_s0 + $0x38] ss:$76 sps:$4 sm:$0xff]   ;;  %v2596_v29 = vld [vmem:[%s3233_s0 + $0x3c] ss:$76 sps:$4 sm:$0xff]  }
  0x4f   :  { %1697 = vmatprep.mubr.bf16.mxu1 %v2552_v53  ;;  %v2598_v31 = vld [vmem:[%s3232_s1 + $0x448] sm:$0xff]   ;;  %v1910_v53 = vld [vmem:[%s3234_s2] sm:$0xff] }
  0x50   :  { %2275 = vmatpush3.bf16.msra.mxu0 %v2527_v30  ;;  %v2597_v30 = vld [vmem:[%s3232_s1 + $0x400] sm:$0xff]   ;;  %v2622_v49 = vld [vmem:[%s3232_s1 + $0x488] sm:$0xff]   ;;  %1916 = vperm.xlu0 %2422, %v1910_v53  }
  0x51   :  { %2303 = vmatpush3.bf16.msra.mxu1 %v2529_v32  ;;  %2276 = vmatprep.subr.bf16.mxu0 %v2530_v33  ;;  %v2599_v32 = vld [vmem:[%s3232_s1 + $0x408] sm:$0xff]  }
  0x52   :  { %2304 = vmatprep.subr.bf16.mxu1 %v2532_v35  ;;  %v2600_v33 = vld [vmem:[%s3233_s0 + $0xcc] ss:$76 sps:$4 sm:$0xff]   ;;  %v2603_v35 = vld [vmem:[%s3232_s1 + $0x450] sm:$0xff]  }
  0x54   :  { %2277 = vmatpush3.bf16.msra.mxu0 %v2531_v34  ;;  %v2602_v34 = vld [vmem:[%s3233_s0 + $0xc8] ss:$76 sps:$4 sm:$0xff]  }
  0x55   :  { %2305 = vmatpush3.bf16.msra.mxu1 %v2533_v36  ;;  %2278 = vmatprep.subr.bf16.mxu0 %v2534_v37  ;;  %v2604_v36 = vld [vmem:[%s3233_s0 + $0xd4] ss:$76 sps:$4 sm:$0xff]  }
  0x56   :  { %2306 = vmatprep.subr.bf16.mxu1 %v2536_v39  ;;  %v2606_v37 = vld [vmem:[%s3232_s1 + $0x410] sm:$0xff]   ;;  %v2608_v39 = vld [vmem:[%s3232_s1 + $0x458] sm:$0xff]  }
  0x58   :  { %2279 = vmatpush3.bf16.msra.mxu0 %v2535_v38  ;;  %v2607_v38 = vld [vmem:[%s3233_s0 + $0xd0] ss:$76 sps:$4 sm:$0xff]  }
  0x59   :  { %2307 = vmatpush3.bf16.msra.mxu1 %v2537_v40  ;;  %2280 = vmatprep.subr.bf16.mxu0 %v2538_v41  ;;  %v2609_v40 = vld [vmem:[%s3232_s1 + $0x418] sm:$0xff]   ;;  %v2610_v41 = vld [vmem:[%s3232_s1 + $0x460] sm:$0xff]  }
  0x5a   :  { %2308 = vmatprep.subr.bf16.mxu1 %v2540_v43  ;;  %v2612_v43 = vld [vmem:[%s3232_s1 + $0x468] sm:$0xff]  }
  0x5c   :  { %2281 = vmatpush3.bf16.msra.mxu0 %v2539_v42  ;;  %v2611_v42 = vld [vmem:[%s3232_s1 + $0x420] sm:$0xff]  }
  0x5d   :  { %2309 = vmatpush3.bf16.msra.mxu1 %v2541_v44  ;;  %2282 = vmatprep.subr.bf16.mxu0 %v2542_v45  ;;  %v2616_v44 = vld [vmem:[%s3232_s1 + $0x480] sm:$0xff]   ;;  %v2613_v45 = vld [vmem:[%s3232_s1 + $0x428] sm:$0xff]  }
  0x5e   :  { %2310 = vmatprep.subr.bf16.mxu1 %v2544_v47  ;;  %v2621_v47 = vld [vmem:[%s3233_s0 + $0x44] ss:$76 sps:$4 sm:$0xff]  }
  0x60   :  { %2283 = vmatpush3.bf16.msra.mxu0 %v2543_v46  ;;  %v2614_v46 = vld [vmem:[%s3232_s1 + $0x470] sm:$0xff]  }
  0x61   :  { %2311 = vmatpush3.bf16.msra.mxu1 %v2548_v50  ;;  %2324 = vmatprep.subr.bf16.mxu0 %v2549_v51  ;;  %v2623_v50 = vld [vmem:[%s3233_s0 + $0x48] ss:$76 sps:$4 sm:$0xff]   ;;  %v2624_v51 = vld [vmem:[%s3233_s0 + $0xe0] ss:$76 sps:$4 sm:$0xff]  }
  0x62   :  { %2352 = vmatprep.subr.bf16.mxu1 %v2554_v55  ;;  %v2618_v55 = vld [vmem:[%s3232_s1 + $0x438] sm:$0xff]  }
  0x63   :  { %1649 = vmatmul.mubr.bf16.vlgmr.msra.gmra.mrb[16].mxu0 %v2545_v48  ;;  %v2615_v48 = vld [vmem:[%s3232_s1 + $0x430] sm:$0xff]  }
  0x64   :  { %2325 = vmatpush3.bf16.msra.mxu0 %v2553_v54  ;;  %1698 = vmatmul.mubr.bf16.vlgmr.msra.gmra.mrb[16].mxu1 %v2550_v52  ;;  %v2617_v52 = vld [vmem:[%s3232_s1 + $0x478] sm:$0xff]   ;;  %v1912_v54 = vld [vmem:[%s3234_s2 + $0x10] sm:$0xff] }
  0x65   :  { %2353 = vmatpush3.bf16.msra.mxu1 %v2555_v56  ;;  %2326 = vmatprep.subr.bf16.mxu0 %v2556_v57  ;;  %v1911_v56 = vld [vmem:[%s3234_s2 + $0x8] sm:$0xff]  ;;  %v1913_v57 = vld [vmem:[%s3234_s2 + $0x18] sm:$0xff] }
  0x66   :  { %2354 = vmatprep.subr.bf16.mxu1 %v2558_v59  ;;  %1656 = vmatprep.mubr.bf16.mxu0 %v2559_v60  ;;  %v2625_v59 = vld [vmem:[%s3233_s0 + $0xdc] ss:$76 sps:$4 sm:$0xff]   ;;  %v2629_v60 = vmov 1  }
  0x67   :  { %1705 = vmatprep.mubr.bf16.mxu1 %v2564_v0  ;;  %1926 = vperm.xlu1 %2423, %v1912_v54  }
  0x68   :  { %2327 = vmatpush3.bf16.msra.mxu0 %v2557_v58  ;;  %v2619_v58 = vld [vmem:[%s3233_s0 + $0x40] ss:$76 sps:$4 sm:$0xff]   ;;  %1921 = vperm.xlu0 %2422, %v1911_v56  }
  0x69   :  { %2355 = vmatpush3.bf16.msra.mxu1 %v2561_v61  ;;  %2328 = vmatprep.subr.bf16.mxu0 %v2563_v63  ;;  %v2627_v61 = vld [vmem:[%s3233_s0 + $0xd8] ss:$76 sps:$4 sm:$0xff]  }
  0x6a   :  { %2356 = vmatprep.subr.bf16.mxu1 %v2568_v3 }
  0x6b   :  { %1657 = vmatmul.mubr.bf16.gmra.mrb[20].mxu0 %v2562_v62  ;;  %1931 = vperm.xlu1 %2423, %v1913_v57  }
  0x6c   :  { %2329 = vmatpush3.bf16.msra.mxu0 %v2566_v1  ;;  %1706 = vmatmul.mubr.bf16.gmra.mrb[20].mxu1 %v2567_v2 }
  0x6d   :  { %2357 = vmatpush3.bf16.msra.mxu1 %v2569_v4  ;;  %2330 = vmatprep.subr.bf16.mxu0 %v2570_v5 }
  0x6e   :  { %2358 = vmatprep.subr.bf16.mxu1 %v2572_v7  ;;  %1746 = vmatprep.mubr.bf16.mxu0 %v2591_v25 }
  0x6f   :  { %1795 = vmatprep.mubr.bf16.mxu1 %v2596_v29  ;;  %2424 = vset.pattern.permute.xlu0 %v2629_v60 }
  0x70   :  { %2331 = vmatpush3.bf16.msra.mxu0 %v2571_v6  ;;  %1939 = vperm.xlu0 %2424, %v1910_v53  }
  0x71   :  { %2359 = vmatpush3.bf16.msra.mxu1 %v2573_v8  ;;  %2332 = vmatprep.subr.bf16.mxu0 %v2574_v9 }
  0x72   :  { %2360 = vmatprep.subr.bf16.mxu1 %v2576_v11  ;;  %2425 = vset.pattern.permute.xlu1 %v2629_v60 }
  0x73   :  { %1943 = vperm.xlu1 %2425, %v1911_v56  }
  0x74   :  { %2333 = vmatpush3.bf16.msra.mxu0 %v2575_v10  ;;  %1951 = vperm.xlu0 %2424, %v1913_v57  }
  0x75   :  { %2361 = vmatpush3.bf16.msra.mxu1 %v2577_v12  ;;  %2334 = vmatprep.subr.bf16.mxu0 %v2578_v13 }
  0x76   :  { %2362 = vmatprep.subr.bf16.mxu1 %v2580_v15 }
  0x77   :  { %1947 = vperm.xlu1 %2425, %v1912_v54  }
  0x78   :  { %2335 = vmatpush3.bf16.msra.mxu0 %v2579_v14 }
  0x79   :  { %2363 = vmatpush3.bf16.msra.mxu1 %v2581_v16  ;;  %2336 = vmatprep.subr.bf16.mxu0 %v2582_v17 }
  0x7a   :  { %2364 = vmatprep.subr.bf16.mxu1 %v2584_v19 }
  0x7c   :  { %2337 = vmatpush3.bf16.msra.mxu0 %v2583_v18 }
  0x7d   :  { %2365 = vmatpush3.bf16.msra.mxu1 %v2585_v20  ;;  %2338 = vmatprep.subr.bf16.mxu0 %v2586_v21 }
  0x7e   :  { %2366 = vmatprep.subr.bf16.mxu1 %v2588_v23 }
  0x80   :  { %2339 = vmatpush3.bf16.msra.mxu0 %v2587_v22 }
  0x81   :  { %2367 = vmatpush3.bf16.msra.mxu1 %v2592_v26  ;;  %2380 = vmatprep.subr.bf16.mxu0 %v2593_v27 }
  0x82   :  { %2412 = vmatprep.subr.bf16.mxu1 %v2616_v44 }
  0x83   :  { %1747 = vmatmul.mubr.bf16.vlgmr.msra.gmra.mrb[24].mxu0 %v2589_v24 }
  0x84   :  { %2381 = vmatpush3.bf16.msra.mxu0 %v2597_v30  ;;  %1796 = vmatmul.mubr.bf16.vlgmr.msra.gmra.mrb[24].mxu1 %v2594_v28 }
  0x85   :  { %2382 = vmatprep.subr.bf16.mxu0 %v2598_v31  ;;  %1754 = vmatprep.mubr.bf16.mxu0 %v2600_v33 }
  0x86   :  { %1803 = vmatprep.mubr.bf16.mxu1 %v2604_v36  ;;  %2413 = vmatpush3.bf16.msra.mxu1 %v2616_v44 }
  0x87   :  { %2414 = vmatprep.subr.bf16.mxu1 %v2622_v49 }
  0x88   :  { %2383 = vmatpush3.bf16.msra.mxu0 %v2599_v32 }
  0x89   :  { %2384 = vmatprep.subr.bf16.mxu0 %v2603_v35 }
  0x8a   :  { %2415 = vmatpush3.bf16.msra.mxu1 %v2622_v49 }
  0x8b   :  { %1755 = vmatmul.mubr.bf16.gmra.mrb[28].mxu0 %v2602_v34 }
  0x8c   :  { %2385 = vmatpush3.bf16.msra.mxu0 %v2606_v37  ;;  %1804 = vmatmul.mubr.bf16.gmra.mrb[28].mxu1 %v2607_v38 }
  0x8d   :  { %2386 = vmatprep.subr.bf16.mxu0 %v2608_v39  ;;  %1844 = vmatprep.mubr.bf16.mxu0 %v2621_v47 }
  0x8e   :  { %2416 = vmatprep.mubr.msk.bf16.mxu1 %vm1413_vm0, %v2623_v50 }
  0x90   :  { %2387 = vmatpush3.bf16.msra.mxu0 %v2609_v40 }
  0x91   :  { %2388 = vmatprep.subr.bf16.mxu0 %v2610_v41 }
  0x94   :  { %2389 = vmatpush3.bf16.msra.mxu0 %v2611_v42  ;;  %2417 = vmatmul.mubr.msk.bf16.vlgmr.msra.gmra.mrb[32].mxu1 %vm1413_vm0, %v2624_v51 }
  0x95   :  { %2390 = vmatprep.subr.bf16.mxu0 %v2612_v43 }
  0x98   :  { %2391 = vmatpush3.bf16.msra.mxu0 %v2613_v45 }
  0x99   :  { %2392 = vmatprep.subr.bf16.mxu0 %v2614_v46 }
  0x9c   :  { %2393 = vmatpush3.bf16.msra.mxu0 %v2615_v48 }
  0x9d   :  { %2394 = vmatprep.subr.bf16.mxu0 %v2617_v52 }
  0xa0   :  { %2395 = vmatpush3.bf16.msra.mxu0 %v2618_v55 }
  0xa3   :  { %1845 = vmatmul.mubr.bf16.vlgmr.msra.gmra.mrb[32].mxu0 %v2619_v58 }
  0xa4   :  { %1852 = vmatprep.mubr.bf16.mxu0 %v2625_v59 }
  0xab   :  { %1853 = vmatmul.mubr.bf16.gmra.mrb[36].mxu0 %v2627_v61 }
  0xf6   :  { %v2172_v62 = vpop.f32.mrb[0].mxu0 }
  0xf7   :  { %v2200_v63 = vpop.f32.mrb[0].mxu1  ;;  %v2173_v0 = vpop.f32.mrb[1].mxu0 }
  0xf8   :  { %v2174_v1 = vadd.f32 %v2173_v0, %v2172_v62  ;;  %v2201_v2 = vpop.f32.mrb[1].mxu1  ;;  %v2175_v3 = vpop.f32.mrb[2].mxu0 }
  0xf9   :  { %v2202_v4 = vadd.f32 %v2201_v2, %v2200_v63  ;;  %v2203_v5 = vpop.f32.mrb[2].mxu1  ;;  %v2176_v6 = vpop.f32.mrb[3].mxu0 }
  0xfa   :  { %v2177_v7 = vadd.f32 %v2176_v6, %v2175_v3  ;;  %v2204_v8 = vpop.f32.mrb[3].mxu1 }
  0xfb   :  { %v1504_v9 = vadd.f32 %v2202_v4, %v2174_v1  ;;  %v2205_v10 = vadd.f32 %v2204_v8, %v2203_v5 }
  0xfd   :  { %v1507_v11 = vadd.f32 %v2205_v10, %v2177_v7 }
  0xfe   :  { %v2178_v12 = vpop.f32.mrb[4].mxu0 }
  0xff   :  { %v2206_v13 = vpop.f32.mrb[4].mxu1  ;;  %v2179_v14 = vpop.f32.mrb[5].mxu0 }
 0x100   :  { %v2207_v15 = vpop.f32.mrb[5].mxu1  ;;  %v2180_v16 = vadd.f32 %v2179_v14, %v2178_v12  ;;  %v2181_v18 = vpop.f32.mrb[6].mxu0 }
 0x101   :  { %v2208_v17 = vadd.f32 %v2207_v15, %v2206_v13  ;;  %v2209_v19 = vpop.f32.mrb[6].mxu1  ;;  %v2182_v20 = vpop.f32.mrb[7].mxu0 }
 0x102   :  { %v2210_v21 = vpop.f32.mrb[7].mxu1  ;;  %v2183_v23 = vadd.f32 %v2182_v20, %v2181_v18 }
 0x103   :  { %v1512_v22 = vadd.f32 %v2208_v17, %v2180_v16  ;;  %v2211_v24 = vadd.f32 %v2210_v21, %v2209_v19 }
 0x105   :  { %v1515_v25 = vadd.f32 %v2211_v24, %v2183_v23 }
 0x116   :  { %v2228_v26 = vpop.f32.mrb[8].mxu0 }
 0x117   :  { %v2229_v27 = vpop.f32.mrb[9].mxu0  ;;  %v2256_v30 = vpop.f32.mrb[8].mxu1 }
 0x118   :  { %v2230_v28 = vadd.f32 %v2229_v27, %v2228_v26  ;;  %v2231_v29 = vpop.f32.mrb[10].mxu0  ;;  %v2257_v34 = vpop.f32.mrb[9].mxu1 }
 0x119   :  { %v2232_v31 = vpop.f32.mrb[11].mxu0  ;;  %v2258_v35 = vadd.f32 %v2257_v34, %v2256_v30  ;;  %v2259_v36 = vpop.f32.mrb[10].mxu1 }
 0x11a   :  { %v1553_v32 = vadd.f32 %v2230_v28, %v1504_v9  ;;  %v2233_v33 = vadd.f32 %v2232_v31, %v2231_v29  ;;  %v2260_v38 = vpop.f32.mrb[11].mxu1 }
 0x11b   :  { %v2261_v40 = vadd.f32 %v2260_v38, %v2259_v36 }
 0x11c   :  { %v1556_v37 = vadd.f32 %v2233_v33, %v1507_v11  ;;  %v1602_v39 = vadd.f32 %v2258_v35, %v1553_v32 }
 0x11e   :  { %v1605_v41 = vadd.f32 %v2261_v40, %v1556_v37  ;;  %v2234_v42 = vpop.f32.mrb[12].mxu0 }
 0x11f   :  { %v2235_v43 = vpop.f32.mrb[13].mxu0  ;;  %v2262_v46 = vpop.f32.mrb[12].mxu1 }
 0x120   :  { %v2236_v44 = vadd.f32 %v2235_v43, %v2234_v42  ;;  %v2237_v45 = vpop.f32.mrb[14].mxu0  ;;  %v2263_v50 = vpop.f32.mrb[13].mxu1 }
 0x121   :  { %v2238_v47 = vpop.f32.mrb[15].mxu0  ;;  %v2264_v51 = vadd.f32 %v2263_v50, %v2262_v46  ;;  %v2265_v52 = vpop.f32.mrb[14].mxu1 }
 0x122   :  { %v1561_v48 = vadd.f32 %v2236_v44, %v1512_v22  ;;  %v2239_v49 = vadd.f32 %v2238_v47, %v2237_v45  ;;  %v2266_v54 = vpop.f32.mrb[15].mxu1 }
 0x123   :  { %v2267_v56 = vadd.f32 %v2266_v54, %v2265_v52 }
 0x124   :  { %v1564_v53 = vadd.f32 %v2239_v49, %v1515_v25  ;;  %v1610_v55 = vadd.f32 %v2264_v51, %v1561_v48 }
 0x126   :  { %v1613_v57 = vadd.f32 %v2267_v56, %v1564_v53 }
 0x136   :  { %v2284_v58 = vpop.f32.mrb[16].mxu0 }
 0x137   :  { %v2285_v59 = vpop.f32.mrb[17].mxu0  ;;  %v2312_v0 = vpop.f32.mrb[16].mxu1 }
 0x138   :  { %v2286_v60 = vadd.f32 %v2285_v59, %v2284_v58  ;;  %v2287_v61 = vpop.f32.mrb[18].mxu0  ;;  %v2313_v2 = vpop.f32.mrb[17].mxu1 }
 0x139   :  { %v2288_v62 = vpop.f32.mrb[19].mxu0  ;;  %v2314_v4 = vadd.f32 %v2313_v2, %v2312_v0  ;;  %v2315_v5 = vpop.f32.mrb[18].mxu1 }
 0x13a   :  { %v1651_v63 = vadd.f32 %v2286_v60, %v1602_v39  ;;  %v2289_v1 = vadd.f32 %v2288_v62, %v2287_v61  ;;  %v2316_v6 = vpop.f32.mrb[19].mxu1  ;;  %v1917_v60 = vpop.permute.xlu0 %1916 }
 0x13b   :  { %v2317_v8 = vadd.f32 %v2316_v6, %v2315_v5 }
 0x13c   :  { %v1654_v3 = vadd.f32 %v2289_v1, %v1605_v41  ;;  %v1700_v7 = vadd.f32 %v2314_v4, %v1651_v63  ;;  %v1927_v63 = vpop.permute.xlu1 %1926 }
 0x13e   :  { %v1703_v9 = vadd.f32 %v2317_v8, %v1654_v3  ;;  %v2290_v10 = vpop.f32.mrb[20].mxu0  ;;  %v1922_v2 = vpop.permute.xlu0 %1921 }
 0x13f   :  { %v2291_v11 = vpop.f32.mrb[21].mxu0  ;;  %v2318_v14 = vpop.f32.mrb[20].mxu1 }
 0x140   :  { %v2292_v12 = vadd.f32 %v2291_v11, %v2290_v10  ;;  %v2293_v13 = vpop.f32.mrb[22].mxu0  ;;  %v2319_v18 = vpop.f32.mrb[21].mxu1 }
 0x141   :  { %v2294_v15 = vpop.f32.mrb[23].mxu0  ;;  %v2320_v19 = vadd.f32 %v2319_v18, %v2318_v14  ;;  %v2321_v20 = vpop.f32.mrb[22].mxu1 }
 0x142   :  { %v1659_v16 = vadd.f32 %v2292_v12, %v1610_v55  ;;  %v2295_v17 = vadd.f32 %v2294_v15, %v2293_v13  ;;  %v2322_v22 = vpop.f32.mrb[23].mxu1  ;;  %v1932_v6 = vpop.permute.xlu1 %1931 }
 0x143   :  { %v2323_v24 = vadd.f32 %v2322_v22, %v2321_v20  ;;  %v1940_v11 = vpop.permute.xlu0 %1939 }
 0x144   :  { %v1662_v21 = vadd.f32 %v2295_v17, %v1613_v57  ;;  %v1708_v23 = vadd.f32 %v2320_v19, %v1659_v16 }
 0x146   :  { %v1711_v25 = vadd.f32 %v2323_v24, %v1662_v21  ;;  %v1944_v16 = vpop.permute.xlu1 %1943 }
 0x156   :  { %v2340_v26 = vpop.f32.mrb[24].mxu0 }
 0x157   :  { %v2341_v27 = vpop.f32.mrb[25].mxu0  ;;  %v2368_v30 = vpop.f32.mrb[24].mxu1 }
 0x158   :  { %v2342_v28 = vadd.f32 %v2341_v27, %v2340_v26  ;;  %v2343_v29 = vpop.f32.mrb[26].mxu0  ;;  %v2369_v34 = vpop.f32.mrb[25].mxu1 }
 0x159   :  { %v2344_v31 = vpop.f32.mrb[27].mxu0  ;;  %v2370_v35 = vadd.f32 %v2369_v34, %v2368_v30  ;;  %v2371_v36 = vpop.f32.mrb[26].mxu1 }
 0x15a   :  { %v1749_v32 = vadd.f32 %v2342_v28, %v1700_v7  ;;  %v2345_v33 = vadd.f32 %v2344_v31, %v2343_v29  ;;  %v2372_v38 = vpop.f32.mrb[27].mxu1  ;;  %v1948_v31 = vpop.permute.xlu1 %1947 }
 0x15b   :  { %v2373_v40 = vadd.f32 %v2372_v38, %v2371_v36  ;;  %v1952_v34 = vpop.permute.xlu0 %1951 }
 0x15c   :  { %v1752_v37 = vadd.f32 %v2345_v33, %v1703_v9  ;;  %v1798_v39 = vadd.f32 %v2370_v35, %v1749_v32 }
 0x15e   :  { %v2346_v41 = vpop.f32.mrb[28].mxu0  ;;  %v1801_v42 = vadd.f32 %v2373_v40, %v1752_v37 }
 0x15f   :  { %v2347_v43 = vpop.f32.mrb[29].mxu0  ;;  %v2374_v46 = vpop.f32.mrb[28].mxu1 }
 0x160   :  { %v2348_v44 = vadd.f32 %v2347_v43, %v2346_v41  ;;  %v2349_v45 = vpop.f32.mrb[30].mxu0  ;;  %v2375_v50 = vpop.f32.mrb[29].mxu1 }
 0x161   :  { %v2350_v47 = vpop.f32.mrb[31].mxu0  ;;  %v2376_v51 = vadd.f32 %v2375_v50, %v2374_v46  ;;  %v2377_v52 = vpop.f32.mrb[30].mxu1 }
 0x162   :  { %v1757_v48 = vadd.f32 %v2348_v44, %v1708_v23  ;;  %v2351_v49 = vadd.f32 %v2350_v47, %v2349_v45  ;;  %v2378_v54 = vpop.f32.mrb[31].mxu1 }
 0x163   :  { %v2379_v56 = vadd.f32 %v2378_v54, %v2377_v52 }
 0x164   :  { %v1760_v53 = vadd.f32 %v2351_v49, %v1711_v25  ;;  %v1806_v55 = vadd.f32 %v2376_v51, %v1757_v48 }
 0x166   :  { %v1809_v57 = vadd.f32 %v2379_v56, %v1760_v53 }
 0x167   :  { %v2418_v58 = vpop.f32.mrb[32].mxu1 }
 0x168   :  { %v1895_v59 = vpop.f32.mrb[33].mxu1 }
 0x169   :  { %v2419_v61 = vpop.f32.mrb[34].mxu1 }
 0x16a   :  { %v1898_v62 = vpop.f32.mrb[35].mxu1 }
 0x176   :  { %v2396_v0 = vpop.f32.mrb[32].mxu0 }
 0x177   :  { %v2397_v1 = vpop.f32.mrb[33].mxu0 }
 0x178   :  { %v2398_v3 = vadd.f32 %v2397_v1, %v2396_v0  ;;  %v2399_v4 = vpop.f32.mrb[34].mxu0 }
 0x179   :  { %v2400_v5 = vpop.f32.mrb[35].mxu0 }
 0x17a   :  { %v2401_v7 = vadd.f32 %v2400_v5, %v2399_v4  ;;  %v1847_v8 = vadd.f32 %v2398_v3, %v1798_v39 }
 0x17c   :  { %v1896_v9 = vadd.f32 %v1895_v59, %v1847_v8  ;;  %v1850_v10 = vadd.f32 %v2401_v7, %v1801_v42 }
 0x17e   :  { %v1899_v12 = vadd.f32 %v1898_v62, %v1850_v10  ;;  %v2402_v13 = vpop.f32.mrb[36].mxu0  ;;  %v1934_v14 = vmul.f32 %v1917_v60, %v1896_v9 }
 0x17f   :  { %v2403_v15 = vpop.f32.mrb[37].mxu0 }
 0x180   :  { %v1954_v17 = vadd.f32 %v1940_v11, %v1934_v14  ;;  %v2404_v18 = vadd.f32 %v2403_v15, %v2402_v13  ;;  %v2405_v19 = vpop.f32.mrb[38].mxu0  ;;  %v1935_v20 = vmul.f32 %v1922_v2, %v1899_v12 }
 0x181   :  { %v2406_v21 = vpop.f32.mrb[39].mxu0 }
 0x182   :  { %v1958_v22 = vmax.f32 %v1954_v17, 0.0  ;;  %v1855_v23 = vadd.f32 %v2404_v18, %v1806_v55  ;;  %v1955_v24 = vadd.f32 %v1944_v16, %v1935_v20  ;;  %v2407_v25 = vadd.f32 %v2406_v21, %v2405_v19 }
 0x184   :  { %1962 = vst.msk [vmem:[%s3235_s3] sm:$0xff] %vm1413_vm0, %v1958_v22  ;;  %v1959_v26 = vmax.f32 %v1955_v24, 0.0  ;;  %v1858_v27 = vadd.f32 %v2407_v25, %v1809_v57  ;;  %v1904_v28 = vadd.f32 %v2418_v58, %v1855_v23 }
 0x186   :  { %1963 = vst.msk [vmem:[%s3235_s3 + $0x8] sm:$0xff] %vm1413_vm0, %v1959_v26  ;;  %v1936_v29 = vmul.f32 %v1927_v63, %v1904_v28  ;;  %v1907_v30 = vadd.f32 %v2419_v61, %v1858_v27 }
 0x188   :  { %v1956_v32 = vadd.f32 %v1948_v31, %v1936_v29  ;;  %v1937_v33 = vmul.f32 %v1932_v6, %v1907_v30 }
 0x18a   :  { %v1960_v35 = vmax.f32 %v1956_v32, 0.0  ;;  %v1957_v36 = vadd.f32 %v1952_v34, %v1937_v33 }
 0x18c   :  { %1964 = vst.msk [vmem:[%s3235_s3 + $0x10] sm:$0xff] %vm1413_vm0, %v1960_v35  ;;  %v1961_v37 = vmax.f32 %v1957_v36, 0.0 }
 0x18e   :  { %1965 = vst.msk [vmem:[%s3235_s3 + $0x18] sm:$0xff] %vm1413_vm0, %v1961_v37 }

// kernel: netG_forward.21
= control target key start
LH: loop header
LB: loop body
LE: loop exit
PB: predicated region body
PF: predicated region fallthrough
CT: control target
= control target key end

     0   :  { %v1340_v1 = vmov 0   ;;  %v1341_v3 = vmov 1   ;;  %vm1343_vm0 = vmmov 0   ;;  %vm738_vm1 = vcmask 261120   ;;  %s1657_s1 = inlined_call_operand.vmem [shape: bf16[1312,128], index: 1, kind: input, shape index: {}]   ;;  %s1658_s0 = inlined_call_operand.vmem [shape: bf16[16,1312], index: 0, kind: input, shape index: {}]   ;;  %s1659_s2 = inlined_call_operand.vmem [shape: f32[16,2], index: 2, kind: input, shape index: {}]   ;;  %s1660_s3 = inlined_call_operand.vmem [shape: f32[16,128], index: 3, kind: output, shape index: {}]  }
   0x1   :  { %v1242_v0 = vld [vmem:[%s1657_s1 + $0x40] sm:$0xff]   ;;  %1239 = vset.pattern.permute.xlu0 %v1340_v1  ;;  %1240 = vset.pattern.permute.xlu1 %v1341_v3  ;;  %v1246_v6 = vld [vmem:[%s1657_s1 + $0x48] sm:$0xff]   ;;  %v1250_v10 = vld [vmem:[%s1657_s1 + $0x50] sm:$0xff]  }
   0x2   :  { %v1243_v2 = vld [vmem:[%s1657_s1 + $0xc0] sm:$0xff]   ;;  %1114 = vmatprep.subr.bf16.mxu0 %v1242_v0  ;;  %v1247_v7 = vld [vmem:[%s1657_s1 + $0xc8] sm:$0xff]   ;;  %v1251_v11 = vld [vmem:[%s1657_s1 + $0xd0] sm:$0xff]  }
   0x3   :  { %v1244_v4 = vld [vmem:[%s1657_s1] sm:$0xff]   ;;  %1136 = vmatprep.subr.bf16.mxu1 %v1243_v2  ;;  %v1248_v8 = vld [vmem:[%s1657_s1 + $0x8] sm:$0xff]   ;;  %v1252_v12 = vld [vmem:[%s1657_s1 + $0x10] sm:$0xff]  }
   0x4   :  { %v1245_v5 = vld [vmem:[%s1657_s1 + $0x80] sm:$0xff]   ;;  %1115 = vmatpush3.bf16.msra.mxu0 %v1244_v4  ;;  %v1249_v9 = vld [vmem:[%s1657_s1 + $0x88] sm:$0xff]   ;;  %v1253_v13 = vld [vmem:[%s1657_s1 + $0x90] sm:$0xff]  }
   0x5   :  { %1137 = vmatpush3.bf16.msra.mxu1 %v1245_v5  ;;  %1116 = vmatprep.subr.bf16.mxu0 %v1246_v6  ;;  %v1254_v14 = vld [vmem:[%s1657_s1 + $0x58] sm:$0xff]   ;;  %v1258_v18 = vld [vmem:[%s1657_s1 + $0x60] sm:$0xff]   ;;  %v1262_v22 = vld [vmem:[%s1657_s1 + $0x68] sm:$0xff]  }
   0x6   :  { %1138 = vmatprep.subr.bf16.mxu1 %v1247_v7  ;;  %v1255_v15 = vld [vmem:[%s1657_s1 + $0xd8] sm:$0xff]   ;;  %v1259_v19 = vld [vmem:[%s1657_s1 + $0xe0] sm:$0xff]   ;;  %v1263_v23 = vld [vmem:[%s1657_s1 + $0xe8] sm:$0xff]  }
   0x7   :  { %v1256_v16 = vld [vmem:[%s1657_s1 + $0x18] sm:$0xff]   ;;  %v1260_v20 = vld [vmem:[%s1657_s1 + $0x20] sm:$0xff]   ;;  %v1264_v24 = vld [vmem:[%s1657_s1 + $0x28] sm:$0xff]  }
   0x8   :  { %1117 = vmatpush3.bf16.msra.mxu0 %v1248_v8  ;;  %v1257_v17 = vld [vmem:[%s1657_s1 + $0x98] sm:$0xff]   ;;  %v1261_v21 = vld [vmem:[%s1657_s1 + $0xa0] sm:$0xff]   ;;  %v1265_v25 = vld [vmem:[%s1657_s1 + $0xa8] sm:$0xff]  }
   0x9   :  { %1139 = vmatpush3.bf16.msra.mxu1 %v1249_v9  ;;  %1118 = vmatprep.subr.bf16.mxu0 %v1250_v10  ;;  %v1266_v26 = vld [vmem:[%s1657_s1 + $0x70] sm:$0xff]   ;;  %v1270_v30 = vld [vmem:[%s1657_s1 + $0x78] sm:$0xff]   ;;  %v1274_v34 = vld [vmem:[%s1658_s0] ss:$44 sps:$4 sm:$0xff]  }
   0xa   :  { %1140 = vmatprep.subr.bf16.mxu1 %v1251_v11  ;;  %v1267_v27 = vld [vmem:[%s1657_s1 + $0xf0] sm:$0xff]   ;;  %v1271_v31 = vld [vmem:[%s1657_s1 + $0xf8] sm:$0xff]   ;;  %v1280_v38 = vld [vmem:[%s1657_s1 + $0x140] sm:$0xff]  }
   0xb   :  { %v1268_v28 = vld [vmem:[%s1657_s1 + $0x30] sm:$0xff]   ;;  %v1272_v32 = vld [vmem:[%s1657_s1 + $0x38] sm:$0xff]   ;;  %v1281_v39 = vld [vmem:[%s1657_s1 + $0x100] sm:$0xff]  }
   0xc   :  { %1119 = vmatpush3.bf16.msra.mxu0 %v1252_v12  ;;  %v1269_v29 = vld [vmem:[%s1657_s1 + $0xb0] sm:$0xff]   ;;  %v1273_v33 = vld [vmem:[%s1657_s1 + $0xb8] sm:$0xff]   ;;  %v1282_v40 = vld [vmem:[%s1657_s1 + $0x1c0] sm:$0xff]   ;;  %v1342_v12 = vmov 0.0  }
   0xd   :  { %1141 = vmatpush3.bf16.msra.mxu1 %v1253_v13  ;;  %1120 = vmatprep.subr.bf16.mxu0 %v1254_v14  ;;  %v1276_v35 = vld [vmem:[%s1658_s0 + $0x4] ss:$44 sps:$4 sm:$0xff]   ;;  %v1277_v36 = vld [vmem:[%s1658_s0 + $0x8] ss:$44 sps:$4 sm:$0xff]   ;;  %v1279_v37 = vld [vmem:[%s1658_s0 + $0xc] ss:$44 sps:$4 sm:$0xff]  }
   0xe   :  { %1142 = vmatprep.subr.bf16.mxu1 %v1255_v15  ;;  %774 = vmatprep.mubr.bf16.mxu0 %v1276_v35  ;;  %v1283_v41 = vld [vmem:[%s1657_s1 + $0x180] sm:$0xff]   ;;  %v1284_v42 = vld [vmem:[%s1657_s1 + $0x148] sm:$0xff]   ;;  %v1288_v46 = vld [vmem:[%s1657_s1 + $0x150] sm:$0xff]  }
   0xf   :  { %815 = vmatprep.mubr.bf16.mxu1 %v1279_v37  ;;  %v1285_v43 = vld [vmem:[%s1657_s1 + $0x108] sm:$0xff]   ;;  %v1289_v47 = vld [vmem:[%s1657_s1 + $0x110] sm:$0xff]   ;;  %v1292_v50 = vld [vmem:[%s1657_s1 + $0x158] sm:$0xff]  }
  0x10   :  { %1121 = vmatpush3.bf16.msra.mxu0 %v1256_v16  ;;  %v1286_v44 = vld [vmem:[%s1657_s1 + $0x1c8] sm:$0xff]   ;;  %v1290_v48 = vld [vmem:[%s1657_s1 + $0x1d0] sm:$0xff]   ;;  %v1293_v51 = vld [vmem:[%s1657_s1 + $0x118] sm:$0xff]  }
  0x11   :  { %1143 = vmatpush3.bf16.msra.mxu1 %v1257_v17  ;;  %1122 = vmatprep.subr.bf16.mxu0 %v1258_v18  ;;  %v1287_v45 = vld [vmem:[%s1657_s1 + $0x188] sm:$0xff]   ;;  %v1291_v49 = vld [vmem:[%s1657_s1 + $0x190] sm:$0xff]   ;;  %v1294_v52 = vld [vmem:[%s1657_s1 + $0x1d8] sm:$0xff]  }
  0x12   :  { %1144 = vmatprep.subr.bf16.mxu1 %v1259_v19  ;;  %v1295_v53 = vld [vmem:[%s1657_s1 + $0x198] sm:$0xff]   ;;  %v1296_v54 = vld [vmem:[%s1657_s1 + $0x160] sm:$0xff]   ;;  %v1300_v58 = vld [vmem:[%s1657_s1 + $0x168] sm:$0xff]  }
  0x13   :  { %v1297_v55 = vld [vmem:[%s1657_s1 + $0x120] sm:$0xff]   ;;  %v1301_v59 = vld [vmem:[%s1657_s1 + $0x128] sm:$0xff]   ;;  %v1304_v62 = vld [vmem:[%s1657_s1 + $0x170] sm:$0xff]  }
  0x14   :  { %1123 = vmatpush3.bf16.msra.mxu0 %v1260_v20  ;;  %v1298_v56 = vld [vmem:[%s1657_s1 + $0x1e0] sm:$0xff]   ;;  %v1302_v60 = vld [vmem:[%s1657_s1 + $0x1e8] sm:$0xff]   ;;  %v1305_v63 = vld [vmem:[%s1657_s1 + $0x130] sm:$0xff]  }
  0x15   :  { %1145 = vmatpush3.bf16.msra.mxu1 %v1261_v21  ;;  %1124 = vmatprep.subr.bf16.mxu0 %v1262_v22  ;;  %v1299_v57 = vld [vmem:[%s1657_s1 + $0x1a0] sm:$0xff]   ;;  %v1303_v61 = vld [vmem:[%s1657_s1 + $0x1a8] sm:$0xff]   ;;  %v1306_v0 = vld [vmem:[%s1657_s1 + $0x1f0] sm:$0xff]  }
  0x16   :  { %1146 = vmatprep.subr.bf16.mxu1 %v1263_v23  ;;  %v1307_v1 = vld [vmem:[%s1657_s1 + $0x1b0] sm:$0xff]   ;;  %v1308_v2 = vld [vmem:[%s1657_s1 + $0x178] sm:$0xff]   ;;  %v1315_v9 = vld [vmem:[%s1657_s1 + $0x240] sm:$0xff]  }
  0x17   :  { %v1309_v4 = vld [vmem:[%s1657_s1 + $0x138] sm:$0xff]   ;;  %v1313_v7 = vld [vmem:[%s1658_s0 + $0x14] ss:$44 sps:$4 sm:$0xff]   ;;  %v1320_v14 = vld [vmem:[%s1657_s1 + $0x248] sm:$0xff]  }
  0x18   :  { %1125 = vmatpush3.bf16.msra.mxu0 %v1264_v24  ;;  %v1310_v5 = vld [vmem:[%s1657_s1 + $0x1f8] sm:$0xff]   ;;  %v1319_v13 = vld [vmem:[%s1657_s1 + $0x200] sm:$0xff]   ;;  %v1321_v15 = vld [vmem:[%s1657_s1 + $0x208] sm:$0xff]  }
  0x19   :  { %1147 = vmatpush3.bf16.msra.mxu1 %v1265_v25  ;;  %1126 = vmatprep.subr.bf16.mxu0 %v1266_v26  ;;  %v1311_v6 = vld [vmem:[%s1658_s0 + $0x10] ss:$44 sps:$4 sm:$0xff]   ;;  %v1316_v10 = vld [vmem:[%s1658_s0 + $0x18] ss:$44 sps:$4 sm:$0xff]   ;;  %v1328_v23 = vld [vmem:[%s1657_s1 + $0x268] sm:$0xff]  }
  0x1a   :  { %1148 = vmatprep.subr.bf16.mxu1 %v1267_v27  ;;  %v1314_v8 = vld [vmem:[%s1657_s1 + $0x1b8] sm:$0xff]   ;;  %v1322_v16 = vld [vmem:[%s1657_s1 + $0x250] sm:$0xff]   ;;  %v1326_v20 = vld [vmem:[%s1657_s1 + $0x260] sm:$0xff]  }
  0x1b   :  { %v1318_v11 = vld [vmem:[%s1658_s0 + $0x1c] ss:$44 sps:$4 sm:$0xff]   ;;  %v1323_v17 = vld [vmem:[%s1657_s1 + $0x210] sm:$0xff]   ;;  %v1332_v21 = vld [vmem:[%s1657_s1 + $0x280] sm:$0xff]  }
  0x1c   :  { %1127 = vmatpush3.bf16.msra.mxu0 %v1268_v28  ;;  %v1324_v18 = vld [vmem:[%s1657_s1 + $0x258] sm:$0xff]   ;;  %v1327_v22 = vld [vmem:[%s1657_s1 + $0x220] sm:$0xff]   ;;  %v1329_v24 = vld [vmem:[%s1657_s1 + $0x228] sm:$0xff]  }
  0x1d   :  { %1149 = vmatpush3.bf16.msra.mxu1 %v1269_v29  ;;  %1128 = vmatprep.subr.bf16.mxu0 %v1270_v30  ;;  %v1325_v19 = vld [vmem:[%s1657_s1 + $0x218] sm:$0xff]   ;;  %v1337_v25 = vld [vmem:[%s1658_s0 + $0x24] ss:$44 sps:$4 sm:$0xff]   ;;  %v1338_v26 = vld [vmem:[%s1657_s1 + $0x288] sm:$0xff]  }
  0x1e   :  { %1150 = vmatprep.subr.bf16.mxu1 %v1271_v31  ;;  %v1339_v27 = vld [vmem:[%s1658_s0 + $0x28] ss:$44 sps:$4 sm:$0xff]   ;;  %v988_v28 = vld [vmem:[%s1659_s2] sm:$0xff] }
  0x1f   :  { %v1330_v29 = vld [vmem:[%s1657_s1 + $0x270] sm:$0xff]   ;;  %992 = vperm.xlu0 %1239, %v988_v28   ;;  %1003 = vperm.xlu1 %1240, %v988_v28   ;;  %v989_v30 = vld [vmem:[%s1659_s2 + $0x8] sm:$0xff] }
  0x20   :  { %1129 = vmatpush3.bf16.msra.mxu0 %v1272_v32  ;;  %v1331_v31 = vld [vmem:[%s1657_s1 + $0x230] sm:$0xff]   ;;  %v1333_v32 = vld [vmem:[%s1657_s1 + $0x278] sm:$0xff]  }
  0x21   :  { %1151 = vmatpush3.bf16.msra.mxu1 %v1273_v33  ;;  %1158 = vmatprep.subr.bf16.mxu0 %v1280_v38  ;;  %v1334_v33 = vld [vmem:[%s1657_s1 + $0x238] sm:$0xff]  }
  0x22   :  { %1180 = vmatprep.subr.bf16.mxu1 %v1282_v40 }
  0x23   :  { %775 = vmatmul.mubr.bf16.vlgmr.msra.gmra.mrb[0].mxu0 %v1274_v34  ;;  %997 = vperm.xlu0 %1239, %v989_v30   ;;  %v1335_v34 = vld [vmem:[%s1658_s0 + $0x20] ss:$44 sps:$4 sm:$0xff]  }
  0x24   :  { %816 = vmatmul.mubr.bf16.vlgmr.msra.gmra.mrb[0].mxu1 %v1277_v36  ;;  %1159 = vmatpush3.bf16.msra.mxu0 %v1281_v39 }
  0x25   :  { %1181 = vmatpush3.bf16.msra.mxu1 %v1283_v41  ;;  %1160 = vmatprep.subr.bf16.mxu0 %v1284_v42 }
  0x26   :  { %1182 = vmatprep.subr.bf16.mxu1 %v1286_v44  ;;  %856 = vmatprep.mubr.bf16.mxu0 %v1313_v7 }
  0x27   :  { %897 = vmatprep.mubr.bf16.mxu1 %v1318_v11  ;;  %1007 = vperm.xlu1 %1240, %v989_v30  }
  0x28   :  { %1161 = vmatpush3.bf16.msra.mxu0 %v1285_v43  ;;  %1241 = vset.pattern.permute.xlu0 %v1341_v3 }
  0x29   :  { %1183 = vmatpush3.bf16.msra.mxu1 %v1287_v45  ;;  %1162 = vmatprep.subr.bf16.mxu0 %v1288_v46 }
  0x2a   :  { %1184 = vmatprep.subr.bf16.mxu1 %v1290_v48 }
  0x2c   :  { %1163 = vmatpush3.bf16.msra.mxu0 %v1289_v47 }
  0x2d   :  { %1185 = vmatpush3.bf16.msra.mxu1 %v1291_v49  ;;  %1164 = vmatprep.subr.bf16.mxu0 %v1292_v50 }
  0x2e   :  { %1186 = vmatprep.subr.bf16.mxu1 %v1294_v52 }
  0x30   :  { %1165 = vmatpush3.bf16.msra.mxu0 %v1293_v51 }
  0x31   :  { %1187 = vmatpush3.bf16.msra.mxu1 %v1295_v53  ;;  %1166 = vmatprep.subr.bf16.mxu0 %v1296_v54 }
  0x32   :  { %1188 = vmatprep.subr.bf16.mxu1 %v1298_v56 }
  0x34   :  { %1167 = vmatpush3.bf16.msra.mxu0 %v1297_v55 }
  0x35   :  { %1189 = vmatpush3.bf16.msra.mxu1 %v1299_v57  ;;  %1168 = vmatprep.subr.bf16.mxu0 %v1300_v58 }
  0x36   :  { %1190 = vmatprep.subr.bf16.mxu1 %v1302_v60 }
  0x38   :  { %1169 = vmatpush3.bf16.msra.mxu0 %v1301_v59 }
  0x39   :  { %1191 = vmatpush3.bf16.msra.mxu1 %v1303_v61  ;;  %1170 = vmatprep.subr.bf16.mxu0 %v1304_v62 }
  0x3a   :  { %1192 = vmatprep.subr.bf16.mxu1 %v1306_v0 }
  0x3c   :  { %1171 = vmatpush3.bf16.msra.mxu0 %v1305_v63 }
  0x3d   :  { %1193 = vmatpush3.bf16.msra.mxu1 %v1307_v1  ;;  %1172 = vmatprep.subr.bf16.mxu0 %v1308_v2 }
  0x3e   :  { %1194 = vmatprep.subr.bf16.mxu1 %v1310_v5 }
  0x40   :  { %1173 = vmatpush3.bf16.msra.mxu0 %v1309_v4 }
  0x41   :  { %1195 = vmatpush3.bf16.msra.mxu1 %v1314_v8  ;;  %1202 = vmatprep.subr.bf16.mxu0 %v1315_v9 }
  0x42   :  { %1227 = vmatprep.subr.bf16.mxu1 %v1342_v12 }
  0x43   :  { %857 = vmatmul.mubr.bf16.vlgmr.msra.gmra.mrb[4].mxu0 %v1311_v6 }
  0x44   :  { %1203 = vmatpush3.bf16.msra.mxu0 %v1319_v13  ;;  %898 = vmatmul.mubr.bf16.vlgmr.msra.gmra.mrb[4].mxu1 %v1316_v10 }
  0x45   :  { %1204 = vmatprep.subr.bf16.mxu0 %v1320_v14  ;;  %1231 = vmatprep.mubr.msk.bf16.mxu1 %vm1343_vm0, %v1342_v12 }
  0x46   :  { %1228 = vmatpush3.bf16.msra.mxu1 %v1332_v21  ;;  %938 = vmatprep.mubr.bf16.mxu0 %v1337_v25 }
  0x47   :  { %1229 = vmatprep.subr.bf16.mxu1 %v1342_v12 }
  0x48   :  { %1205 = vmatpush3.bf16.msra.mxu0 %v1321_v15 }
  0x49   :  { %1206 = vmatprep.subr.bf16.mxu0 %v1322_v16 }
  0x4a   :  { %1230 = vmatpush3.bf16.msra.mxu1 %v1338_v26 }
  0x4c   :  { %1207 = vmatpush3.bf16.msra.mxu0 %v1323_v17 }
  0x4d   :  { %1208 = vmatprep.subr.bf16.mxu0 %v1324_v18  ;;  %1232 = vmatmul.mubr.msk.bf16.vlgmr.msra.gmra.mrb[8].mxu1 %vm738_vm1, %v1339_v27 }
  0x50   :  { %1209 = vmatpush3.bf16.msra.mxu0 %v1325_v19 }
  0x51   :  { %1210 = vmatprep.subr.bf16.mxu0 %v1326_v20 }
  0x54   :  { %1211 = vmatpush3.bf16.msra.mxu0 %v1327_v22 }
  0x55   :  { %1212 = vmatprep.subr.bf16.mxu0 %v1328_v23 }
  0x58   :  { %1213 = vmatpush3.bf16.msra.mxu0 %v1329_v24 }
  0x59   :  { %1214 = vmatprep.subr.bf16.mxu0 %v1330_v29 }
  0x5c   :  { %1215 = vmatpush3.bf16.msra.mxu0 %v1331_v31 }
  0x5d   :  { %1216 = vmatprep.subr.bf16.mxu0 %v1333_v32 }
  0x60   :  { %1217 = vmatpush3.bf16.msra.mxu0 %v1334_v33 }
  0x63   :  { %939 = vmatmul.mubr.bf16.vlgmr.msra.gmra.mrb[8].mxu0 %v1335_v34 }
  0x9e   :  { %v993_v9 = vpop.permute.xlu0 %992  ;;  %v1004_v13 = vpop.permute.xlu1 %1003 }
  0xa2   :  { %v998_v18 = vpop.permute.xlu0 %997 }
  0xa6   :  { %v1008_v21 = vpop.permute.xlu1 %1007 }
  0xf6   :  { %v1130_v35 = vpop.f32.mrb[0].mxu0 }
  0xf7   :  { %v1152_v36 = vpop.f32.mrb[0].mxu1  ;;  %v1131_v37 = vpop.f32.mrb[1].mxu0 }
  0xf8   :  { %v1132_v38 = vadd.f32 %v1131_v37, %v1130_v35  ;;  %v1153_v39 = vpop.f32.mrb[1].mxu1  ;;  %v1133_v40 = vpop.f32.mrb[2].mxu0 }
  0xf9   :  { %v1154_v41 = vadd.f32 %v1153_v39, %v1152_v36  ;;  %v1155_v42 = vpop.f32.mrb[2].mxu1  ;;  %v1134_v43 = vpop.f32.mrb[3].mxu0 }
  0xfa   :  { %v1135_v44 = vadd.f32 %v1134_v43, %v1133_v40  ;;  %v1156_v45 = vpop.f32.mrb[3].mxu1 }
  0xfb   :  { %v818_v46 = vadd.f32 %v1154_v41, %v1132_v38  ;;  %v1157_v47 = vadd.f32 %v1156_v45, %v1155_v42 }
  0xfd   :  { %v821_v3 = vadd.f32 %v1157_v47, %v1135_v44 }
 0x116   :  { %v1174_v48 = vpop.f32.mrb[4].mxu0 }
 0x117   :  { %v1175_v49 = vpop.f32.mrb[5].mxu0  ;;  %v1196_v54 = vpop.f32.mrb[4].mxu1 }
 0x118   :  { %v1176_v50 = vadd.f32 %v1175_v49, %v1174_v48  ;;  %v1177_v51 = vpop.f32.mrb[6].mxu0  ;;  %v1197_v56 = vpop.f32.mrb[5].mxu1 }
 0x119   :  { %v1178_v52 = vpop.f32.mrb[7].mxu0  ;;  %v1198_v58 = vadd.f32 %v1197_v56, %v1196_v54  ;;  %v1199_v59 = vpop.f32.mrb[6].mxu1 }
 0x11a   :  { %v859_v53 = vadd.f32 %v1176_v50, %v818_v46  ;;  %v1179_v55 = vadd.f32 %v1178_v52, %v1177_v51  ;;  %v1200_v60 = vpop.f32.mrb[7].mxu1 }
 0x11b   :  { %v1201_v62 = vadd.f32 %v1200_v60, %v1199_v59 }
 0x11c   :  { %v862_v57 = vadd.f32 %v1179_v55, %v821_v3  ;;  %v900_v61 = vadd.f32 %v1198_v58, %v859_v53 }
 0x11e   :  { %v903_v63 = vadd.f32 %v1201_v62, %v862_v57 }
 0x120   :  { %v981_v0 = vpop.f32.mrb[8].mxu1 }
 0x121   :  { %v1233_v1 = vpop.f32.mrb[9].mxu1 }
 0x122   :  { %v984_v2 = vpop.f32.mrb[10].mxu1 }
 0x123   :  { %v1234_v4 = vpop.f32.mrb[11].mxu1 }
 0x136   :  { %v1218_v5 = vpop.f32.mrb[8].mxu0 }
 0x137   :  { %v1219_v6 = vpop.f32.mrb[9].mxu0 }
 0x138   :  { %v1220_v7 = vadd.f32 %v1219_v6, %v1218_v5  ;;  %v1221_v8 = vpop.f32.mrb[10].mxu0 }
 0x139   :  { %v1222_v10 = vpop.f32.mrb[11].mxu0 }
 0x13a   :  { %v941_v11 = vadd.f32 %v1220_v7, %v900_v61  ;;  %v1223_v12 = vadd.f32 %v1222_v10, %v1221_v8 }
 0x13c   :  { %v982_v14 = vadd.f32 %v981_v0, %v941_v11  ;;  %v944_v15 = vadd.f32 %v1223_v12, %v903_v63 }
 0x13e   :  { %v1000_v16 = vmul.f32 %v993_v9, %v982_v14  ;;  %v985_v17 = vadd.f32 %v984_v2, %v944_v15 }
 0x140   :  { %v1010_v19 = vadd.f32 %v1004_v13, %v1000_v16  ;;  %v1001_v20 = vmul.f32 %v998_v18, %v985_v17 }
 0x142   :  { %v1012_v22 = vmax.f32 %v1010_v19, 0.0  ;;  %v1011_v23 = vadd.f32 %v1008_v21, %v1001_v20 }
 0x144   :  { %1014 = vst [vmem:[%s1660_s3] sm:$0xff] %v1012_v22  ;;  %v1013_v24 = vmax.f32 %v1011_v23, 0.0 }
 0x146   :  { %1015 = vst [vmem:[%s1660_s3 + $0x8] sm:$0xff] %v1013_v24 }

// kernel: netG_forward.22
= control target key start
LH: loop header
LB: loop body
LE: loop exit
PB: predicated region body
PF: predicated region fallthrough
CT: control target
= control target key end

     0   :  { %s2788_s12 = smov 0   ;;  %s2790_s13 = smov 0   ;;  %s3453_s0 = inlined_call_operand.vmem [shape: bf16[8,800], index: 0, kind: input, shape index: {}]   ;;  %s3454_s1 = inlined_call_operand.vmem [shape: bf16[800,768], index: 1, kind: input, shape index: {}]   ;;  %s3455_s2 = inlined_call_operand.vmem [shape: f32[8,2], index: 2, kind: input, shape index: {}]   ;;  %s3456_s3 = inlined_call_operand.vmem [shape: f32[8,768], index: 3, kind: output, shape index: {}]  }
   0x1   :  { %s2792_s14 = smov 0  }
   0x2 LB: > { %s2045_s15 = sadd.s32 4294967295, %s2762_s14   ;;  %s2805_s16 = sadd.s32 1, %s2762_s14   ;;  %s2762_s14 = sphi %s2792_s14, %s3459_s14   ;;  %s2758_s13 = sphi %s2790_s13, %s3458_s13   ;;  %s2754_s12 = sphi %s2788_s12, %s3457_s12  }
   0x3   : > { %s38_s17 = ssub.s32 %s2762_s14, %s2805_s16  ;;  %s41_s18 = sadd.s32 1, %s2758_s13 }
   0x4   : > { %p39_p0 = scmp.eq.s32.totalorder %s38_s17, 0  ;;  %p48_p1 = scmp.ne.s32.totalorder %s2758_s13, %s2754_s12 }
   0x5   : > { %p49_p2 = scmp.eq.s32.totalorder %s2762_s14, 0  ;;  %p2048_p4 = scmp.ge.s32.totalorder %s2762_s14, 2 }
   0x6   : > { %s2814_s19 = scalar_select %p39_p0, %s2758_s13, %s41_s18  }
   0x7   : > { %p50_p3 = por %p49_p2, %p48_p1  ;;  %127 = sbr.rel (%p2048_p4) target bundleno = 135 (0x87), region = 24 }
   0xe   : > { %130 = sbr.rel (!%p50_p3) target bundleno = 135 (0x87), region = 28  ;;  %s132_s20 = sand.u32 (%p50_p3), 1, %s2758_s13  }
   0xf   : > { %s2413_s21 = smul.u32 (%p50_p3), 12, %s2762_s14 }
  0x10   : > { %s2501_s22 = smul.u32 (%p50_p3), 1200, %s132_s20 }
  0x11   : > { %s2822_s25 = scalar_lea.vmem (%p50_p3), %s3454_s1, %s2413_s21 }
  0x12   : > { %v152_v0 = vld [vmem:[%s2822_s25] sm:$0xff] (%p50_p3)  ;;  %v154_v1 = vld [vmem:[%s2822_s25 + $0x18] sm:$0xff] (%p50_p3)  ;;  %v156_v2 = vld [vmem:[%s2822_s25 + $0x30] sm:$0xff] (%p50_p3)  ;;  %s2827_s26 = scalar_lea.vmem (%p50_p3), [#allocation2], %s2501_s22 }
  0x13   : > { %153 = vst [vmem:[%s2827_s26] sm:$0xff] (%p50_p3), %v152_v0  ;;  %155 = vst [vmem:[%s2827_s26 + $0xc] sm:$0xff] (%p50_p3), %v154_v1  ;;  %v158_v3 = vld [vmem:[%s2822_s25 + $0x48] sm:$0xff] (%p50_p3)  ;;  %v160_v4 = vld [vmem:[%s2822_s25 + $0x60] sm:$0xff] (%p50_p3) }
  0x14   : > { %157 = vst [vmem:[%s2827_s26 + $0x18] sm:$0xff] (%p50_p3), %v156_v2  ;;  %v162_v5 = vld [vmem:[%s2822_s25 + $0x78] sm:$0xff] (%p50_p3)  ;;  %159 = vst [vmem:[%s2827_s26 + $0x24] sm:$0xff] (%p50_p3), %v158_v3  ;;  %v164_v6 = vld [vmem:[%s2822_s25 + $0x90] sm:$0xff] (%p50_p3) }
  0x15   : > { %161 = vst [vmem:[%s2827_s26 + $0x30] sm:$0xff] %v160_v4  ;;  %163 = vst [vmem:[%s2827_s26 + $0x3c] sm:$0xff] %v162_v5  ;;  %v166_v7 = vld [vmem:[%s2822_s25 + $0xa8] sm:$0xff]  ;;  %v168_v8 = vld [vmem:[%s2822_s25 + $0xc0] sm:$0xff] }
  0x16   : > { %165 = vst [vmem:[%s2827_s26 + $0x48] sm:$0xff] %v164_v6  ;;  %167 = vst [vmem:[%s2827_s26 + $0x54] sm:$0xff] %v166_v7  ;;  %v170_v9 = vld [vmem:[%s2822_s25 + $0xd8] sm:$0xff]  ;;  %v172_v10 = vld [vmem:[%s2822_s25 + $0xf0] sm:$0xff] }
  0x17   : > { %169 = vst [vmem:[%s2827_s26 + $0x60] sm:$0xff] %v168_v8  ;;  %v174_v11 = vld [vmem:[%s2822_s25 + $0x108] sm:$0xff]  ;;  %171 = vst [vmem:[%s2827_s26 + $0x6c] sm:$0xff] %v170_v9  ;;  %v176_v12 = vld [vmem:[%s2822_s25 + $0x120] sm:$0xff] }
  0x18   : > { %173 = vst [vmem:[%s2827_s26 + $0x78] sm:$0xff] %v172_v10  ;;  %175 = vst [vmem:[%s2827_s26 + $0x84] sm:$0xff] %v174_v11  ;;  %v178_v13 = vld [vmem:[%s2822_s25 + $0x138] sm:$0xff]  ;;  %v180_v14 = vld [vmem:[%s2822_s25 + $0x150] sm:$0xff] }
  0x19   : > { %177 = vst [vmem:[%s2827_s26 + $0x90] sm:$0xff] %v176_v12  ;;  %179 = vst [vmem:[%s2827_s26 + $0x9c] sm:$0xff] %v178_v13  ;;  %v182_v15 = vld [vmem:[%s2822_s25 + $0x168] sm:$0xff]  ;;  %v184_v16 = vld [vmem:[%s2822_s25 + $0x180] sm:$0xff] }
  0x1a   : > { %181 = vst [vmem:[%s2827_s26 + $0xa8] sm:$0xff] %v180_v14  ;;  %v186_v17 = vld [vmem:[%s2822_s25 + $0x198] sm:$0xff]  ;;  %183 = vst [vmem:[%s2827_s26 + $0xb4] sm:$0xff] %v182_v15  ;;  %v188_v18 = vld [vmem:[%s2822_s25 + $0x1b0] sm:$0xff] }
  0x1b   : > { %185 = vst [vmem:[%s2827_s26 + $0xc0] sm:$0xff] %v184_v16  ;;  %187 = vst [vmem:[%s2827_s26 + $0xcc] sm:$0xff] %v186_v17  ;;  %v190_v19 = vld [vmem:[%s2822_s25 + $0x1c8] sm:$0xff]  ;;  %v192_v20 = vld [vmem:[%s2822_s25 + $0x1e0] sm:$0xff] }
  0x1c   : > { %189 = vst [vmem:[%s2827_s26 + $0xd8] sm:$0xff] %v188_v18  ;;  %191 = vst [vmem:[%s2827_s26 + $0xe4] sm:$0xff] %v190_v19  ;;  %v194_v21 = vld [vmem:[%s2822_s25 + $0x1f8] sm:$0xff]  ;;  %v196_v22 = vld [vmem:[%s2822_s25 + $0x210] sm:$0xff] }
  0x1d   : > { %193 = vst [vmem:[%s2827_s26 + $0xf0] sm:$0xff] %v192_v20  ;;  %v198_v23 = vld [vmem:[%s2822_s25 + $0x228] sm:$0xff]  ;;  %195 = vst [vmem:[%s2827_s26 + $0xfc] sm:$0xff] %v194_v21  ;;  %v200_v24 = vld [vmem:[%s2822_s25 + $0x240] sm:$0xff] }
  0x1e   : > { %197 = vst [vmem:[%s2827_s26 + $0x108] sm:$0xff] %v196_v22  ;;  %199 = vst [vmem:[%s2827_s26 + $0x114] sm:$0xff] %v198_v23  ;;  %v202_v25 = vld [vmem:[%s2822_s25 + $0x258] sm:$0xff]  ;;  %v204_v26 = vld [vmem:[%s2822_s25 + $0x270] sm:$0xff] }
  0x1f   : > { %201 = vst [vmem:[%s2827_s26 + $0x120] sm:$0xff] %v200_v24  ;;  %203 = vst [vmem:[%s2827_s26 + $0x12c] sm:$0xff] %v202_v25  ;;  %v206_v27 = vld [vmem:[%s2822_s25 + $0x288] sm:$0xff]  ;;  %v208_v28 = vld [vmem:[%s2822_s25 + $0x2a0] sm:$0xff] }
  0x20   : > { %205 = vst [vmem:[%s2827_s26 + $0x138] sm:$0xff] %v204_v26  ;;  %v210_v29 = vld [vmem:[%s2822_s25 + $0x2b8] sm:$0xff]  ;;  %207 = vst [vmem:[%s2827_s26 + $0x144] sm:$0xff] %v206_v27  ;;  %v212_v30 = vld [vmem:[%s2822_s25 + $0x2d0] sm:$0xff] }
  0x21   : > { %209 = vst [vmem:[%s2827_s26 + $0x150] sm:$0xff] %v208_v28  ;;  %211 = vst [vmem:[%s2827_s26 + $0x15c] sm:$0xff] %v210_v29  ;;  %v214_v31 = vld [vmem:[%s2822_s25 + $0x2e8] sm:$0xff]  ;;  %v216_v32 = vld [vmem:[%s2822_s25 + $0x300] sm:$0xff] }
  0x22   : > { %213 = vst [vmem:[%s2827_s26 + $0x168] sm:$0xff] %v212_v30  ;;  %215 = vst [vmem:[%s2827_s26 + $0x174] sm:$0xff] %v214_v31  ;;  %v218_v33 = vld [vmem:[%s2822_s25 + $0x318] sm:$0xff]  ;;  %v220_v34 = vld [vmem:[%s2822_s25 + $0x330] sm:$0xff] }
  0x23   : > { %217 = vst [vmem:[%s2827_s26 + $0x180] sm:$0xff] %v216_v32  ;;  %v222_v35 = vld [vmem:[%s2822_s25 + $0x348] sm:$0xff]  ;;  %219 = vst [vmem:[%s2827_s26 + $0x18c] sm:$0xff] %v218_v33  ;;  %v224_v36 = vld [vmem:[%s2822_s25 + $0x360] sm:$0xff] }
  0x24   : > { %221 = vst [vmem:[%s2827_s26 + $0x198] sm:$0xff] %v220_v34  ;;  %223 = vst [vmem:[%s2827_s26 + $0x1a4] sm:$0xff] %v222_v35  ;;  %v226_v37 = vld [vmem:[%s2822_s25 + $0x378] sm:$0xff]  ;;  %v228_v38 = vld [vmem:[%s2822_s25 + $0x390] sm:$0xff] }
  0x25   : > { %225 = vst [vmem:[%s2827_s26 + $0x1b0] sm:$0xff] %v224_v36  ;;  %227 = vst [vmem:[%s2827_s26 + $0x1bc] sm:$0xff] %v226_v37  ;;  %v230_v39 = vld [vmem:[%s2822_s25 + $0x3a8] sm:$0xff]  ;;  %v232_v40 = vld [vmem:[%s2822_s25 + $0x3c0] sm:$0xff] }
  0x26   : > { %229 = vst [vmem:[%s2827_s26 + $0x1c8] sm:$0xff] %v228_v38  ;;  %v234_v41 = vld [vmem:[%s2822_s25 + $0x3d8] sm:$0xff]  ;;  %231 = vst [vmem:[%s2827_s26 + $0x1d4] sm:$0xff] %v230_v39  ;;  %v236_v42 = vld [vmem:[%s2822_s25 + $0x3f0] sm:$0xff] }
  0x27   : > { %233 = vst [vmem:[%s2827_s26 + $0x1e0] sm:$0xff] %v232_v40  ;;  %235 = vst [vmem:[%s2827_s26 + $0x1ec] sm:$0xff] %v234_v41  ;;  %v238_v43 = vld [vmem:[%s2822_s25 + $0x408] sm:$0xff]  ;;  %v240_v44 = vld [vmem:[%s2822_s25 + $0x420] sm:$0xff] }
  0x28   : > { %237 = vst [vmem:[%s2827_s26 + $0x1f8] sm:$0xff] %v236_v42  ;;  %239 = vst [vmem:[%s2827_s26 + $0x204] sm:$0xff] %v238_v43  ;;  %v242_v45 = vld [vmem:[%s2822_s25 + $0x438] sm:$0xff]  ;;  %v244_v46 = vld [vmem:[%s2822_s25 + $0x450] sm:$0xff] }
  0x29   : > { %241 = vst [vmem:[%s2827_s26 + $0x210] sm:$0xff] %v240_v44  ;;  %v246_v47 = vld [vmem:[%s2822_s25 + $0x468] sm:$0xff]  ;;  %243 = vst [vmem:[%s2827_s26 + $0x21c] sm:$0xff] %v242_v45  ;;  %v248_v48 = vld [vmem:[%s2822_s25 + $0x480] sm:$0xff] }
  0x2a   : > { %245 = vst [vmem:[%s2827_s26 + $0x228] sm:$0xff] %v244_v46  ;;  %247 = vst [vmem:[%s2827_s26 + $0x234] sm:$0xff] %v246_v47  ;;  %v250_v49 = vld [vmem:[%s2822_s25 + $0x498] sm:$0xff]  ;;  %v252_v50 = vld [vmem:[%s2822_s25 + $0x4b0] sm:$0xff] }
  0x2b   : > { %249 = vst [vmem:[%s2827_s26 + $0x240] sm:$0xff] %v248_v48  ;;  %251 = vst [vmem:[%s2827_s26 + $0x24c] sm:$0xff] %v250_v49  ;;  %v254_v51 = vld [vmem:[%s2822_s25 + $0x4c8] sm:$0xff]  ;;  %v256_v52 = vld [vmem:[%s2822_s25 + $0x4e0] sm:$0xff] }
  0x2c   : > { %253 = vst [vmem:[%s2827_s26 + $0x258] sm:$0xff] %v252_v50  ;;  %v258_v53 = vld [vmem:[%s2822_s25 + $0x4f8] sm:$0xff]  ;;  %255 = vst [vmem:[%s2827_s26 + $0x264] sm:$0xff] %v254_v51  ;;  %v260_v54 = vld [vmem:[%s2822_s25 + $0x510] sm:$0xff] }
  0x2d   : > { %257 = vst [vmem:[%s2827_s26 + $0x270] sm:$0xff] %v256_v52  ;;  %259 = vst [vmem:[%s2827_s26 + $0x27c] sm:$0xff] %v258_v53  ;;  %v262_v55 = vld [vmem:[%s2822_s25 + $0x528] sm:$0xff]  ;;  %v264_v56 = vld [vmem:[%s2822_s25 + $0x540] sm:$0xff] }
  0x2e   : > { %261 = vst [vmem:[%s2827_s26 + $0x288] sm:$0xff] %v260_v54  ;;  %263 = vst [vmem:[%s2827_s26 + $0x294] sm:$0xff] %v262_v55  ;;  %v266_v57 = vld [vmem:[%s2822_s25 + $0x558] sm:$0xff]  ;;  %v268_v58 = vld [vmem:[%s2822_s25 + $0x570] sm:$0xff] }
  0x2f   : > { %265 = vst [vmem:[%s2827_s26 + $0x2a0] sm:$0xff] %v264_v56  ;;  %v270_v59 = vld [vmem:[%s2822_s25 + $0x588] sm:$0xff]  ;;  %267 = vst [vmem:[%s2827_s26 + $0x2ac] sm:$0xff] %v266_v57  ;;  %v272_v60 = vld [vmem:[%s2822_s25 + $0x5a0] sm:$0xff] }
  0x30   : > { %269 = vst [vmem:[%s2827_s26 + $0x2b8] sm:$0xff] %v268_v58  ;;  %271 = vst [vmem:[%s2827_s26 + $0x2c4] sm:$0xff] %v270_v59  ;;  %v274_v61 = vld [vmem:[%s2822_s25 + $0x5b8] sm:$0xff]  ;;  %v276_v62 = vld [vmem:[%s2822_s25 + $0x5d0] sm:$0xff] }
  0x31   : > { %273 = vst [vmem:[%s2827_s26 + $0x2d0] sm:$0xff] %v272_v60  ;;  %275 = vst [vmem:[%s2827_s26 + $0x2dc] sm:$0xff] %v274_v61  ;;  %v278_v63 = vld [vmem:[%s2822_s25 + $0x5e8] sm:$0xff]  ;;  %v280_v0 = vld [vmem:[%s2822_s25 + $0x600] sm:$0xff] }
  0x32   : > { %277 = vst [vmem:[%s2827_s26 + $0x2e8] sm:$0xff] %v276_v62  ;;  %v282_v1 = vld [vmem:[%s2822_s25 + $0x618] sm:$0xff]  ;;  %279 = vst [vmem:[%s2827_s26 + $0x2f4] sm:$0xff] %v278_v63  ;;  %v284_v2 = vld [vmem:[%s2822_s25 + $0x630] sm:$0xff] }
  0x33   : > { %281 = vst [vmem:[%s2827_s26 + $0x300] sm:$0xff] %v280_v0  ;;  %283 = vst [vmem:[%s2827_s26 + $0x30c] sm:$0xff] %v282_v1  ;;  %v286_v3 = vld [vmem:[%s2822_s25 + $0x648] sm:$0xff]  ;;  %v288_v4 = vld [vmem:[%s2822_s25 + $0x660] sm:$0xff] }
  0x34   : > { %285 = vst [vmem:[%s2827_s26 + $0x318] sm:$0xff] %v284_v2  ;;  %287 = vst [vmem:[%s2827_s26 + $0x324] sm:$0xff] %v286_v3  ;;  %v290_v5 = vld [vmem:[%s2822_s25 + $0x678] sm:$0xff]  ;;  %v292_v6 = vld [vmem:[%s2822_s25 + $0x690] sm:$0xff] }
  0x35   : > { %289 = vst [vmem:[%s2827_s26 + $0x330] sm:$0xff] %v288_v4  ;;  %v294_v7 = vld [vmem:[%s2822_s25 + $0x6a8] sm:$0xff]  ;;  %291 = vst [vmem:[%s2827_s26 + $0x33c] sm:$0xff] %v290_v5  ;;  %v296_v8 = vld [vmem:[%s2822_s25 + $0x6c0] sm:$0xff] }
  0x36   : > { %293 = vst [vmem:[%s2827_s26 + $0x348] sm:$0xff] %v292_v6  ;;  %295 = vst [vmem:[%s2827_s26 + $0x354] sm:$0xff] %v294_v7  ;;  %v298_v9 = vld [vmem:[%s2822_s25 + $0x6d8] sm:$0xff]  ;;  %v300_v10 = vld [vmem:[%s2822_s25 + $0x6f0] sm:$0xff] }
  0x37   : > { %297 = vst [vmem:[%s2827_s26 + $0x360] sm:$0xff] %v296_v8  ;;  %299 = vst [vmem:[%s2827_s26 + $0x36c] sm:$0xff] %v298_v9  ;;  %v302_v11 = vld [vmem:[%s2822_s25 + $0x708] sm:$0xff]  ;;  %v304_v12 = vld [vmem:[%s2822_s25 + $0x720] sm:$0xff] }
  0x38   : > { %301 = vst [vmem:[%s2827_s26 + $0x378] sm:$0xff] %v300_v10  ;;  %v306_v13 = vld [vmem:[%s2822_s25 + $0x738] sm:$0xff]  ;;  %303 = vst [vmem:[%s2827_s26 + $0x384] sm:$0xff] %v302_v11  ;;  %v308_v14 = vld [vmem:[%s2822_s25 + $0x750] sm:$0xff] }
  0x39   : > { %305 = vst [vmem:[%s2827_s26 + $0x390] sm:$0xff] %v304_v12  ;;  %307 = vst [vmem:[%s2827_s26 + $0x39c] sm:$0xff] %v306_v13  ;;  %v310_v15 = vld [vmem:[%s2822_s25 + $0x768] sm:$0xff]  ;;  %v312_v16 = vld [vmem:[%s2822_s25 + $0x780] sm:$0xff] }
  0x3a   : > { %309 = vst [vmem:[%s2827_s26 + $0x3a8] sm:$0xff] %v308_v14  ;;  %311 = vst [vmem:[%s2827_s26 + $0x3b4] sm:$0xff] %v310_v15  ;;  %v314_v17 = vld [vmem:[%s2822_s25 + $0x798] sm:$0xff]  ;;  %v316_v18 = vld [vmem:[%s2822_s25 + $0x7b0] sm:$0xff] }
  0x3b   : > { %313 = vst [vmem:[%s2827_s26 + $0x3c0] sm:$0xff] %v312_v16  ;;  %v318_v19 = vld [vmem:[%s2822_s25 + $0x7c8] sm:$0xff]  ;;  %315 = vst [vmem:[%s2827_s26 + $0x3cc] sm:$0xff] %v314_v17  ;;  %v320_v20 = vld [vmem:[%s2822_s25 + $0x7e0] sm:$0xff] }
  0x3c   : > { %317 = vst [vmem:[%s2827_s26 + $0x3d8] sm:$0xff] %v316_v18  ;;  %319 = vst [vmem:[%s2827_s26 + $0x3e4] sm:$0xff] %v318_v19  ;;  %v322_v21 = vld [vmem:[%s2822_s25 + $0x7f8] sm:$0xff]  ;;  %v324_v22 = vld [vmem:[%s2822_s25 + $0x810] sm:$0xff] }
  0x3d   : > { %321 = vst [vmem:[%s2827_s26 + $0x3f0] sm:$0xff] %v320_v20  ;;  %323 = vst [vmem:[%s2827_s26 + $0x3fc] sm:$0xff] %v322_v21  ;;  %v326_v23 = vld [vmem:[%s2822_s25 + $0x828] sm:$0xff]  ;;  %v328_v24 = vld [vmem:[%s2822_s25 + $0x840] sm:$0xff] }
  0x3e   : > { %325 = vst [vmem:[%s2827_s26 + $0x408] sm:$0xff] %v324_v22  ;;  %v330_v25 = vld [vmem:[%s2822_s25 + $0x858] sm:$0xff]  ;;  %327 = vst [vmem:[%s2827_s26 + $0x414] sm:$0xff] %v326_v23  ;;  %v332_v26 = vld [vmem:[%s2822_s25 + $0x870] sm:$0xff] }
  0x3f   : > { %329 = vst [vmem:[%s2827_s26 + $0x420] sm:$0xff] %v328_v24  ;;  %331 = vst [vmem:[%s2827_s26 + $0x42c] sm:$0xff] %v330_v25  ;;  %v334_v27 = vld [vmem:[%s2822_s25 + $0x888] sm:$0xff]  ;;  %v336_v28 = vld [vmem:[%s2822_s25 + $0x8a0] sm:$0xff] }
  0x40   : > { %333 = vst [vmem:[%s2827_s26 + $0x438] sm:$0xff] %v332_v26  ;;  %335 = vst [vmem:[%s2827_s26 + $0x444] sm:$0xff] %v334_v27  ;;  %v338_v29 = vld [vmem:[%s2822_s25 + $0x8b8] sm:$0xff]  ;;  %v340_v30 = vld [vmem:[%s2822_s25 + $0x8d0] sm:$0xff] }
  0x41   : > { %337 = vst [vmem:[%s2827_s26 + $0x450] sm:$0xff] %v336_v28  ;;  %v342_v31 = vld [vmem:[%s2822_s25 + $0x8e8] sm:$0xff]  ;;  %339 = vst [vmem:[%s2827_s26 + $0x45c] sm:$0xff] %v338_v29  ;;  %v344_v32 = vld [vmem:[%s2822_s25 + $0x900] sm:$0xff] }
  0x42   : > { %341 = vst [vmem:[%s2827_s26 + $0x468] sm:$0xff] %v340_v30  ;;  %343 = vst [vmem:[%s2827_s26 + $0x474] sm:$0xff] %v342_v31  ;;  %v346_v33 = vld [vmem:[%s2822_s25 + $0x918] sm:$0xff]  ;;  %v348_v34 = vld [vmem:[%s2822_s25 + $0x930] sm:$0xff] }
  0x43   : > { %345 = vst [vmem:[%s2827_s26 + $0x480] sm:$0xff] %v344_v32  ;;  %347 = vst [vmem:[%s2827_s26 + $0x48c] sm:$0xff] %v346_v33  ;;  %v350_v35 = vld [vmem:[%s2822_s25 + $0x948] sm:$0xff]  ;;  %v2052_v37 = vld [vmem:[%s2822_s25 + $0x20] sm:$0xf] }
  0x44   : > { %349 = vst [vmem:[%s2827_s26 + $0x498] sm:$0xff] %v348_v34  ;;  %v2050_v36 = vld [vmem:[%s2822_s25 + $0x8] sm:$0xf]  ;;  %351 = vst [vmem:[%s2827_s26 + $0x4a4] sm:$0xff] %v350_v35  ;;  %v2054_v38 = vld [vmem:[%s2822_s25 + $0x38] sm:$0xf] }
  0x45   : > { %2051 = vst [vmem:[%s2827_s26 + $0x8] sm:$0xf] %v2050_v36  ;;  %2053 = vst [vmem:[%s2827_s26 + $0x14] sm:$0xf] %v2052_v37  ;;  %v2056_v39 = vld [vmem:[%s2822_s25 + $0x50] sm:$0xf] }
  0x46   : > { %v2058_v40 = vld [vmem:[%s2822_s25 + $0x68] sm:$0xf]  ;;  %2055 = vst [vmem:[%s2827_s26 + $0x20] sm:$0xf] %v2054_v38  ;;  %2057 = vst [vmem:[%s2827_s26 + $0x2c] sm:$0xf] %v2056_v39 }
  0x47   : > { %2059 = vst [vmem:[%s2827_s26 + $0x38] sm:$0xf] %v2058_v40  ;;  %v2060_v41 = vld [vmem:[%s2822_s25 + $0x80] sm:$0xf]  ;;  %v2062_v42 = vld [vmem:[%s2822_s25 + $0x98] sm:$0xf] }
  0x48   : > { %v2064_v43 = vld [vmem:[%s2822_s25 + $0xb0] sm:$0xf]  ;;  %2061 = vst [vmem:[%s2827_s26 + $0x44] sm:$0xf] %v2060_v41  ;;  %2063 = vst [vmem:[%s2827_s26 + $0x50] sm:$0xf] %v2062_v42 }
  0x49   : > { %2065 = vst [vmem:[%s2827_s26 + $0x5c] sm:$0xf] %v2064_v43  ;;  %v2066_v44 = vld [vmem:[%s2822_s25 + $0xc8] sm:$0xf]  ;;  %v2068_v45 = vld [vmem:[%s2822_s25 + $0xe0] sm:$0xf] }
  0x4a   : > { %v2070_v46 = vld [vmem:[%s2822_s25 + $0xf8] sm:$0xf]  ;;  %2067 = vst [vmem:[%s2827_s26 + $0x68] sm:$0xf] %v2066_v44  ;;  %2069 = vst [vmem:[%s2827_s26 + $0x74] sm:$0xf] %v2068_v45 }
  0x4b   : > { %2071 = vst [vmem:[%s2827_s26 + $0x80] sm:$0xf] %v2070_v46  ;;  %v2072_v47 = vld [vmem:[%s2822_s25 + $0x110] sm:$0xf]  ;;  %v2074_v48 = vld [vmem:[%s2822_s25 + $0x128] sm:$0xf] }
  0x4c   : > { %v2076_v49 = vld [vmem:[%s2822_s25 + $0x140] sm:$0xf]  ;;  %2073 = vst [vmem:[%s2827_s26 + $0x8c] sm:$0xf] %v2072_v47  ;;  %2075 = vst [vmem:[%s2827_s26 + $0x98] sm:$0xf] %v2074_v48 }
  0x4d   : > { %2077 = vst [vmem:[%s2827_s26 + $0xa4] sm:$0xf] %v2076_v49  ;;  %v2078_v50 = vld [vmem:[%s2822_s25 + $0x158] sm:$0xf]  ;;  %v2080_v51 = vld [vmem:[%s2822_s25 + $0x170] sm:$0xf] }
  0x4e   : > { %v2082_v52 = vld [vmem:[%s2822_s25 + $0x188] sm:$0xf]  ;;  %2079 = vst [vmem:[%s2827_s26 + $0xb0] sm:$0xf] %v2078_v50  ;;  %2081 = vst [vmem:[%s2827_s26 + $0xbc] sm:$0xf] %v2080_v51 }
  0x4f   : > { %2083 = vst [vmem:[%s2827_s26 + $0xc8] sm:$0xf] %v2082_v52  ;;  %v2084_v53 = vld [vmem:[%s2822_s25 + $0x1a0] sm:$0xf]  ;;  %v2086_v54 = vld [vmem:[%s2822_s25 + $0x1b8] sm:$0xf] }
  0x50   : > { %v2088_v55 = vld [vmem:[%s2822_s25 + $0x1d0] sm:$0xf]  ;;  %2085 = vst [vmem:[%s2827_s26 + $0xd4] sm:$0xf] %v2084_v53  ;;  %2087 = vst [vmem:[%s2827_s26 + $0xe0] sm:$0xf] %v2086_v54 }
  0x51   : > { %2089 = vst [vmem:[%s2827_s26 + $0xec] sm:$0xf] %v2088_v55  ;;  %v2090_v56 = vld [vmem:[%s2822_s25 + $0x1e8] sm:$0xf]  ;;  %v2092_v57 = vld [vmem:[%s2822_s25 + $0x200] sm:$0xf] }
  0x52   : > { %v2094_v58 = vld [vmem:[%s2822_s25 + $0x218] sm:$0xf]  ;;  %2091 = vst [vmem:[%s2827_s26 + $0xf8] sm:$0xf] %v2090_v56  ;;  %2093 = vst [vmem:[%s2827_s26 + $0x104] sm:$0xf] %v2092_v57 }
  0x53   : > { %2095 = vst [vmem:[%s2827_s26 + $0x110] sm:$0xf] %v2094_v58  ;;  %v2096_v59 = vld [vmem:[%s2822_s25 + $0x230] sm:$0xf]  ;;  %v2098_v60 = vld [vmem:[%s2822_s25 + $0x248] sm:$0xf] }
  0x54   : > { %v2100_v61 = vld [vmem:[%s2822_s25 + $0x260] sm:$0xf]  ;;  %2097 = vst [vmem:[%s2827_s26 + $0x11c] sm:$0xf] %v2096_v59  ;;  %2099 = vst [vmem:[%s2827_s26 + $0x128] sm:$0xf] %v2098_v60 }
  0x55   : > { %2101 = vst [vmem:[%s2827_s26 + $0x134] sm:$0xf] %v2100_v61  ;;  %v2102_v62 = vld [vmem:[%s2822_s25 + $0x278] sm:$0xf]  ;;  %v2104_v63 = vld [vmem:[%s2822_s25 + $0x290] sm:$0xf] }
  0x56   : > { %v2106_v0 = vld [vmem:[%s2822_s25 + $0x2a8] sm:$0xf]  ;;  %2103 = vst [vmem:[%s2827_s26 + $0x140] sm:$0xf] %v2102_v62  ;;  %2105 = vst [vmem:[%s2827_s26 + $0x14c] sm:$0xf] %v2104_v63 }
  0x57   : > { %2107 = vst [vmem:[%s2827_s26 + $0x158] sm:$0xf] %v2106_v0  ;;  %v2108_v1 = vld [vmem:[%s2822_s25 + $0x2c0] sm:$0xf]  ;;  %v2110_v2 = vld [vmem:[%s2822_s25 + $0x2d8] sm:$0xf] }
  0x58   : > { %v2112_v3 = vld [vmem:[%s2822_s25 + $0x2f0] sm:$0xf]  ;;  %2109 = vst [vmem:[%s2827_s26 + $0x164] sm:$0xf] %v2108_v1  ;;  %2111 = vst [vmem:[%s2827_s26 + $0x170] sm:$0xf] %v2110_v2 }
  0x59   : > { %2113 = vst [vmem:[%s2827_s26 + $0x17c] sm:$0xf] %v2112_v3  ;;  %v2114_v4 = vld [vmem:[%s2822_s25 + $0x308] sm:$0xf]  ;;  %v2116_v5 = vld [vmem:[%s2822_s25 + $0x320] sm:$0xf] }
  0x5a   : > { %v2118_v6 = vld [vmem:[%s2822_s25 + $0x338] sm:$0xf]  ;;  %2115 = vst [vmem:[%s2827_s26 + $0x188] sm:$0xf] %v2114_v4  ;;  %2117 = vst [vmem:[%s2827_s26 + $0x194] sm:$0xf] %v2116_v5 }
  0x5b   : > { %2119 = vst [vmem:[%s2827_s26 + $0x1a0] sm:$0xf] %v2118_v6  ;;  %v2120_v7 = vld [vmem:[%s2822_s25 + $0x350] sm:$0xf]  ;;  %v2122_v8 = vld [vmem:[%s2822_s25 + $0x368] sm:$0xf] }
  0x5c   : > { %v2124_v9 = vld [vmem:[%s2822_s25 + $0x380] sm:$0xf]  ;;  %2121 = vst [vmem:[%s2827_s26 + $0x1ac] sm:$0xf] %v2120_v7  ;;  %2123 = vst [vmem:[%s2827_s26 + $0x1b8] sm:$0xf] %v2122_v8 }
  0x5d   : > { %2125 = vst [vmem:[%s2827_s26 + $0x1c4] sm:$0xf] %v2124_v9  ;;  %v2126_v10 = vld [vmem:[%s2822_s25 + $0x398] sm:$0xf]  ;;  %v2128_v11 = vld [vmem:[%s2822_s25 + $0x3b0] sm:$0xf] }
  0x5e   : > { %v2130_v12 = vld [vmem:[%s2822_s25 + $0x3c8] sm:$0xf]  ;;  %2127 = vst [vmem:[%s2827_s26 + $0x1d0] sm:$0xf] %v2126_v10  ;;  %2129 = vst [vmem:[%s2827_s26 + $0x1dc] sm:$0xf] %v2128_v11 }
  0x5f   : > { %2131 = vst [vmem:[%s2827_s26 + $0x1e8] sm:$0xf] %v2130_v12  ;;  %v2132_v13 = vld [vmem:[%s2822_s25 + $0x3e0] sm:$0xf]  ;;  %v2134_v14 = vld [vmem:[%s2822_s25 + $0x3f8] sm:$0xf] }
  0x60   : > { %v2136_v15 = vld [vmem:[%s2822_s25 + $0x410] sm:$0xf]  ;;  %2133 = vst [vmem:[%s2827_s26 + $0x1f4] sm:$0xf] %v2132_v13  ;;  %2135 = vst [vmem:[%s2827_s26 + $0x200] sm:$0xf] %v2134_v14 }
  0x61   : > { %2137 = vst [vmem:[%s2827_s26 + $0x20c] sm:$0xf] %v2136_v15  ;;  %v2138_v16 = vld [vmem:[%s2822_s25 + $0x428] sm:$0xf]  ;;  %v2140_v17 = vld [vmem:[%s2822_s25 + $0x440] sm:$0xf] }
  0x62   : > { %v2142_v18 = vld [vmem:[%s2822_s25 + $0x458] sm:$0xf]  ;;  %2139 = vst [vmem:[%s2827_s26 + $0x218] sm:$0xf] %v2138_v16  ;;  %2141 = vst [vmem:[%s2827_s26 + $0x224] sm:$0xf] %v2140_v17 }
  0x63   : > { %2143 = vst [vmem:[%s2827_s26 + $0x230] sm:$0xf] %v2142_v18  ;;  %v2144_v19 = vld [vmem:[%s2822_s25 + $0x470] sm:$0xf]  ;;  %v2146_v20 = vld [vmem:[%s2822_s25 + $0x488] sm:$0xf] }
  0x64   : > { %v2148_v21 = vld [vmem:[%s2822_s25 + $0x4a0] sm:$0xf]  ;;  %2145 = vst [vmem:[%s2827_s26 + $0x23c] sm:$0xf] %v2144_v19  ;;  %2147 = vst [vmem:[%s2827_s26 + $0x248] sm:$0xf] %v2146_v20 }
  0x65   : > { %2149 = vst [vmem:[%s2827_s26 + $0x254] sm:$0xf] %v2148_v21  ;;  %v2150_v22 = vld [vmem:[%s2822_s25 + $0x4b8] sm:$0xf]  ;;  %v2152_v23 = vld [vmem:[%s2822_s25 + $0x4d0] sm:$0xf] }
  0x66   : > { %v2154_v24 = vld [vmem:[%s2822_s25 + $0x4e8] sm:$0xf]  ;;  %2151 = vst [vmem:[%s2827_s26 + $0x260] sm:$0xf] %v2150_v22  ;;  %2153 = vst [vmem:[%s2827_s26 + $0x26c] sm:$0xf] %v2152_v23 }
  0x67   : > { %2155 = vst [vmem:[%s2827_s26 + $0x278] sm:$0xf] %v2154_v24  ;;  %v2156_v25 = vld [vmem:[%s2822_s25 + $0x500] sm:$0xf]  ;;  %v2158_v26 = vld [vmem:[%s2822_s25 + $0x518] sm:$0xf] }
  0x68   : > { %v2160_v27 = vld [vmem:[%s2822_s25 + $0x530] sm:$0xf]  ;;  %2157 = vst [vmem:[%s2827_s26 + $0x284] sm:$0xf] %v2156_v25  ;;  %2159 = vst [vmem:[%s2827_s26 + $0x290] sm:$0xf] %v2158_v26 }
  0x69   : > { %2161 = vst [vmem:[%s2827_s26 + $0x29c] sm:$0xf] %v2160_v27  ;;  %v2162_v28 = vld [vmem:[%s2822_s25 + $0x548] sm:$0xf]  ;;  %v2164_v29 = vld [vmem:[%s2822_s25 + $0x560] sm:$0xf] }
  0x6a   : > { %v2166_v30 = vld [vmem:[%s2822_s25 + $0x578] sm:$0xf]  ;;  %2163 = vst [vmem:[%s2827_s26 + $0x2a8] sm:$0xf] %v2162_v28  ;;  %2165 = vst [vmem:[%s2827_s26 + $0x2b4] sm:$0xf] %v2164_v29 }
  0x6b   : > { %2167 = vst [vmem:[%s2827_s26 + $0x2c0] sm:$0xf] %v2166_v30  ;;  %v2168_v31 = vld [vmem:[%s2822_s25 + $0x590] sm:$0xf]  ;;  %v2170_v32 = vld [vmem:[%s2822_s25 + $0x5a8] sm:$0xf] }
  0x6c   : > { %v2172_v33 = vld [vmem:[%s2822_s25 + $0x5c0] sm:$0xf]  ;;  %2169 = vst [vmem:[%s2827_s26 + $0x2cc] sm:$0xf] %v2168_v31  ;;  %2171 = vst [vmem:[%s2827_s26 + $0x2d8] sm:$0xf] %v2170_v32 }
  0x6d   : > { %2173 = vst [vmem:[%s2827_s26 + $0x2e4] sm:$0xf] %v2172_v33  ;;  %v2174_v34 = vld [vmem:[%s2822_s25 + $0x5d8] sm:$0xf]  ;;  %v2176_v35 = vld [vmem:[%s2822_s25 + $0x5f0] sm:$0xf] }
  0x6e   : > { %v2178_v36 = vld [vmem:[%s2822_s25 + $0x608] sm:$0xf]  ;;  %2175 = vst [vmem:[%s2827_s26 + $0x2f0] sm:$0xf] %v2174_v34  ;;  %2177 = vst [vmem:[%s2827_s26 + $0x2fc] sm:$0xf] %v2176_v35 }
  0x6f   : > { %2179 = vst [vmem:[%s2827_s26 + $0x308] sm:$0xf] %v2178_v36  ;;  %v2180_v37 = vld [vmem:[%s2822_s25 + $0x620] sm:$0xf]  ;;  %v2182_v38 = vld [vmem:[%s2822_s25 + $0x638] sm:$0xf] }
  0x70   : > { %v2184_v39 = vld [vmem:[%s2822_s25 + $0x650] sm:$0xf]  ;;  %2181 = vst [vmem:[%s2827_s26 + $0x314] sm:$0xf] %v2180_v37  ;;  %2183 = vst [vmem:[%s2827_s26 + $0x320] sm:$0xf] %v2182_v38 }
  0x71   : > { %2185 = vst [vmem:[%s2827_s26 + $0x32c] sm:$0xf] %v2184_v39  ;;  %v2186_v40 = vld [vmem:[%s2822_s25 + $0x668] sm:$0xf]  ;;  %v2188_v41 = vld [vmem:[%s2822_s25 + $0x680] sm:$0xf] }
  0x72   : > { %v2190_v42 = vld [vmem:[%s2822_s25 + $0x698] sm:$0xf]  ;;  %2187 = vst [vmem:[%s2827_s26 + $0x338] sm:$0xf] %v2186_v40  ;;  %2189 = vst [vmem:[%s2827_s26 + $0x344] sm:$0xf] %v2188_v41 }
  0x73   : > { %2191 = vst [vmem:[%s2827_s26 + $0x350] sm:$0xf] %v2190_v42  ;;  %v2192_v43 = vld [vmem:[%s2822_s25 + $0x6b0] sm:$0xf]  ;;  %v2194_v44 = vld [vmem:[%s2822_s25 + $0x6c8] sm:$0xf] }
  0x74   : > { %v2196_v45 = vld [vmem:[%s2822_s25 + $0x6e0] sm:$0xf]  ;;  %2193 = vst [vmem:[%s2827_s26 + $0x35c] sm:$0xf] %v2192_v43  ;;  %2195 = vst [vmem:[%s2827_s26 + $0x368] sm:$0xf] %v2194_v44 }
  0x75   : > { %2197 = vst [vmem:[%s2827_s26 + $0x374] sm:$0xf] %v2196_v45  ;;  %v2198_v46 = vld [vmem:[%s2822_s25 + $0x6f8] sm:$0xf]  ;;  %v2200_v47 = vld [vmem:[%s2822_s25 + $0x710] sm:$0xf] }
  0x76   : > { %v2202_v48 = vld [vmem:[%s2822_s25 + $0x728] sm:$0xf]  ;;  %2199 = vst [vmem:[%s2827_s26 + $0x380] sm:$0xf] %v2198_v46  ;;  %2201 = vst [vmem:[%s2827_s26 + $0x38c] sm:$0xf] %v2200_v47 }
  0x77   : > { %2203 = vst [vmem:[%s2827_s26 + $0x398] sm:$0xf] %v2202_v48  ;;  %v2204_v49 = vld [vmem:[%s2822_s25 + $0x740] sm:$0xf]  ;;  %v2206_v50 = vld [vmem:[%s2822_s25 + $0x758] sm:$0xf] }
  0x78   : > { %v2208_v51 = vld [vmem:[%s2822_s25 + $0x770] sm:$0xf]  ;;  %2205 = vst [vmem:[%s2827_s26 + $0x3a4] sm:$0xf] %v2204_v49  ;;  %2207 = vst [vmem:[%s2827_s26 + $0x3b0] sm:$0xf] %v2206_v50 }
  0x79   : > { %2209 = vst [vmem:[%s2827_s26 + $0x3bc] sm:$0xf] %v2208_v51  ;;  %v2210_v52 = vld [vmem:[%s2822_s25 + $0x788] sm:$0xf]  ;;  %v2212_v53 = vld [vmem:[%s2822_s25 + $0x7a0] sm:$0xf] }
  0x7a   : > { %v2214_v54 = vld [vmem:[%s2822_s25 + $0x7b8] sm:$0xf]  ;;  %2211 = vst [vmem:[%s2827_s26 + $0x3c8] sm:$0xf] %v2210_v52  ;;  %2213 = vst [vmem:[%s2827_s26 + $0x3d4] sm:$0xf] %v2212_v53 }
  0x7b   : > { %2215 = vst [vmem:[%s2827_s26 + $0x3e0] sm:$0xf] %v2214_v54  ;;  %v2216_v55 = vld [vmem:[%s2822_s25 + $0x7d0] sm:$0xf]  ;;  %v2218_v56 = vld [vmem:[%s2822_s25 + $0x7e8] sm:$0xf] }
  0x7c   : > { %v2220_v57 = vld [vmem:[%s2822_s25 + $0x800] sm:$0xf]  ;;  %2217 = vst [vmem:[%s2827_s26 + $0x3ec] sm:$0xf] %v2216_v55  ;;  %2219 = vst [vmem:[%s2827_s26 + $0x3f8] sm:$0xf] %v2218_v56 }
  0x7d   : > { %2221 = vst [vmem:[%s2827_s26 + $0x404] sm:$0xf] %v2220_v57  ;;  %v2222_v58 = vld [vmem:[%s2822_s25 + $0x818] sm:$0xf]  ;;  %v2224_v59 = vld [vmem:[%s2822_s25 + $0x830] sm:$0xf] }
  0x7e   : > { %v2226_v60 = vld [vmem:[%s2822_s25 + $0x848] sm:$0xf]  ;;  %2223 = vst [vmem:[%s2827_s26 + $0x410] sm:$0xf] %v2222_v58  ;;  %2225 = vst [vmem:[%s2827_s26 + $0x41c] sm:$0xf] %v2224_v59 }
  0x7f   : > { %2227 = vst [vmem:[%s2827_s26 + $0x428] sm:$0xf] %v2226_v60  ;;  %v2228_v61 = vld [vmem:[%s2822_s25 + $0x860] sm:$0xf]  ;;  %v2230_v62 = vld [vmem:[%s2822_s25 + $0x878] sm:$0xf] }
  0x80   : > { %v2232_v63 = vld [vmem:[%s2822_s25 + $0x890] sm:$0xf]  ;;  %2229 = vst [vmem:[%s2827_s26 + $0x434] sm:$0xf] %v2228_v61  ;;  %2231 = vst [vmem:[%s2827_s26 + $0x440] sm:$0xf] %v2230_v62 }
  0x81   : > { %2233 = vst [vmem:[%s2827_s26 + $0x44c] sm:$0xf] %v2232_v63  ;;  %v2234_v0 = vld [vmem:[%s2822_s25 + $0x8a8] sm:$0xf]  ;;  %v2236_v1 = vld [vmem:[%s2822_s25 + $0x8c0] sm:$0xf] }
  0x82   : > { %v2238_v2 = vld [vmem:[%s2822_s25 + $0x8d8] sm:$0xf]  ;;  %2235 = vst [vmem:[%s2827_s26 + $0x458] sm:$0xf] %v2234_v0  ;;  %2237 = vst [vmem:[%s2827_s26 + $0x464] sm:$0xf] %v2236_v1 }
  0x83   : > { %2239 = vst [vmem:[%s2827_s26 + $0x470] sm:$0xf] %v2238_v2  ;;  %v2240_v3 = vld [vmem:[%s2822_s25 + $0x8f0] sm:$0xf]  ;;  %v2242_v4 = vld [vmem:[%s2822_s25 + $0x908] sm:$0xf] }
  0x84   : > { %v2244_v5 = vld [vmem:[%s2822_s25 + $0x920] sm:$0xf]  ;;  %2241 = vst [vmem:[%s2827_s26 + $0x47c] sm:$0xf] %v2240_v3  ;;  %2243 = vst [vmem:[%s2827_s26 + $0x488] sm:$0xf] %v2242_v4 }
  0x85   : > { %2245 = vst [vmem:[%s2827_s26 + $0x494] sm:$0xf] %v2244_v5  ;;  %v2246_v6 = vld [vmem:[%s2822_s25 + $0x938] sm:$0xf]  ;;  %v2248_v7 = vld [vmem:[%s2822_s25 + $0x950] sm:$0xf] }
  0x86   : > { %2247 = vst [vmem:[%s2827_s26 + $0x4a0] sm:$0xf] %v2246_v6  ;;  %2249 = vst [vmem:[%s2827_s26 + $0x4ac] sm:$0xf] %v2248_v7 }
  0x87 PF: > { %p2250_p5 = scmp.ge.s32.totalorder %s2762_s14, 1  ;;  %p563_p6 = scmp.lt.s32.totalorder %s2762_s14, 3 }
  0x89   : > { %p564_p7 = pnand %p2250_p5, %p563_p6 }
  0x8a   : > { %s570_s27 = sand.u32 (!%p564_p7), 1, %s2754_s12   ;;  %v3232_v8 = vld [vmem:[%s3453_s0] sm:$0xff] (!%p564_p7)  ;;  %v3237_v9 = vld [vmem:[%s3453_s0 + $0x8] sm:$0xff] (!%p564_p7)  ;;  %v2764_v30 = vmov (!%p564_p7), 0   ;;  %vm1629_vm0 = vcmask (!%p564_p7), 261120   ;;  %vm2767_vm1 = vmmov (!%p564_p7), 0  }
  0x8b   : > { %567 = sbr.rel (%p564_p7) target bundleno = 530 (0x212), region = 54  ;;  %v3241_v10 = vcombine.high (!%p564_p7), %v3232_v8, %v3232_v8  ;;  %v3245_v11 = vcombine.high (!%p564_p7), %v3237_v9, %v3237_v9  ;;  %2531 = vset.pattern.permute.xlu0 (!%p564_p7), %v2764_v30 }
  0x8c   : > { %s2502_s5 = smul.u32 (!%p564_p7), 1200, %s570_s27 }
  0x8d   : > { %1665 = vmatprep.mubr.bf16.mxu1 (!%p564_p7), %v3241_v10  ;;  %1706 = vmatprep.mubr.bf16.mxu0 (!%p564_p7), %v3245_v11  ;;  %s594_s17 = smul.u32 (!%p564_p7), 3, %s2045_s15 }
  0x8e   : > { %s3249_s6 = scalar_lea.vmem (!%p564_p7), [#allocation2], %s2502_s5 }
  0x8f   : > { %v2533_v12 = vld [vmem:[%s3249_s6 + $0x4] ss:$12 sps:$4 sm:$0xff] (!%p564_p7)   ;;  %v2537_v14 = vld [vmem:[%s3249_s6] ss:$12 sps:$4 sm:$0xff] (!%p564_p7)   ;;  %v2539_v16 = vld [vmem:[%s3249_s6 + $0x1c] ss:$12 sps:$4 sm:$0xff] (!%p564_p7)  }
  0x90   : > { %v2535_v13 = vld [vmem:[%s3249_s6 + $0x184] ss:$12 sps:$4 sm:$0xff] (!%p564_p7)   ;;  %1633 = vmatprep.subr.bf16.mxu1 (!%p564_p7), %v2533_v12  ;;  %v2538_v15 = vld [vmem:[%s3249_s6 + $0x180] ss:$12 sps:$4 sm:$0xff] (!%p564_p7)   ;;  %v2541_v17 = vld [vmem:[%s3249_s6 + $0x19c] ss:$12 sps:$4 sm:$0xff] (!%p564_p7)  }
  0x91   : > { %1674 = vmatprep.subr.bf16.mxu0 (!%p564_p7), %v2535_v13  ;;  %1634 = vmatpush1.bf16.msra.mxu1 (!%p564_p7), %v2537_v14  ;;  %v2543_v18 = vld [vmem:[%s3249_s6 + $0x18] ss:$12 sps:$4 sm:$0xff] (!%p564_p7)   ;;  %v2545_v20 = vld [vmem:[%s3249_s6 + $0x34] ss:$12 sps:$4 sm:$0xff] (!%p564_p7)   ;;  %v2549_v22 = vld [vmem:[%s3249_s6 + $0x30] ss:$12 sps:$4 sm:$0xff] (!%p564_p7)  }
  0x92   : > { %1675 = vmatpush1.bf16.msra.mxu0 %v2538_v15  ;;  %1635 = vmatprep.subr.bf16.mxu1 %v2539_v16  ;;  %v2544_v19 = vld [vmem:[%s3249_s6 + $0x198] ss:$12 sps:$4 sm:$0xff]   ;;  %v2547_v21 = vld [vmem:[%s3249_s6 + $0x1b4] ss:$12 sps:$4 sm:$0xff]   ;;  %v2550_v23 = vld [vmem:[%s3249_s6 + $0x1b0] ss:$12 sps:$4 sm:$0xff]  }
  0x93   : > { %1676 = vmatprep.subr.bf16.mxu0 %v2541_v17  ;;  %v2551_v24 = vld [vmem:[%s3249_s6 + $0x4c] ss:$12 sps:$4 sm:$0xff]   ;;  %v2555_v26 = vld [vmem:[%s3249_s6 + $0x48] ss:$12 sps:$4 sm:$0xff]   ;;  %v2557_v28 = vld [vmem:[%s3249_s6 + $0x64] ss:$12 sps:$4 sm:$0xff]  }
  0x94   : > { %v2553_v25 = vld [vmem:[%s3249_s6 + $0x1cc] ss:$12 sps:$4 sm:$0xff]   ;;  %v2556_v27 = vld [vmem:[%s3249_s6 + $0x1c8] ss:$12 sps:$4 sm:$0xff]   ;;  %v2559_v29 = vld [vmem:[%s3249_s6 + $0x1e4] ss:$12 sps:$4 sm:$0xff]  }
  0x95   : > { %1636 = vmatpush1.bf16.msra.mxu1 %v2543_v18  ;;  %v2561_v31 = vld [vmem:[%s3249_s6 + $0x60] ss:$12 sps:$4 sm:$0xff]   ;;  %v2563_v33 = vld [vmem:[%s3249_s6 + $0x7c] ss:$12 sps:$4 sm:$0xff]   ;;  %v2567_v35 = vld [vmem:[%s3249_s6 + $0x78] ss:$12 sps:$4 sm:$0xff]  }
  0x96   : > { %1677 = vmatpush1.bf16.msra.mxu0 %v2544_v19  ;;  %1637 = vmatprep.subr.bf16.mxu1 %v2545_v20  ;;  %v2562_v32 = vld [vmem:[%s3249_s6 + $0x1e0] ss:$12 sps:$4 sm:$0xff]   ;;  %v2565_v34 = vld [vmem:[%s3249_s6 + $0x1fc] ss:$12 sps:$4 sm:$0xff]   ;;  %v2568_v36 = vld [vmem:[%s3249_s6 + $0x1f8] ss:$12 sps:$4 sm:$0xff]   ;;  %v3325_v20 = vcombine.low %v3232_v8, %v3232_v8 }
  0x97   : > { %1678 = vmatprep.subr.bf16.mxu0 %v2547_v21  ;;  %v2569_v37 = vld [vmem:[%s3249_s6 + $0x94] ss:$12 sps:$4 sm:$0xff]   ;;  %v2573_v39 = vld [vmem:[%s3249_s6 + $0x90] ss:$12 sps:$4 sm:$0xff]   ;;  %v2575_v41 = vld [vmem:[%s3249_s6 + $0xac] ss:$12 sps:$4 sm:$0xff]   ;;  %v3329_v21 = vcombine.low %v3237_v9, %v3237_v9 }
  0x98   : > { %v2571_v38 = vld [vmem:[%s3249_s6 + $0x214] ss:$12 sps:$4 sm:$0xff]   ;;  %v2574_v40 = vld [vmem:[%s3249_s6 + $0x210] ss:$12 sps:$4 sm:$0xff]   ;;  %v2577_v42 = vld [vmem:[%s3249_s6 + $0x22c] ss:$12 sps:$4 sm:$0xff]  }
  0x99   : > { %1638 = vmatpush1.bf16.msra.mxu1 %v2549_v22  ;;  %v2579_v43 = vld [vmem:[%s3249_s6 + $0xa8] ss:$12 sps:$4 sm:$0xff]   ;;  %v2581_v45 = vld [vmem:[%s3249_s6 + $0xc4] ss:$12 sps:$4 sm:$0xff]   ;;  %v2585_v47 = vld [vmem:[%s3249_s6 + $0xc0] ss:$12 sps:$4 sm:$0xff]  }
  0x9a   : > { %1679 = vmatpush1.bf16.msra.mxu0 %v2550_v23  ;;  %1639 = vmatprep.subr.bf16.mxu1 %v2551_v24  ;;  %v2580_v44 = vld [vmem:[%s3249_s6 + $0x228] ss:$12 sps:$4 sm:$0xff]   ;;  %v2583_v46 = vld [vmem:[%s3249_s6 + $0x244] ss:$12 sps:$4 sm:$0xff]   ;;  %v2586_v48 = vld [vmem:[%s3249_s6 + $0x240] ss:$12 sps:$4 sm:$0xff]  }
  0x9b   : > { %1680 = vmatprep.subr.bf16.mxu0 %v2553_v25  ;;  %v2587_v49 = vld [vmem:[%s3249_s6 + $0xdc] ss:$12 sps:$4 sm:$0xff]   ;;  %v2591_v51 = vld [vmem:[%s3249_s6 + $0xd8] ss:$12 sps:$4 sm:$0xff]   ;;  %v2593_v53 = vld [vmem:[%s3249_s6 + $0xf4] ss:$12 sps:$4 sm:$0xff]  }
  0x9c   : > { %v2589_v50 = vld [vmem:[%s3249_s6 + $0x25c] ss:$12 sps:$4 sm:$0xff]   ;;  %v2592_v52 = vld [vmem:[%s3249_s6 + $0x258] ss:$12 sps:$4 sm:$0xff]   ;;  %v2595_v54 = vld [vmem:[%s3249_s6 + $0x274] ss:$12 sps:$4 sm:$0xff]  }
  0x9d   : > { %1640 = vmatpush1.bf16.msra.mxu1 %v2555_v26  ;;  %v2597_v55 = vld [vmem:[%s3249_s6 + $0xf0] ss:$12 sps:$4 sm:$0xff]   ;;  %v2599_v57 = vld [vmem:[%s3249_s6 + $0x10c] ss:$12 sps:$4 sm:$0xff]   ;;  %v2603_v59 = vld [vmem:[%s3249_s6 + $0x108] ss:$12 sps:$4 sm:$0xff]  }
  0x9e   : > { %1681 = vmatpush1.bf16.msra.mxu0 %v2556_v27  ;;  %1641 = vmatprep.subr.bf16.mxu1 %v2557_v28  ;;  %v2598_v56 = vld [vmem:[%s3249_s6 + $0x270] ss:$12 sps:$4 sm:$0xff]   ;;  %v2601_v58 = vld [vmem:[%s3249_s6 + $0x28c] ss:$12 sps:$4 sm:$0xff]   ;;  %v2604_v60 = vld [vmem:[%s3249_s6 + $0x288] ss:$12 sps:$4 sm:$0xff]  }
  0x9f   : > { %1682 = vmatprep.subr.bf16.mxu0 %v2559_v29  ;;  %v2605_v61 = vld [vmem:[%s3249_s6 + $0x124] ss:$12 sps:$4 sm:$0xff]   ;;  %v2609_v63 = vld [vmem:[%s3249_s6 + $0x120] ss:$12 sps:$4 sm:$0xff]   ;;  %v2611_v1 = vld [vmem:[%s3249_s6 + $0x13c] ss:$12 sps:$4 sm:$0xff]  }
  0xa0   : > { %v2607_v62 = vld [vmem:[%s3249_s6 + $0x2a4] ss:$12 sps:$4 sm:$0xff]   ;;  %v2610_v0 = vld [vmem:[%s3249_s6 + $0x2a0] ss:$12 sps:$4 sm:$0xff]   ;;  %v2613_v2 = vld [vmem:[%s3249_s6 + $0x2bc] ss:$12 sps:$4 sm:$0xff]  }
  0xa1   : > { %1642 = vmatpush1.bf16.msra.mxu1 %v2561_v31  ;;  %v2615_v3 = vld [vmem:[%s3249_s6 + $0x138] ss:$12 sps:$4 sm:$0xff]   ;;  %v2617_v5 = vld [vmem:[%s3249_s6 + $0x154] ss:$12 sps:$4 sm:$0xff]   ;;  %v2621_v7 = vld [vmem:[%s3249_s6 + $0x150] ss:$12 sps:$4 sm:$0xff]  }
  0xa2   : > { %1683 = vmatpush1.bf16.msra.mxu0 %v2562_v32  ;;  %1643 = vmatprep.subr.bf16.mxu1 %v2563_v33  ;;  %v2616_v4 = vld [vmem:[%s3249_s6 + $0x2b8] ss:$12 sps:$4 sm:$0xff]   ;;  %v2619_v6 = vld [vmem:[%s3249_s6 + $0x2d4] ss:$12 sps:$4 sm:$0xff]   ;;  %v2622_v12 = vld [vmem:[%s3249_s6 + $0x2d0] ss:$12 sps:$4 sm:$0xff]  }
  0xa3   : > { %1684 = vmatprep.subr.bf16.mxu0 %v2565_v34  ;;  %v2623_v13 = vld [vmem:[%s3249_s6 + $0x16c] ss:$12 sps:$4 sm:$0xff]   ;;  %v2627_v15 = vld [vmem:[%s3249_s6 + $0x168] ss:$12 sps:$4 sm:$0xff]   ;;  %v2635_v17 = vld [vmem:[%s3249_s6 + $0x304] ss:$12 sps:$4 sm:$0xff]  }
  0xa4   : > { %v2625_v14 = vld [vmem:[%s3249_s6 + $0x2ec] ss:$12 sps:$4 sm:$0xff]   ;;  %v2628_v16 = vld [vmem:[%s3249_s6 + $0x2e8] ss:$12 sps:$4 sm:$0xff]   ;;  %v2643_v29 = vld [vmem:[%s3249_s6 + $0x330] ss:$12 sps:$4 sm:$0xff]  }
  0xa5   : > { %1644 = vmatpush1.bf16.msra.mxu1 %v2567_v35  ;;  %v2636_v18 = vld [vmem:[%s3249_s6 + $0xc8] ss:$12 sps:$4 sm:$0xff]   ;;  %v2633_v22 = vld [vmem:[%s3249_s6 + $0x300] ss:$12 sps:$4 sm:$0xff]   ;;  %v2638_v26 = vld [vmem:[%s3249_s6 + $0x318] ss:$12 sps:$4 sm:$0xff]  }
  0xa6   : > { %1685 = vmatpush1.bf16.msra.mxu0 %v2568_v36  ;;  %1645 = vmatprep.subr.bf16.mxu1 %v2569_v37  ;;  %v3321_v19 = vld [vmem:[%s3453_s0 + $0x10] sm:$0xff]  ;;  %v2640_v24 = vld [vmem:[%s3249_s6 + $0x31c] ss:$12 sps:$4 sm:$0xff]   ;;  %v2650_v32 = vld [vmem:[%s3249_s6 + $0x34c] ss:$12 sps:$4 sm:$0xff]   ;;  %p595_p8 = scmp.lt.s32.totalorder %s594_s17, 5 }
  0xa7   : > { %1686 = vmatprep.subr.bf16.mxu0 %v2571_v38  ;;  %v2637_v23 = vld [vmem:[%s3249_s6 + $0x8] ss:$12 sps:$4 sm:$0xff]   ;;  %v2641_v25 = vld [vmem:[%s3249_s6 + $0xe0] ss:$12 sps:$4 sm:$0xff]   ;;  %v3338_v8 = vcombine.high %v3321_v19, %v3321_v19  ;;  %v2646_v28 = vld [vmem:[%s3249_s6 + $0xf8] ss:$12 sps:$4 sm:$0xff]  }
  0xa8   : > { %v2642_v9 = vld [vmem:[%s3249_s6 + $0x20] ss:$12 sps:$4 sm:$0xff]   ;;  %v2647_v31 = vld [vmem:[%s3249_s6 + $0x38] ss:$12 sps:$4 sm:$0xff]   ;;  %v2651_v33 = vld [vmem:[%s3249_s6 + $0x110] ss:$12 sps:$4 sm:$0xff]  }
  0xa9   : > { %1646 = vmatpush1.bf16.msra.mxu1 %v2573_v39  ;;  %v2645_v27 = vld [vmem:[%s3249_s6 + $0x334] ss:$12 sps:$4 sm:$0xff]   ;;  %v2652_v35 = vld [vmem:[%s3249_s6 + $0x50] ss:$12 sps:$4 sm:$0xff]   ;;  %s3461_s17 = smov (!%p595_p8, %s594_s17), 5 }
  0xaa   : > { %1687 = vmatpush1.bf16.msra.mxu0 %v2574_v40  ;;  %1647 = vmatprep.subr.bf16.mxu1 %v2575_v41  ;;  %v2648_v34 = vld [vmem:[%s3249_s6 + $0x348] ss:$12 sps:$4 sm:$0xff]   ;;  %v2653_v37 = vld [vmem:[%s3249_s6 + $0x360] ss:$12 sps:$4 sm:$0xff]   ;;  %v2658_v41 = vld [vmem:[%s3249_s6 + $0x378] ss:$12 sps:$4 sm:$0xff]  }
  0xab   : > { %1688 = vmatprep.subr.bf16.mxu0 %v2577_v42  ;;  %v2656_v36 = vld [vmem:[%s3249_s6 + $0x128] ss:$12 sps:$4 sm:$0xff]   ;;  %v2661_v40 = vld [vmem:[%s3249_s6 + $0x140] ss:$12 sps:$4 sm:$0xff]   ;;  %s2251_s18 = sshll.u32 %s3461_s17, 3 }
  0xac   : > { %v2657_v38 = vld [vmem:[%s3249_s6 + $0x68] ss:$12 sps:$4 sm:$0xff]   ;;  %v2662_v42 = vld [vmem:[%s3249_s6 + $0x80] ss:$12 sps:$4 sm:$0xff]   ;;  %s598_s14 = scalar_lea.vmem %s3456_s3, %s2251_s18 }
  0xad   : > { %1648 = vmatpush1.bf16.msra.mxu1 %v2579_v43  ;;  %v2660_v39 = vld [vmem:[%s3249_s6 + $0x37c] ss:$12 sps:$4 sm:$0xff]   ;;  %v2665_v43 = vld [vmem:[%s3249_s6 + $0x394] ss:$12 sps:$4 sm:$0xff]  }
  0xae   : > { %1689 = vmatpush1.bf16.msra.mxu0 %v2580_v44  ;;  %1649 = vmatprep.subr.bf16.mxu1 %v2581_v45  ;;  %v2666_v44 = vld [vmem:[%s3249_s6 + $0x158] ss:$12 sps:$4 sm:$0xff]   ;;  %v2663_v45 = vld [vmem:[%s3249_s6 + $0x390] ss:$12 sps:$4 sm:$0xff]  }
  0xaf   : > { %1690 = vmatprep.subr.bf16.mxu0 %v2583_v46  ;;  %v2667_v46 = vld [vmem:[%s3249_s6 + $0x98] ss:$12 sps:$4 sm:$0xff]  }
  0xb1   : > { %1650 = vmatpush1.bf16.msra.mxu1 %v2585_v47  ;;  %v2670_v47 = vld [vmem:[%s3249_s6 + $0x3ac] ss:$12 sps:$4 sm:$0xff]  }
  0xb2   : > { %1691 = vmatpush1.bf16.msra.mxu0 %v2586_v48  ;;  %1651 = vmatprep.subr.bf16.mxu1 %v2587_v49  ;;  %v2671_v48 = vld [vmem:[%s3249_s6 + $0x170] ss:$12 sps:$4 sm:$0xff]   ;;  %v2668_v49 = vld [vmem:[%s3249_s6 + $0x3a8] ss:$12 sps:$4 sm:$0xff]  }
  0xb3   : > { %1692 = vmatprep.subr.bf16.mxu0 %v2589_v50  ;;  %v2672_v50 = vld [vmem:[%s3249_s6 + $0xb0] ss:$12 sps:$4 sm:$0xff]  }
  0xb5   : > { %1652 = vmatpush1.bf16.msra.mxu1 %v2591_v51  ;;  %v2675_v51 = vld [vmem:[%s3249_s6 + $0x3c4] ss:$12 sps:$4 sm:$0xff]  }
  0xb6   : > { %1693 = vmatpush1.bf16.msra.mxu0 %v2592_v52  ;;  %1653 = vmatprep.subr.bf16.mxu1 %v2593_v53  ;;  %v2676_v52 = vld [vmem:[%s3249_s6 + $0x248] ss:$12 sps:$4 sm:$0xff]   ;;  %v2673_v53 = vld [vmem:[%s3249_s6 + $0x3c0] ss:$12 sps:$4 sm:$0xff]  }
  0xb7   : > { %1694 = vmatprep.subr.bf16.mxu0 %v2595_v54  ;;  %v2677_v54 = vld [vmem:[%s3249_s6 + $0x188] ss:$12 sps:$4 sm:$0xff]  }
  0xb9   : > { %1654 = vmatpush1.bf16.msra.mxu1 %v2597_v55  ;;  %v2680_v55 = vld [vmem:[%s3249_s6 + $0x3dc] ss:$12 sps:$4 sm:$0xff]  }
  0xba   : > { %1695 = vmatpush1.bf16.msra.mxu0 %v2598_v56  ;;  %1655 = vmatprep.subr.bf16.mxu1 %v2599_v57  ;;  %v2681_v56 = vld [vmem:[%s3249_s6 + $0x260] ss:$12 sps:$4 sm:$0xff]   ;;  %v2678_v57 = vld [vmem:[%s3249_s6 + $0x3d8] ss:$12 sps:$4 sm:$0xff]  }
  0xbb   : > { %1696 = vmatprep.subr.bf16.mxu0 %v2601_v58  ;;  %v2682_v58 = vld [vmem:[%s3249_s6 + $0x1a0] ss:$12 sps:$4 sm:$0xff]  }
  0xbd   : > { %1656 = vmatpush1.bf16.msra.mxu1 %v2603_v59  ;;  %v2685_v59 = vld [vmem:[%s3249_s6 + $0x3f4] ss:$12 sps:$4 sm:$0xff]  }
  0xbe   : > { %1697 = vmatpush1.bf16.msra.mxu0 %v2604_v60  ;;  %1657 = vmatprep.subr.bf16.mxu1 %v2605_v61  ;;  %v2686_v60 = vld [vmem:[%s3249_s6 + $0x278] ss:$12 sps:$4 sm:$0xff]   ;;  %v2683_v61 = vld [vmem:[%s3249_s6 + $0x3f0] ss:$12 sps:$4 sm:$0xff]  }
  0xbf   : > { %1698 = vmatprep.subr.bf16.mxu0 %v2607_v62  ;;  %v2687_v62 = vld [vmem:[%s3249_s6 + $0x1b8] ss:$12 sps:$4 sm:$0xff]  }
  0xc1   : > { %1658 = vmatpush1.bf16.msra.mxu1 %v2609_v63  ;;  %v2690_v63 = vld [vmem:[%s3249_s6 + $0x40c] ss:$12 sps:$4 sm:$0xff]  }
  0xc2   : > { %1699 = vmatpush1.bf16.msra.mxu0 %v2610_v0  ;;  %1659 = vmatprep.subr.bf16.mxu1 %v2611_v1  ;;  %v2691_v0 = vld [vmem:[%s3249_s6 + $0x290] ss:$12 sps:$4 sm:$0xff]   ;;  %v2688_v1 = vld [vmem:[%s3249_s6 + $0x408] ss:$12 sps:$4 sm:$0xff]  }
  0xc3   : > { %1700 = vmatprep.subr.bf16.mxu0 %v2613_v2  ;;  %v2692_v2 = vld [vmem:[%s3249_s6 + $0x1d0] ss:$12 sps:$4 sm:$0xff]  }
  0xc5   : > { %1660 = vmatpush1.bf16.msra.mxu1 %v2615_v3  ;;  %v2696_v3 = vld [vmem:[%s3249_s6 + $0x2a8] ss:$12 sps:$4 sm:$0xff]  }
  0xc6   : > { %1701 = vmatpush1.bf16.msra.mxu0 %v2616_v4  ;;  %1661 = vmatprep.subr.bf16.mxu1 %v2617_v5  ;;  %v2693_v4 = vld [vmem:[%s3249_s6 + $0x420] ss:$12 sps:$4 sm:$0xff]   ;;  %v2697_v5 = vld [vmem:[%s3249_s6 + $0x1e8] ss:$12 sps:$4 sm:$0xff]  }
  0xc7   : > { %1702 = vmatprep.subr.bf16.mxu0 %v2619_v6  ;;  %v2700_v6 = vld [vmem:[%s3249_s6 + $0x43c] ss:$12 sps:$4 sm:$0xff]  }
  0xc9   : > { %1662 = vmatpush1.bf16.msra.mxu1 %v2621_v7  ;;  %v2701_v7 = vld [vmem:[%s3249_s6 + $0x2c0] ss:$12 sps:$4 sm:$0xff]  }
  0xca   : > { %1703 = vmatpush1.bf16.msra.mxu0 %v2622_v12  ;;  %1663 = vmatprep.subr.bf16.mxu1 %v2623_v13  ;;  %v2698_v12 = vld [vmem:[%s3249_s6 + $0x438] ss:$12 sps:$4 sm:$0xff]   ;;  %v2702_v13 = vld [vmem:[%s3249_s6 + $0x200] ss:$12 sps:$4 sm:$0xff]  }
  0xcb   : > { %1704 = vmatprep.subr.bf16.mxu0 %v2625_v14  ;;  %v2705_v14 = vld [vmem:[%s3249_s6 + $0x454] ss:$12 sps:$4 sm:$0xff]  }
  0xcd   : > { %1664 = vmatpush1.bf16.msra.mxu1 %v2627_v15  ;;  %v2706_v15 = vld [vmem:[%s3249_s6 + $0x2d8] ss:$12 sps:$4 sm:$0xff]  }
  0xce   : > { %1705 = vmatpush1.bf16.msra.mxu0 %v2628_v16  ;;  %2414 = vmatprep.subr.bf16.mxu1 %v2636_v18  ;;  %v1957_v16 = vld [vmem:[%s3455_s2] sm:$0xff] }
  0xcf   : > { %1715 = vmatprep.subr.bf16.mxu0 %v2635_v17  ;;  %1960 = vperm.xlu0 %2531, %v1957_v16   ;;  %v2703_v17 = vld [vmem:[%s3249_s6 + $0x450] ss:$12 sps:$4 sm:$0xff]   ;;  %v2707_v18 = vld [vmem:[%s3249_s6 + $0x218] ss:$12 sps:$4 sm:$0xff]  }
  0xd0   : > { %1666 = vmatmul.mubr.bf16.vlgmr.msra.gmra.mrb[0].mxu1 %v3325_v20 }
  0xd1   : > { %1707 = vmatmul.mubr.bf16.vlgmr.msra.gmra.mrb[0].mxu0 %v3329_v21  ;;  %2415 = vmatpush3.bf16.msra.mxu1 %v2637_v23  ;;  %v2765_v23 = vmov 1  }
  0xd2   : > { %1716 = vmatpush1.bf16.msra.mxu0 %v2633_v22  ;;  %2416 = vmatprep.subr.bf16.mxu1 %v2641_v25  ;;  %v2711_v22 = vld [vmem:[%s3249_s6 + $0x2f0] ss:$12 sps:$4 sm:$0xff]  }
  0xd3   : > { %1717 = vmatprep.subr.bf16.mxu0 %v2640_v24  ;;  %1829 = vmatprep.mubr.bf16.mxu1 %v3241_v10  ;;  %v2655_v10 = vld [vmem:[%s3249_s6 + $0x364] ss:$12 sps:$4 sm:$0xff]   ;;  %v2708_v24 = vld [vmem:[%s3249_s6 + $0x468] ss:$12 sps:$4 sm:$0xff]  }
  0xd4   : > { %1747 = vmatprep.mubr.bf16.mxu0 %v3338_v8  ;;  %2532 = vset.pattern.permute.xlu0 %v2765_v23  ;;  %v2712_v25 = vld [vmem:[%s3249_s6 + $0x230] ss:$12 sps:$4 sm:$0xff]  }
  0xd5   : > { %2417 = vmatpush3.bf16.msra.mxu1 %v2642_v9  ;;  %1967 = vperm.xlu0 %2532, %v1957_v16   ;;  %v2719_v9 = vld [vmem:[%s3249_s6 + $0x484] ss:$12 sps:$4 sm:$0xff]  }
  0xd6   : > { %1718 = vmatpush1.bf16.msra.mxu0 %v2638_v26  ;;  %2418 = vmatprep.subr.bf16.mxu1 %v2646_v28  ;;  %v2715_v26 = vld [vmem:[%s3249_s6 + $0x3c8] ss:$12 sps:$4 sm:$0xff]  }
  0xd7   : > { %1719 = vmatprep.subr.bf16.mxu0 %v2645_v27  ;;  %v2256_v27 = vcombine.low %v3321_v19, %v3321_v19  ;;  %v2716_v28 = vld [vmem:[%s3249_s6 + $0x308] ss:$12 sps:$4 sm:$0xff]   ;;  %v2725_v19 = vld [vmem:[%s3249_s6 + $0x3f8] ss:$12 sps:$4 sm:$0xff]  }
  0xd9   : > { %2419 = vmatpush3.bf16.msra.mxu1 %v2647_v31  ;;  %v2720_v31 = vld [vmem:[%s3249_s6 + $0x3e0] ss:$12 sps:$4 sm:$0xff]  }
  0xda   : > { %1720 = vmatpush1.bf16.msra.mxu0 %v2643_v29  ;;  %2420 = vmatprep.subr.bf16.mxu1 %v2651_v33  ;;  %v2717_v29 = vld [vmem:[%s3249_s6 + $0x480] ss:$12 sps:$4 sm:$0xff]  }
  0xdb   : > { %1721 = vmatprep.subr.bf16.mxu0 %v2650_v32  ;;  %v2724_v32 = vld [vmem:[%s3249_s6 + $0x49c] ss:$12 sps:$4 sm:$0xff]   ;;  %v2721_v33 = vld [vmem:[%s3249_s6 + $0x320] ss:$12 sps:$4 sm:$0xff]  }
  0xdd   : > { %2421 = vmatpush3.bf16.msra.mxu1 %v2652_v35  ;;  %v2726_v35 = vld [vmem:[%s3249_s6 + $0x338] ss:$12 sps:$4 sm:$0xff]  }
  0xde   : > { %1722 = vmatpush1.bf16.msra.mxu0 %v2648_v34  ;;  %2422 = vmatprep.subr.bf16.mxu1 %v2656_v36  ;;  %v2722_v34 = vld [vmem:[%s3249_s6 + $0x498] ss:$12 sps:$4 sm:$0xff]  }
  0xdf   : > { %1723 = vmatprep.subr.bf16.mxu0 %v2655_v10  ;;  %v2766_v10 = vmov 0.0   ;;  %v2727_v36 = vld [vmem:[%s3453_s0 + $0x18] ss:$0 sps:$4 sm:$0xff]  }
  0xe1   : > { %2423 = vmatpush3.bf16.msra.mxu1 %v2657_v38  ;;  %v2731_v38 = vld [vmem:[%s3249_s6 + $0x368] ss:$12 sps:$4 sm:$0xff]  }
  0xe2   : > { %1724 = vmatpush1.bf16.msra.mxu0 %v2653_v37  ;;  %2424 = vmatprep.subr.bf16.mxu1 %v2661_v40  ;;  %v2736_v37 = vld [vmem:[%s3249_s6 + $0x488] ss:$12 sps:$4 sm:$0xff]   ;;  %v2732_v40 = vld [vmem:[%s3249_s6 + $0x440] ss:$12 sps:$4 sm:$0xff]  }
  0xe3   : > { %1725 = vmatprep.subr.bf16.mxu0 %v2660_v39  ;;  %v2739_v39 = vld [vmem:[%s3249_s6 + $0x4a0] ss:$12 sps:$4 sm:$0xff]  }
  0xe5   : > { %2425 = vmatpush3.bf16.msra.mxu1 %v2662_v42  ;;  %v2734_v42 = vld [vmem:[%s3249_s6 + $0x458] ss:$12 sps:$4 sm:$0xff]  }
  0xe6   : > { %1726 = vmatpush1.bf16.msra.mxu0 %v2658_v41  ;;  %2426 = vmatprep.subr.bf16.mxu1 %v2666_v44  ;;  %v2733_v41 = vld [vmem:[%s3249_s6 + $0x380] ss:$12 sps:$4 sm:$0xff]   ;;  %v2737_v44 = vld [vmem:[%s3249_s6 + $0x470] ss:$12 sps:$4 sm:$0xff]  }
  0xe7   : > { %1727 = vmatprep.subr.bf16.mxu0 %v2665_v43  ;;  %v2735_v43 = vld [vmem:[%s3249_s6 + $0x398] ss:$12 sps:$4 sm:$0xff]  }
  0xe9   : > { %2427 = vmatpush3.bf16.msra.mxu1 %v2667_v46 }
  0xea   : > { %1728 = vmatpush1.bf16.msra.mxu0 %v2663_v45  ;;  %2428 = vmatprep.subr.bf16.mxu1 %v2671_v48  ;;  %v2738_v45 = vld [vmem:[%s3249_s6 + $0x3b0] ss:$12 sps:$4 sm:$0xff]  }
  0xeb   : > { %1729 = vmatprep.subr.bf16.mxu0 %v2670_v47 }
  0xed   : > { %2429 = vmatpush3.bf16.msra.mxu1 %v2672_v50 }
  0xee   : > { %1730 = vmatpush1.bf16.msra.mxu0 %v2668_v49  ;;  %2436 = vmatprep.subr.bf16.mxu1 %v2676_v52 }
  0xef   : > { %1731 = vmatprep.subr.bf16.mxu0 %v2675_v51 }
  0xf0   : > { %1830 = vmatmul.mubr.bf16.vlgmr.msra.gmra.mrb[4].mxu1 %v3325_v20  ;;  %v2710_v20 = vld [vmem:[%s3249_s6 + $0x46c] ss:$12 sps:$4 sm:$0xff]  }
  0xf1   : > { %2437 = vmatpush3.bf16.msra.mxu1 %v2677_v54  ;;  %1869 = vmatprep.mubr.bf16.mxu1 %v3245_v11  ;;  %v2695_v11 = vld [vmem:[%s3249_s6 + $0x424] ss:$12 sps:$4 sm:$0xff]  }
  0xf2   : > { %1732 = vmatpush1.bf16.msra.mxu0 %v2673_v53  ;;  %2438 = vmatprep.subr.bf16.mxu1 %v2681_v56 }
  0xf3   : > { %1733 = vmatprep.subr.bf16.mxu0 %v2680_v55 }
  0xf5   : > { %2439 = vmatpush3.bf16.msra.mxu1 %v2682_v58 }
  0xf6   : > { %1734 = vmatpush1.bf16.msra.mxu0 %v2678_v57  ;;  %2440 = vmatprep.subr.bf16.mxu1 %v2686_v60 }
  0xf7   : > { %1735 = vmatprep.subr.bf16.mxu0 %v2685_v59 }
  0xf9   : > { %2441 = vmatpush3.bf16.msra.mxu1 %v2687_v62 }
  0xfa   : > { %1736 = vmatpush1.bf16.msra.mxu0 %v2683_v61  ;;  %2442 = vmatprep.subr.bf16.mxu1 %v2691_v0 }
  0xfb   : > { %1737 = vmatprep.subr.bf16.mxu0 %v2690_v63 }
  0xfd   : > { %2443 = vmatpush3.bf16.msra.mxu1 %v2692_v2 }
  0xfe   : > { %1738 = vmatpush1.bf16.msra.mxu0 %v2688_v1  ;;  %2444 = vmatprep.subr.bf16.mxu1 %v2696_v3 }
  0xff   : > { %1739 = vmatprep.subr.bf16.mxu0 %v2695_v11 }
 0x101   : > { %2445 = vmatpush3.bf16.msra.mxu1 %v2697_v5 }
 0x102   : > { %1740 = vmatpush1.bf16.msra.mxu0 %v2693_v4  ;;  %2446 = vmatprep.subr.bf16.mxu1 %v2701_v7 }
 0x103   : > { %1741 = vmatprep.subr.bf16.mxu0 %v2700_v6 }
 0x105   : > { %2447 = vmatpush3.bf16.msra.mxu1 %v2702_v13 }
 0x106   : > { %1742 = vmatpush1.bf16.msra.mxu0 %v2698_v12  ;;  %2448 = vmatprep.subr.bf16.mxu1 %v2706_v15 }
 0x107   : > { %1743 = vmatprep.subr.bf16.mxu0 %v2705_v14 }
 0x109   : > { %2449 = vmatpush3.bf16.msra.mxu1 %v2707_v18 }
 0x10a   : > { %1744 = vmatpush1.bf16.msra.mxu0 %v2703_v17  ;;  %2450 = vmatprep.subr.bf16.mxu1 %v2711_v22 }
 0x10b   : > { %1745 = vmatprep.subr.bf16.mxu0 %v2710_v20 }
 0x10d   : > { %2451 = vmatpush3.bf16.msra.mxu1 %v2712_v25 }
 0x10e   : > { %1746 = vmatpush1.bf16.msra.mxu0 %v2708_v24  ;;  %2458 = vmatprep.subr.bf16.mxu1 %v2715_v26 }
 0x10f   : > { %1756 = vmatprep.subr.bf16.mxu0 %v2719_v9 }
 0x110   : > { %1870 = vmatmul.mubr.bf16.vlgmr.msra.gmra.mrb[8].mxu1 %v3329_v21  ;;  %v2728_v21 = vld [vmem:[%s3249_s6 + $0x410] ss:$12 sps:$4 sm:$0xff]  }
 0x111   : > { %1748 = vmatmul.mubr.bf16.vlgmr.msra.gmra.mrb[0].mxu0 %v2256_v27  ;;  %2459 = vmatpush3.bf16.msra.mxu1 %v2716_v28 }
 0x112   : > { %1757 = vmatpush1.bf16.msra.mxu0 %v2717_v29  ;;  %2460 = vmatprep.subr.bf16.mxu1 %v2720_v31 }
 0x113   : > { %1758 = vmatprep.subr.bf16.mxu0 %v2724_v32  ;;  %1788 = vmatprep.mubr.bf16.mxu0 %v2764_v30  ;;  %v2729_v30 = vld [vmem:[%s3249_s6 + $0x350] ss:$12 sps:$4 sm:$0xff]  }
 0x114   : > { %1909 = vmatprep.mubr.bf16.mxu1 %v3338_v8  ;;  %v2730_v8 = vld [vmem:[%s3249_s6 + $0x428] ss:$12 sps:$4 sm:$0xff]  }
 0x115   : > { %2461 = vmatpush3.bf16.msra.mxu1 %v2721_v33 }
 0x116   : > { %1759 = vmatpush1.bf16.msra.mxu0 %v2722_v34  ;;  %2462 = vmatprep.subr.bf16.mxu1 %v2725_v19 }
 0x117   : > { %2483 = vmatprep.subr.bf16.mxu0 %v2766_v10 }
 0x119   : > { %2463 = vmatpush3.bf16.msra.mxu1 %v2726_v35 }
 0x11a   : > { %2464 = vmatprep.subr.bf16.mxu1 %v2728_v21 }
 0x11d   : > { %2409 = vmatmul.mubr.msk.bf16.vlgmr.msra.gmra.mrb[0].mxu0 %vm1629_vm0, %v2727_v36  ;;  %2465 = vmatpush3.bf16.msra.mxu1 %v2729_v30 }
 0x11e   : > { %2484 = vmatpush3.bf16.msra.mxu0 %v2736_v37  ;;  %2466 = vmatprep.subr.bf16.mxu1 %v2730_v8 }
 0x11f   : > { %2485 = vmatprep.subr.bf16.mxu0 %v2766_v10  ;;  %2487 = vmatprep.mubr.msk.bf16.mxu0 %vm2767_vm1, %v2766_v10 }
 0x121   : > { %2467 = vmatpush3.bf16.msra.mxu1 %v2731_v38 }
 0x122   : > { %2486 = vmatpush3.bf16.msra.mxu0 %v2739_v39  ;;  %2468 = vmatprep.subr.bf16.mxu1 %v2732_v40 }
 0x125   : > { %2488 = vmatmul.mubr.msk.bf16.vlgmr.msra.gmra.mrb[4].mxu0 %vm1629_vm0, %v2727_v36  ;;  %2469 = vmatpush3.bf16.msra.mxu1 %v2733_v41 }
 0x126   : > { %2470 = vmatprep.subr.bf16.mxu1 %v2734_v42 }
 0x129   : > { %2471 = vmatpush3.bf16.msra.mxu1 %v2735_v43 }
 0x12a   : > { %2472 = vmatprep.subr.bf16.mxu1 %v2737_v44 }
 0x12d   : > { %2473 = vmatpush3.bf16.msra.mxu1 %v2738_v45 }
 0x130   : > { %1910 = vmatmul.mubr.bf16.vlgmr.msra.gmra.mrb[12].mxu1 %v2256_v27 }
 0x14e   : > { %v1961_v61 = vpop.permute.xlu0 %1960 }
 0x154   : > { %v1968_v11 = vpop.permute.xlu0 %1967 }
 0x1a3   : > { %v1667_v46 = vpop.f32.mrb[0].mxu1 }
 0x1a4   : > { %v1669_v47 = vpop.f32.mrb[1].mxu1 }
 0x1a5   : > { %v1671_v48 = vpop.f32.mrb[2].mxu1 }
 0x1a6   : > { %v1672_v49 = vpop.f32.mrb[3].mxu1 }
 0x1c3   : > { %v2430_v50 = vpop.f32.mrb[4].mxu1 }
 0x1c4   : > { %v2431_v51 = vpop.f32.mrb[5].mxu1 }
 0x1c5   : > { %v2432_v52 = vadd.f32 %v2431_v51, %v2430_v50  ;;  %v2433_v53 = vpop.f32.mrb[6].mxu1 }
 0x1c6   : > { %v2434_v54 = vpop.f32.mrb[7].mxu1 }
 0x1e3   : > { %v2452_v55 = vpop.f32.mrb[8].mxu1 }
 0x1e4   : > { %v2453_v56 = vpop.f32.mrb[9].mxu1 }
 0x1e5   : > { %v2454_v57 = vadd.f32 %v2453_v56, %v2452_v55  ;;  %v2455_v58 = vpop.f32.mrb[10].mxu1 }
 0x1e6   : > { %v2456_v59 = vpop.f32.mrb[11].mxu1 }
 0x1e7   : > { %v1872_v60 = vadd.f32 %v2454_v57, %v2432_v52 }
 0x1f0   : > { %v1790_v62 = vpop.f32.mrb[0].mxu0 }
 0x1f1   : > { %v2491_v63 = vadd.f32 %v1790_v62, %v1667_v46  ;;  %v1792_v0 = vpop.f32.mrb[1].mxu0 }
 0x1f2   : > { %v2492_v1 = vadd.f32 %v1792_v0, %v1669_v47  ;;  %v1794_v2 = vpop.f32.mrb[2].mxu0 }
 0x1f3   : > { %v1963_v3 = vmul.f32 %v2491_v63, %v1961_v61  ;;  %v1795_v4 = vpop.f32.mrb[3].mxu0 }
 0x1f4   : > { %v1964_v5 = vmul.f32 %v2492_v1, %v1961_v61 }
 0x1f5   : > { %v1970_v6 = vadd.f32 %v1968_v11, %v1963_v3 }
 0x1f6   : > { %v1971_v7 = vadd.f32 %v1968_v11, %v1964_v5 }
 0x1f7   : > { %v1973_v12 = vmax.f32 %v1970_v6, 0.0 }
 0x1f8   : > { %v1974_v13 = vmax.f32 %v1971_v7, 0.0  ;;  %v1951_v14 = vpop.f32.mrb[4].mxu0 }
 0x1f9   : > { %1976 = vst [vmem:[%s598_s14] sm:$0xff] %v1973_v12  ;;  %v2489_v15 = vpop.f32.mrb[5].mxu0 }
 0x1fa   : > { %1977 = vst [vmem:[%s598_s14 + $0x8] sm:$0xff] %v1974_v13  ;;  %v1954_v16 = vpop.f32.mrb[6].mxu0 }
 0x1fb   : > { %v2490_v17 = vpop.f32.mrb[7].mxu0 }
 0x203   : > { %v2474_v18 = vpop.f32.mrb[12].mxu1 }
 0x204   : > { %v2475_v20 = vpop.f32.mrb[13].mxu1 }
 0x205   : > { %v2476_v22 = vadd.f32 %v2475_v20, %v2474_v18  ;;  %v2477_v23 = vpop.f32.mrb[14].mxu1 }
 0x206   : > { %v2478_v24 = vpop.f32.mrb[15].mxu1 }
 0x207   : > { %v1912_v25 = vadd.f32 %v2476_v22, %v1872_v60 }
 0x209   : > { %v1952_v26 = vadd.f32 %v1951_v14, %v1912_v25 }
 0x20b   : > { %v1965_v9 = vmul.f32 %v1961_v61, %v1952_v26 }
 0x20d   : > { %v1972_v27 = vadd.f32 %v1968_v11, %v1965_v9 }
 0x20f   : > { %v1975_v28 = vmax.f32 %v1972_v27, 0.0 }
 0x211   : > { %1978 = vst [vmem:[%s598_s14 + $0x10] sm:$0xff] %v1975_v28 }
 0x212 PF: > { %p10_p9 = scmp.ge.s32.totalorder %s2805_s16, 4   ;;  %s3457_s12 = smov %s2758_s13 }
 0x213   : > { %s3458_s13 = smov %s2814_s19  ;;  %s3459_s14 = smov %s2805_s16 }
 0x214   :  { %12 = sbr.rel (!%p10_p9) target bundleno = 2 (0x2), region = 99 }

// kernel: netG_forward.23
= control target key start
LH: loop header
LB: loop body
LE: loop exit
PB: predicated region body
PF: predicated region fallthrough
CT: control target
= control target key end

     0   :  { %s4280_s12 = smov 0   ;;  %s4282_s13 = smov 0   ;;  %s5361_s0 = inlined_call_operand.vmem [shape: bf16[1,416], index: 0, kind: input, shape index: {}]   ;;  %s5362_s1 = inlined_call_operand.vmem [shape: bf16[416,2816], index: 1, kind: input, shape index: {}]   ;;  %s5363_s2 = inlined_call_operand.vmem [shape: f32[1,2], index: 2, kind: input, shape index: {}]   ;;  %s5364_s3 = inlined_call_operand.vmem [shape: f32[1,2816], index: 3, kind: output, shape index: {}]  }
   0x1   :  { %s4284_s14 = smov 0  }
   0x2 LB: > { %s3316_s15 = sadd.s32 4294967295, %s4255_s14   ;;  %s4297_s16 = sadd.s32 1, %s4255_s14   ;;  %s4255_s14 = sphi %s4284_s14, %s5367_s14   ;;  %s4251_s13 = sphi %s4282_s13, %s5366_s13   ;;  %s4247_s12 = sphi %s4280_s12, %s5365_s12  }
   0x3   : > { %s38_s17 = ssub.s32 %s4255_s14, %s4297_s16  ;;  %s41_s18 = sadd.s32 1, %s4251_s13 }
   0x4   : > { %p39_p0 = scmp.eq.s32.totalorder %s38_s17, 0  ;;  %p48_p1 = scmp.ne.s32.totalorder %s4251_s13, %s4247_s12 }
   0x5   : > { %p49_p2 = scmp.eq.s32.totalorder %s4255_s14, 0  ;;  %p3319_p4 = scmp.ge.s32.totalorder %s4255_s14, 2 }
   0x6   : > { %s4306_s19 = scalar_select %p39_p0, %s4251_s13, %s41_s18  }
   0x7   : > { %p50_p3 = por %p49_p2, %p48_p1  ;;  %127 = sbr.rel (%p3319_p4) target bundleno = 183 (0xb7), region = 24 }
   0xe   : > { %130 = sbr.rel (!%p50_p3) target bundleno = 183 (0xb7), region = 28  ;;  %s132_s20 = sand.u32 (%p50_p3), 1, %s4251_s13  }
   0xf   : > { %s3721_s21 = smul.u32 (%p50_p3), 44, %s4255_s14 }
  0x10   : > { %s3764_s22 = smul.u32 (%p50_p3), 2288, %s132_s20 }
  0x11   : > { %s4314_s25 = scalar_lea.vmem (%p50_p3), %s5362_s1, %s3721_s21 }
  0x12   : > { %v152_v0 = vld [vmem:[%s4314_s25] sm:$0xff] (%p50_p3)  ;;  %v154_v1 = vld [vmem:[%s4314_s25 + $0x8] sm:$0xff] (%p50_p3)  ;;  %v156_v2 = vld [vmem:[%s4314_s25 + $0x10] sm:$0xff] (%p50_p3)  ;;  %s4319_s26 = scalar_lea.vmem (%p50_p3), [#allocation2], %s3764_s22 }
  0x13   : > { %153 = vst [vmem:[%s4319_s26] sm:$0xff] (%p50_p3), %v152_v0  ;;  %155 = vst [vmem:[%s4319_s26 + $0x8] sm:$0xff] (%p50_p3), %v154_v1  ;;  %v158_v3 = vld [vmem:[%s4314_s25 + $0x18] sm:$0xff] (%p50_p3)  ;;  %v160_v4 = vld [vmem:[%s4314_s25 + $0x20] sm:$0xff] (%p50_p3) }
  0x14   : > { %157 = vst [vmem:[%s4319_s26 + $0x10] sm:$0xff] (%p50_p3), %v156_v2  ;;  %v162_v5 = vld [vmem:[%s4314_s25 + $0x58] sm:$0xff] (%p50_p3)  ;;  %159 = vst [vmem:[%s4319_s26 + $0x18] sm:$0xff] (%p50_p3), %v158_v3  ;;  %v164_v6 = vld [vmem:[%s4314_s25 + $0x60] sm:$0xff] (%p50_p3) }
  0x15   : > { %161 = vst [vmem:[%s4319_s26 + $0x20] sm:$0xff] %v160_v4  ;;  %163 = vst [vmem:[%s4319_s26 + $0x2c] sm:$0xff] %v162_v5  ;;  %v166_v7 = vld [vmem:[%s4314_s25 + $0x68] sm:$0xff]  ;;  %v168_v8 = vld [vmem:[%s4314_s25 + $0x70] sm:$0xff] }
  0x16   : > { %165 = vst [vmem:[%s4319_s26 + $0x34] sm:$0xff] %v164_v6  ;;  %167 = vst [vmem:[%s4319_s26 + $0x3c] sm:$0xff] %v166_v7  ;;  %v170_v9 = vld [vmem:[%s4314_s25 + $0x78] sm:$0xff]  ;;  %v172_v10 = vld [vmem:[%s4314_s25 + $0xb0] sm:$0xff] }
  0x17   : > { %169 = vst [vmem:[%s4319_s26 + $0x44] sm:$0xff] %v168_v8  ;;  %v174_v11 = vld [vmem:[%s4314_s25 + $0xb8] sm:$0xff]  ;;  %171 = vst [vmem:[%s4319_s26 + $0x4c] sm:$0xff] %v170_v9  ;;  %v176_v12 = vld [vmem:[%s4314_s25 + $0xc0] sm:$0xff] }
  0x18   : > { %173 = vst [vmem:[%s4319_s26 + $0x58] sm:$0xff] %v172_v10  ;;  %175 = vst [vmem:[%s4319_s26 + $0x60] sm:$0xff] %v174_v11  ;;  %v178_v13 = vld [vmem:[%s4314_s25 + $0xc8] sm:$0xff]  ;;  %v180_v14 = vld [vmem:[%s4314_s25 + $0xd0] sm:$0xff] }
  0x19   : > { %177 = vst [vmem:[%s4319_s26 + $0x68] sm:$0xff] %v176_v12  ;;  %179 = vst [vmem:[%s4319_s26 + $0x70] sm:$0xff] %v178_v13  ;;  %v182_v15 = vld [vmem:[%s4314_s25 + $0x108] sm:$0xff]  ;;  %v184_v16 = vld [vmem:[%s4314_s25 + $0x110] sm:$0xff] }
  0x1a   : > { %181 = vst [vmem:[%s4319_s26 + $0x78] sm:$0xff] %v180_v14  ;;  %v186_v17 = vld [vmem:[%s4314_s25 + $0x118] sm:$0xff]  ;;  %183 = vst [vmem:[%s4319_s26 + $0x84] sm:$0xff] %v182_v15  ;;  %v188_v18 = vld [vmem:[%s4314_s25 + $0x120] sm:$0xff] }
  0x1b   : > { %185 = vst [vmem:[%s4319_s26 + $0x8c] sm:$0xff] %v184_v16  ;;  %187 = vst [vmem:[%s4319_s26 + $0x94] sm:$0xff] %v186_v17  ;;  %v190_v19 = vld [vmem:[%s4314_s25 + $0x128] sm:$0xff]  ;;  %v192_v20 = vld [vmem:[%s4314_s25 + $0x160] sm:$0xff] }
  0x1c   : > { %189 = vst [vmem:[%s4319_s26 + $0x9c] sm:$0xff] %v188_v18  ;;  %191 = vst [vmem:[%s4319_s26 + $0xa4] sm:$0xff] %v190_v19  ;;  %v194_v21 = vld [vmem:[%s4314_s25 + $0x168] sm:$0xff]  ;;  %v196_v22 = vld [vmem:[%s4314_s25 + $0x170] sm:$0xff] }
  0x1d   : > { %193 = vst [vmem:[%s4319_s26 + $0xb0] sm:$0xff] %v192_v20  ;;  %v198_v23 = vld [vmem:[%s4314_s25 + $0x178] sm:$0xff]  ;;  %195 = vst [vmem:[%s4319_s26 + $0xb8] sm:$0xff] %v194_v21  ;;  %v200_v24 = vld [vmem:[%s4314_s25 + $0x180] sm:$0xff] }
  0x1e   : > { %197 = vst [vmem:[%s4319_s26 + $0xc0] sm:$0xff] %v196_v22  ;;  %199 = vst [vmem:[%s4319_s26 + $0xc8] sm:$0xff] %v198_v23  ;;  %v202_v25 = vld [vmem:[%s4314_s25 + $0x1b8] sm:$0xff]  ;;  %v204_v26 = vld [vmem:[%s4314_s25 + $0x1c0] sm:$0xff] }
  0x1f   : > { %201 = vst [vmem:[%s4319_s26 + $0xd0] sm:$0xff] %v200_v24  ;;  %203 = vst [vmem:[%s4319_s26 + $0xdc] sm:$0xff] %v202_v25  ;;  %v206_v27 = vld [vmem:[%s4314_s25 + $0x1c8] sm:$0xff]  ;;  %v208_v28 = vld [vmem:[%s4314_s25 + $0x1d0] sm:$0xff] }
  0x20   : > { %205 = vst [vmem:[%s4319_s26 + $0xe4] sm:$0xff] %v204_v26  ;;  %v210_v29 = vld [vmem:[%s4314_s25 + $0x1d8] sm:$0xff]  ;;  %207 = vst [vmem:[%s4319_s26 + $0xec] sm:$0xff] %v206_v27  ;;  %v212_v30 = vld [vmem:[%s4314_s25 + $0x210] sm:$0xff] }
  0x21   : > { %209 = vst [vmem:[%s4319_s26 + $0xf4] sm:$0xff] %v208_v28  ;;  %211 = vst [vmem:[%s4319_s26 + $0xfc] sm:$0xff] %v210_v29  ;;  %v214_v31 = vld [vmem:[%s4314_s25 + $0x218] sm:$0xff]  ;;  %v216_v32 = vld [vmem:[%s4314_s25 + $0x220] sm:$0xff] }
  0x22   : > { %213 = vst [vmem:[%s4319_s26 + $0x108] sm:$0xff] %v212_v30  ;;  %215 = vst [vmem:[%s4319_s26 + $0x110] sm:$0xff] %v214_v31  ;;  %v218_v33 = vld [vmem:[%s4314_s25 + $0x228] sm:$0xff]  ;;  %v220_v34 = vld [vmem:[%s4314_s25 + $0x230] sm:$0xff] }
  0x23   : > { %217 = vst [vmem:[%s4319_s26 + $0x118] sm:$0xff] %v216_v32  ;;  %v222_v35 = vld [vmem:[%s4314_s25 + $0x268] sm:$0xff]  ;;  %219 = vst [vmem:[%s4319_s26 + $0x120] sm:$0xff] %v218_v33  ;;  %v224_v36 = vld [vmem:[%s4314_s25 + $0x270] sm:$0xff] }
  0x24   : > { %221 = vst [vmem:[%s4319_s26 + $0x128] sm:$0xff] %v220_v34  ;;  %223 = vst [vmem:[%s4319_s26 + $0x134] sm:$0xff] %v222_v35  ;;  %v226_v37 = vld [vmem:[%s4314_s25 + $0x278] sm:$0xff]  ;;  %v228_v38 = vld [vmem:[%s4314_s25 + $0x280] sm:$0xff] }
  0x25   : > { %225 = vst [vmem:[%s4319_s26 + $0x13c] sm:$0xff] %v224_v36  ;;  %227 = vst [vmem:[%s4319_s26 + $0x144] sm:$0xff] %v226_v37  ;;  %v230_v39 = vld [vmem:[%s4314_s25 + $0x288] sm:$0xff]  ;;  %v232_v40 = vld [vmem:[%s4314_s25 + $0x2c0] sm:$0xff] }
  0x26   : > { %229 = vst [vmem:[%s4319_s26 + $0x14c] sm:$0xff] %v228_v38  ;;  %v234_v41 = vld [vmem:[%s4314_s25 + $0x2c8] sm:$0xff]  ;;  %231 = vst [vmem:[%s4319_s26 + $0x154] sm:$0xff] %v230_v39  ;;  %v236_v42 = vld [vmem:[%s4314_s25 + $0x2d0] sm:$0xff] }
  0x27   : > { %233 = vst [vmem:[%s4319_s26 + $0x160] sm:$0xff] %v232_v40  ;;  %235 = vst [vmem:[%s4319_s26 + $0x168] sm:$0xff] %v234_v41  ;;  %v238_v43 = vld [vmem:[%s4314_s25 + $0x2d8] sm:$0xff]  ;;  %v240_v44 = vld [vmem:[%s4314_s25 + $0x2e0] sm:$0xff] }
  0x28   : > { %237 = vst [vmem:[%s4319_s26 + $0x170] sm:$0xff] %v236_v42  ;;  %239 = vst [vmem:[%s4319_s26 + $0x178] sm:$0xff] %v238_v43  ;;  %v242_v45 = vld [vmem:[%s4314_s25 + $0x318] sm:$0xff]  ;;  %v244_v46 = vld [vmem:[%s4314_s25 + $0x320] sm:$0xff] }
  0x29   : > { %241 = vst [vmem:[%s4319_s26 + $0x180] sm:$0xff] %v240_v44  ;;  %v246_v47 = vld [vmem:[%s4314_s25 + $0x328] sm:$0xff]  ;;  %243 = vst [vmem:[%s4319_s26 + $0x18c] sm:$0xff] %v242_v45  ;;  %v248_v48 = vld [vmem:[%s4314_s25 + $0x330] sm:$0xff] }
  0x2a   : > { %245 = vst [vmem:[%s4319_s26 + $0x194] sm:$0xff] %v244_v46  ;;  %247 = vst [vmem:[%s4319_s26 + $0x19c] sm:$0xff] %v246_v47  ;;  %v250_v49 = vld [vmem:[%s4314_s25 + $0x338] sm:$0xff]  ;;  %v252_v50 = vld [vmem:[%s4314_s25 + $0x370] sm:$0xff] }
  0x2b   : > { %249 = vst [vmem:[%s4319_s26 + $0x1a4] sm:$0xff] %v248_v48  ;;  %251 = vst [vmem:[%s4319_s26 + $0x1ac] sm:$0xff] %v250_v49  ;;  %v254_v51 = vld [vmem:[%s4314_s25 + $0x378] sm:$0xff]  ;;  %v256_v52 = vld [vmem:[%s4314_s25 + $0x380] sm:$0xff] }
  0x2c   : > { %253 = vst [vmem:[%s4319_s26 + $0x1b8] sm:$0xff] %v252_v50  ;;  %v258_v53 = vld [vmem:[%s4314_s25 + $0x388] sm:$0xff]  ;;  %255 = vst [vmem:[%s4319_s26 + $0x1c0] sm:$0xff] %v254_v51  ;;  %v260_v54 = vld [vmem:[%s4314_s25 + $0x390] sm:$0xff] }
  0x2d   : > { %257 = vst [vmem:[%s4319_s26 + $0x1c8] sm:$0xff] %v256_v52  ;;  %259 = vst [vmem:[%s4319_s26 + $0x1d0] sm:$0xff] %v258_v53  ;;  %v262_v55 = vld [vmem:[%s4314_s25 + $0x3c8] sm:$0xff]  ;;  %v264_v56 = vld [vmem:[%s4314_s25 + $0x3d0] sm:$0xff] }
  0x2e   : > { %261 = vst [vmem:[%s4319_s26 + $0x1d8] sm:$0xff] %v260_v54  ;;  %263 = vst [vmem:[%s4319_s26 + $0x1e4] sm:$0xff] %v262_v55  ;;  %v266_v57 = vld [vmem:[%s4314_s25 + $0x3d8] sm:$0xff]  ;;  %v268_v58 = vld [vmem:[%s4314_s25 + $0x3e0] sm:$0xff] }
  0x2f   : > { %265 = vst [vmem:[%s4319_s26 + $0x1ec] sm:$0xff] %v264_v56  ;;  %v270_v59 = vld [vmem:[%s4314_s25 + $0x3e8] sm:$0xff]  ;;  %267 = vst [vmem:[%s4319_s26 + $0x1f4] sm:$0xff] %v266_v57  ;;  %v272_v60 = vld [vmem:[%s4314_s25 + $0x420] sm:$0xff] }
  0x30   : > { %269 = vst [vmem:[%s4319_s26 + $0x1fc] sm:$0xff] %v268_v58  ;;  %271 = vst [vmem:[%s4319_s26 + $0x204] sm:$0xff] %v270_v59  ;;  %v274_v61 = vld [vmem:[%s4314_s25 + $0x428] sm:$0xff]  ;;  %v276_v62 = vld [vmem:[%s4314_s25 + $0x430] sm:$0xff] }
  0x31   : > { %273 = vst [vmem:[%s4319_s26 + $0x210] sm:$0xff] %v272_v60  ;;  %275 = vst [vmem:[%s4319_s26 + $0x218] sm:$0xff] %v274_v61  ;;  %v278_v63 = vld [vmem:[%s4314_s25 + $0x438] sm:$0xff]  ;;  %v280_v0 = vld [vmem:[%s4314_s25 + $0x440] sm:$0xff] }
  0x32   : > { %277 = vst [vmem:[%s4319_s26 + $0x220] sm:$0xff] %v276_v62  ;;  %v282_v1 = vld [vmem:[%s4314_s25 + $0x478] sm:$0xff]  ;;  %279 = vst [vmem:[%s4319_s26 + $0x228] sm:$0xff] %v278_v63  ;;  %v284_v2 = vld [vmem:[%s4314_s25 + $0x480] sm:$0xff] }
  0x33   : > { %281 = vst [vmem:[%s4319_s26 + $0x230] sm:$0xff] %v280_v0  ;;  %283 = vst [vmem:[%s4319_s26 + $0x23c] sm:$0xff] %v282_v1  ;;  %v286_v3 = vld [vmem:[%s4314_s25 + $0x488] sm:$0xff]  ;;  %v288_v4 = vld [vmem:[%s4314_s25 + $0x490] sm:$0xff] }
  0x34   : > { %285 = vst [vmem:[%s4319_s26 + $0x244] sm:$0xff] %v284_v2  ;;  %287 = vst [vmem:[%s4319_s26 + $0x24c] sm:$0xff] %v286_v3  ;;  %v290_v5 = vld [vmem:[%s4314_s25 + $0x498] sm:$0xff]  ;;  %v292_v6 = vld [vmem:[%s4314_s25 + $0x4d0] sm:$0xff] }
  0x35   : > { %289 = vst [vmem:[%s4319_s26 + $0x254] sm:$0xff] %v288_v4  ;;  %v294_v7 = vld [vmem:[%s4314_s25 + $0x4d8] sm:$0xff]  ;;  %291 = vst [vmem:[%s4319_s26 + $0x25c] sm:$0xff] %v290_v5  ;;  %v296_v8 = vld [vmem:[%s4314_s25 + $0x4e0] sm:$0xff] }
  0x36   : > { %293 = vst [vmem:[%s4319_s26 + $0x268] sm:$0xff] %v292_v6  ;;  %295 = vst [vmem:[%s4319_s26 + $0x270] sm:$0xff] %v294_v7  ;;  %v298_v9 = vld [vmem:[%s4314_s25 + $0x4e8] sm:$0xff]  ;;  %v300_v10 = vld [vmem:[%s4314_s25 + $0x4f0] sm:$0xff] }
  0x37   : > { %297 = vst [vmem:[%s4319_s26 + $0x278] sm:$0xff] %v296_v8  ;;  %299 = vst [vmem:[%s4319_s26 + $0x280] sm:$0xff] %v298_v9  ;;  %v302_v11 = vld [vmem:[%s4314_s25 + $0x528] sm:$0xff]  ;;  %v304_v12 = vld [vmem:[%s4314_s25 + $0x530] sm:$0xff] }
  0x38   : > { %301 = vst [vmem:[%s4319_s26 + $0x288] sm:$0xff] %v300_v10  ;;  %v306_v13 = vld [vmem:[%s4314_s25 + $0x538] sm:$0xff]  ;;  %303 = vst [vmem:[%s4319_s26 + $0x294] sm:$0xff] %v302_v11  ;;  %v308_v14 = vld [vmem:[%s4314_s25 + $0x540] sm:$0xff] }
  0x39   : > { %305 = vst [vmem:[%s4319_s26 + $0x29c] sm:$0xff] %v304_v12  ;;  %307 = vst [vmem:[%s4319_s26 + $0x2a4] sm:$0xff] %v306_v13  ;;  %v310_v15 = vld [vmem:[%s4314_s25 + $0x548] sm:$0xff]  ;;  %v312_v16 = vld [vmem:[%s4314_s25 + $0x580] sm:$0xff] }
  0x3a   : > { %309 = vst [vmem:[%s4319_s26 + $0x2ac] sm:$0xff] %v308_v14  ;;  %311 = vst [vmem:[%s4319_s26 + $0x2b4] sm:$0xff] %v310_v15  ;;  %v314_v17 = vld [vmem:[%s4314_s25 + $0x588] sm:$0xff]  ;;  %v316_v18 = vld [vmem:[%s4314_s25 + $0x590] sm:$0xff] }
  0x3b   : > { %313 = vst [vmem:[%s4319_s26 + $0x2c0] sm:$0xff] %v312_v16  ;;  %v318_v19 = vld [vmem:[%s4314_s25 + $0x598] sm:$0xff]  ;;  %315 = vst [vmem:[%s4319_s26 + $0x2c8] sm:$0xff] %v314_v17  ;;  %v320_v20 = vld [vmem:[%s4314_s25 + $0x5a0] sm:$0xff] }
  0x3c   : > { %317 = vst [vmem:[%s4319_s26 + $0x2d0] sm:$0xff] %v316_v18  ;;  %319 = vst [vmem:[%s4319_s26 + $0x2d8] sm:$0xff] %v318_v19  ;;  %v322_v21 = vld [vmem:[%s4314_s25 + $0x5d8] sm:$0xff]  ;;  %v324_v22 = vld [vmem:[%s4314_s25 + $0x5e0] sm:$0xff] }
  0x3d   : > { %321 = vst [vmem:[%s4319_s26 + $0x2e0] sm:$0xff] %v320_v20  ;;  %323 = vst [vmem:[%s4319_s26 + $0x2ec] sm:$0xff] %v322_v21  ;;  %v326_v23 = vld [vmem:[%s4314_s25 + $0x5e8] sm:$0xff]  ;;  %v328_v24 = vld [vmem:[%s4314_s25 + $0x5f0] sm:$0xff] }
  0x3e   : > { %325 = vst [vmem:[%s4319_s26 + $0x2f4] sm:$0xff] %v324_v22  ;;  %v330_v25 = vld [vmem:[%s4314_s25 + $0x5f8] sm:$0xff]  ;;  %327 = vst [vmem:[%s4319_s26 + $0x2fc] sm:$0xff] %v326_v23  ;;  %v332_v26 = vld [vmem:[%s4314_s25 + $0x630] sm:$0xff] }
  0x3f   : > { %329 = vst [vmem:[%s4319_s26 + $0x304] sm:$0xff] %v328_v24  ;;  %331 = vst [vmem:[%s4319_s26 + $0x30c] sm:$0xff] %v330_v25  ;;  %v334_v27 = vld [vmem:[%s4314_s25 + $0x638] sm:$0xff]  ;;  %v336_v28 = vld [vmem:[%s4314_s25 + $0x640] sm:$0xff] }
  0x40   : > { %333 = vst [vmem:[%s4319_s26 + $0x318] sm:$0xff] %v332_v26  ;;  %335 = vst [vmem:[%s4319_s26 + $0x320] sm:$0xff] %v334_v27  ;;  %v338_v29 = vld [vmem:[%s4314_s25 + $0x648] sm:$0xff]  ;;  %v340_v30 = vld [vmem:[%s4314_s25 + $0x650] sm:$0xff] }
  0x41   : > { %337 = vst [vmem:[%s4319_s26 + $0x328] sm:$0xff] %v336_v28  ;;  %v342_v31 = vld [vmem:[%s4314_s25 + $0x688] sm:$0xff]  ;;  %339 = vst [vmem:[%s4319_s26 + $0x330] sm:$0xff] %v338_v29  ;;  %v344_v32 = vld [vmem:[%s4314_s25 + $0x690] sm:$0xff] }
  0x42   : > { %341 = vst [vmem:[%s4319_s26 + $0x338] sm:$0xff] %v340_v30  ;;  %343 = vst [vmem:[%s4319_s26 + $0x344] sm:$0xff] %v342_v31  ;;  %v346_v33 = vld [vmem:[%s4314_s25 + $0x698] sm:$0xff]  ;;  %v348_v34 = vld [vmem:[%s4314_s25 + $0x6a0] sm:$0xff] }
  0x43   : > { %345 = vst [vmem:[%s4319_s26 + $0x34c] sm:$0xff] %v344_v32  ;;  %347 = vst [vmem:[%s4319_s26 + $0x354] sm:$0xff] %v346_v33  ;;  %v350_v35 = vld [vmem:[%s4314_s25 + $0x6a8] sm:$0xff]  ;;  %v352_v36 = vld [vmem:[%s4314_s25 + $0x6e0] sm:$0xff] }
  0x44   : > { %349 = vst [vmem:[%s4319_s26 + $0x35c] sm:$0xff] %v348_v34  ;;  %v354_v37 = vld [vmem:[%s4314_s25 + $0x6e8] sm:$0xff]  ;;  %351 = vst [vmem:[%s4319_s26 + $0x364] sm:$0xff] %v350_v35  ;;  %v356_v38 = vld [vmem:[%s4314_s25 + $0x6f0] sm:$0xff] }
  0x45   : > { %353 = vst [vmem:[%s4319_s26 + $0x370] sm:$0xff] %v352_v36  ;;  %355 = vst [vmem:[%s4319_s26 + $0x378] sm:$0xff] %v354_v37  ;;  %v358_v39 = vld [vmem:[%s4314_s25 + $0x6f8] sm:$0xff]  ;;  %v360_v40 = vld [vmem:[%s4314_s25 + $0x700] sm:$0xff] }
  0x46   : > { %357 = vst [vmem:[%s4319_s26 + $0x380] sm:$0xff] %v356_v38  ;;  %359 = vst [vmem:[%s4319_s26 + $0x388] sm:$0xff] %v358_v39  ;;  %v362_v41 = vld [vmem:[%s4314_s25 + $0x738] sm:$0xff]  ;;  %v364_v42 = vld [vmem:[%s4314_s25 + $0x740] sm:$0xff] }
  0x47   : > { %361 = vst [vmem:[%s4319_s26 + $0x390] sm:$0xff] %v360_v40  ;;  %v366_v43 = vld [vmem:[%s4314_s25 + $0x748] sm:$0xff]  ;;  %363 = vst [vmem:[%s4319_s26 + $0x39c] sm:$0xff] %v362_v41  ;;  %v368_v44 = vld [vmem:[%s4314_s25 + $0x750] sm:$0xff] }
  0x48   : > { %365 = vst [vmem:[%s4319_s26 + $0x3a4] sm:$0xff] %v364_v42  ;;  %367 = vst [vmem:[%s4319_s26 + $0x3ac] sm:$0xff] %v366_v43  ;;  %v370_v45 = vld [vmem:[%s4314_s25 + $0x758] sm:$0xff]  ;;  %v372_v46 = vld [vmem:[%s4314_s25 + $0x790] sm:$0xff] }
  0x49   : > { %369 = vst [vmem:[%s4319_s26 + $0x3b4] sm:$0xff] %v368_v44  ;;  %371 = vst [vmem:[%s4319_s26 + $0x3bc] sm:$0xff] %v370_v45  ;;  %v374_v47 = vld [vmem:[%s4314_s25 + $0x798] sm:$0xff]  ;;  %v376_v48 = vld [vmem:[%s4314_s25 + $0x7a0] sm:$0xff] }
  0x4a   : > { %373 = vst [vmem:[%s4319_s26 + $0x3c8] sm:$0xff] %v372_v46  ;;  %v378_v49 = vld [vmem:[%s4314_s25 + $0x7a8] sm:$0xff]  ;;  %375 = vst [vmem:[%s4319_s26 + $0x3d0] sm:$0xff] %v374_v47  ;;  %v380_v50 = vld [vmem:[%s4314_s25 + $0x7b0] sm:$0xff] }
  0x4b   : > { %377 = vst [vmem:[%s4319_s26 + $0x3d8] sm:$0xff] %v376_v48  ;;  %379 = vst [vmem:[%s4319_s26 + $0x3e0] sm:$0xff] %v378_v49  ;;  %v382_v51 = vld [vmem:[%s4314_s25 + $0x7e8] sm:$0xff]  ;;  %v384_v52 = vld [vmem:[%s4314_s25 + $0x7f0] sm:$0xff] }
  0x4c   : > { %381 = vst [vmem:[%s4319_s26 + $0x3e8] sm:$0xff] %v380_v50  ;;  %383 = vst [vmem:[%s4319_s26 + $0x3f4] sm:$0xff] %v382_v51  ;;  %v386_v53 = vld [vmem:[%s4314_s25 + $0x7f8] sm:$0xff]  ;;  %v388_v54 = vld [vmem:[%s4314_s25 + $0x800] sm:$0xff] }
  0x4d   : > { %385 = vst [vmem:[%s4319_s26 + $0x3fc] sm:$0xff] %v384_v52  ;;  %v390_v55 = vld [vmem:[%s4314_s25 + $0x808] sm:$0xff]  ;;  %387 = vst [vmem:[%s4319_s26 + $0x404] sm:$0xff] %v386_v53  ;;  %v392_v56 = vld [vmem:[%s4314_s25 + $0x840] sm:$0xff] }
  0x4e   : > { %389 = vst [vmem:[%s4319_s26 + $0x40c] sm:$0xff] %v388_v54  ;;  %391 = vst [vmem:[%s4319_s26 + $0x414] sm:$0xff] %v390_v55  ;;  %v394_v57 = vld [vmem:[%s4314_s25 + $0x848] sm:$0xff]  ;;  %v396_v58 = vld [vmem:[%s4314_s25 + $0x850] sm:$0xff] }
  0x4f   : > { %393 = vst [vmem:[%s4319_s26 + $0x420] sm:$0xff] %v392_v56  ;;  %395 = vst [vmem:[%s4319_s26 + $0x428] sm:$0xff] %v394_v57  ;;  %v398_v59 = vld [vmem:[%s4314_s25 + $0x858] sm:$0xff]  ;;  %v400_v60 = vld [vmem:[%s4314_s25 + $0x860] sm:$0xff] }
  0x50   : > { %397 = vst [vmem:[%s4319_s26 + $0x430] sm:$0xff] %v396_v58  ;;  %v402_v61 = vld [vmem:[%s4314_s25 + $0x898] sm:$0xff]  ;;  %399 = vst [vmem:[%s4319_s26 + $0x438] sm:$0xff] %v398_v59  ;;  %v404_v62 = vld [vmem:[%s4314_s25 + $0x8a0] sm:$0xff] }
  0x51   : > { %401 = vst [vmem:[%s4319_s26 + $0x440] sm:$0xff] %v400_v60  ;;  %403 = vst [vmem:[%s4319_s26 + $0x44c] sm:$0xff] %v402_v61  ;;  %v406_v63 = vld [vmem:[%s4314_s25 + $0x8a8] sm:$0xff]  ;;  %v408_v0 = vld [vmem:[%s4314_s25 + $0x8b0] sm:$0xff] }
  0x52   : > { %405 = vst [vmem:[%s4319_s26 + $0x454] sm:$0xff] %v404_v62  ;;  %407 = vst [vmem:[%s4319_s26 + $0x45c] sm:$0xff] %v406_v63  ;;  %v410_v1 = vld [vmem:[%s4314_s25 + $0x8b8] sm:$0xff]  ;;  %v412_v2 = vld [vmem:[%s4314_s25 + $0x8f0] sm:$0xff] }
  0x53   : > { %409 = vst [vmem:[%s4319_s26 + $0x464] sm:$0xff] %v408_v0  ;;  %v414_v3 = vld [vmem:[%s4314_s25 + $0x8f8] sm:$0xff]  ;;  %411 = vst [vmem:[%s4319_s26 + $0x46c] sm:$0xff] %v410_v1  ;;  %v416_v4 = vld [vmem:[%s4314_s25 + $0x900] sm:$0xff] }
  0x54   : > { %413 = vst [vmem:[%s4319_s26 + $0x478] sm:$0xff] %v412_v2  ;;  %415 = vst [vmem:[%s4319_s26 + $0x480] sm:$0xff] %v414_v3  ;;  %v418_v5 = vld [vmem:[%s4314_s25 + $0x908] sm:$0xff]  ;;  %v420_v6 = vld [vmem:[%s4314_s25 + $0x910] sm:$0xff] }
  0x55   : > { %417 = vst [vmem:[%s4319_s26 + $0x488] sm:$0xff] %v416_v4  ;;  %419 = vst [vmem:[%s4319_s26 + $0x490] sm:$0xff] %v418_v5  ;;  %v422_v7 = vld [vmem:[%s4314_s25 + $0x948] sm:$0xff]  ;;  %v424_v8 = vld [vmem:[%s4314_s25 + $0x950] sm:$0xff] }
  0x56   : > { %421 = vst [vmem:[%s4319_s26 + $0x498] sm:$0xff] %v420_v6  ;;  %v426_v9 = vld [vmem:[%s4314_s25 + $0x958] sm:$0xff]  ;;  %423 = vst [vmem:[%s4319_s26 + $0x4a4] sm:$0xff] %v422_v7  ;;  %v428_v10 = vld [vmem:[%s4314_s25 + $0x960] sm:$0xff] }
  0x57   : > { %425 = vst [vmem:[%s4319_s26 + $0x4ac] sm:$0xff] %v424_v8  ;;  %427 = vst [vmem:[%s4319_s26 + $0x4b4] sm:$0xff] %v426_v9  ;;  %v430_v11 = vld [vmem:[%s4314_s25 + $0x968] sm:$0xff]  ;;  %v432_v12 = vld [vmem:[%s4314_s25 + $0x9a0] sm:$0xff] }
  0x58   : > { %429 = vst [vmem:[%s4319_s26 + $0x4bc] sm:$0xff] %v428_v10  ;;  %431 = vst [vmem:[%s4319_s26 + $0x4c4] sm:$0xff] %v430_v11  ;;  %v434_v13 = vld [vmem:[%s4314_s25 + $0x9a8] sm:$0xff]  ;;  %v436_v14 = vld [vmem:[%s4314_s25 + $0x9b0] sm:$0xff] }
  0x59   : > { %433 = vst [vmem:[%s4319_s26 + $0x4d0] sm:$0xff] %v432_v12  ;;  %v438_v15 = vld [vmem:[%s4314_s25 + $0x9b8] sm:$0xff]  ;;  %435 = vst [vmem:[%s4319_s26 + $0x4d8] sm:$0xff] %v434_v13  ;;  %v440_v16 = vld [vmem:[%s4314_s25 + $0x9c0] sm:$0xff] }
  0x5a   : > { %437 = vst [vmem:[%s4319_s26 + $0x4e0] sm:$0xff] %v436_v14  ;;  %439 = vst [vmem:[%s4319_s26 + $0x4e8] sm:$0xff] %v438_v15  ;;  %v442_v17 = vld [vmem:[%s4314_s25 + $0x9f8] sm:$0xff]  ;;  %v444_v18 = vld [vmem:[%s4314_s25 + $0xa00] sm:$0xff] }
  0x5b   : > { %441 = vst [vmem:[%s4319_s26 + $0x4f0] sm:$0xff] %v440_v16  ;;  %443 = vst [vmem:[%s4319_s26 + $0x4fc] sm:$0xff] %v442_v17  ;;  %v446_v19 = vld [vmem:[%s4314_s25 + $0xa08] sm:$0xff]  ;;  %v448_v20 = vld [vmem:[%s4314_s25 + $0xa10] sm:$0xff] }
  0x5c   : > { %445 = vst [vmem:[%s4319_s26 + $0x504] sm:$0xff] %v444_v18  ;;  %v450_v21 = vld [vmem:[%s4314_s25 + $0xa18] sm:$0xff]  ;;  %447 = vst [vmem:[%s4319_s26 + $0x50c] sm:$0xff] %v446_v19  ;;  %v452_v22 = vld [vmem:[%s4314_s25 + $0xa50] sm:$0xff] }
  0x5d   : > { %449 = vst [vmem:[%s4319_s26 + $0x514] sm:$0xff] %v448_v20  ;;  %451 = vst [vmem:[%s4319_s26 + $0x51c] sm:$0xff] %v450_v21  ;;  %v454_v23 = vld [vmem:[%s4314_s25 + $0xa58] sm:$0xff]  ;;  %v456_v24 = vld [vmem:[%s4314_s25 + $0xa60] sm:$0xff] }
  0x5e   : > { %453 = vst [vmem:[%s4319_s26 + $0x528] sm:$0xff] %v452_v22  ;;  %455 = vst [vmem:[%s4319_s26 + $0x530] sm:$0xff] %v454_v23  ;;  %v458_v25 = vld [vmem:[%s4314_s25 + $0xa68] sm:$0xff]  ;;  %v460_v26 = vld [vmem:[%s4314_s25 + $0xa70] sm:$0xff] }
  0x5f   : > { %457 = vst [vmem:[%s4319_s26 + $0x538] sm:$0xff] %v456_v24  ;;  %v462_v27 = vld [vmem:[%s4314_s25 + $0xaa8] sm:$0xff]  ;;  %459 = vst [vmem:[%s4319_s26 + $0x540] sm:$0xff] %v458_v25  ;;  %v464_v28 = vld [vmem:[%s4314_s25 + $0xab0] sm:$0xff] }
  0x60   : > { %461 = vst [vmem:[%s4319_s26 + $0x548] sm:$0xff] %v460_v26  ;;  %463 = vst [vmem:[%s4319_s26 + $0x554] sm:$0xff] %v462_v27  ;;  %v466_v29 = vld [vmem:[%s4314_s25 + $0xab8] sm:$0xff]  ;;  %v468_v30 = vld [vmem:[%s4314_s25 + $0xac0] sm:$0xff] }
  0x61   : > { %465 = vst [vmem:[%s4319_s26 + $0x55c] sm:$0xff] %v464_v28  ;;  %467 = vst [vmem:[%s4319_s26 + $0x564] sm:$0xff] %v466_v29  ;;  %v470_v31 = vld [vmem:[%s4314_s25 + $0xac8] sm:$0xff]  ;;  %v472_v32 = vld [vmem:[%s4314_s25 + $0xb00] sm:$0xff] }
  0x62   : > { %469 = vst [vmem:[%s4319_s26 + $0x56c] sm:$0xff] %v468_v30  ;;  %v474_v33 = vld [vmem:[%s4314_s25 + $0xb08] sm:$0xff]  ;;  %471 = vst [vmem:[%s4319_s26 + $0x574] sm:$0xff] %v470_v31  ;;  %v476_v34 = vld [vmem:[%s4314_s25 + $0xb10] sm:$0xff] }
  0x63   : > { %473 = vst [vmem:[%s4319_s26 + $0x580] sm:$0xff] %v472_v32  ;;  %475 = vst [vmem:[%s4319_s26 + $0x588] sm:$0xff] %v474_v33  ;;  %v478_v35 = vld [vmem:[%s4314_s25 + $0xb18] sm:$0xff]  ;;  %v480_v36 = vld [vmem:[%s4314_s25 + $0xb20] sm:$0xff] }
  0x64   : > { %477 = vst [vmem:[%s4319_s26 + $0x590] sm:$0xff] %v476_v34  ;;  %479 = vst [vmem:[%s4319_s26 + $0x598] sm:$0xff] %v478_v35  ;;  %v482_v37 = vld [vmem:[%s4314_s25 + $0xb58] sm:$0xff]  ;;  %v484_v38 = vld [vmem:[%s4314_s25 + $0xb60] sm:$0xff] }
  0x65   : > { %481 = vst [vmem:[%s4319_s26 + $0x5a0] sm:$0xff] %v480_v36  ;;  %v486_v39 = vld [vmem:[%s4314_s25 + $0xb68] sm:$0xff]  ;;  %483 = vst [vmem:[%s4319_s26 + $0x5ac] sm:$0xff] %v482_v37  ;;  %v488_v40 = vld [vmem:[%s4314_s25 + $0xb70] sm:$0xff] }
  0x66   : > { %485 = vst [vmem:[%s4319_s26 + $0x5b4] sm:$0xff] %v484_v38  ;;  %487 = vst [vmem:[%s4319_s26 + $0x5bc] sm:$0xff] %v486_v39  ;;  %v490_v41 = vld [vmem:[%s4314_s25 + $0xb78] sm:$0xff]  ;;  %v492_v42 = vld [vmem:[%s4314_s25 + $0xbb0] sm:$0xff] }
  0x67   : > { %489 = vst [vmem:[%s4319_s26 + $0x5c4] sm:$0xff] %v488_v40  ;;  %491 = vst [vmem:[%s4319_s26 + $0x5cc] sm:$0xff] %v490_v41  ;;  %v494_v43 = vld [vmem:[%s4314_s25 + $0xbb8] sm:$0xff]  ;;  %v496_v44 = vld [vmem:[%s4314_s25 + $0xbc0] sm:$0xff] }
  0x68   : > { %493 = vst [vmem:[%s4319_s26 + $0x5d8] sm:$0xff] %v492_v42  ;;  %v498_v45 = vld [vmem:[%s4314_s25 + $0xbc8] sm:$0xff]  ;;  %495 = vst [vmem:[%s4319_s26 + $0x5e0] sm:$0xff] %v494_v43  ;;  %v500_v46 = vld [vmem:[%s4314_s25 + $0xbd0] sm:$0xff] }
  0x69   : > { %497 = vst [vmem:[%s4319_s26 + $0x5e8] sm:$0xff] %v496_v44  ;;  %499 = vst [vmem:[%s4319_s26 + $0x5f0] sm:$0xff] %v498_v45  ;;  %v502_v47 = vld [vmem:[%s4314_s25 + $0xc08] sm:$0xff]  ;;  %v504_v48 = vld [vmem:[%s4314_s25 + $0xc10] sm:$0xff] }
  0x6a   : > { %501 = vst [vmem:[%s4319_s26 + $0x5f8] sm:$0xff] %v500_v46  ;;  %503 = vst [vmem:[%s4319_s26 + $0x604] sm:$0xff] %v502_v47  ;;  %v506_v49 = vld [vmem:[%s4314_s25 + $0xc18] sm:$0xff]  ;;  %v508_v50 = vld [vmem:[%s4314_s25 + $0xc20] sm:$0xff] }
  0x6b   : > { %505 = vst [vmem:[%s4319_s26 + $0x60c] sm:$0xff] %v504_v48  ;;  %v510_v51 = vld [vmem:[%s4314_s25 + $0xc28] sm:$0xff]  ;;  %507 = vst [vmem:[%s4319_s26 + $0x614] sm:$0xff] %v506_v49  ;;  %v512_v52 = vld [vmem:[%s4314_s25 + $0xc60] sm:$0xff] }
  0x6c   : > { %509 = vst [vmem:[%s4319_s26 + $0x61c] sm:$0xff] %v508_v50  ;;  %511 = vst [vmem:[%s4319_s26 + $0x624] sm:$0xff] %v510_v51  ;;  %v514_v53 = vld [vmem:[%s4314_s25 + $0xc68] sm:$0xff]  ;;  %v516_v54 = vld [vmem:[%s4314_s25 + $0xc70] sm:$0xff] }
  0x6d   : > { %513 = vst [vmem:[%s4319_s26 + $0x630] sm:$0xff] %v512_v52  ;;  %515 = vst [vmem:[%s4319_s26 + $0x638] sm:$0xff] %v514_v53  ;;  %v518_v55 = vld [vmem:[%s4314_s25 + $0xc78] sm:$0xff]  ;;  %v520_v56 = vld [vmem:[%s4314_s25 + $0xc80] sm:$0xff] }
  0x6e   : > { %517 = vst [vmem:[%s4319_s26 + $0x640] sm:$0xff] %v516_v54  ;;  %v522_v57 = vld [vmem:[%s4314_s25 + $0xcb8] sm:$0xff]  ;;  %519 = vst [vmem:[%s4319_s26 + $0x648] sm:$0xff] %v518_v55  ;;  %v524_v58 = vld [vmem:[%s4314_s25 + $0xcc0] sm:$0xff] }
  0x6f   : > { %521 = vst [vmem:[%s4319_s26 + $0x650] sm:$0xff] %v520_v56  ;;  %523 = vst [vmem:[%s4319_s26 + $0x65c] sm:$0xff] %v522_v57  ;;  %v526_v59 = vld [vmem:[%s4314_s25 + $0xcc8] sm:$0xff]  ;;  %v528_v60 = vld [vmem:[%s4314_s25 + $0xcd0] sm:$0xff] }
  0x70   : > { %525 = vst [vmem:[%s4319_s26 + $0x664] sm:$0xff] %v524_v58  ;;  %527 = vst [vmem:[%s4319_s26 + $0x66c] sm:$0xff] %v526_v59  ;;  %v530_v61 = vld [vmem:[%s4314_s25 + $0xcd8] sm:$0xff]  ;;  %v532_v62 = vld [vmem:[%s4314_s25 + $0xd10] sm:$0xff] }
  0x71   : > { %529 = vst [vmem:[%s4319_s26 + $0x674] sm:$0xff] %v528_v60  ;;  %v534_v63 = vld [vmem:[%s4314_s25 + $0xd18] sm:$0xff]  ;;  %531 = vst [vmem:[%s4319_s26 + $0x67c] sm:$0xff] %v530_v61  ;;  %v536_v0 = vld [vmem:[%s4314_s25 + $0xd20] sm:$0xff] }
  0x72   : > { %533 = vst [vmem:[%s4319_s26 + $0x688] sm:$0xff] %v532_v62  ;;  %535 = vst [vmem:[%s4319_s26 + $0x690] sm:$0xff] %v534_v63  ;;  %v538_v1 = vld [vmem:[%s4314_s25 + $0xd28] sm:$0xff]  ;;  %v540_v2 = vld [vmem:[%s4314_s25 + $0xd30] sm:$0xff] }
  0x73   : > { %537 = vst [vmem:[%s4319_s26 + $0x698] sm:$0xff] %v536_v0  ;;  %539 = vst [vmem:[%s4319_s26 + $0x6a0] sm:$0xff] %v538_v1  ;;  %v542_v3 = vld [vmem:[%s4314_s25 + $0xd68] sm:$0xff]  ;;  %v544_v4 = vld [vmem:[%s4314_s25 + $0xd70] sm:$0xff] }
  0x74   : > { %541 = vst [vmem:[%s4319_s26 + $0x6a8] sm:$0xff] %v540_v2  ;;  %v546_v5 = vld [vmem:[%s4314_s25 + $0xd78] sm:$0xff]  ;;  %543 = vst [vmem:[%s4319_s26 + $0x6b4] sm:$0xff] %v542_v3  ;;  %v548_v6 = vld [vmem:[%s4314_s25 + $0xd80] sm:$0xff] }
  0x75   : > { %545 = vst [vmem:[%s4319_s26 + $0x6bc] sm:$0xff] %v544_v4  ;;  %547 = vst [vmem:[%s4319_s26 + $0x6c4] sm:$0xff] %v546_v5  ;;  %v550_v7 = vld [vmem:[%s4314_s25 + $0xd88] sm:$0xff]  ;;  %v552_v8 = vld [vmem:[%s4314_s25 + $0xdc0] sm:$0xff] }
  0x76   : > { %549 = vst [vmem:[%s4319_s26 + $0x6cc] sm:$0xff] %v548_v6  ;;  %551 = vst [vmem:[%s4319_s26 + $0x6d4] sm:$0xff] %v550_v7  ;;  %v554_v9 = vld [vmem:[%s4314_s25 + $0xdc8] sm:$0xff]  ;;  %v556_v10 = vld [vmem:[%s4314_s25 + $0xdd0] sm:$0xff] }
  0x77   : > { %553 = vst [vmem:[%s4319_s26 + $0x6e0] sm:$0xff] %v552_v8  ;;  %v558_v11 = vld [vmem:[%s4314_s25 + $0xdd8] sm:$0xff]  ;;  %555 = vst [vmem:[%s4319_s26 + $0x6e8] sm:$0xff] %v554_v9  ;;  %v560_v12 = vld [vmem:[%s4314_s25 + $0xde0] sm:$0xff] }
  0x78   : > { %557 = vst [vmem:[%s4319_s26 + $0x6f0] sm:$0xff] %v556_v10  ;;  %559 = vst [vmem:[%s4319_s26 + $0x6f8] sm:$0xff] %v558_v11  ;;  %v562_v13 = vld [vmem:[%s4314_s25 + $0xe18] sm:$0xff]  ;;  %v564_v14 = vld [vmem:[%s4314_s25 + $0xe20] sm:$0xff] }
  0x79   : > { %561 = vst [vmem:[%s4319_s26 + $0x700] sm:$0xff] %v560_v12  ;;  %563 = vst [vmem:[%s4319_s26 + $0x70c] sm:$0xff] %v562_v13  ;;  %v566_v15 = vld [vmem:[%s4314_s25 + $0xe28] sm:$0xff]  ;;  %v568_v16 = vld [vmem:[%s4314_s25 + $0xe30] sm:$0xff] }
  0x7a   : > { %565 = vst [vmem:[%s4319_s26 + $0x714] sm:$0xff] %v564_v14  ;;  %v570_v17 = vld [vmem:[%s4314_s25 + $0xe38] sm:$0xff]  ;;  %567 = vst [vmem:[%s4319_s26 + $0x71c] sm:$0xff] %v566_v15  ;;  %v572_v18 = vld [vmem:[%s4314_s25 + $0xe70] sm:$0xff] }
  0x7b   : > { %569 = vst [vmem:[%s4319_s26 + $0x724] sm:$0xff] %v568_v16  ;;  %571 = vst [vmem:[%s4319_s26 + $0x72c] sm:$0xff] %v570_v17  ;;  %v574_v19 = vld [vmem:[%s4314_s25 + $0xe78] sm:$0xff]  ;;  %v576_v20 = vld [vmem:[%s4314_s25 + $0xe80] sm:$0xff] }
  0x7c   : > { %573 = vst [vmem:[%s4319_s26 + $0x738] sm:$0xff] %v572_v18  ;;  %575 = vst [vmem:[%s4319_s26 + $0x740] sm:$0xff] %v574_v19  ;;  %v578_v21 = vld [vmem:[%s4314_s25 + $0xe88] sm:$0xff]  ;;  %v580_v22 = vld [vmem:[%s4314_s25 + $0xe90] sm:$0xff] }
  0x7d   : > { %577 = vst [vmem:[%s4319_s26 + $0x748] sm:$0xff] %v576_v20  ;;  %v582_v23 = vld [vmem:[%s4314_s25 + $0xec8] sm:$0xff]  ;;  %579 = vst [vmem:[%s4319_s26 + $0x750] sm:$0xff] %v578_v21  ;;  %v584_v24 = vld [vmem:[%s4314_s25 + $0xed0] sm:$0xff] }
  0x7e   : > { %581 = vst [vmem:[%s4319_s26 + $0x758] sm:$0xff] %v580_v22  ;;  %583 = vst [vmem:[%s4319_s26 + $0x764] sm:$0xff] %v582_v23  ;;  %v586_v25 = vld [vmem:[%s4314_s25 + $0xed8] sm:$0xff]  ;;  %v588_v26 = vld [vmem:[%s4314_s25 + $0xee0] sm:$0xff] }
  0x7f   : > { %585 = vst [vmem:[%s4319_s26 + $0x76c] sm:$0xff] %v584_v24  ;;  %587 = vst [vmem:[%s4319_s26 + $0x774] sm:$0xff] %v586_v25  ;;  %v590_v27 = vld [vmem:[%s4314_s25 + $0xee8] sm:$0xff]  ;;  %v592_v28 = vld [vmem:[%s4314_s25 + $0xf20] sm:$0xff] }
  0x80   : > { %589 = vst [vmem:[%s4319_s26 + $0x77c] sm:$0xff] %v588_v26  ;;  %v594_v29 = vld [vmem:[%s4314_s25 + $0xf28] sm:$0xff]  ;;  %591 = vst [vmem:[%s4319_s26 + $0x784] sm:$0xff] %v590_v27  ;;  %v596_v30 = vld [vmem:[%s4314_s25 + $0xf30] sm:$0xff] }
  0x81   : > { %593 = vst [vmem:[%s4319_s26 + $0x790] sm:$0xff] %v592_v28  ;;  %595 = vst [vmem:[%s4319_s26 + $0x798] sm:$0xff] %v594_v29  ;;  %v598_v31 = vld [vmem:[%s4314_s25 + $0xf38] sm:$0xff]  ;;  %v600_v32 = vld [vmem:[%s4314_s25 + $0xf40] sm:$0xff] }
  0x82   : > { %597 = vst [vmem:[%s4319_s26 + $0x7a0] sm:$0xff] %v596_v30  ;;  %599 = vst [vmem:[%s4319_s26 + $0x7a8] sm:$0xff] %v598_v31  ;;  %v602_v33 = vld [vmem:[%s4314_s25 + $0xf78] sm:$0xff]  ;;  %v604_v34 = vld [vmem:[%s4314_s25 + $0xf80] sm:$0xff] }
  0x83   : > { %601 = vst [vmem:[%s4319_s26 + $0x7b0] sm:$0xff] %v600_v32  ;;  %v606_v35 = vld [vmem:[%s4314_s25 + $0xf88] sm:$0xff]  ;;  %603 = vst [vmem:[%s4319_s26 + $0x7bc] sm:$0xff] %v602_v33  ;;  %v608_v36 = vld [vmem:[%s4314_s25 + $0xf90] sm:$0xff] }
  0x84   : > { %605 = vst [vmem:[%s4319_s26 + $0x7c4] sm:$0xff] %v604_v34  ;;  %607 = vst [vmem:[%s4319_s26 + $0x7cc] sm:$0xff] %v606_v35  ;;  %v610_v37 = vld [vmem:[%s4314_s25 + $0xf98] sm:$0xff]  ;;  %v612_v38 = vld [vmem:[%s4314_s25 + $0xfd0] sm:$0xff] }
  0x85   : > { %609 = vst [vmem:[%s4319_s26 + $0x7d4] sm:$0xff] %v608_v36  ;;  %611 = vst [vmem:[%s4319_s26 + $0x7dc] sm:$0xff] %v610_v37  ;;  %v614_v39 = vld [vmem:[%s4314_s25 + $0xfd8] sm:$0xff]  ;;  %v616_v40 = vld [vmem:[%s4314_s25 + $0xfe0] sm:$0xff] }
  0x86   : > { %613 = vst [vmem:[%s4319_s26 + $0x7e8] sm:$0xff] %v612_v38  ;;  %v618_v41 = vld [vmem:[%s4314_s25 + $0xfe8] sm:$0xff]  ;;  %615 = vst [vmem:[%s4319_s26 + $0x7f0] sm:$0xff] %v614_v39  ;;  %v620_v42 = vld [vmem:[%s4314_s25 + $0xff0] sm:$0xff] }
  0x87   : > { %617 = vst [vmem:[%s4319_s26 + $0x7f8] sm:$0xff] %v616_v40  ;;  %619 = vst [vmem:[%s4319_s26 + $0x800] sm:$0xff] %v618_v41  ;;  %v622_v43 = vld [vmem:[%s4314_s25 + $0x1028] sm:$0xff]  ;;  %v624_v44 = vld [vmem:[%s4314_s25 + $0x1030] sm:$0xff] }
  0x88   : > { %621 = vst [vmem:[%s4319_s26 + $0x808] sm:$0xff] %v620_v42  ;;  %623 = vst [vmem:[%s4319_s26 + $0x814] sm:$0xff] %v622_v43  ;;  %v626_v45 = vld [vmem:[%s4314_s25 + $0x1038] sm:$0xff]  ;;  %v628_v46 = vld [vmem:[%s4314_s25 + $0x1040] sm:$0xff] }
  0x89   : > { %625 = vst [vmem:[%s4319_s26 + $0x81c] sm:$0xff] %v624_v44  ;;  %v630_v47 = vld [vmem:[%s4314_s25 + $0x1048] sm:$0xff]  ;;  %627 = vst [vmem:[%s4319_s26 + $0x824] sm:$0xff] %v626_v45  ;;  %v632_v48 = vld [vmem:[%s4314_s25 + $0x1080] sm:$0xff] }
  0x8a   : > { %629 = vst [vmem:[%s4319_s26 + $0x82c] sm:$0xff] %v628_v46  ;;  %631 = vst [vmem:[%s4319_s26 + $0x834] sm:$0xff] %v630_v47  ;;  %v634_v49 = vld [vmem:[%s4314_s25 + $0x1088] sm:$0xff]  ;;  %v636_v50 = vld [vmem:[%s4314_s25 + $0x1090] sm:$0xff] }
  0x8b   : > { %633 = vst [vmem:[%s4319_s26 + $0x840] sm:$0xff] %v632_v48  ;;  %635 = vst [vmem:[%s4319_s26 + $0x848] sm:$0xff] %v634_v49  ;;  %v638_v51 = vld [vmem:[%s4314_s25 + $0x1098] sm:$0xff]  ;;  %v640_v52 = vld [vmem:[%s4314_s25 + $0x10a0] sm:$0xff] }
  0x8c   : > { %637 = vst [vmem:[%s4319_s26 + $0x850] sm:$0xff] %v636_v50  ;;  %v642_v53 = vld [vmem:[%s4314_s25 + $0x10d8] sm:$0xff]  ;;  %639 = vst [vmem:[%s4319_s26 + $0x858] sm:$0xff] %v638_v51  ;;  %v644_v54 = vld [vmem:[%s4314_s25 + $0x10e0] sm:$0xff] }
  0x8d   : > { %641 = vst [vmem:[%s4319_s26 + $0x860] sm:$0xff] %v640_v52  ;;  %643 = vst [vmem:[%s4319_s26 + $0x86c] sm:$0xff] %v642_v53  ;;  %v646_v55 = vld [vmem:[%s4314_s25 + $0x10e8] sm:$0xff]  ;;  %v648_v56 = vld [vmem:[%s4314_s25 + $0x10f0] sm:$0xff] }
  0x8e   : > { %645 = vst [vmem:[%s4319_s26 + $0x874] sm:$0xff] %v644_v54  ;;  %647 = vst [vmem:[%s4319_s26 + $0x87c] sm:$0xff] %v646_v55  ;;  %v650_v57 = vld [vmem:[%s4314_s25 + $0x10f8] sm:$0xff]  ;;  %v652_v58 = vld [vmem:[%s4314_s25 + $0x1130] sm:$0xff] }
  0x8f   : > { %649 = vst [vmem:[%s4319_s26 + $0x884] sm:$0xff] %v648_v56  ;;  %v654_v59 = vld [vmem:[%s4314_s25 + $0x1138] sm:$0xff]  ;;  %651 = vst [vmem:[%s4319_s26 + $0x88c] sm:$0xff] %v650_v57  ;;  %v656_v60 = vld [vmem:[%s4314_s25 + $0x1140] sm:$0xff] }
  0x90   : > { %653 = vst [vmem:[%s4319_s26 + $0x898] sm:$0xff] %v652_v58  ;;  %655 = vst [vmem:[%s4319_s26 + $0x8a0] sm:$0xff] %v654_v59  ;;  %v658_v61 = vld [vmem:[%s4314_s25 + $0x1148] sm:$0xff]  ;;  %v660_v62 = vld [vmem:[%s4314_s25 + $0x1150] sm:$0xff] }
  0x91   : > { %657 = vst [vmem:[%s4319_s26 + $0x8a8] sm:$0xff] %v656_v60  ;;  %659 = vst [vmem:[%s4319_s26 + $0x8b0] sm:$0xff] %v658_v61  ;;  %v662_v63 = vld [vmem:[%s4314_s25 + $0x1188] sm:$0xff]  ;;  %v664_v0 = vld [vmem:[%s4314_s25 + $0x1190] sm:$0xff] }
  0x92   : > { %661 = vst [vmem:[%s4319_s26 + $0x8b8] sm:$0xff] %v660_v62  ;;  %v666_v1 = vld [vmem:[%s4314_s25 + $0x1198] sm:$0xff]  ;;  %663 = vst [vmem:[%s4319_s26 + $0x8c4] sm:$0xff] %v662_v63  ;;  %v668_v2 = vld [vmem:[%s4314_s25 + $0x11a0] sm:$0xff] }
  0x93   : > { %665 = vst [vmem:[%s4319_s26 + $0x8cc] sm:$0xff] %v664_v0  ;;  %667 = vst [vmem:[%s4319_s26 + $0x8d4] sm:$0xff] %v666_v1  ;;  %v670_v3 = vld [vmem:[%s4314_s25 + $0x11a8] sm:$0xff]  ;;  %v3323_v5 = vld [vmem:[%s4314_s25 + $0x80] sm:$0xf] }
  0x94   : > { %v3321_v4 = vld [vmem:[%s4314_s25 + $0x28] sm:$0xf]  ;;  %669 = vst [vmem:[%s4319_s26 + $0x8dc] sm:$0xff] %v668_v2  ;;  %671 = vst [vmem:[%s4319_s26 + $0x8e4] sm:$0xff] %v670_v3  ;;  %v3325_v6 = vld [vmem:[%s4314_s25 + $0xd8] sm:$0xf] }
  0x95   : > { %3322 = vst [vmem:[%s4319_s26 + $0x28] sm:$0xf] %v3321_v4  ;;  %v3327_v7 = vld [vmem:[%s4314_s25 + $0x130] sm:$0xf]  ;;  %3324 = vst [vmem:[%s4319_s26 + $0x54] sm:$0xf] %v3323_v5 }
  0x96   : > { %3326 = vst [vmem:[%s4319_s26 + $0x80] sm:$0xf] %v3325_v6  ;;  %3328 = vst [vmem:[%s4319_s26 + $0xac] sm:$0xf] %v3327_v7  ;;  %v3329_v8 = vld [vmem:[%s4314_s25 + $0x188] sm:$0xf] }
  0x97   : > { %v3331_v9 = vld [vmem:[%s4314_s25 + $0x1e0] sm:$0xf]  ;;  %v3333_v10 = vld [vmem:[%s4314_s25 + $0x238] sm:$0xf]  ;;  %3330 = vst [vmem:[%s4319_s26 + $0xd8] sm:$0xf] %v3329_v8 }
  0x98   : > { %3332 = vst [vmem:[%s4319_s26 + $0x104] sm:$0xf] %v3331_v9  ;;  %3334 = vst [vmem:[%s4319_s26 + $0x130] sm:$0xf] %v3333_v10  ;;  %v3335_v11 = vld [vmem:[%s4314_s25 + $0x290] sm:$0xf] }
  0x99   : > { %v3337_v12 = vld [vmem:[%s4314_s25 + $0x2e8] sm:$0xf]  ;;  %v3339_v13 = vld [vmem:[%s4314_s25 + $0x340] sm:$0xf]  ;;  %3336 = vst [vmem:[%s4319_s26 + $0x15c] sm:$0xf] %v3335_v11 }
  0x9a   : > { %3338 = vst [vmem:[%s4319_s26 + $0x188] sm:$0xf] %v3337_v12  ;;  %3340 = vst [vmem:[%s4319_s26 + $0x1b4] sm:$0xf] %v3339_v13  ;;  %v3341_v14 = vld [vmem:[%s4314_s25 + $0x398] sm:$0xf] }
  0x9b   : > { %v3343_v15 = vld [vmem:[%s4314_s25 + $0x3f0] sm:$0xf]  ;;  %v3345_v16 = vld [vmem:[%s4314_s25 + $0x448] sm:$0xf]  ;;  %3342 = vst [vmem:[%s4319_s26 + $0x1e0] sm:$0xf] %v3341_v14 }
  0x9c   : > { %3344 = vst [vmem:[%s4319_s26 + $0x20c] sm:$0xf] %v3343_v15  ;;  %3346 = vst [vmem:[%s4319_s26 + $0x238] sm:$0xf] %v3345_v16  ;;  %v3347_v17 = vld [vmem:[%s4314_s25 + $0x4a0] sm:$0xf] }
  0x9d   : > { %v3349_v18 = vld [vmem:[%s4314_s25 + $0x4f8] sm:$0xf]  ;;  %v3351_v19 = vld [vmem:[%s4314_s25 + $0x550] sm:$0xf]  ;;  %3348 = vst [vmem:[%s4319_s26 + $0x264] sm:$0xf] %v3347_v17 }
  0x9e   : > { %3350 = vst [vmem:[%s4319_s26 + $0x290] sm:$0xf] %v3349_v18  ;;  %3352 = vst [vmem:[%s4319_s26 + $0x2bc] sm:$0xf] %v3351_v19  ;;  %v3353_v20 = vld [vmem:[%s4314_s25 + $0x5a8] sm:$0xf] }
  0x9f   : > { %v3355_v21 = vld [vmem:[%s4314_s25 + $0x600] sm:$0xf]  ;;  %v3357_v22 = vld [vmem:[%s4314_s25 + $0x658] sm:$0xf]  ;;  %3354 = vst [vmem:[%s4319_s26 + $0x2e8] sm:$0xf] %v3353_v20 }
  0xa0   : > { %3356 = vst [vmem:[%s4319_s26 + $0x314] sm:$0xf] %v3355_v21  ;;  %3358 = vst [vmem:[%s4319_s26 + $0x340] sm:$0xf] %v3357_v22  ;;  %v3359_v23 = vld [vmem:[%s4314_s25 + $0x6b0] sm:$0xf] }
  0xa1   : > { %v3361_v24 = vld [vmem:[%s4314_s25 + $0x708] sm:$0xf]  ;;  %v3363_v25 = vld [vmem:[%s4314_s25 + $0x760] sm:$0xf]  ;;  %3360 = vst [vmem:[%s4319_s26 + $0x36c] sm:$0xf] %v3359_v23 }
  0xa2   : > { %3362 = vst [vmem:[%s4319_s26 + $0x398] sm:$0xf] %v3361_v24  ;;  %3364 = vst [vmem:[%s4319_s26 + $0x3c4] sm:$0xf] %v3363_v25  ;;  %v3365_v26 = vld [vmem:[%s4314_s25 + $0x7b8] sm:$0xf] }
  0xa3   : > { %v3367_v27 = vld [vmem:[%s4314_s25 + $0x810] sm:$0xf]  ;;  %v3369_v28 = vld [vmem:[%s4314_s25 + $0x868] sm:$0xf]  ;;  %3366 = vst [vmem:[%s4319_s26 + $0x3f0] sm:$0xf] %v3365_v26 }
  0xa4   : > { %3368 = vst [vmem:[%s4319_s26 + $0x41c] sm:$0xf] %v3367_v27  ;;  %3370 = vst [vmem:[%s4319_s26 + $0x448] sm:$0xf] %v3369_v28  ;;  %v3371_v29 = vld [vmem:[%s4314_s25 + $0x8c0] sm:$0xf] }
  0xa5   : > { %v3373_v30 = vld [vmem:[%s4314_s25 + $0x918] sm:$0xf]  ;;  %v3375_v31 = vld [vmem:[%s4314_s25 + $0x970] sm:$0xf]  ;;  %3372 = vst [vmem:[%s4319_s26 + $0x474] sm:$0xf] %v3371_v29 }
  0xa6   : > { %3374 = vst [vmem:[%s4319_s26 + $0x4a0] sm:$0xf] %v3373_v30  ;;  %3376 = vst [vmem:[%s4319_s26 + $0x4cc] sm:$0xf] %v3375_v31  ;;  %v3377_v32 = vld [vmem:[%s4314_s25 + $0x9c8] sm:$0xf] }
  0xa7   : > { %v3379_v33 = vld [vmem:[%s4314_s25 + $0xa20] sm:$0xf]  ;;  %v3381_v34 = vld [vmem:[%s4314_s25 + $0xa78] sm:$0xf]  ;;  %3378 = vst [vmem:[%s4319_s26 + $0x4f8] sm:$0xf] %v3377_v32 }
  0xa8   : > { %3380 = vst [vmem:[%s4319_s26 + $0x524] sm:$0xf] %v3379_v33  ;;  %3382 = vst [vmem:[%s4319_s26 + $0x550] sm:$0xf] %v3381_v34  ;;  %v3383_v35 = vld [vmem:[%s4314_s25 + $0xad0] sm:$0xf] }
  0xa9   : > { %v3385_v36 = vld [vmem:[%s4314_s25 + $0xb28] sm:$0xf]  ;;  %v3387_v37 = vld [vmem:[%s4314_s25 + $0xb80] sm:$0xf]  ;;  %3384 = vst [vmem:[%s4319_s26 + $0x57c] sm:$0xf] %v3383_v35 }
  0xaa   : > { %3386 = vst [vmem:[%s4319_s26 + $0x5a8] sm:$0xf] %v3385_v36  ;;  %3388 = vst [vmem:[%s4319_s26 + $0x5d4] sm:$0xf] %v3387_v37  ;;  %v3389_v38 = vld [vmem:[%s4314_s25 + $0xbd8] sm:$0xf] }
  0xab   : > { %v3391_v39 = vld [vmem:[%s4314_s25 + $0xc30] sm:$0xf]  ;;  %v3393_v40 = vld [vmem:[%s4314_s25 + $0xc88] sm:$0xf]  ;;  %3390 = vst [vmem:[%s4319_s26 + $0x600] sm:$0xf] %v3389_v38 }
  0xac   : > { %3392 = vst [vmem:[%s4319_s26 + $0x62c] sm:$0xf] %v3391_v39  ;;  %3394 = vst [vmem:[%s4319_s26 + $0x658] sm:$0xf] %v3393_v40  ;;  %v3395_v41 = vld [vmem:[%s4314_s25 + $0xce0] sm:$0xf] }
  0xad   : > { %v3397_v42 = vld [vmem:[%s4314_s25 + $0xd38] sm:$0xf]  ;;  %v3399_v43 = vld [vmem:[%s4314_s25 + $0xd90] sm:$0xf]  ;;  %3396 = vst [vmem:[%s4319_s26 + $0x684] sm:$0xf] %v3395_v41 }
  0xae   : > { %3398 = vst [vmem:[%s4319_s26 + $0x6b0] sm:$0xf] %v3397_v42  ;;  %3400 = vst [vmem:[%s4319_s26 + $0x6dc] sm:$0xf] %v3399_v43  ;;  %v3401_v44 = vld [vmem:[%s4314_s25 + $0xde8] sm:$0xf] }
  0xaf   : > { %v3403_v45 = vld [vmem:[%s4314_s25 + $0xe40] sm:$0xf]  ;;  %v3405_v46 = vld [vmem:[%s4314_s25 + $0xe98] sm:$0xf]  ;;  %3402 = vst [vmem:[%s4319_s26 + $0x708] sm:$0xf] %v3401_v44 }
  0xb0   : > { %3404 = vst [vmem:[%s4319_s26 + $0x734] sm:$0xf] %v3403_v45  ;;  %3406 = vst [vmem:[%s4319_s26 + $0x760] sm:$0xf] %v3405_v46  ;;  %v3407_v47 = vld [vmem:[%s4314_s25 + $0xef0] sm:$0xf] }
  0xb1   : > { %v3409_v48 = vld [vmem:[%s4314_s25 + $0xf48] sm:$0xf]  ;;  %v3411_v49 = vld [vmem:[%s4314_s25 + $0xfa0] sm:$0xf]  ;;  %3408 = vst [vmem:[%s4319_s26 + $0x78c] sm:$0xf] %v3407_v47 }
  0xb2   : > { %3410 = vst [vmem:[%s4319_s26 + $0x7b8] sm:$0xf] %v3409_v48  ;;  %3412 = vst [vmem:[%s4319_s26 + $0x7e4] sm:$0xf] %v3411_v49  ;;  %v3413_v50 = vld [vmem:[%s4314_s25 + $0xff8] sm:$0xf] }
  0xb3   : > { %v3415_v51 = vld [vmem:[%s4314_s25 + $0x1050] sm:$0xf]  ;;  %v3417_v52 = vld [vmem:[%s4314_s25 + $0x10a8] sm:$0xf]  ;;  %3414 = vst [vmem:[%s4319_s26 + $0x810] sm:$0xf] %v3413_v50 }
  0xb4   : > { %3416 = vst [vmem:[%s4319_s26 + $0x83c] sm:$0xf] %v3415_v51  ;;  %3418 = vst [vmem:[%s4319_s26 + $0x868] sm:$0xf] %v3417_v52  ;;  %v3419_v53 = vld [vmem:[%s4314_s25 + $0x1100] sm:$0xf] }
  0xb5   : > { %v3421_v54 = vld [vmem:[%s4314_s25 + $0x1158] sm:$0xf]  ;;  %v3423_v55 = vld [vmem:[%s4314_s25 + $0x11b0] sm:$0xf]  ;;  %3420 = vst [vmem:[%s4319_s26 + $0x894] sm:$0xf] %v3419_v53 }
  0xb6   : > { %3422 = vst [vmem:[%s4319_s26 + $0x8c0] sm:$0xf] %v3421_v54  ;;  %3424 = vst [vmem:[%s4319_s26 + $0x8ec] sm:$0xf] %v3423_v55 }
  0xb7 PF: > { %p3425_p5 = scmp.ge.s32.totalorder %s4255_s14, 1  ;;  %p787_p6 = scmp.lt.s32.totalorder %s4255_s14, 3 }
  0xb9   : > { %p788_p7 = pnand %p3425_p5, %p787_p6 }
  0xba   : > { %s794_s27 = sand.u32 (!%p788_p7), 1, %s4247_s12   ;;  %v4948_v56 = vld.sshfl [vmem:[%s5361_s0] sm:$0x33 pattern:$0x75316420] (!%p788_p7)  ;;  %v1148_v57 = vlaneseq (!%p788_p7)  ;;  %vm2620_vm0 = vcmask (!%p788_p7), 261120  }
  0xbb   : > { %791 = sbr.rel (%p788_p7) target bundleno = 741 (0x2e5), region = 54  ;;  %v4257_v58 = vmov (!%p788_p7), 1966171168   ;;  %v1144_v62 = vcombine.high (!%p788_p7), %v4948_v56, %v4948_v56 }
  0xbc   : > { %s3765_s30 = smul.u32 (!%p788_p7), 2288, %s794_s27  ;;  %v1146_v59 = vunpack.c.l.s4 (!%p788_p7), %v4257_v58  ;;  %v4951_v60 = vshrl.u32 (!%p788_p7), %v1148_v57, 7  ;;  %vm3253_vm1 = vcmp.lt.s32.totalorder (!%p788_p7), %v1148_v57, 384 }
  0xbd   : > { %s817_s7 = smul.u32 (!%p788_p7), 11, %s3316_s15 }
  0xbe   : > { %s4953_s4 = scalar_lea.vmem (!%p788_p7), [#allocation2], %s3765_s30  ;;  %v1147_v63 = vunpack.c.0.s8 (!%p788_p7), %v1146_v59 }
  0xbf   : > { %v3795_v61 = vld [vmem:[%s4953_s4 + $0x4] ss:$44 sps:$4 sm:$0xff] (!%p788_p7)   ;;  %v3797_v0 = vld [vmem:[%s4953_s4 + $0xc] ss:$44 sps:$4 sm:$0xff] (!%p788_p7)   ;;  %v3800_v2 = vld [vmem:[%s4953_s4 + $0x8] ss:$44 sps:$4 sm:$0xff] (!%p788_p7)  }
  0xc0   : > { %2624 = vmatprep.subr.bf16.mxu0 (!%p788_p7), %v3795_v61  ;;  %v3799_v1 = vld [vmem:[%s4953_s4] ss:$44 sps:$4 sm:$0xff] (!%p788_p7)   ;;  %v4962_v3 = vsub.s32 (!%p788_p7), %v1147_v63, %v4951_v60  ;;  %2706 = vmatprep.subr.bf16.mxu1 (!%p788_p7), %v3797_v0  ;;  %v3801_v4 = vld [vmem:[%s4953_s4 + $0x5c] ss:$44 sps:$4 sm:$0xff] (!%p788_p7)   ;;  %v3803_v5 = vld [vmem:[%s4953_s4 + $0x64] ss:$44 sps:$4 sm:$0xff] (!%p788_p7)  }
  0xc1   : > { %2625 = vmatpush1.bf16.msra.mxu0 (!%p788_p7), %v3799_v1  ;;  %2707 = vmatpush1.bf16.msra.mxu1 (!%p788_p7), %v3800_v2  ;;  %v3805_v6 = vld [vmem:[%s4953_s4 + $0x58] ss:$44 sps:$4 sm:$0xff] (!%p788_p7)   ;;  %v3806_v8 = vld [vmem:[%s4953_s4 + $0x60] ss:$44 sps:$4 sm:$0xff] (!%p788_p7)   ;;  %v3809_v10 = vld [vmem:[%s4953_s4 + $0xbc] ss:$44 sps:$4 sm:$0xff] (!%p788_p7)  }
  0xc2   : > { %v4968_v7 = vrot.slane %v1144_v62, %v4962_v3  ;;  %2626 = vmatprep.subr.bf16.mxu0 %v3801_v4  ;;  %2708 = vmatprep.subr.bf16.mxu1 %v3803_v5  ;;  %v3807_v9 = vld [vmem:[%s4953_s4 + $0xb4] ss:$44 sps:$4 sm:$0xff]   ;;  %v3811_v11 = vld [vmem:[%s4953_s4 + $0xb0] ss:$44 sps:$4 sm:$0xff]   ;;  %v3812_v12 = vld [vmem:[%s4953_s4 + $0xb8] ss:$44 sps:$4 sm:$0xff]  }
  0xc3   : > { %v3813_v13 = vld [vmem:[%s4953_s4 + $0x10c] ss:$44 sps:$4 sm:$0xff]   ;;  %v3815_v14 = vld [vmem:[%s4953_s4 + $0x114] ss:$44 sps:$4 sm:$0xff]   ;;  %v3818_v16 = vld [vmem:[%s4953_s4 + $0x110] ss:$44 sps:$4 sm:$0xff]  }
  0xc4   : > { %2656 = vmatprep.mubr.bf16.mxu0 %v4968_v7  ;;  %2738 = vmatprep.mubr.bf16.mxu1 %v4968_v7  ;;  %v3817_v15 = vld [vmem:[%s4953_s4 + $0x108] ss:$44 sps:$4 sm:$0xff]   ;;  %v3819_v17 = vld [vmem:[%s4953_s4 + $0x164] ss:$44 sps:$4 sm:$0xff]   ;;  %v3821_v18 = vld [vmem:[%s4953_s4 + $0x16c] ss:$44 sps:$4 sm:$0xff]  }
  0xc5   : > { %2627 = vmatpush1.bf16.msra.mxu0 %v3805_v6  ;;  %2709 = vmatpush1.bf16.msra.mxu1 %v3806_v8  ;;  %v3823_v19 = vld [vmem:[%s4953_s4 + $0x160] ss:$44 sps:$4 sm:$0xff]   ;;  %v3824_v20 = vld [vmem:[%s4953_s4 + $0x168] ss:$44 sps:$4 sm:$0xff]   ;;  %v3827_v22 = vld [vmem:[%s4953_s4 + $0x1c4] ss:$44 sps:$4 sm:$0xff]  }
  0xc6   : > { %2628 = vmatprep.subr.bf16.mxu0 %v3807_v9  ;;  %2710 = vmatprep.subr.bf16.mxu1 %v3809_v10  ;;  %v3825_v21 = vld [vmem:[%s4953_s4 + $0x1bc] ss:$44 sps:$4 sm:$0xff]   ;;  %v3829_v23 = vld [vmem:[%s4953_s4 + $0x1b8] ss:$44 sps:$4 sm:$0xff]   ;;  %v3830_v24 = vld [vmem:[%s4953_s4 + $0x1c0] ss:$44 sps:$4 sm:$0xff]  }
  0xc7   : > { %v3831_v25 = vld [vmem:[%s4953_s4 + $0x214] ss:$44 sps:$4 sm:$0xff]   ;;  %v3833_v26 = vld [vmem:[%s4953_s4 + $0x21c] ss:$44 sps:$4 sm:$0xff]   ;;  %v3836_v28 = vld [vmem:[%s4953_s4 + $0x218] ss:$44 sps:$4 sm:$0xff]  }
  0xc8   : > { %v3835_v27 = vld [vmem:[%s4953_s4 + $0x210] ss:$44 sps:$4 sm:$0xff]   ;;  %v3837_v29 = vld [vmem:[%s4953_s4 + $0x26c] ss:$44 sps:$4 sm:$0xff]   ;;  %v3839_v30 = vld [vmem:[%s4953_s4 + $0x274] ss:$44 sps:$4 sm:$0xff]  }
  0xc9   : > { %2629 = vmatpush1.bf16.msra.mxu0 %v3811_v11  ;;  %2711 = vmatpush1.bf16.msra.mxu1 %v3812_v12  ;;  %v3841_v31 = vld [vmem:[%s4953_s4 + $0x268] ss:$44 sps:$4 sm:$0xff]   ;;  %v3842_v32 = vld [vmem:[%s4953_s4 + $0x270] ss:$44 sps:$4 sm:$0xff]   ;;  %v3845_v34 = vld [vmem:[%s4953_s4 + $0x2cc] ss:$44 sps:$4 sm:$0xff]   ;;  %v5036_v11 = vrot.slane %v4948_v56, %v4962_v3 }
  0xca   : > { %2630 = vmatprep.subr.bf16.mxu0 %v3813_v13  ;;  %2712 = vmatprep.subr.bf16.mxu1 %v3815_v14  ;;  %v3843_v33 = vld [vmem:[%s4953_s4 + $0x2c4] ss:$44 sps:$4 sm:$0xff]   ;;  %v3847_v35 = vld [vmem:[%s4953_s4 + $0x2c0] ss:$44 sps:$4 sm:$0xff]   ;;  %v3848_v36 = vld [vmem:[%s4953_s4 + $0x2c8] ss:$44 sps:$4 sm:$0xff]   ;;  %v5042_v14 = vcombine.high %v4968_v7, %v4968_v7 }
  0xcb   : > { %v3849_v37 = vld [vmem:[%s4953_s4 + $0x31c] ss:$44 sps:$4 sm:$0xff]   ;;  %v3851_v38 = vld [vmem:[%s4953_s4 + $0x324] ss:$44 sps:$4 sm:$0xff]   ;;  %v3854_v40 = vld [vmem:[%s4953_s4 + $0x320] ss:$44 sps:$4 sm:$0xff]  }
  0xcc   : > { %v3853_v39 = vld [vmem:[%s4953_s4 + $0x318] ss:$44 sps:$4 sm:$0xff]   ;;  %v3855_v41 = vld [vmem:[%s4953_s4 + $0x374] ss:$44 sps:$4 sm:$0xff]   ;;  %v3857_v42 = vld [vmem:[%s4953_s4 + $0x37c] ss:$44 sps:$4 sm:$0xff]  }
  0xcd   : > { %2631 = vmatpush1.bf16.msra.mxu0 %v3817_v15  ;;  %2713 = vmatpush1.bf16.msra.mxu1 %v3818_v16  ;;  %v3859_v43 = vld [vmem:[%s4953_s4 + $0x370] ss:$44 sps:$4 sm:$0xff]   ;;  %v3860_v44 = vld [vmem:[%s4953_s4 + $0x378] ss:$44 sps:$4 sm:$0xff]   ;;  %v3863_v46 = vld [vmem:[%s4953_s4 + $0x3d4] ss:$44 sps:$4 sm:$0xff]  }
  0xce   : > { %2632 = vmatprep.subr.bf16.mxu0 %v3819_v17  ;;  %2714 = vmatprep.subr.bf16.mxu1 %v3821_v18  ;;  %v3861_v45 = vld [vmem:[%s4953_s4 + $0x3cc] ss:$44 sps:$4 sm:$0xff]   ;;  %v3865_v47 = vld [vmem:[%s4953_s4 + $0x3c8] ss:$44 sps:$4 sm:$0xff]   ;;  %v3866_v48 = vld [vmem:[%s4953_s4 + $0x3d0] ss:$44 sps:$4 sm:$0xff]  }
  0xcf   : > { %v3867_v49 = vld [vmem:[%s4953_s4 + $0x424] ss:$44 sps:$4 sm:$0xff]   ;;  %v3869_v50 = vld [vmem:[%s4953_s4 + $0x42c] ss:$44 sps:$4 sm:$0xff]   ;;  %v3872_v52 = vld [vmem:[%s4953_s4 + $0x428] ss:$44 sps:$4 sm:$0xff]  }
  0xd0   : > { %v3871_v51 = vld [vmem:[%s4953_s4 + $0x420] ss:$44 sps:$4 sm:$0xff]   ;;  %v3873_v53 = vld [vmem:[%s4953_s4 + $0x47c] ss:$44 sps:$4 sm:$0xff]   ;;  %v3875_v54 = vld [vmem:[%s4953_s4 + $0x484] ss:$44 sps:$4 sm:$0xff]  }
  0xd1   : > { %2633 = vmatpush1.bf16.msra.mxu0 %v3823_v19  ;;  %2715 = vmatpush1.bf16.msra.mxu1 %v3824_v20  ;;  %v3877_v55 = vld [vmem:[%s4953_s4 + $0x478] ss:$44 sps:$4 sm:$0xff]   ;;  %v3878_v58 = vld [vmem:[%s4953_s4 + $0x480] ss:$44 sps:$4 sm:$0xff]   ;;  %v3881_v61 = vld [vmem:[%s4953_s4 + $0x4dc] ss:$44 sps:$4 sm:$0xff]  }
  0xd2   : > { %2634 = vmatprep.subr.bf16.mxu0 %v3825_v21  ;;  %2716 = vmatprep.subr.bf16.mxu1 %v3827_v22  ;;  %v3879_v59 = vld [vmem:[%s4953_s4 + $0x4d4] ss:$44 sps:$4 sm:$0xff]   ;;  %v3883_v62 = vld [vmem:[%s4953_s4 + $0x4d0] ss:$44 sps:$4 sm:$0xff]   ;;  %v3884_v63 = vld [vmem:[%s4953_s4 + $0x4d8] ss:$44 sps:$4 sm:$0xff]  }
  0xd3   : > { %v3885_v0 = vld [vmem:[%s4953_s4 + $0x52c] ss:$44 sps:$4 sm:$0xff]   ;;  %v3887_v1 = vld [vmem:[%s4953_s4 + $0x534] ss:$44 sps:$4 sm:$0xff]   ;;  %v4258_v2 = vmov 0   ;;  %p818_p8 = scmp.lt.s32.totalorder %s817_s7, 21 }
  0xd4   : > { %3793 = vset.pattern.permute.xlu0 %v4258_v2  ;;  %v3889_v4 = vld [vmem:[%s4953_s4 + $0x528] ss:$44 sps:$4 sm:$0xff]   ;;  %v3890_v5 = vld [vmem:[%s4953_s4 + $0x530] ss:$44 sps:$4 sm:$0xff]   ;;  %v3896_v8 = vld [vmem:[%s4953_s4 + $0x58c] ss:$44 sps:$4 sm:$0xff]  }
  0xd5   : > { %2635 = vmatpush1.bf16.msra.mxu0 %v3829_v23  ;;  %2717 = vmatpush1.bf16.msra.mxu1 %v3830_v24  ;;  %v3893_v6 = vld [vmem:[%s4953_s4 + $0x584] ss:$44 sps:$4 sm:$0xff]   ;;  %v3891_v9 = vld [vmem:[%s4953_s4 + $0x580] ss:$44 sps:$4 sm:$0xff]   ;;  %v3894_v10 = vld [vmem:[%s4953_s4 + $0x588] ss:$44 sps:$4 sm:$0xff]  }
  0xd6   : > { %2636 = vmatprep.subr.bf16.mxu0 %v3831_v25  ;;  %2718 = vmatprep.subr.bf16.mxu1 %v3833_v26  ;;  %v3899_v12 = vld [vmem:[%s4953_s4 + $0x5dc] ss:$44 sps:$4 sm:$0xff]   ;;  %v3902_v13 = vld [vmem:[%s4953_s4 + $0x5e4] ss:$44 sps:$4 sm:$0xff]   ;;  %v3900_v15 = vld [vmem:[%s4953_s4 + $0x5e0] ss:$44 sps:$4 sm:$0xff]  }
  0xd7   : > { %v3897_v56 = vld [vmem:[%s4953_s4 + $0x5d8] ss:$44 sps:$4 sm:$0xff]   ;;  %v3905_v16 = vld [vmem:[%s4953_s4 + $0x634] ss:$44 sps:$4 sm:$0xff]   ;;  %v3908_v17 = vld [vmem:[%s4953_s4 + $0x63c] ss:$44 sps:$4 sm:$0xff]  }
  0xd8   : > { %v3903_v18 = vld [vmem:[%s4953_s4 + $0x630] ss:$44 sps:$4 sm:$0xff]   ;;  %v3906_v19 = vld [vmem:[%s4953_s4 + $0x638] ss:$44 sps:$4 sm:$0xff]   ;;  %v3914_v21 = vld [vmem:[%s4953_s4 + $0x694] ss:$44 sps:$4 sm:$0xff]  }
  0xd9   : > { %2637 = vmatpush1.bf16.msra.mxu0 %v3835_v27  ;;  %2719 = vmatpush1.bf16.msra.mxu1 %v3836_v28  ;;  %v3911_v20 = vld [vmem:[%s4953_s4 + $0x68c] ss:$44 sps:$4 sm:$0xff]   ;;  %v3909_v22 = vld [vmem:[%s4953_s4 + $0x688] ss:$44 sps:$4 sm:$0xff]   ;;  %v3912_v23 = vld [vmem:[%s4953_s4 + $0x690] ss:$44 sps:$4 sm:$0xff]  }
  0xda   : > { %2638 = vmatprep.subr.bf16.mxu0 %v3837_v29  ;;  %2720 = vmatprep.subr.bf16.mxu1 %v3839_v30  ;;  %v3917_v24 = vld [vmem:[%s4953_s4 + $0x6e4] ss:$44 sps:$4 sm:$0xff]   ;;  %v3920_v25 = vld [vmem:[%s4953_s4 + $0x6ec] ss:$44 sps:$4 sm:$0xff]   ;;  %v3918_v27 = vld [vmem:[%s4953_s4 + $0x6e8] ss:$44 sps:$4 sm:$0xff]  }
  0xdb   : > { %v3915_v26 = vld [vmem:[%s4953_s4 + $0x6e0] ss:$44 sps:$4 sm:$0xff]   ;;  %v3923_v28 = vld [vmem:[%s4953_s4 + $0x73c] ss:$44 sps:$4 sm:$0xff]   ;;  %v3926_v29 = vld [vmem:[%s4953_s4 + $0x744] ss:$44 sps:$4 sm:$0xff]  }
  0xdc   : > { %v3921_v30 = vld [vmem:[%s4953_s4 + $0x738] ss:$44 sps:$4 sm:$0xff]   ;;  %s5369_s7 = smov (!%p818_p8, %s817_s7), 21 }
  0xdd   : > { %2639 = vmatpush1.bf16.msra.mxu0 %v3841_v31  ;;  %2721 = vmatpush1.bf16.msra.mxu1 %v3842_v32  ;;  %v3924_v31 = vld [vmem:[%s4953_s4 + $0x740] ss:$44 sps:$4 sm:$0xff]   ;;  %s5337_s10 = scalar_lea.vmem %s5364_s3, %s5369_s7 }
  0xde   : > { %2640 = vmatprep.subr.bf16.mxu0 %v3843_v33  ;;  %2722 = vmatprep.subr.bf16.mxu1 %v3845_v34  ;;  %v3929_v32 = vld [vmem:[%s4953_s4 + $0x794] ss:$44 sps:$4 sm:$0xff]   ;;  %v3932_v33 = vld [vmem:[%s4953_s4 + $0x79c] ss:$44 sps:$4 sm:$0xff]  }
  0xdf   : > { %v3927_v34 = vld [vmem:[%s4953_s4 + $0x790] ss:$44 sps:$4 sm:$0xff]  }
  0xe1   : > { %2641 = vmatpush1.bf16.msra.mxu0 %v3847_v35  ;;  %2723 = vmatpush1.bf16.msra.mxu1 %v3848_v36  ;;  %v3930_v35 = vld [vmem:[%s4953_s4 + $0x798] ss:$44 sps:$4 sm:$0xff]  }
  0xe2   : > { %2642 = vmatprep.subr.bf16.mxu0 %v3849_v37  ;;  %2724 = vmatprep.subr.bf16.mxu1 %v3851_v38  ;;  %v3935_v36 = vld [vmem:[%s4953_s4 + $0x7ec] ss:$44 sps:$4 sm:$0xff]   ;;  %v3938_v37 = vld [vmem:[%s4953_s4 + $0x7f4] ss:$44 sps:$4 sm:$0xff]  }
  0xe3   : > { %v3933_v38 = vld [vmem:[%s4953_s4 + $0x7e8] ss:$44 sps:$4 sm:$0xff]  }
  0xe5   : > { %2643 = vmatpush1.bf16.msra.mxu0 %v3853_v39  ;;  %2725 = vmatpush1.bf16.msra.mxu1 %v3854_v40  ;;  %v3936_v39 = vld [vmem:[%s4953_s4 + $0x7f0] ss:$44 sps:$4 sm:$0xff]  }
  0xe6   : > { %2644 = vmatprep.subr.bf16.mxu0 %v3855_v41  ;;  %2726 = vmatprep.subr.bf16.mxu1 %v3857_v42  ;;  %v3941_v40 = vld [vmem:[%s4953_s4 + $0x844] ss:$44 sps:$4 sm:$0xff]   ;;  %v3944_v41 = vld [vmem:[%s4953_s4 + $0x84c] ss:$44 sps:$4 sm:$0xff]  }
  0xe7   : > { %v3939_v42 = vld [vmem:[%s4953_s4 + $0x840] ss:$44 sps:$4 sm:$0xff]  }
  0xe9   : > { %2645 = vmatpush1.bf16.msra.mxu0 %v3859_v43  ;;  %2727 = vmatpush1.bf16.msra.mxu1 %v3860_v44  ;;  %v3942_v43 = vld [vmem:[%s4953_s4 + $0x848] ss:$44 sps:$4 sm:$0xff]  }
  0xea   : > { %2646 = vmatprep.subr.bf16.mxu0 %v3861_v45  ;;  %2728 = vmatprep.subr.bf16.mxu1 %v3863_v46  ;;  %v3947_v44 = vld [vmem:[%s4953_s4 + $0x89c] ss:$44 sps:$4 sm:$0xff]   ;;  %v3950_v45 = vld [vmem:[%s4953_s4 + $0x8a4] ss:$44 sps:$4 sm:$0xff]  }
  0xeb   : > { %v3945_v46 = vld [vmem:[%s4953_s4 + $0x898] ss:$44 sps:$4 sm:$0xff]  }
  0xed   : > { %2647 = vmatpush1.bf16.msra.mxu0 %v3865_v47  ;;  %2729 = vmatpush1.bf16.msra.mxu1 %v3866_v48  ;;  %v3948_v47 = vld [vmem:[%s4953_s4 + $0x8a0] ss:$44 sps:$4 sm:$0xff]  }
  0xee   : > { %2648 = vmatprep.subr.bf16.mxu0 %v3867_v49  ;;  %2730 = vmatprep.subr.bf16.mxu1 %v3869_v50  ;;  %v3953_v48 = vld [vmem:[%s4953_s4 + $0x14] ss:$44 sps:$4 sm:$0xff]   ;;  %v3956_v49 = vld [vmem:[%s4953_s4 + $0x1c] ss:$44 sps:$4 sm:$0xff]   ;;  %v5088_v50 = vcombine.high %v5036_v11, %v5036_v11 }
  0xf1   : > { %2649 = vmatpush1.bf16.msra.mxu0 %v3871_v51  ;;  %2731 = vmatpush1.bf16.msra.mxu1 %v3872_v52  ;;  %v3951_v51 = vld [vmem:[%s4953_s4 + $0x10] ss:$44 sps:$4 sm:$0xff]   ;;  %v3954_v52 = vld [vmem:[%s4953_s4 + $0x18] ss:$44 sps:$4 sm:$0xff]  }
  0xf2   : > { %2650 = vmatprep.subr.bf16.mxu0 %v3873_v53  ;;  %2732 = vmatprep.subr.bf16.mxu1 %v3875_v54  ;;  %v3959_v53 = vld [vmem:[%s4953_s4 + $0x6c] ss:$44 sps:$4 sm:$0xff]   ;;  %v3962_v54 = vld [vmem:[%s4953_s4 + $0x74] ss:$44 sps:$4 sm:$0xff]  }
  0xf5   : > { %2651 = vmatpush1.bf16.msra.mxu0 %v3877_v55  ;;  %2733 = vmatpush1.bf16.msra.mxu1 %v3878_v58  ;;  %v3957_v55 = vld [vmem:[%s4953_s4 + $0x68] ss:$44 sps:$4 sm:$0xff]   ;;  %v3960_v58 = vld [vmem:[%s4953_s4 + $0x70] ss:$44 sps:$4 sm:$0xff]  }
  0xf6   : > { %2652 = vmatprep.subr.bf16.mxu0 %v3879_v59  ;;  %2734 = vmatprep.subr.bf16.mxu1 %v3881_v61  ;;  %v3965_v59 = vld [vmem:[%s4953_s4 + $0xc4] ss:$44 sps:$4 sm:$0xff]   ;;  %v3968_v61 = vld [vmem:[%s4953_s4 + $0xcc] ss:$44 sps:$4 sm:$0xff]  }
  0xf9   : > { %2653 = vmatpush1.bf16.msra.mxu0 %v3883_v62  ;;  %2735 = vmatpush1.bf16.msra.mxu1 %v3884_v63  ;;  %v3963_v62 = vld [vmem:[%s4953_s4 + $0xc0] ss:$44 sps:$4 sm:$0xff]   ;;  %v3966_v63 = vld [vmem:[%s4953_s4 + $0xc8] ss:$44 sps:$4 sm:$0xff]  }
  0xfa   : > { %2654 = vmatprep.subr.bf16.mxu0 %v3885_v0  ;;  %2736 = vmatprep.subr.bf16.mxu1 %v3887_v1  ;;  %v3971_v0 = vld [vmem:[%s4953_s4 + $0x11c] ss:$44 sps:$4 sm:$0xff]   ;;  %v3974_v1 = vld [vmem:[%s4953_s4 + $0x124] ss:$44 sps:$4 sm:$0xff]  }
  0xfd   : > { %2655 = vmatpush1.bf16.msra.mxu0 %v3889_v4  ;;  %2737 = vmatpush1.bf16.msra.mxu1 %v3890_v5  ;;  %v3969_v4 = vld [vmem:[%s4953_s4 + $0x118] ss:$44 sps:$4 sm:$0xff]   ;;  %v3972_v5 = vld [vmem:[%s4953_s4 + $0x120] ss:$44 sps:$4 sm:$0xff]  }
  0xfe   : > { %2665 = vmatprep.subr.bf16.mxu0 %v3893_v6  ;;  %2747 = vmatprep.subr.bf16.mxu1 %v3896_v8  ;;  %v3977_v6 = vld [vmem:[%s4953_s4 + $0x174] ss:$44 sps:$4 sm:$0xff]   ;;  %v3980_v8 = vld [vmem:[%s4953_s4 + $0x17c] ss:$44 sps:$4 sm:$0xff]  }
 0x100   : > { %2657 = vmatmul.mubr.bf16.vlgmr.msra.gmra.mrb[0].mxu0 %v5036_v11  ;;  %2739 = vmatmul.mubr.bf16.vlgmr.msra.gmra.mrb[0].mxu1 %v5036_v11 }
 0x101   : > { %2666 = vmatpush1.bf16.msra.mxu0 %v3891_v9  ;;  %2748 = vmatpush1.bf16.msra.mxu1 %v3894_v10  ;;  %v3975_v9 = vld [vmem:[%s4953_s4 + $0x170] ss:$44 sps:$4 sm:$0xff]   ;;  %v3978_v10 = vld [vmem:[%s4953_s4 + $0x178] ss:$44 sps:$4 sm:$0xff]  }
 0x102   : > { %2667 = vmatprep.subr.bf16.mxu0 %v3899_v12  ;;  %2749 = vmatprep.subr.bf16.mxu1 %v3902_v13  ;;  %v3983_v12 = vld [vmem:[%s4953_s4 + $0x1cc] ss:$44 sps:$4 sm:$0xff]   ;;  %v3986_v13 = vld [vmem:[%s4953_s4 + $0x1d4] ss:$44 sps:$4 sm:$0xff]  }
 0x103   : > { %3713 = vmatprep.mubr.msk.bf16.mxu0 %vm2620_vm0, %v5042_v14  ;;  %3714 = vmatprep.mubr.msk.bf16.mxu1 %vm2620_vm0, %v5042_v14 }
 0x105   : > { %2668 = vmatpush1.bf16.msra.mxu0 %v3897_v56  ;;  %2750 = vmatpush1.bf16.msra.mxu1 %v3900_v15  ;;  %v3114_v56 = vld [vmem:[%s5363_s2] sm:$0x1]  ;;  %v3981_v15 = vld [vmem:[%s4953_s4 + $0x1c8] ss:$44 sps:$4 sm:$0xff]  }
 0x106   : > { %2669 = vmatprep.subr.bf16.mxu0 %v3905_v16  ;;  %2751 = vmatprep.subr.bf16.mxu1 %v3908_v17  ;;  %v3984_v16 = vld [vmem:[%s4953_s4 + $0x1d0] ss:$44 sps:$4 sm:$0xff]  }
 0x107   : > { %3117 = vperm.xlu0 %3793, %v3114_v56   ;;  %v3989_v17 = vld [vmem:[%s4953_s4 + $0x224] ss:$44 sps:$4 sm:$0xff]  }
 0x109   : > { %2670 = vmatpush1.bf16.msra.mxu0 %v3903_v18  ;;  %2752 = vmatpush1.bf16.msra.mxu1 %v3906_v19  ;;  %v3992_v18 = vld [vmem:[%s4953_s4 + $0x22c] ss:$44 sps:$4 sm:$0xff]  }
 0x10a   : > { %2671 = vmatprep.subr.bf16.mxu0 %v3911_v20  ;;  %2753 = vmatprep.subr.bf16.mxu1 %v3914_v21  ;;  %v3987_v19 = vld [vmem:[%s4953_s4 + $0x220] ss:$44 sps:$4 sm:$0xff]   ;;  %v4259_v20 = vmov 1   ;;  %v3990_v21 = vld [vmem:[%s4953_s4 + $0x228] ss:$44 sps:$4 sm:$0xff]  }
 0x10b   : > { %3794 = vset.pattern.permute.xlu0 %v4259_v20  ;;  %v4071_v20 = vld [vmem:[%s4953_s4 + $0x6f0] ss:$44 sps:$4 sm:$0xff]  }
 0x10c   : > { %3136 = vperm.xlu0 %3794, %v3114_v56   ;;  %v4067_v56 = vld [vmem:[%s4953_s4 + $0x69c] ss:$44 sps:$4 sm:$0xff]  }
 0x10d   : > { %2672 = vmatpush1.bf16.msra.mxu0 %v3909_v22  ;;  %2754 = vmatpush1.bf16.msra.mxu1 %v3912_v23  ;;  %v3995_v22 = vld [vmem:[%s4953_s4 + $0x27c] ss:$44 sps:$4 sm:$0xff]   ;;  %v3998_v23 = vld [vmem:[%s4953_s4 + $0x284] ss:$44 sps:$4 sm:$0xff]  }
 0x10e   : > { %2673 = vmatprep.subr.bf16.mxu0 %v3917_v24  ;;  %2755 = vmatprep.subr.bf16.mxu1 %v3920_v25  ;;  %v3993_v24 = vld [vmem:[%s4953_s4 + $0x278] ss:$44 sps:$4 sm:$0xff]   ;;  %v3996_v25 = vld [vmem:[%s4953_s4 + $0x280] ss:$44 sps:$4 sm:$0xff]  }
 0x111   : > { %2674 = vmatpush1.bf16.msra.mxu0 %v3915_v26  ;;  %2756 = vmatpush1.bf16.msra.mxu1 %v3918_v27  ;;  %v4001_v26 = vld [vmem:[%s4953_s4 + $0x2d4] ss:$44 sps:$4 sm:$0xff]   ;;  %v4004_v27 = vld [vmem:[%s4953_s4 + $0x2dc] ss:$44 sps:$4 sm:$0xff]  }
 0x112   : > { %2675 = vmatprep.subr.bf16.mxu0 %v3923_v28  ;;  %2757 = vmatprep.subr.bf16.mxu1 %v3926_v29  ;;  %v3999_v28 = vld [vmem:[%s4953_s4 + $0x2d0] ss:$44 sps:$4 sm:$0xff]   ;;  %v4002_v29 = vld [vmem:[%s4953_s4 + $0x2d8] ss:$44 sps:$4 sm:$0xff]  }
 0x115   : > { %2676 = vmatpush1.bf16.msra.mxu0 %v3921_v30  ;;  %2758 = vmatpush1.bf16.msra.mxu1 %v3924_v31  ;;  %v4007_v30 = vld [vmem:[%s4953_s4 + $0x32c] ss:$44 sps:$4 sm:$0xff]   ;;  %v4010_v31 = vld [vmem:[%s4953_s4 + $0x334] ss:$44 sps:$4 sm:$0xff]  }
 0x116   : > { %2677 = vmatprep.subr.bf16.mxu0 %v3929_v32  ;;  %2759 = vmatprep.subr.bf16.mxu1 %v3932_v33  ;;  %v4005_v32 = vld [vmem:[%s4953_s4 + $0x328] ss:$44 sps:$4 sm:$0xff]   ;;  %v4008_v33 = vld [vmem:[%s4953_s4 + $0x330] ss:$44 sps:$4 sm:$0xff]  }
 0x119   : > { %2678 = vmatpush1.bf16.msra.mxu0 %v3927_v34  ;;  %2760 = vmatpush1.bf16.msra.mxu1 %v3930_v35  ;;  %v4013_v34 = vld [vmem:[%s4953_s4 + $0x384] ss:$44 sps:$4 sm:$0xff]   ;;  %v4016_v35 = vld [vmem:[%s4953_s4 + $0x38c] ss:$44 sps:$4 sm:$0xff]  }
 0x11a   : > { %2679 = vmatprep.subr.bf16.mxu0 %v3935_v36  ;;  %2761 = vmatprep.subr.bf16.mxu1 %v3938_v37  ;;  %v4011_v36 = vld [vmem:[%s4953_s4 + $0x380] ss:$44 sps:$4 sm:$0xff]   ;;  %v4014_v37 = vld [vmem:[%s4953_s4 + $0x388] ss:$44 sps:$4 sm:$0xff]  }
 0x11d   : > { %2680 = vmatpush1.bf16.msra.mxu0 %v3933_v38  ;;  %2762 = vmatpush1.bf16.msra.mxu1 %v3936_v39  ;;  %v4019_v38 = vld [vmem:[%s4953_s4 + $0x3dc] ss:$44 sps:$4 sm:$0xff]   ;;  %v4022_v39 = vld [vmem:[%s4953_s4 + $0x3e4] ss:$44 sps:$4 sm:$0xff]  }
 0x11e   : > { %2681 = vmatprep.subr.bf16.mxu0 %v3941_v40  ;;  %2763 = vmatprep.subr.bf16.mxu1 %v3944_v41  ;;  %v4017_v40 = vld [vmem:[%s4953_s4 + $0x3d8] ss:$44 sps:$4 sm:$0xff]   ;;  %v4020_v41 = vld [vmem:[%s4953_s4 + $0x3e0] ss:$44 sps:$4 sm:$0xff]  }
 0x121   : > { %2682 = vmatpush1.bf16.msra.mxu0 %v3939_v42  ;;  %2764 = vmatpush1.bf16.msra.mxu1 %v3942_v43  ;;  %v4025_v42 = vld [vmem:[%s4953_s4 + $0x434] ss:$44 sps:$4 sm:$0xff]   ;;  %v4028_v43 = vld [vmem:[%s4953_s4 + $0x43c] ss:$44 sps:$4 sm:$0xff]  }
 0x122   : > { %2683 = vmatprep.subr.bf16.mxu0 %v3947_v44  ;;  %2765 = vmatprep.subr.bf16.mxu1 %v3950_v45  ;;  %v4023_v44 = vld [vmem:[%s4953_s4 + $0x430] ss:$44 sps:$4 sm:$0xff]   ;;  %v4026_v45 = vld [vmem:[%s4953_s4 + $0x438] ss:$44 sps:$4 sm:$0xff]  }
 0x125   : > { %2684 = vmatpush1.bf16.msra.mxu0 %v3945_v46  ;;  %2766 = vmatpush1.bf16.msra.mxu1 %v3948_v47  ;;  %v4031_v46 = vld [vmem:[%s4953_s4 + $0x48c] ss:$44 sps:$4 sm:$0xff]   ;;  %v4034_v47 = vld [vmem:[%s4953_s4 + $0x494] ss:$44 sps:$4 sm:$0xff]  }
 0x126   : > { %2788 = vmatprep.subr.bf16.mxu0 %v3953_v48  ;;  %2870 = vmatprep.subr.bf16.mxu1 %v3956_v49  ;;  %v4029_v48 = vld [vmem:[%s4953_s4 + $0x488] ss:$44 sps:$4 sm:$0xff]   ;;  %v4032_v49 = vld [vmem:[%s4953_s4 + $0x490] ss:$44 sps:$4 sm:$0xff]  }
 0x128   : > { %2698 = vmatmul.mubr.bf16.vlgmr.msra.gmra.mrb[0].mxu0 %v5088_v50  ;;  %2780 = vmatmul.mubr.bf16.vlgmr.msra.gmra.mrb[0].mxu1 %v5088_v50 }
 0x129   : > { %2789 = vmatpush1.bf16.msra.mxu0 %v3951_v51  ;;  %2871 = vmatpush1.bf16.msra.mxu1 %v3954_v52  ;;  %v4037_v51 = vld [vmem:[%s4953_s4 + $0x4e4] ss:$44 sps:$4 sm:$0xff]   ;;  %v4040_v52 = vld [vmem:[%s4953_s4 + $0x4ec] ss:$44 sps:$4 sm:$0xff]  }
 0x12a   : > { %2790 = vmatprep.subr.bf16.mxu0 %v3959_v53  ;;  %2872 = vmatprep.subr.bf16.mxu1 %v3962_v54  ;;  %v4035_v53 = vld [vmem:[%s4953_s4 + $0x4e0] ss:$44 sps:$4 sm:$0xff]   ;;  %v4038_v54 = vld [vmem:[%s4953_s4 + $0x4e8] ss:$44 sps:$4 sm:$0xff]  }
 0x12b   : > { %2820 = vmatprep.mubr.bf16.mxu0 %v4968_v7  ;;  %2902 = vmatprep.mubr.bf16.mxu1 %v4968_v7 }
 0x12d   : > { %2791 = vmatpush1.bf16.msra.mxu0 %v3957_v55  ;;  %2873 = vmatpush1.bf16.msra.mxu1 %v3960_v58  ;;  %v4043_v55 = vld [vmem:[%s4953_s4 + $0x53c] ss:$44 sps:$4 sm:$0xff]   ;;  %v4046_v58 = vld [vmem:[%s4953_s4 + $0x544] ss:$44 sps:$4 sm:$0xff]  }
 0x12e   : > { %2792 = vmatprep.subr.bf16.mxu0 %v3965_v59  ;;  %2874 = vmatprep.subr.bf16.mxu1 %v3968_v61  ;;  %v4041_v59 = vld [vmem:[%s4953_s4 + $0x538] ss:$44 sps:$4 sm:$0xff]   ;;  %v4044_v61 = vld [vmem:[%s4953_s4 + $0x540] ss:$44 sps:$4 sm:$0xff]  }
 0x131   : > { %2793 = vmatpush1.bf16.msra.mxu0 %v3963_v62  ;;  %2875 = vmatpush1.bf16.msra.mxu1 %v3966_v63  ;;  %v4049_v62 = vld [vmem:[%s4953_s4 + $0x594] ss:$44 sps:$4 sm:$0xff]   ;;  %v4052_v63 = vld [vmem:[%s4953_s4 + $0x59c] ss:$44 sps:$4 sm:$0xff]  }
 0x132   : > { %2794 = vmatprep.subr.bf16.mxu0 %v3971_v0  ;;  %2876 = vmatprep.subr.bf16.mxu1 %v3974_v1  ;;  %v4047_v0 = vld [vmem:[%s4953_s4 + $0x590] ss:$44 sps:$4 sm:$0xff]   ;;  %v4050_v1 = vld [vmem:[%s4953_s4 + $0x598] ss:$44 sps:$4 sm:$0xff]  }
 0x135   : > { %2795 = vmatpush1.bf16.msra.mxu0 %v3969_v4  ;;  %2877 = vmatpush1.bf16.msra.mxu1 %v3972_v5  ;;  %v4055_v4 = vld [vmem:[%s4953_s4 + $0x5ec] ss:$44 sps:$4 sm:$0xff]   ;;  %v4058_v5 = vld [vmem:[%s4953_s4 + $0x5f4] ss:$44 sps:$4 sm:$0xff]  }
 0x136   : > { %2796 = vmatprep.subr.bf16.mxu0 %v3977_v6  ;;  %2878 = vmatprep.subr.bf16.mxu1 %v3980_v8  ;;  %v4053_v6 = vld [vmem:[%s4953_s4 + $0x5e8] ss:$44 sps:$4 sm:$0xff]   ;;  %v4056_v8 = vld [vmem:[%s4953_s4 + $0x5f0] ss:$44 sps:$4 sm:$0xff]  }
 0x139   : > { %2797 = vmatpush1.bf16.msra.mxu0 %v3975_v9  ;;  %2879 = vmatpush1.bf16.msra.mxu1 %v3978_v10  ;;  %v4061_v9 = vld [vmem:[%s4953_s4 + $0x644] ss:$44 sps:$4 sm:$0xff]   ;;  %v4064_v10 = vld [vmem:[%s4953_s4 + $0x64c] ss:$44 sps:$4 sm:$0xff]  }
 0x13a   : > { %2798 = vmatprep.subr.bf16.mxu0 %v3983_v12  ;;  %2880 = vmatprep.subr.bf16.mxu1 %v3986_v13  ;;  %v4059_v12 = vld [vmem:[%s4953_s4 + $0x640] ss:$44 sps:$4 sm:$0xff]   ;;  %v4062_v13 = vld [vmem:[%s4953_s4 + $0x648] ss:$44 sps:$4 sm:$0xff]  }
 0x13d   : > { %2799 = vmatpush1.bf16.msra.mxu0 %v3981_v15  ;;  %2881 = vmatpush1.bf16.msra.mxu1 %v3984_v16  ;;  %v4070_v15 = vld [vmem:[%s4953_s4 + $0x6a4] ss:$44 sps:$4 sm:$0xff]  }
 0x13e   : > { %2800 = vmatprep.subr.bf16.mxu0 %v3989_v17  ;;  %2882 = vmatprep.subr.bf16.mxu1 %v3992_v18  ;;  %v4065_v16 = vld [vmem:[%s4953_s4 + $0x698] ss:$44 sps:$4 sm:$0xff]   ;;  %v4068_v17 = vld [vmem:[%s4953_s4 + $0x6a0] ss:$44 sps:$4 sm:$0xff]  }
 0x13f   : > { %v4073_v18 = vld [vmem:[%s4953_s4 + $0x6f4] ss:$44 sps:$4 sm:$0xff]  }
 0x141   : > { %2801 = vmatpush1.bf16.msra.mxu0 %v3987_v19  ;;  %2883 = vmatpush1.bf16.msra.mxu1 %v3990_v21  ;;  %v4076_v19 = vld [vmem:[%s4953_s4 + $0x6fc] ss:$44 sps:$4 sm:$0xff]   ;;  %v4074_v21 = vld [vmem:[%s4953_s4 + $0x6f8] ss:$44 sps:$4 sm:$0xff]  }
 0x142   : > { %2802 = vmatprep.subr.bf16.mxu0 %v3995_v22  ;;  %2884 = vmatprep.subr.bf16.mxu1 %v3998_v23  ;;  %v4079_v22 = vld [vmem:[%s4953_s4 + $0x74c] ss:$44 sps:$4 sm:$0xff]   ;;  %v4082_v23 = vld [vmem:[%s4953_s4 + $0x754] ss:$44 sps:$4 sm:$0xff]  }
 0x145   : > { %2803 = vmatpush1.bf16.msra.mxu0 %v3993_v24  ;;  %2885 = vmatpush1.bf16.msra.mxu1 %v3996_v25  ;;  %v4077_v24 = vld [vmem:[%s4953_s4 + $0x748] ss:$44 sps:$4 sm:$0xff]   ;;  %v4080_v25 = vld [vmem:[%s4953_s4 + $0x750] ss:$44 sps:$4 sm:$0xff]  }
 0x146   : > { %2804 = vmatprep.subr.bf16.mxu0 %v4001_v26  ;;  %2886 = vmatprep.subr.bf16.mxu1 %v4004_v27  ;;  %v4085_v26 = vld [vmem:[%s4953_s4 + $0x7a4] ss:$44 sps:$4 sm:$0xff]   ;;  %v4088_v27 = vld [vmem:[%s4953_s4 + $0x7ac] ss:$44 sps:$4 sm:$0xff]  }
 0x149   : > { %2805 = vmatpush1.bf16.msra.mxu0 %v3999_v28  ;;  %2887 = vmatpush1.bf16.msra.mxu1 %v4002_v29  ;;  %v4083_v28 = vld [vmem:[%s4953_s4 + $0x7a0] ss:$44 sps:$4 sm:$0xff]   ;;  %v4086_v29 = vld [vmem:[%s4953_s4 + $0x7a8] ss:$44 sps:$4 sm:$0xff]  }
 0x14a   : > { %2806 = vmatprep.subr.bf16.mxu0 %v4007_v30  ;;  %2888 = vmatprep.subr.bf16.mxu1 %v4010_v31  ;;  %v4091_v30 = vld [vmem:[%s4953_s4 + $0x7fc] ss:$44 sps:$4 sm:$0xff]   ;;  %v4094_v31 = vld [vmem:[%s4953_s4 + $0x804] ss:$44 sps:$4 sm:$0xff]  }
 0x14d   : > { %2807 = vmatpush1.bf16.msra.mxu0 %v4005_v32  ;;  %2889 = vmatpush1.bf16.msra.mxu1 %v4008_v33  ;;  %v4089_v32 = vld [vmem:[%s4953_s4 + $0x7f8] ss:$44 sps:$4 sm:$0xff]   ;;  %v4092_v33 = vld [vmem:[%s4953_s4 + $0x800] ss:$44 sps:$4 sm:$0xff]  }
 0x14e   : > { %2808 = vmatprep.subr.bf16.mxu0 %v4013_v34  ;;  %2890 = vmatprep.subr.bf16.mxu1 %v4016_v35  ;;  %v4097_v34 = vld [vmem:[%s4953_s4 + $0x854] ss:$44 sps:$4 sm:$0xff]   ;;  %v4100_v35 = vld [vmem:[%s4953_s4 + $0x85c] ss:$44 sps:$4 sm:$0xff]  }
 0x151   : > { %2809 = vmatpush1.bf16.msra.mxu0 %v4011_v36  ;;  %2891 = vmatpush1.bf16.msra.mxu1 %v4014_v37  ;;  %v4095_v36 = vld [vmem:[%s4953_s4 + $0x850] ss:$44 sps:$4 sm:$0xff]   ;;  %v4098_v37 = vld [vmem:[%s4953_s4 + $0x858] ss:$44 sps:$4 sm:$0xff]  }
 0x152   : > { %2810 = vmatprep.subr.bf16.mxu0 %v4019_v38  ;;  %2892 = vmatprep.subr.bf16.mxu1 %v4022_v39  ;;  %v4103_v38 = vld [vmem:[%s4953_s4 + $0x8ac] ss:$44 sps:$4 sm:$0xff]   ;;  %v4106_v39 = vld [vmem:[%s4953_s4 + $0x8b4] ss:$44 sps:$4 sm:$0xff]  }
 0x155   : > { %2811 = vmatpush1.bf16.msra.mxu0 %v4017_v40  ;;  %2893 = vmatpush1.bf16.msra.mxu1 %v4020_v41  ;;  %v4101_v40 = vld [vmem:[%s4953_s4 + $0x8a8] ss:$44 sps:$4 sm:$0xff]   ;;  %v4104_v41 = vld [vmem:[%s4953_s4 + $0x8b0] ss:$44 sps:$4 sm:$0xff]  }
 0x156   : > { %2812 = vmatprep.subr.bf16.mxu0 %v4025_v42  ;;  %2894 = vmatprep.subr.bf16.mxu1 %v4028_v43  ;;  %v4109_v42 = vld [vmem:[%s4953_s4 + $0x24] ss:$44 sps:$4 sm:$0xff]   ;;  %v4110_v43 = vld [vmem:[%s4953_s4 + $0x2e8] ss:$44 sps:$4 sm:$0xff]  }
 0x159   : > { %2813 = vmatpush1.bf16.msra.mxu0 %v4023_v44  ;;  %2895 = vmatpush1.bf16.msra.mxu1 %v4026_v45  ;;  %v4107_v44 = vld [vmem:[%s4953_s4 + $0x20] ss:$44 sps:$4 sm:$0xff]   ;;  %v4111_v45 = vld [vmem:[%s4953_s4 + $0x28] ss:$44 sps:$4 sm:$0xff]  }
 0x15a   : > { %2814 = vmatprep.subr.bf16.mxu0 %v4031_v46  ;;  %2896 = vmatprep.subr.bf16.mxu1 %v4034_v47  ;;  %v4114_v46 = vld [vmem:[%s4953_s4 + $0x7c] ss:$44 sps:$4 sm:$0xff]   ;;  %v4115_v47 = vld [vmem:[%s4953_s4 + $0x340] ss:$44 sps:$4 sm:$0xff]  }
 0x15d   : > { %2815 = vmatpush1.bf16.msra.mxu0 %v4029_v48  ;;  %2897 = vmatpush1.bf16.msra.mxu1 %v4032_v49  ;;  %v4112_v48 = vld [vmem:[%s4953_s4 + $0x78] ss:$44 sps:$4 sm:$0xff]   ;;  %v4116_v49 = vld [vmem:[%s4953_s4 + $0x80] ss:$44 sps:$4 sm:$0xff]  }
 0x15e   : > { %2816 = vmatprep.subr.bf16.mxu0 %v4037_v51  ;;  %2898 = vmatprep.subr.bf16.mxu1 %v4040_v52  ;;  %v4119_v51 = vld [vmem:[%s4953_s4 + $0xd4] ss:$44 sps:$4 sm:$0xff]   ;;  %v4120_v52 = vld [vmem:[%s4953_s4 + $0x398] ss:$44 sps:$4 sm:$0xff]  }
 0x161   : > { %2817 = vmatpush1.bf16.msra.mxu0 %v4035_v53  ;;  %2899 = vmatpush1.bf16.msra.mxu1 %v4038_v54  ;;  %v4117_v53 = vld [vmem:[%s4953_s4 + $0xd0] ss:$44 sps:$4 sm:$0xff]   ;;  %v4121_v54 = vld [vmem:[%s4953_s4 + $0xd8] ss:$44 sps:$4 sm:$0xff]  }
 0x162   : > { %2818 = vmatprep.subr.bf16.mxu0 %v4043_v55  ;;  %2900 = vmatprep.subr.bf16.mxu1 %v4046_v58  ;;  %v4124_v55 = vld [vmem:[%s4953_s4 + $0x12c] ss:$44 sps:$4 sm:$0xff]   ;;  %v4125_v58 = vld [vmem:[%s4953_s4 + $0x3f0] ss:$44 sps:$4 sm:$0xff]  }
 0x165   : > { %2819 = vmatpush1.bf16.msra.mxu0 %v4041_v59  ;;  %2901 = vmatpush1.bf16.msra.mxu1 %v4044_v61  ;;  %v4122_v59 = vld [vmem:[%s4953_s4 + $0x128] ss:$44 sps:$4 sm:$0xff]   ;;  %v4126_v61 = vld [vmem:[%s4953_s4 + $0x130] ss:$44 sps:$4 sm:$0xff]  }
 0x166   : > { %2829 = vmatprep.subr.bf16.mxu0 %v4049_v62  ;;  %2911 = vmatprep.subr.bf16.mxu1 %v4052_v63  ;;  %v4130_v62 = vld [vmem:[%s4953_s4 + $0x448] ss:$44 sps:$4 sm:$0xff]   ;;  %v4127_v63 = vld [vmem:[%s4953_s4 + $0x180] ss:$44 sps:$4 sm:$0xff]  }
 0x168   : > { %2821 = vmatmul.mubr.bf16.vlgmr.msra.gmra.mrb[4].mxu0 %v5036_v11  ;;  %2903 = vmatmul.mubr.bf16.vlgmr.msra.gmra.mrb[4].mxu1 %v5036_v11 }
 0x169   : > { %2830 = vmatpush1.bf16.msra.mxu0 %v4047_v0  ;;  %2912 = vmatpush1.bf16.msra.mxu1 %v4050_v1  ;;  %v4131_v0 = vld [vmem:[%s4953_s4 + $0x188] ss:$44 sps:$4 sm:$0xff]  }
 0x16a   : > { %2831 = vmatprep.subr.bf16.mxu0 %v4055_v4  ;;  %2913 = vmatprep.subr.bf16.mxu1 %v4058_v5  ;;  %v4134_v1 = vld [vmem:[%s4953_s4 + $0x1dc] ss:$44 sps:$4 sm:$0xff]   ;;  %v4135_v4 = vld [vmem:[%s4953_s4 + $0x4a0] ss:$44 sps:$4 sm:$0xff]   ;;  %v4132_v5 = vld [vmem:[%s4953_s4 + $0x1d8] ss:$44 sps:$4 sm:$0xff]  }
 0x16b   : > { %3715 = vmatprep.mubr.msk.bf16.mxu0 %vm2620_vm0, %v5042_v14  ;;  %3716 = vmatprep.mubr.msk.bf16.mxu1 %vm2620_vm0, %v5042_v14 }
 0x16d   : > { %2832 = vmatpush1.bf16.msra.mxu0 %v4053_v6  ;;  %2914 = vmatpush1.bf16.msra.mxu1 %v4056_v8  ;;  %v4136_v6 = vld [vmem:[%s4953_s4 + $0x1e0] ss:$44 sps:$4 sm:$0xff]  }
 0x16e   : > { %2833 = vmatprep.subr.bf16.mxu0 %v4061_v9  ;;  %2915 = vmatprep.subr.bf16.mxu1 %v4064_v10  ;;  %v4139_v8 = vld [vmem:[%s4953_s4 + $0x234] ss:$44 sps:$4 sm:$0xff]   ;;  %v4140_v9 = vld [vmem:[%s4953_s4 + $0x4f8] ss:$44 sps:$4 sm:$0xff]   ;;  %v4137_v10 = vld [vmem:[%s4953_s4 + $0x230] ss:$44 sps:$4 sm:$0xff]  }
 0x171   : > { %2834 = vmatpush1.bf16.msra.mxu0 %v4059_v12  ;;  %2916 = vmatpush1.bf16.msra.mxu1 %v4062_v13  ;;  %v4141_v12 = vld [vmem:[%s4953_s4 + $0x238] ss:$44 sps:$4 sm:$0xff]  }
 0x172   : > { %2835 = vmatprep.subr.bf16.mxu0 %v4067_v56  ;;  %2917 = vmatprep.subr.bf16.mxu1 %v4070_v15  ;;  %v4144_v13 = vld [vmem:[%s4953_s4 + $0x28c] ss:$44 sps:$4 sm:$0xff]   ;;  %v4145_v56 = vld [vmem:[%s4953_s4 + $0x550] ss:$44 sps:$4 sm:$0xff]   ;;  %v4142_v15 = vld [vmem:[%s4953_s4 + $0x288] ss:$44 sps:$4 sm:$0xff]  }
 0x175   : > { %2836 = vmatpush1.bf16.msra.mxu0 %v4065_v16  ;;  %2918 = vmatpush1.bf16.msra.mxu1 %v4068_v17  ;;  %v4146_v16 = vld [vmem:[%s4953_s4 + $0x290] ss:$44 sps:$4 sm:$0xff]  }
 0x176   : > { %2837 = vmatprep.subr.bf16.mxu0 %v4073_v18  ;;  %2919 = vmatprep.subr.bf16.mxu1 %v4076_v19  ;;  %v4149_v17 = vld [vmem:[%s4953_s4 + $0x2e4] ss:$44 sps:$4 sm:$0xff]   ;;  %v4147_v18 = vld [vmem:[%s4953_s4 + $0x2e0] ss:$44 sps:$4 sm:$0xff]   ;;  %v4150_v19 = vld [vmem:[%s4953_s4 + $0x5a8] ss:$44 sps:$4 sm:$0xff]  }
 0x179   : > { %2838 = vmatpush1.bf16.msra.mxu0 %v4071_v20  ;;  %2920 = vmatpush1.bf16.msra.mxu1 %v4074_v21  ;;  %v4153_v20 = vld [vmem:[%s4953_s4 + $0x33c] ss:$44 sps:$4 sm:$0xff]   ;;  %v4151_v21 = vld [vmem:[%s4953_s4 + $0x338] ss:$44 sps:$4 sm:$0xff]  }
 0x17a   : > { %2839 = vmatprep.subr.bf16.mxu0 %v4079_v22  ;;  %2921 = vmatprep.subr.bf16.mxu1 %v4082_v23  ;;  %v4154_v22 = vld [vmem:[%s4953_s4 + $0x600] ss:$44 sps:$4 sm:$0xff]  }
 0x17b   : > { %v4157_v23 = vld [vmem:[%s4953_s4 + $0x394] ss:$44 sps:$4 sm:$0xff]  }
 0x17d   : > { %2840 = vmatpush1.bf16.msra.mxu0 %v4077_v24  ;;  %2922 = vmatpush1.bf16.msra.mxu1 %v4080_v25  ;;  %v4155_v24 = vld [vmem:[%s4953_s4 + $0x390] ss:$44 sps:$4 sm:$0xff]   ;;  %v4158_v25 = vld [vmem:[%s4953_s4 + $0x658] ss:$44 sps:$4 sm:$0xff]  }
 0x17e   : > { %2841 = vmatprep.subr.bf16.mxu0 %v4085_v26  ;;  %2923 = vmatprep.subr.bf16.mxu1 %v4088_v27  ;;  %v4161_v26 = vld [vmem:[%s4953_s4 + $0x3ec] ss:$44 sps:$4 sm:$0xff]   ;;  %v4159_v27 = vld [vmem:[%s4953_s4 + $0x3e8] ss:$44 sps:$4 sm:$0xff]  }
 0x181   : > { %2842 = vmatpush1.bf16.msra.mxu0 %v4083_v28  ;;  %2924 = vmatpush1.bf16.msra.mxu1 %v4086_v29  ;;  %v4162_v28 = vld [vmem:[%s4953_s4 + $0x6b0] ss:$44 sps:$4 sm:$0xff]  }
 0x182   : > { %2843 = vmatprep.subr.bf16.mxu0 %v4091_v30  ;;  %2925 = vmatprep.subr.bf16.mxu1 %v4094_v31  ;;  %v4165_v29 = vld [vmem:[%s4953_s4 + $0x444] ss:$44 sps:$4 sm:$0xff]   ;;  %v4163_v30 = vld [vmem:[%s4953_s4 + $0x440] ss:$44 sps:$4 sm:$0xff]   ;;  %v4166_v31 = vld [vmem:[%s4953_s4 + $0x708] ss:$44 sps:$4 sm:$0xff]  }
 0x185   : > { %2844 = vmatpush1.bf16.msra.mxu0 %v4089_v32  ;;  %2926 = vmatpush1.bf16.msra.mxu1 %v4092_v33  ;;  %v4169_v32 = vld [vmem:[%s4953_s4 + $0x49c] ss:$44 sps:$4 sm:$0xff]   ;;  %v4167_v33 = vld [vmem:[%s4953_s4 + $0x498] ss:$44 sps:$4 sm:$0xff]  }
 0x186   : > { %2845 = vmatprep.subr.bf16.mxu0 %v4097_v34  ;;  %2927 = vmatprep.subr.bf16.mxu1 %v4100_v35  ;;  %v4170_v34 = vld [vmem:[%s4953_s4 + $0x760] ss:$44 sps:$4 sm:$0xff]  }
 0x187   : > { %v4173_v35 = vld [vmem:[%s4953_s4 + $0x4f4] ss:$44 sps:$4 sm:$0xff]  }
 0x189   : > { %2846 = vmatpush1.bf16.msra.mxu0 %v4095_v36  ;;  %2928 = vmatpush1.bf16.msra.mxu1 %v4098_v37  ;;  %v4171_v36 = vld [vmem:[%s4953_s4 + $0x4f0] ss:$44 sps:$4 sm:$0xff]   ;;  %v4174_v37 = vld [vmem:[%s4953_s4 + $0x7b8] ss:$44 sps:$4 sm:$0xff]  }
 0x18a   : > { %2847 = vmatprep.subr.bf16.mxu0 %v4103_v38  ;;  %2929 = vmatprep.subr.bf16.mxu1 %v4106_v39  ;;  %v4177_v38 = vld [vmem:[%s4953_s4 + $0x54c] ss:$44 sps:$4 sm:$0xff]   ;;  %v4175_v39 = vld [vmem:[%s4953_s4 + $0x548] ss:$44 sps:$4 sm:$0xff]  }
 0x18d   : > { %2848 = vmatpush1.bf16.msra.mxu0 %v4101_v40  ;;  %2930 = vmatpush1.bf16.msra.mxu1 %v4104_v41  ;;  %v4178_v40 = vld [vmem:[%s4953_s4 + $0x810] ss:$44 sps:$4 sm:$0xff]  }
 0x18e   : > { %2952 = vmatprep.subr.bf16.mxu0 %v4109_v42  ;;  %3722 = vmatprep.subr.bf16.mxu1 %v4110_v43  ;;  %v4181_v41 = vld [vmem:[%s4953_s4 + $0x5a4] ss:$44 sps:$4 sm:$0xff]   ;;  %v4179_v42 = vld [vmem:[%s4953_s4 + $0x5a0] ss:$44 sps:$4 sm:$0xff]   ;;  %v4182_v43 = vld [vmem:[%s4953_s4 + $0x868] ss:$44 sps:$4 sm:$0xff]  }
 0x190   : > { %2862 = vmatmul.mubr.bf16.vlgmr.msra.gmra.mrb[4].mxu0 %v5088_v50  ;;  %2944 = vmatmul.mubr.bf16.vlgmr.msra.gmra.mrb[4].mxu1 %v5088_v50 }
 0x191   : > { %2953 = vmatpush1.bf16.msra.mxu0 %v4107_v44  ;;  %3723 = vmatpush3.bf16.msra.mxu1 %v4111_v45  ;;  %v4185_v44 = vld [vmem:[%s4953_s4 + $0x5fc] ss:$44 sps:$4 sm:$0xff]   ;;  %v4183_v45 = vld [vmem:[%s4953_s4 + $0x5f8] ss:$44 sps:$4 sm:$0xff]  }
 0x192   : > { %2954 = vmatprep.subr.bf16.mxu0 %v4114_v46  ;;  %3724 = vmatprep.subr.bf16.mxu1 %v4115_v47  ;;  %v4186_v46 = vld [vmem:[%s4953_s4 + $0x8c0] ss:$44 sps:$4 sm:$0xff]  }
 0x193   : > { %3066 = vmatprep.mubr.bf16.mxu1 %v4968_v7  ;;  %2984 = vmatprep.mubr.bf16.mxu0 %v4968_v7  ;;  %v4129_v7 = vld [vmem:[%s4953_s4 + $0x184] ss:$44 sps:$4 sm:$0xff]   ;;  %v4189_v47 = vld [vmem:[%s4953_s4 + $0x654] ss:$44 sps:$4 sm:$0xff]  }
 0x195   : > { %2955 = vmatpush1.bf16.msra.mxu0 %v4112_v48  ;;  %3725 = vmatpush3.bf16.msra.mxu1 %v4116_v49  ;;  %v4192_v48 = vld [vmem:[%s4953_s4 + $0x6ac] ss:$44 sps:$4 sm:$0xff]   ;;  %v4190_v49 = vld [vmem:[%s4953_s4 + $0x6a8] ss:$44 sps:$4 sm:$0xff]  }
 0x196   : > { %2956 = vmatprep.subr.bf16.mxu0 %v4119_v51  ;;  %3726 = vmatprep.subr.bf16.mxu1 %v4120_v52  ;;  %v4193_v51 = vld [vmem:[%s4953_s4 + $0x700] ss:$44 sps:$4 sm:$0xff]   ;;  %v4196_v52 = vld [vmem:[%s4953_s4 + $0x758] ss:$44 sps:$4 sm:$0xff]  }
 0x199   : > { %2957 = vmatpush1.bf16.msra.mxu0 %v4117_v53  ;;  %3727 = vmatpush3.bf16.msra.mxu1 %v4121_v54  ;;  %v4201_v53 = vld [vmem:[%s4953_s4 + $0x7b4] ss:$44 sps:$4 sm:$0xff]   ;;  %v4199_v54 = vld [vmem:[%s4953_s4 + $0x7b0] ss:$44 sps:$4 sm:$0xff]  }
 0x19a   : > { %2958 = vmatprep.subr.bf16.mxu0 %v4124_v55  ;;  %3728 = vmatprep.subr.bf16.mxu1 %v4125_v58  ;;  %v4204_v55 = vld [vmem:[%s4953_s4 + $0x80c] ss:$44 sps:$4 sm:$0xff]   ;;  %v4202_v58 = vld [vmem:[%s4953_s4 + $0x808] ss:$44 sps:$4 sm:$0xff]  }
 0x19d   : > { %2959 = vmatpush1.bf16.msra.mxu0 %v4122_v59  ;;  %3729 = vmatpush3.bf16.msra.mxu1 %v4126_v61  ;;  %v4207_v59 = vld [vmem:[%s4953_s4 + $0x864] ss:$44 sps:$4 sm:$0xff]   ;;  %v4205_v61 = vld [vmem:[%s4953_s4 + $0x860] ss:$44 sps:$4 sm:$0xff]  }
 0x19e   : > { %2960 = vmatprep.subr.bf16.mxu0 %v4129_v7  ;;  %3730 = vmatprep.subr.bf16.mxu1 %v4130_v62  ;;  %v4210_v7 = vld [vmem:[%s4953_s4 + $0x8bc] ss:$44 sps:$4 sm:$0xff]   ;;  %v4208_v62 = vld [vmem:[%s4953_s4 + $0x8b8] ss:$44 sps:$4 sm:$0xff]  }
 0x1a1   : > { %2961 = vmatpush1.bf16.msra.mxu0 %v4127_v63  ;;  %3731 = vmatpush3.bf16.msra.mxu1 %v4131_v0  ;;  %v3118_v63 = vpop.permute.xlu0 %3117  ;;  %v3122_v0 = vsub.s32 0, %v4951_v60 }
 0x1a2   : > { %2962 = vmatprep.subr.bf16.mxu0 %v4134_v1  ;;  %3732 = vmatprep.subr.bf16.mxu1 %v4135_v4 }
 0x1a3   : > { %v5305_v4 = vrot.slane %v3118_v63, %v3122_v0 }
 0x1a5   : > { %2963 = vmatpush1.bf16.msra.mxu0 %v4132_v5  ;;  %3733 = vmatpush3.bf16.msra.mxu1 %v4136_v6  ;;  %v3137_v1 = vpop.permute.xlu0 %3136 }
 0x1a6   : > { %2964 = vmatprep.subr.bf16.mxu0 %v4139_v8  ;;  %3734 = vmatprep.subr.bf16.mxu1 %v4140_v9  ;;  %v5308_v5 = vrot.slane %v3137_v1, %v3122_v0 }
 0x1a9   : > { %2965 = vmatpush1.bf16.msra.mxu0 %v4137_v10  ;;  %3735 = vmatpush3.bf16.msra.mxu1 %v4141_v12 }
 0x1aa   : > { %2966 = vmatprep.subr.bf16.mxu0 %v4144_v13  ;;  %3736 = vmatprep.subr.bf16.mxu1 %v4145_v56 }
 0x1ad   : > { %2967 = vmatpush1.bf16.msra.mxu0 %v4142_v15  ;;  %3737 = vmatpush3.bf16.msra.mxu1 %v4146_v16 }
 0x1ae   : > { %2968 = vmatprep.subr.bf16.mxu0 %v4149_v17  ;;  %3074 = vmatprep.subr.bf16.mxu1 %v4258_v2 }
 0x1b0   : > { %3067 = vmatmul.mubr.bf16.vlgmr.msra.gmra.mrb[8].mxu1 %v5036_v11 }
 0x1b1   : > { %2969 = vmatpush1.bf16.msra.mxu0 %v4147_v18  ;;  %3075 = vmatpush1.bf16.msra.mxu1 %v4150_v19 }
 0x1b2   : > { %2970 = vmatprep.subr.bf16.mxu0 %v4153_v20  ;;  %3076 = vmatprep.subr.bf16.mxu1 %v4258_v2 }
 0x1b3   : > { %3718 = vmatprep.mubr.msk.bf16.mxu1 %vm2620_vm0, %v5042_v14 }
 0x1b5   : > { %2971 = vmatpush1.bf16.msra.mxu0 %v4151_v21  ;;  %3077 = vmatpush1.bf16.msra.mxu1 %v4154_v22 }
 0x1b6   : > { %2972 = vmatprep.subr.bf16.mxu0 %v4157_v23  ;;  %3078 = vmatprep.subr.bf16.mxu1 %v4258_v2 }
 0x1b9   : > { %2973 = vmatpush1.bf16.msra.mxu0 %v4155_v24  ;;  %3079 = vmatpush1.bf16.msra.mxu1 %v4158_v25 }
 0x1ba   : > { %2974 = vmatprep.subr.bf16.mxu0 %v4161_v26  ;;  %3080 = vmatprep.subr.bf16.mxu1 %v4258_v2 }
 0x1bd   : > { %2975 = vmatpush1.bf16.msra.mxu0 %v4159_v27  ;;  %3081 = vmatpush1.bf16.msra.mxu1 %v4162_v28 }
 0x1be   : > { %2976 = vmatprep.subr.bf16.mxu0 %v4165_v29  ;;  %3082 = vmatprep.subr.bf16.mxu1 %v4258_v2 }
 0x1c1   : > { %2977 = vmatpush1.bf16.msra.mxu0 %v4163_v30  ;;  %3083 = vmatpush1.bf16.msra.mxu1 %v4166_v31 }
 0x1c2   : > { %2978 = vmatprep.subr.bf16.mxu0 %v4169_v32  ;;  %3084 = vmatprep.subr.bf16.mxu1 %v4258_v2 }
 0x1c5   : > { %2979 = vmatpush1.bf16.msra.mxu0 %v4167_v33  ;;  %3085 = vmatpush1.bf16.msra.mxu1 %v4170_v34 }
 0x1c6   : > { %2980 = vmatprep.subr.bf16.mxu0 %v4173_v35  ;;  %3086 = vmatprep.subr.bf16.mxu1 %v4258_v2 }
 0x1c9   : > { %2981 = vmatpush1.bf16.msra.mxu0 %v4171_v36  ;;  %3087 = vmatpush1.bf16.msra.mxu1 %v4174_v37 }
 0x1ca   : > { %2982 = vmatprep.subr.bf16.mxu0 %v4177_v38  ;;  %3088 = vmatprep.subr.bf16.mxu1 %v4258_v2 }
 0x1cd   : > { %2983 = vmatpush1.bf16.msra.mxu0 %v4175_v39  ;;  %3089 = vmatpush1.bf16.msra.mxu1 %v4178_v40 }
 0x1ce   : > { %2993 = vmatprep.subr.bf16.mxu0 %v4181_v41  ;;  %3090 = vmatprep.subr.bf16.mxu1 %v4258_v2 }
 0x1d0   : > { %2985 = vmatmul.mubr.bf16.vlgmr.msra.gmra.mrb[8].mxu0 %v5036_v11  ;;  %v4187_v11 = vld [vmem:[%s4953_s4 + $0x650] ss:$44 sps:$4 sm:$0xff]  }
 0x1d1   : > { %2994 = vmatpush1.bf16.msra.mxu0 %v4179_v42  ;;  %3091 = vmatpush1.bf16.msra.mxu1 %v4182_v43 }
 0x1d2   : > { %2995 = vmatprep.subr.bf16.mxu0 %v4185_v44  ;;  %3092 = vmatprep.subr.bf16.mxu1 %v4258_v2  ;;  %v4195_v2 = vld [vmem:[%s4953_s4 + $0x704] ss:$44 sps:$4 sm:$0xff]  }
 0x1d3   : > { %3717 = vmatprep.mubr.msk.bf16.mxu0 %vm2620_vm0, %v5042_v14  ;;  %v4198_v14 = vld [vmem:[%s4953_s4 + $0x75c] ss:$44 sps:$4 sm:$0xff]  }
 0x1d5   : > { %2996 = vmatpush1.bf16.msra.mxu0 %v4183_v45  ;;  %3093 = vmatpush1.bf16.msra.mxu1 %v4186_v46 }
 0x1d6   : > { %2997 = vmatprep.subr.bf16.mxu0 %v4189_v47 }
 0x1d8   : > { %3107 = vmatmul.mubr.bf16.vlgmr.msra.gmra.mrb[12].mxu1 %v5088_v50 }
 0x1d9   : > { %2998 = vmatpush1.bf16.msra.mxu0 %v4187_v11 }
 0x1da   : > { %2999 = vmatprep.subr.bf16.mxu0 %v4192_v48 }
 0x1dd   : > { %3000 = vmatpush1.bf16.msra.mxu0 %v4190_v49 }
 0x1de   : > { %3001 = vmatprep.subr.bf16.mxu0 %v4195_v2 }
 0x1e1   : > { %3002 = vmatpush1.bf16.msra.mxu0 %v4193_v51 }
 0x1e2   : > { %3003 = vmatprep.subr.bf16.mxu0 %v4198_v14 }
 0x1e5   : > { %3004 = vmatpush1.bf16.msra.mxu0 %v4196_v52 }
 0x1e6   : > { %3005 = vmatprep.subr.bf16.mxu0 %v4201_v53 }
 0x1e9   : > { %3006 = vmatpush1.bf16.msra.mxu0 %v4199_v54 }
 0x1ea   : > { %3007 = vmatprep.subr.bf16.mxu0 %v4204_v55 }
 0x1ed   : > { %3008 = vmatpush1.bf16.msra.mxu0 %v4202_v58 }
 0x1ee   : > { %3009 = vmatprep.subr.bf16.mxu0 %v4207_v59 }
 0x1f1   : > { %3010 = vmatpush1.bf16.msra.mxu0 %v4205_v61 }
 0x1f2   : > { %3011 = vmatprep.subr.bf16.mxu0 %v4210_v7 }
 0x1f5   : > { %3012 = vmatpush1.bf16.msra.mxu0 %v4208_v62 }
 0x1f8   : > { %3026 = vmatmul.mubr.bf16.vlgmr.msra.gmra.mrb[8].mxu0 %v5088_v50 }
 0x1fb   : > { %v2699_v6 = vpop.f32.mrb[0].mxu0  ;;  %v2781_v8 = vpop.f32.mrb[0].mxu1 }
 0x1fc   : > { %v3124_v9 = vmul.f32 %v5305_v4, %v2699_v6  ;;  %v3126_v10 = vmul.f32 %v5305_v4, %v2781_v8  ;;  %v2701_v12 = vpop.f32.mrb[1].mxu0  ;;  %v2783_v13 = vpop.f32.mrb[1].mxu1 }
 0x1fd   : > { %v3125_v56 = vmul.f32 %v5305_v4, %v2701_v12  ;;  %v3127_v60 = vmul.f32 %v5305_v4, %v2783_v13  ;;  %v2703_v15 = vpop.f32.mrb[2].mxu0  ;;  %v2785_v16 = vpop.f32.mrb[2].mxu1 }
 0x1fe   : > { %v3143_v17 = vadd.f32 %v5308_v5, %v3124_v9  ;;  %v3145_v50 = vadd.f32 %v5308_v5, %v3126_v10  ;;  %v2704_v18 = vpop.f32.mrb[3].mxu0  ;;  %v2786_v19 = vpop.f32.mrb[3].mxu1 }
 0x1ff   : > { %v3144_v20 = vadd.f32 %v5308_v5, %v3125_v56  ;;  %v3146_v21 = vadd.f32 %v5308_v5, %v3127_v60 }
 0x200   : > { %4211 = vtanh.f32 %v3143_v17 }
 0x201   : > { %4213 = vtanh.f32 %v3145_v50 }
 0x202   : > { %4215 = vtanh.f32 %v3144_v20 }
 0x203   : > { %4217 = vtanh.f32 %v3146_v21 }
 0x20a   : > { %v4212_v22 = vpop.eup %4211 }
 0x20b   : > { %v4214_v23 = vpop.eup %4213 }
 0x20c   : > { %v4216_v24 = vpop.eup %4215 }
 0x20d   : > { %v4218_v25 = vpop.eup %4217  ;;  %v3176_v26 = vcombine.low %v4212_v22, %v4216_v24 }
 0x20e   : > { %v3177_v27 = vcombine.low %v4214_v23, %v4218_v25 }
 0x20f   : > { %v3186_v28 = vrot.slane %v3176_v26, %v4962_v3 }
 0x210   : > { %v3193_v29 = vrot.slane %v3177_v27, %v4962_v3 }
 0x212   : > { %v3208_v30 = vcombine.low %v3186_v28, %v3193_v29 }
 0x214   : > { %v3216_v54 = vrot.slane %v3208_v30, %v4962_v3 }
 0x263   : > { %v2863_v31 = vpop.f32.mrb[4].mxu0  ;;  %v2945_v32 = vpop.f32.mrb[4].mxu1 }
 0x264   : > { %v3128_v33 = vmul.f32 %v5305_v4, %v2863_v31  ;;  %v3130_v34 = vmul.f32 %v5305_v4, %v2945_v32  ;;  %v2865_v35 = vpop.f32.mrb[5].mxu0  ;;  %v2947_v36 = vpop.f32.mrb[5].mxu1 }
 0x265   : > { %v3129_v37 = vmul.f32 %v5305_v4, %v2865_v35  ;;  %v3131_v38 = vmul.f32 %v5305_v4, %v2947_v36  ;;  %v2867_v39 = vpop.f32.mrb[6].mxu0  ;;  %v2949_v40 = vpop.f32.mrb[6].mxu1 }
 0x266   : > { %v3147_v41 = vadd.f32 %v5308_v5, %v3128_v33  ;;  %v3149_v42 = vadd.f32 %v5308_v5, %v3130_v34  ;;  %v2868_v43 = vpop.f32.mrb[7].mxu0  ;;  %v2950_v44 = vpop.f32.mrb[7].mxu1 }
 0x267   : > { %v3148_v45 = vadd.f32 %v5308_v5, %v3129_v37  ;;  %v3150_v46 = vadd.f32 %v5308_v5, %v3131_v38 }
 0x268   : > { %4219 = vtanh.f32 %v3147_v41 }
 0x269   : > { %4221 = vtanh.f32 %v3149_v42 }
 0x26a   : > { %4223 = vtanh.f32 %v3148_v45 }
 0x26b   : > { %4225 = vtanh.f32 %v3150_v46 }
 0x272   : > { %v4220_v47 = vpop.eup %4219 }
 0x273   : > { %v4222_v11 = vpop.eup %4221 }
 0x274   : > { %v4224_v48 = vpop.eup %4223 }
 0x275   : > { %v4226_v49 = vpop.eup %4225  ;;  %v3178_v2 = vcombine.low %v4220_v47, %v4224_v48 }
 0x276   : > { %v3179_v51 = vcombine.low %v4222_v11, %v4226_v49 }
 0x277   : > { %v3200_v14 = vrot.slane %v3178_v2, %v4962_v3 }
 0x278   : > { %v3207_v52 = vrot.slane %v3179_v51, %v4962_v3 }
 0x27a   : > { %v3209_v53 = vcombine.low %v3200_v14, %v3207_v52 }
 0x27c   : > { %v3223_v55 = vrot.slane %v3209_v53, %v4962_v3 }
 0x27e   : > { %v3224_v58 = vcombine.low %v3216_v54, %v3223_v55 }
 0x280   : > { %3250 = vst [vmem:[%s5337_s10] sm:$0xff] %v3224_v58 }
 0x283   : > { %v3738_v59 = vpop.f32.mrb[8].mxu1 }
 0x284   : > { %v3739_v61 = vpop.f32.mrb[9].mxu1 }
 0x285   : > { %v3740_v7 = vadd.f32 %v3739_v61, %v3738_v59  ;;  %v3741_v62 = vpop.f32.mrb[10].mxu1 }
 0x286   : > { %v3742_v63 = vpop.f32.mrb[11].mxu1 }
 0x2ab   : > { %v3108_v0 = vpop.f32.mrb[12].mxu1 }
 0x2ac   : > { %v3109_v1 = vadd.f32 %v3740_v7, %v3108_v0  ;;  %v3110_v6 = vpop.f32.mrb[13].mxu1 }
 0x2ad   : > { %v3111_v8 = vpop.f32.mrb[14].mxu1 }
 0x2ae   : > { %v3112_v9 = vpop.f32.mrb[15].mxu1  ;;  %v3134_v10 = vmul.f32 %v5305_v4, %v3109_v1 }
 0x2b0   : > { %v3153_v12 = vadd.f32 %v5308_v5, %v3134_v10 }
 0x2b2   : > { %4227 = vtanh.f32 %v3153_v12 }
 0x2bc   : > { %v4228_v19 = vpop.eup %4227 }
 0x2bd   : > { %v3239_v23 = vrot.slane %v4228_v19, %v4962_v3 }
 0x2cb   : > { %v3027_v13 = vpop.f32.mrb[8].mxu0 }
 0x2cc   : > { %v3132_v56 = vmul.f32 %v5305_v4, %v3027_v13  ;;  %v3029_v60 = vpop.f32.mrb[9].mxu0 }
 0x2cd   : > { %v3133_v15 = vmul.f32 %v5305_v4, %v3029_v60  ;;  %v3031_v16 = vpop.f32.mrb[10].mxu0 }
 0x2ce   : > { %v3151_v17 = vadd.f32 %v5308_v5, %v3132_v56  ;;  %v3032_v50 = vpop.f32.mrb[11].mxu0 }
 0x2cf   : > { %v3152_v18 = vadd.f32 %v5308_v5, %v3133_v15 }
 0x2d0   : > { %4229 = vtanh.f32 %v3151_v17 }
 0x2d1   : > { %4231 = vtanh.f32 %v3152_v18 }
 0x2da   : > { %v4230_v20 = vpop.eup %4229 }
 0x2db   : > { %v4232_v21 = vpop.eup %4231 }
 0x2dc   : > { %v3225_v22 = vcombine.low %v4230_v20, %v4232_v21 }
 0x2de   : > { %v3232_v24 = vrot.slane %v3225_v22, %v4962_v3 }
 0x2e0   : > { %v3240_v25 = vcombine.low %v3232_v24, %v3239_v23 }
 0x2e2   : > { %v3247_v4 = vrot.slane %v3240_v25, %v4962_v3 }
 0x2e4   : > { %3255 = vst.msk [vmem:[%s5337_s10 + $0x8] sm:$0x7] %vm3253_vm1, %v3247_v4 }
 0x2e5 PF: > { %p10_p9 = scmp.ge.s32.totalorder %s4297_s16, 4   ;;  %s5365_s12 = smov %s4251_s13 }
 0x2e6   : > { %s5366_s13 = smov %s4306_s19  ;;  %s5367_s14 = smov %s4297_s16 }
 0x2e7   :  { %12 = sbr.rel (!%p10_p9) target bundleno = 2 (0x2), region = 99 }

</bundles_post_ra>
